<compile_context>
chip_gen: v6e
topology: v6e:2x2x1
jax: 0.10.0
libtpu: 0.0.40
codegen_flags: <defaults>
</compile_context>

<pallas_src>
import functools

import jax
import jax.numpy as jnp
from jax.experimental import pallas as pl
from jax.experimental.pallas import tpu as pltpu

LATENT = 32
MAX_TK = 2048          # largest single-shot K tile (bf16 A tile 512*2048*2 = 2 MiB)
MAX_TM = 512
MAX_TN = 512


def _round_up(x, m):
    return (x + m - 1) // m * m


def _apply_act(y, activation):
    if activation == "relu":
        return jnp.maximum(y, 0.0)
    if activation == "sigmoid":
        return jax.nn.sigmoid(y)
    return y


# ----------------------------------------------------------------------------
# Pallas kernels:  act(A @ B + bias)
# ----------------------------------------------------------------------------
def _mm_single_kernel(a_ref, b_ref, bias_ref, o_ref, *, activation):
    # Whole K in one step: no accumulator scratch, bias/activation fused.
    y = jnp.dot(a_ref[...], b_ref[...], preferred_element_type=jnp.float32)
    o_ref[...] = _apply_act(y + bias_ref[...], activation).astype(o_ref.dtype)


def _mm_acc_kernel(a_ref, b_ref, bias_ref, o_ref, acc_ref, *, activation):
    # Fallback for very large K (not hit by this model).
    k = pl.program_id(2)

    @pl.when(k == 0)
    def _():
        acc_ref[...] = jnp.zeros_like(acc_ref)

    acc_ref[...] += jnp.dot(a_ref[...], b_ref[...],
                            preferred_element_type=jnp.float32)

    @pl.when(k == pl.num_programs(2) - 1)
    def _():
        o_ref[...] = _apply_act(acc_ref[...] + bias_ref[...],
                                activation).astype(o_ref.dtype)


# ----------------------------------------------------------------------------
# Weight preparation (done ONCE at init: transpose, pad, bf16 cast)
# ----------------------------------------------------------------------------
def prep_weight(w_mat, b):
    """w_mat: (K, N) f32 in matmul layout, b: (N,).  Returns padded bf16 weight."""
    K, N = w_mat.shape
    Kp = _round_up(K, 128)
    tk = Kp if Kp <= MAX_TK else MAX_TK
    Kp = _round_up(K, tk)
    tn = min(MAX_TN, _round_up(N, 128))
    Np = _round_up(N, tn)
    wp = jnp.zeros((Kp, Np), jnp.bfloat16).at[:K, :N].set(
        w_mat.astype(jnp.bfloat16))
    bp = jnp.zeros((1, Np), jnp.float32).at[0, :N].set(b.astype(jnp.float32))
    return {"w": wp, "b": bp, "K": K, "N": N, "tk": tk, "tn": tn}


def matmul_bias_act(a, layer, activation="none"):
    """act(a @ W + b) with prepared weights.  a: (M, K) -> (M, N) f32."""
    M, K = a.shape
    assert K == layer["K"]
    wp, bp, tk, tn = layer["w"], layer["b"], layer["tk"], layer["tn"]
    Kp, Np = wp.shape
    tm = min(MAX_TM, _round_up(M, 8))
    Mp = _round_up(M, tm)

    a = a.astype(jnp.bfloat16)
    if Mp > M or Kp > K:
        a = jnp.pad(a, ((0, Mp - M), (0, Kp - K)))

    if tk == Kp:
        out = pl.pallas_call(
            functools.partial(_mm_single_kernel, activation=activation),
            out_shape=jax.ShapeDtypeStruct((Mp, Np), jnp.float32),
            grid_spec=pltpu.PrefetchScalarGridSpec(
                num_scalar_prefetch=0,
                grid=(Mp // tm, Np // tn),
                in_specs=[
                    pl.BlockSpec((tm, Kp), lambda i, j: (i, 0)),
                    pl.BlockSpec((Kp, tn), lambda i, j: (0, j)),
                    pl.BlockSpec((1, tn), lambda i, j: (0, j)),
                ],
                out_specs=pl.BlockSpec((tm, tn), lambda i, j: (i, j)),
            ),
            compiler_params=pltpu.CompilerParams(
                dimension_semantics=("parallel", "parallel")),
        )(a, wp, bp)
    else:
        out = pl.pallas_call(
            functools.partial(_mm_acc_kernel, activation=activation),
            out_shape=jax.ShapeDtypeStruct((Mp, Np), jnp.float32),
            grid_spec=pltpu.PrefetchScalarGridSpec(
                num_scalar_prefetch=0,
                grid=(Mp // tm, Np // tn, Kp // tk),
                in_specs=[
                    pl.BlockSpec((tm, tk), lambda i, j, k: (i, k)),
                    pl.BlockSpec((tk, tn), lambda i, j, k: (k, j)),
                    pl.BlockSpec((1, tn), lambda i, j, k: (0, j)),
                ],
                out_specs=pl.BlockSpec((tm, tn), lambda i, j, k: (i, j)),
                scratch_shapes=[pltpu.VMEM((tm, tn), jnp.float32)],
            ),
            compiler_params=pltpu.CompilerParams(
                dimension_semantics=("parallel", "parallel", "arbitrary")),
        )(a, wp, bp)
    return out[:M, :layer["N"]]


# ----------------------------------------------------------------------------
# Plain-JAX glue: NHWC im2col (encoder) and col2im scatter-add (decoder)
# ----------------------------------------------------------------------------
def _im2col_nhwc(x, kh, kw, stride):
    # x: (N, H, W, C) -> (N*OH*OW, kh*kw*C)   (patch order = (ky, kx, c))
    N, H, W, C = x.shape
    OH = (H - kh) // stride + 1
    OW = (W - kw) // stride + 1
    cols = []
    for i in range(kh):
        for j in range(kw):
            cols.append(x[:, i:i + stride * OH:stride,
                          j:j + stride * OW:stride, :])
    p = jnp.stack(cols, axis=3)                       # (N, OH, OW, kh*kw, C)
    return p.reshape(N * OH * OW, kh * kw * C), OH, OW


def conv2d_nhwc(x, layer, stride, activation):
    N = x.shape[0]
    patches, OH, OW = _im2col_nhwc(x, layer["kh"], layer["kw"], stride)
    out = matmul_bias_act(patches, layer, activation)
    return out.reshape(N, OH, OW, layer["N"])


def conv_transpose2d_nhwc(x, layer, stride, activation):
    # Dense matmul + col2im overlap-add (no zero-dilated im2col).
    N, H, W, IC = x.shape
    kh, kw, oc = layer["kh"], layer["kw"], layer["oc"]
    y = matmul_bias_act(x.reshape(N * H * W, IC), layer, "none")
    y = y.reshape(N, H, W, kh, kw, oc)
    OH = (H - 1) * stride + kh
    OW = (W - 1) * stride + kw
    out = jnp.zeros((N, OH, OW, oc), jnp.float32)
    for ky in range(kh):                     # tiny tensors; static strided adds
        for kx in range(kw):
            out = out.at[:, ky:ky + stride * H:stride,
                         kx:kx + stride * W:stride, :].add(y[:, :, :, ky, kx, :])
    return _apply_act(out + layer["bias"], activation)


# ----------------------------------------------------------------------------
# Parameters (torch layouts) + one-time preparation into matmul layout
# ----------------------------------------------------------------------------
def init_vae_params(key, latent_dim=LATENT):
    keys = iter(jax.random.split(key, 40))

    def conv_p(ic, oc, k):
        w = jax.random.normal(next(keys), (oc, ic, k, k), jnp.float32)
        w = w * (1.0 / (ic * k * k) ** 0.5)
        b = jax.random.normal(next(keys), (oc,), jnp.float32) * 0.01
        return w, b

    def deconv_p(ic, oc, k):
        w = jax.random.normal(next(keys), (ic, oc, k, k), jnp.float32)
        w = w * (1.0 / (ic * k * k) ** 0.5)
        b = jax.random.normal(next(keys), (oc,), jnp.float32) * 0.01
        return w, b

    def linear_p(din, dout):
        w = jax.random.normal(next(keys), (dout, din), jnp.float32)
        w = w * (1.0 / din ** 0.5)
        b = jax.random.normal(next(keys), (dout,), jnp.float32) * 0.01
        return w, b

    return {
        "conv1": conv_p(3, 32, 4),
        "conv2": conv_p(32, 64, 4),
        "conv3": conv_p(64, 128, 4),
        "conv4": conv_p(128, 256, 4),
        "mu": linear_p(1024, latent_dim),
        "logvar": linear_p(1024, latent_dim),
        "z": linear_p(latent_dim, 1024),
        "deconv1": deconv_p(1024, 128, 5),
        "deconv2": deconv_p(128, 64, 5),
        "deconv3": deconv_p(64, 32, 6),
        "deconv4": deconv_p(32, 3, 6),
    }


def prep_conv(w, b):
    OC, IC, KH, KW = w.shape
    w_mat = jnp.transpose(w, (2, 3, 1, 0)).reshape(KH * KW * IC, OC)
    layer = prep_weight(w_mat, b)
    layer.update(kh=KH, kw=KW)
    return layer


def prep_deconv(w, b):
    IC, OC, KH, KW = w.shape
    w_mat = jnp.transpose(w, (0, 2, 3, 1)).reshape(IC, KH * KW * OC)
    layer = prep_weight(w_mat, jnp.zeros((KH * KW * OC,), jnp.float32))
    layer.update(kh=KH, kw=KW, oc=OC, bias=b.astype(jnp.float32))
    return layer


def prepare_vae_params(params, latent_dim=LATENT):
    # All weight reshapes / pads / bf16 casts happen ONCE here (not per forward).
    w_mu, b_mu = params["mu"]
    w_lv, b_lv = params["logvar"]

    def reorder(w):   # torch NCHW flatten (c,h,w) -> our NHWC flatten (h,w,c)
        return w.reshape(-1, 256, 2, 2).transpose(0, 2, 3, 1).reshape(w.shape[0], 1024)

    w_ml = jnp.concatenate([reorder(w_mu), reorder(w_lv)], axis=0)   # (2*lat, 1024)
    b_ml = jnp.concatenate([b_mu, b_lv])
    return {
        "conv1": prep_conv(*params["conv1"]),
        "conv2": prep_conv(*params["conv2"]),
        "conv3": prep_conv(*params["conv3"]),
        "conv4": prep_conv(*params["conv4"]),
        "mulogvar": prep_weight(w_ml.T, b_ml),           # fused mu | logvar
        "z": prep_weight(params["z"][0].T, params["z"][1]),
        "deconv1": prep_deconv(*params["deconv1"]),
        "deconv2": prep_deconv(*params["deconv2"]),
        "deconv3": prep_deconv(*params["deconv3"]),
        "deconv4": prep_deconv(*params["deconv4"]),
        "latent": latent_dim,
    }


# ----------------------------------------------------------------------------
# Forward pass
# ----------------------------------------------------------------------------
def vae_forward(prepared, x, training=False, noise_key=None):
    lat = prepared["latent"]
    n = x.shape[0]

    # ---- encode (NHWC end-to-end) ----
    h = jnp.transpose(x, (0, 2, 3, 1))                    # NCHW -> NHWC, once
    h = conv2d_nhwc(h, prepared["conv1"], 2, "relu")      # (N,31,31,32)
    h = conv2d_nhwc(h, prepared["conv2"], 2, "relu")      # (N,14,14,64)
    h = conv2d_nhwc(h, prepared["conv3"], 2, "relu")      # (N,6,6,128)
    h = conv2d_nhwc(h, prepared["conv4"], 2, "relu")      # (N,2,2,256)
    h = h.reshape(n, -1)                                  # (N,1024); weights reordered to match

    ml = matmul_bias_act(h, prepared["mulogvar"], "none")  # fused (N, 2*lat)
    mu, logvar = ml[:, :lat], ml[:, lat:]

    # ---- sample ----
    if training:
        # TODO(synk): PyTorch's in-place .normal_() RNG stream cannot be
        # reproduced bit-exactly; identical math (std = exp(logvar); z = mu + std*eps).
        std = jnp.exp(logvar)
        eps = jax.random.normal(noise_key, std.shape, std.dtype)
        z = mu + std * eps
    else:
        z = mu

    # ---- decode ----
    zz = matmul_bias_act(z, prepared["z"], "none")        # (N,1024), torch channel order
    d = zz.reshape(n, 1, 1, 1024)
    d = conv_transpose2d_nhwc(d, prepared["deconv1"], 2, "relu")     # (N,5,5,128)
    d = conv_transpose2d_nhwc(d, prepared["deconv2"], 2, "relu")     # (N,13,13,64)
    d = conv_transpose2d_nhwc(d, prepared["deconv3"], 2, "relu")     # (N,30,30,32)
    d = conv_transpose2d_nhwc(d, prepared["deconv4"], 2, "sigmoid")  # (N,64,64,3)
    return jnp.transpose(d, (0, 3, 1, 2)), mu, logvar     # back to NCHW


if __name__ == "__main__":
    key = jax.random.PRNGKey(0)
    pkey, xkey = jax.random.split(key)
    params = init_vae_params(pkey)
    prepared = prepare_vae_params(params)

    # Architecture constrains input to 3x64x64 (conv-stack flatten must be 1024).
    x = jax.random.uniform(xkey, (2, 3, 64, 64), jnp.float32)

    fwd = jax.jit(lambda xx: vae_forward(prepared, xx))   # prepared is closed over (static metadata)
    recon, mu, logvar = fwd(x)
    jax.block_until_ready((recon, mu, logvar))

    assert recon.shape == (2, 3, 64, 64)
    assert mu.shape == (2, LATENT) and logvar.shape == (2, LATENT)
    print("KERNEL_OK")
</pallas_src>

<mosaic_0001>
module attributes {stable_mosaic.version = 11 : i64} {
  func.func @_mm_single_kernel(%arg0: i32, %arg1: i32, %arg2: memref<512x128xbf16, #tpu.memory_space<vmem>>, %arg3: memref<128x128xbf16, #tpu.memory_space<vmem>>, %arg4: memref<1x128xf32, #tpu.memory_space<vmem>>, %arg5: memref<512x128xf32, #tpu.memory_space<vmem>>) attributes {dimension_semantics = [#tpu.dimension_semantics<parallel>, #tpu.dimension_semantics<parallel>], iteration_bounds = array<i64: 4, 1>, scalar_prefetch = 0 : i64, scratch_operands = 0 : i64, tpu.core_type = #tpu.core_type<tc>, window_params = [{transform_indices = @transform_0, window_bounds = array<i64: 512, 128>}, {transform_indices = @transform_1, window_bounds = array<i64: 128, 128>}, {transform_indices = @transform_2, window_bounds = array<i64: 1, 128>}, {transform_indices = @transform_3, window_bounds = array<i64: 512, 128>}]} {
    %c0 = arith.constant 0 : index
    %c0_0 = arith.constant 0 : index
    %0 = vector.load %arg2[%c0, %c0_0] : memref<512x128xbf16, #tpu.memory_space<vmem>>, vector<512x128xbf16>
    %c0_1 = arith.constant 0 : index
    %c0_2 = arith.constant 0 : index
    %1 = vector.load %arg3[%c0_1, %c0_2] : memref<128x128xbf16, #tpu.memory_space<vmem>>, vector<128x128xbf16>
    %cst = arith.constant dense<0.000000e+00> : vector<512x128xf32>
    %2 = tpu.matmul %0, %1, %cst {dimension_numbers = #tpu.dot_dimension_numbers<[1], [0], [0], [1], [0, 0, 1, 1], [], []>} : vector<512x128xbf16>, vector<128x128xbf16>, vector<512x128xf32> -> vector<512x128xf32>
    %c0_3 = arith.constant 0 : index
    %c0_4 = arith.constant 0 : index
    %3 = vector.load %arg4[%c0_3, %c0_4] : memref<1x128xf32, #tpu.memory_space<vmem>>, vector<1x128xf32>
    %4 = vector.broadcast %3 : vector<1x128xf32> to vector<512x128xf32>
    %5 = arith.addf %2, %4 : vector<512x128xf32>
    %cst_5 = arith.constant 0.000000e+00 : f32
    %6 = vector.broadcast %cst_5 : f32 to vector<512x128xf32>
    %7 = arith.maximumf %5, %6 : vector<512x128xf32>
    %c0_6 = arith.constant 0 : index
    %c0_7 = arith.constant 0 : index
    %8 = vector.load %arg5[%c0_6, %c0_7] : memref<512x128xf32, #tpu.memory_space<vmem>>, vector<512x128xf32>
    tpu.vector_store %arg5[%c0_6, %c0_7], %7 {strides = array<i32>} : memref<512x128xf32, #tpu.memory_space<vmem>>, vector<512x128xf32>,
    return
  }
  func.func @transform_0(%arg0: i32, %arg1: i32) -> (i32, i32) {
    %c0_i32 = arith.constant 0 : i32
    %c0_i32_0 = arith.constant 0 : i32
    return %arg0, %c0_i32 : i32, i32
  }
  func.func @transform_1(%arg0: i32, %arg1: i32) -> (i32, i32) {
    %c0_i32 = arith.constant 0 : i32
    %c0_i32_0 = arith.constant 0 : i32
    return %c0_i32, %arg1 : i32, i32
  }
  func.func @transform_2(%arg0: i32, %arg1: i32) -> (i32, i32) {
    %c0_i32 = arith.constant 0 : i32
    %c0_i32_0 = arith.constant 0 : i32
    return %c0_i32, %arg1 : i32, i32
  }
  func.func @transform_3(%arg0: i32, %arg1: i32) -> (i32, i32) {
    %c0_i32 = arith.constant 0 : i32
    return %arg0, %arg1 : i32, i32
  }
}

module attributes {stable_mosaic.version = 11 : i64} {
  func.func @_mm_single_kernel(%arg0: i32, %arg1: i32, %arg2: memref<392x512xbf16, #tpu.memory_space<vmem>>, %arg3: memref<512x128xbf16, #tpu.memory_space<vmem>>, %arg4: memref<1x128xf32, #tpu.memory_space<vmem>>, %arg5: memref<392x128xf32, #tpu.memory_space<vmem>>) attributes {dimension_semantics = [#tpu.dimension_semantics<parallel>, #tpu.dimension_semantics<parallel>], iteration_bounds = array<i64: 1, 1>, scalar_prefetch = 0 : i64, scratch_operands = 0 : i64, tpu.core_type = #tpu.core_type<tc>, window_params = [{transform_indices = @transform_0, window_bounds = array<i64: 392, 512>}, {transform_indices = @transform_1, window_bounds = array<i64: 512, 128>}, {transform_indices = @transform_2, window_bounds = array<i64: 1, 128>}, {transform_indices = @transform_3, window_bounds = array<i64: 392, 128>}]} {
    %c0 = arith.constant 0 : index
    %c0_0 = arith.constant 0 : index
    %0 = vector.load %arg2[%c0, %c0_0] : memref<392x512xbf16, #tpu.memory_space<vmem>>, vector<392x512xbf16>
    %c0_1 = arith.constant 0 : index
    %c0_2 = arith.constant 0 : index
    %1 = vector.load %arg3[%c0_1, %c0_2] : memref<512x128xbf16, #tpu.memory_space<vmem>>, vector<512x128xbf16>
    %cst = arith.constant dense<0.000000e+00> : vector<392x128xf32>
    %2 = tpu.matmul %0, %1, %cst {dimension_numbers = #tpu.dot_dimension_numbers<[1], [0], [0], [1], [0, 0, 1, 1], [], []>} : vector<392x512xbf16>, vector<512x128xbf16>, vector<392x128xf32> -> vector<392x128xf32>
    %c0_3 = arith.constant 0 : index
    %c0_4 = arith.constant 0 : index
    %3 = vector.load %arg4[%c0_3, %c0_4] : memref<1x128xf32, #tpu.memory_space<vmem>>, vector<1x128xf32>
    %4 = vector.broadcast %3 : vector<1x128xf32> to vector<392x128xf32>
    %5 = arith.addf %2, %4 : vector<392x128xf32>
    %cst_5 = arith.constant 0.000000e+00 : f32
    %6 = vector.broadcast %cst_5 : f32 to vector<392x128xf32>
    %7 = arith.maximumf %5, %6 : vector<392x128xf32>
    %c0_6 = arith.constant 0 : index
    %c0_7 = arith.constant 0 : index
    %8 = vector.load %arg5[%c0_6, %c0_7] : memref<392x128xf32, #tpu.memory_space<vmem>>, vector<392x128xf32>
    tpu.vector_store %arg5[%c0_6, %c0_7], %7 {strides = array<i32>} : memref<392x128xf32, #tpu.memory_space<vmem>>, vector<392x128xf32>,
    return
  }
  func.func @transform_0(%arg0: i32, %arg1: i32) -> (i32, i32) {
    %c0_i32 = arith.constant 0 : i32
    %c0_i32_0 = arith.constant 0 : i32
    return %arg0, %c0_i32 : i32, i32
  }
  func.func @transform_1(%arg0: i32, %arg1: i32) -> (i32, i32) {
    %c0_i32 = arith.constant 0 : i32
    %c0_i32_0 = arith.constant 0 : i32
    return %c0_i32, %arg1 : i32, i32
  }
  func.func @transform_2(%arg0: i32, %arg1: i32) -> (i32, i32) {
    %c0_i32 = arith.constant 0 : i32
    %c0_i32_0 = arith.constant 0 : i32
    return %c0_i32, %arg1 : i32, i32
  }
  func.func @transform_3(%arg0: i32, %arg1: i32) -> (i32, i32) {
    %c0_i32 = arith.constant 0 : i32
    return %arg0, %arg1 : i32, i32
  }
}

module attributes {stable_mosaic.version = 11 : i64} {
  func.func @_mm_single_kernel(%arg0: i32, %arg1: i32, %arg2: memref<72x1024xbf16, #tpu.memory_space<vmem>>, %arg3: memref<1024x128xbf16, #tpu.memory_space<vmem>>, %arg4: memref<1x128xf32, #tpu.memory_space<vmem>>, %arg5: memref<72x128xf32, #tpu.memory_space<vmem>>) attributes {dimension_semantics = [#tpu.dimension_semantics<parallel>, #tpu.dimension_semantics<parallel>], iteration_bounds = array<i64: 1, 1>, scalar_prefetch = 0 : i64, scratch_operands = 0 : i64, tpu.core_type = #tpu.core_type<tc>, window_params = [{transform_indices = @transform_0, window_bounds = array<i64: 72, 1024>}, {transform_indices = @transform_1, window_bounds = array<i64: 1024, 128>}, {transform_indices = @transform_2, window_bounds = array<i64: 1, 128>}, {transform_indices = @transform_3, window_bounds = array<i64: 72, 128>}]} {
    %c0 = arith.constant 0 : index
    %c0_0 = arith.constant 0 : index
    %0 = vector.load %arg2[%c0, %c0_0] : memref<72x1024xbf16, #tpu.memory_space<vmem>>, vector<72x1024xbf16>
    %c0_1 = arith.constant 0 : index
    %c0_2 = arith.constant 0 : index
    %1 = vector.load %arg3[%c0_1, %c0_2] : memref<1024x128xbf16, #tpu.memory_space<vmem>>, vector<1024x128xbf16>
    %cst = arith.constant dense<0.000000e+00> : vector<72x128xf32>
    %2 = tpu.matmul %0, %1, %cst {dimension_numbers = #tpu.dot_dimension_numbers<[1], [0], [0], [1], [0, 0, 1, 1], [], []>} : vector<72x1024xbf16>, vector<1024x128xbf16>, vector<72x128xf32> -> vector<72x128xf32>
    %c0_3 = arith.constant 0 : index
    %c0_4 = arith.constant 0 : index
    %3 = vector.load %arg4[%c0_3, %c0_4] : memref<1x128xf32, #tpu.memory_space<vmem>>, vector<1x128xf32>
    %4 = vector.broadcast %3 : vector<1x128xf32> to vector<72x128xf32>
    %5 = arith.addf %2, %4 : vector<72x128xf32>
    %cst_5 = arith.constant 0.000000e+00 : f32
    %6 = vector.broadcast %cst_5 : f32 to vector<72x128xf32>
    %7 = arith.maximumf %5, %6 : vector<72x128xf32>
    %c0_6 = arith.constant 0 : index
    %c0_7 = arith.constant 0 : index
    %8 = vector.load %arg5[%c0_6, %c0_7] : memref<72x128xf32, #tpu.memory_space<vmem>>, vector<72x128xf32>
    tpu.vector_store %arg5[%c0_6, %c0_7], %7 {strides = array<i32>} : memref<72x128xf32, #tpu.memory_space<vmem>>, vector<72x128xf32>,
    return
  }
  func.func @transform_0(%arg0: i32, %arg1: i32) -> (i32, i32) {
    %c0_i32 = arith.constant 0 : i32
    %c0_i32_0 = arith.constant 0 : i32
    return %arg0, %c0_i32 : i32, i32
  }
  func.func @transform_1(%arg0: i32, %arg1: i32) -> (i32, i32) {
    %c0_i32 = arith.constant 0 : i32
    %c0_i32_0 = arith.constant 0 : i32
    return %c0_i32, %arg1 : i32, i32
  }
  func.func @transform_2(%arg0: i32, %arg1: i32) -> (i32, i32) {
    %c0_i32 = arith.constant 0 : i32
    %c0_i32_0 = arith.constant 0 : i32
    return %c0_i32, %arg1 : i32, i32
  }
  func.func @transform_3(%arg0: i32, %arg1: i32) -> (i32, i32) {
    %c0_i32 = arith.constant 0 : i32
    return %arg0, %arg1 : i32, i32
  }
}

module attributes {stable_mosaic.version = 11 : i64} {
  func.func @_mm_single_kernel(%arg0: i32, %arg1: i32, %arg2: memref<8x2048xbf16, #tpu.memory_space<vmem>>, %arg3: memref<2048x256xbf16, #tpu.memory_space<vmem>>, %arg4: memref<1x256xf32, #tpu.memory_space<vmem>>, %arg5: memref<8x256xf32, #tpu.memory_space<vmem>>) attributes {dimension_semantics = [#tpu.dimension_semantics<parallel>, #tpu.dimension_semantics<parallel>], iteration_bounds = array<i64: 1, 1>, scalar_prefetch = 0 : i64, scratch_operands = 0 : i64, tpu.core_type = #tpu.core_type<tc>, window_params = [{transform_indices = @transform_0, window_bounds = array<i64: 8, 2048>}, {transform_indices = @transform_1, window_bounds = array<i64: 2048, 256>}, {transform_indices = @transform_2, window_bounds = array<i64: 1, 256>}, {transform_indices = @transform_3, window_bounds = array<i64: 8, 256>}]} {
    %c0 = arith.constant 0 : index
    %c0_0 = arith.constant 0 : index
    %0 = vector.load %arg2[%c0, %c0_0] : memref<8x2048xbf16, #tpu.memory_space<vmem>>, vector<8x2048xbf16>
    %c0_1 = arith.constant 0 : index
    %c0_2 = arith.constant 0 : index
    %1 = vector.load %arg3[%c0_1, %c0_2] : memref<2048x256xbf16, #tpu.memory_space<vmem>>, vector<2048x256xbf16>
    %cst = arith.constant dense<0.000000e+00> : vector<8x256xf32>
    %2 = tpu.matmul %0, %1, %cst {dimension_numbers = #tpu.dot_dimension_numbers<[1], [0], [0], [1], [0, 0, 1, 1], [], []>} : vector<8x2048xbf16>, vector<2048x256xbf16>, vector<8x256xf32> -> vector<8x256xf32>
    %c0_3 = arith.constant 0 : index
    %c0_4 = arith.constant 0 : index
    %3 = vector.load %arg4[%c0_3, %c0_4] : memref<1x256xf32, #tpu.memory_space<vmem>>, vector<1x256xf32>
    %4 = vector.broadcast %3 : vector<1x256xf32> to vector<8x256xf32>
    %5 = arith.addf %2, %4 : vector<8x256xf32>
    %cst_5 = arith.constant 0.000000e+00 : f32
    %6 = vector.broadcast %cst_5 : f32 to vector<8x256xf32>
    %7 = arith.maximumf %5, %6 : vector<8x256xf32>
    %c0_6 = arith.constant 0 : index
    %c0_7 = arith.constant 0 : index
    %8 = vector.load %arg5[%c0_6, %c0_7] : memref<8x256xf32, #tpu.memory_space<vmem>>, vector<8x256xf32>
    tpu.vector_store %arg5[%c0_6, %c0_7], %7 {strides = array<i32>} : memref<8x256xf32, #tpu.memory_space<vmem>>, vector<8x256xf32>,
    return
  }
  func.func @transform_0(%arg0: i32, %arg1: i32) -> (i32, i32) {
    %c0_i32 = arith.constant 0 : i32
    %c0_i32_0 = arith.constant 0 : i32
    return %arg0, %c0_i32 : i32, i32
  }
  func.func @transform_1(%arg0: i32, %arg1: i32) -> (i32, i32) {
    %c0_i32 = arith.constant 0 : i32
    %c0_i32_0 = arith.constant 0 : i32
    return %c0_i32, %arg1 : i32, i32
  }
  func.func @transform_2(%arg0: i32, %arg1: i32) -> (i32, i32) {
    %c0_i32 = arith.constant 0 : i32
    %c0_i32_0 = arith.constant 0 : i32
    return %c0_i32, %arg1 : i32, i32
  }
  func.func @transform_3(%arg0: i32, %arg1: i32) -> (i32, i32) {
    %c0_i32 = arith.constant 0 : i32
    return %arg0, %arg1 : i32, i32
  }
}

module attributes {stable_mosaic.version = 11 : i64} {
  func.func @_mm_single_kernel(%arg0: i32, %arg1: i32, %arg2: memref<8x128xbf16, #tpu.memory_space<vmem>>, %arg3: memref<128x512xbf16, #tpu.memory_space<vmem>>, %arg4: memref<1x512xf32, #tpu.memory_space<vmem>>, %arg5: memref<8x512xf32, #tpu.memory_space<vmem>>) attributes {dimension_semantics = [#tpu.dimension_semantics<parallel>, #tpu.dimension_semantics<parallel>], iteration_bounds = array<i64: 1, 2>, scalar_prefetch = 0 : i64, scratch_operands = 0 : i64, tpu.core_type = #tpu.core_type<tc>, window_params = [{transform_indices = @transform_0, window_bounds = array<i64: 8, 128>}, {transform_indices = @transform_1, window_bounds = array<i64: 128, 512>}, {transform_indices = @transform_2, window_bounds = array<i64: 1, 512>}, {transform_indices = @transform_3, window_bounds = array<i64: 8, 512>}]} {
    %c0 = arith.constant 0 : index
    %c0_0 = arith.constant 0 : index
    %0 = vector.load %arg2[%c0, %c0_0] : memref<8x128xbf16, #tpu.memory_space<vmem>>, vector<8x128xbf16>
    %c0_1 = arith.constant 0 : index
    %c0_2 = arith.constant 0 : index
    %1 = vector.load %arg3[%c0_1, %c0_2] : memref<128x512xbf16, #tpu.memory_space<vmem>>, vector<128x512xbf16>
    %cst = arith.constant dense<0.000000e+00> : vector<8x512xf32>
    %2 = tpu.matmul %0, %1, %cst {dimension_numbers = #tpu.dot_dimension_numbers<[1], [0], [0], [1], [0, 0, 1, 1], [], []>} : vector<8x128xbf16>, vector<128x512xbf16>, vector<8x512xf32> -> vector<8x512xf32>
    %c0_3 = arith.constant 0 : index
    %c0_4 = arith.constant 0 : index
    %3 = vector.load %arg4[%c0_3, %c0_4] : memref<1x512xf32, #tpu.memory_space<vmem>>, vector<1x512xf32>
    %4 = vector.broadcast %3 : vector<1x512xf32> to vector<8x512xf32>
    %5 = arith.addf %2, %4 : vector<8x512xf32>
    %c0_5 = arith.constant 0 : index
    %c0_6 = arith.constant 0 : index
    %6 = vector.load %arg5[%c0_5, %c0_6] : memref<8x512xf32, #tpu.memory_space<vmem>>, vector<8x512xf32>
    tpu.vector_store %arg5[%c0_5, %c0_6], %5 {strides = array<i32>} : memref<8x512xf32, #tpu.memory_space<vmem>>, vector<8x512xf32>,
    return
  }
  func.func @transform_0(%arg0: i32, %arg1: i32) -> (i32, i32) {
    %c0_i32 = arith.constant 0 : i32
    %c0_i32_0 = arith.constant 0 : i32
    return %arg0, %c0_i32 : i32, i32
  }
  func.func @transform_1(%arg0: i32, %arg1: i32) -> (i32, i32) {
    %c0_i32 = arith.constant 0 : i32
    %c0_i32_0 = arith.constant 0 : i32
    return %c0_i32, %arg1 : i32, i32
  }
  func.func @transform_2(%arg0: i32, %arg1: i32) -> (i32, i32) {
    %c0_i32 = arith.constant 0 : i32
    %c0_i32_0 = arith.constant 0 : i32
    return %c0_i32, %arg1 : i32, i32
  }
  func.func @transform_3(%arg0: i32, %arg1: i32) -> (i32, i32) {
    %c0_i32 = arith.constant 0 : i32
    return %arg0, %arg1 : i32, i32
  }
}

module attributes {stable_mosaic.version = 11 : i64} {
  func.func @_mm_single_kernel(%arg0: i32, %arg1: i32, %arg2: memref<8x1024xbf16, #tpu.memory_space<vmem>>, %arg3: memref<1024x128xbf16, #tpu.memory_space<vmem>>, %arg4: memref<1x128xf32, #tpu.memory_space<vmem>>, %arg5: memref<8x128xf32, #tpu.memory_space<vmem>>) attributes {dimension_semantics = [#tpu.dimension_semantics<parallel>, #tpu.dimension_semantics<parallel>], iteration_bounds = array<i64: 1, 1>, scalar_prefetch = 0 : i64, scratch_operands = 0 : i64, tpu.core_type = #tpu.core_type<tc>, window_params = [{transform_indices = @transform_0, window_bounds = array<i64: 8, 1024>}, {transform_indices = @transform_1, window_bounds = array<i64: 1024, 128>}, {transform_indices = @transform_2, window_bounds = array<i64: 1, 128>}, {transform_indices = @transform_3, window_bounds = array<i64: 8, 128>}]} {
    %c0 = arith.constant 0 : index
    %c0_0 = arith.constant 0 : index
    %0 = vector.load %arg2[%c0, %c0_0] : memref<8x1024xbf16, #tpu.memory_space<vmem>>, vector<8x1024xbf16>
    %c0_1 = arith.constant 0 : index
    %c0_2 = arith.constant 0 : index
    %1 = vector.load %arg3[%c0_1, %c0_2] : memref<1024x128xbf16, #tpu.memory_space<vmem>>, vector<1024x128xbf16>
    %cst = arith.constant dense<0.000000e+00> : vector<8x128xf32>
    %2 = tpu.matmul %0, %1, %cst {dimension_numbers = #tpu.dot_dimension_numbers<[1], [0], [0], [1], [0, 0, 1, 1], [], []>} : vector<8x1024xbf16>, vector<1024x128xbf16>, vector<8x128xf32> -> vector<8x128xf32>
    %c0_3 = arith.constant 0 : index
    %c0_4 = arith.constant 0 : index
    %3 = vector.load %arg4[%c0_3, %c0_4] : memref<1x128xf32, #tpu.memory_space<vmem>>, vector<1x128xf32>
    %4 = vector.broadcast %3 : vector<1x128xf32> to vector<8x128xf32>
    %5 = arith.addf %2, %4 : vector<8x128xf32>
    %c0_5 = arith.constant 0 : index
    %c0_6 = arith.constant 0 : index
    %6 = vector.load %arg5[%c0_5, %c0_6] : memref<8x128xf32, #tpu.memory_space<vmem>>, vector<8x128xf32>
    tpu.vector_store %arg5[%c0_5, %c0_6], %5 {strides = array<i32>} : memref<8x128xf32, #tpu.memory_space<vmem>>, vector<8x128xf32>,
    return
  }
  func.func @transform_0(%arg0: i32, %arg1: i32) -> (i32, i32) {
    %c0_i32 = arith.constant 0 : i32
    %c0_i32_0 = arith.constant 0 : i32
    return %arg0, %c0_i32 : i32, i32
  }
  func.func @transform_1(%arg0: i32, %arg1: i32) -> (i32, i32) {
    %c0_i32 = arith.constant 0 : i32
    %c0_i32_0 = arith.constant 0 : i32
    return %c0_i32, %arg1 : i32, i32
  }
  func.func @transform_2(%arg0: i32, %arg1: i32) -> (i32, i32) {
    %c0_i32 = arith.constant 0 : i32
    %c0_i32_0 = arith.constant 0 : i32
    return %c0_i32, %arg1 : i32, i32
  }
  func.func @transform_3(%arg0: i32, %arg1: i32) -> (i32, i32) {
    %c0_i32 = arith.constant 0 : i32
    return %arg0, %arg1 : i32, i32
  }
}

module attributes {stable_mosaic.version = 11 : i64} {
  func.func @_mm_single_kernel(%arg0: i32, %arg1: i32, %arg2: memref<8x1024xbf16, #tpu.memory_space<vmem>>, %arg3: memref<1024x512xbf16, #tpu.memory_space<vmem>>, %arg4: memref<1x512xf32, #tpu.memory_space<vmem>>, %arg5: memref<8x512xf32, #tpu.memory_space<vmem>>) attributes {dimension_semantics = [#tpu.dimension_semantics<parallel>, #tpu.dimension_semantics<parallel>], iteration_bounds = array<i64: 1, 7>, scalar_prefetch = 0 : i64, scratch_operands = 0 : i64, tpu.core_type = #tpu.core_type<tc>, window_params = [{transform_indices = @transform_0, window_bounds = array<i64: 8, 1024>}, {transform_indices = @transform_1, window_bounds = array<i64: 1024, 512>}, {transform_indices = @transform_2, window_bounds = array<i64: 1, 512>}, {transform_indices = @transform_3, window_bounds = array<i64: 8, 512>}]} {
    %c0 = arith.constant 0 : index
    %c0_0 = arith.constant 0 : index
    %0 = vector.load %arg2[%c0, %c0_0] : memref<8x1024xbf16, #tpu.memory_space<vmem>>, vector<8x1024xbf16>
    %c0_1 = arith.constant 0 : index
    %c0_2 = arith.constant 0 : index
    %1 = vector.load %arg3[%c0_1, %c0_2] : memref<1024x512xbf16, #tpu.memory_space<vmem>>, vector<1024x512xbf16>
    %cst = arith.constant dense<0.000000e+00> : vector<8x512xf32>
    %2 = tpu.matmul %0, %1, %cst {dimension_numbers = #tpu.dot_dimension_numbers<[1], [0], [0], [1], [0, 0, 1, 1], [], []>} : vector<8x1024xbf16>, vector<1024x512xbf16>, vector<8x512xf32> -> vector<8x512xf32>
    %c0_3 = arith.constant 0 : index
    %c0_4 = arith.constant 0 : index
    %3 = vector.load %arg4[%c0_3, %c0_4] : memref<1x512xf32, #tpu.memory_space<vmem>>, vector<1x512xf32>
    %4 = vector.broadcast %3 : vector<1x512xf32> to vector<8x512xf32>
    %5 = arith.addf %2, %4 : vector<8x512xf32>
    %c0_5 = arith.constant 0 : index
    %c0_6 = arith.constant 0 : index
    %6 = vector.load %arg5[%c0_5, %c0_6] : memref<8x512xf32, #tpu.memory_space<vmem>>, vector<8x512xf32>
    tpu.vector_store %arg5[%c0_5, %c0_6], %5 {strides = array<i32>} : memref<8x512xf32, #tpu.memory_space<vmem>>, vector<8x512xf32>,
    return
  }
  func.func @transform_0(%arg0: i32, %arg1: i32) -> (i32, i32) {
    %c0_i32 = arith.constant 0 : i32
    %c0_i32_0 = arith.constant 0 : i32
    return %arg0, %c0_i32 : i32, i32
  }
  func.func @transform_1(%arg0: i32, %arg1: i32) -> (i32, i32) {
    %c0_i32 = arith.constant 0 : i32
    %c0_i32_0 = arith.constant 0 : i32
    return %c0_i32, %arg1 : i32, i32
  }
  func.func @transform_2(%arg0: i32, %arg1: i32) -> (i32, i32) {
    %c0_i32 = arith.constant 0 : i32
    %c0_i32_0 = arith.constant 0 : i32
    return %c0_i32, %arg1 : i32, i32
  }
  func.func @transform_3(%arg0: i32, %arg1: i32) -> (i32, i32) {
    %c0_i32 = arith.constant 0 : i32
    return %arg0, %arg1 : i32, i32
  }
}

module attributes {stable_mosaic.version = 11 : i64} {
  func.func @_mm_single_kernel(%arg0: i32, %arg1: i32, %arg2: memref<56x128xbf16, #tpu.memory_space<vmem>>, %arg3: memref<128x512xbf16, #tpu.memory_space<vmem>>, %arg4: memref<1x512xf32, #tpu.memory_space<vmem>>, %arg5: memref<56x512xf32, #tpu.memory_space<vmem>>) attributes {dimension_semantics = [#tpu.dimension_semantics<parallel>, #tpu.dimension_semantics<parallel>], iteration_bounds = array<i64: 1, 4>, scalar_prefetch = 0 : i64, scratch_operands = 0 : i64, tpu.core_type = #tpu.core_type<tc>, window_params = [{transform_indices = @transform_0, window_bounds = array<i64: 56, 128>}, {transform_indices = @transform_1, window_bounds = array<i64: 128, 512>}, {transform_indices = @transform_2, window_bounds = array<i64: 1, 512>}, {transform_indices = @transform_3, window_bounds = array<i64: 56, 512>}]} {
    %c0 = arith.constant 0 : index
    %c0_0 = arith.constant 0 : index
    %0 = vector.load %arg2[%c0, %c0_0] : memref<56x128xbf16, #tpu.memory_space<vmem>>, vector<56x128xbf16>
    %c0_1 = arith.constant 0 : index
    %c0_2 = arith.constant 0 : index
    %1 = vector.load %arg3[%c0_1, %c0_2] : memref<128x512xbf16, #tpu.memory_space<vmem>>, vector<128x512xbf16>
    %cst = arith.constant dense<0.000000e+00> : vector<56x512xf32>
    %2 = tpu.matmul %0, %1, %cst {dimension_numbers = #tpu.dot_dimension_numbers<[1], [0], [0], [1], [0, 0, 1, 1], [], []>} : vector<56x128xbf16>, vector<128x512xbf16>, vector<56x512xf32> -> vector<56x512xf32>
    %c0_3 = arith.constant 0 : index
    %c0_4 = arith.constant 0 : index
    %3 = vector.load %arg4[%c0_3, %c0_4] : memref<1x512xf32, #tpu.memory_space<vmem>>, vector<1x512xf32>
    %4 = vector.broadcast %3 : vector<1x512xf32> to vector<56x512xf32>
    %5 = arith.addf %2, %4 : vector<56x512xf32>
    %c0_5 = arith.constant 0 : index
    %c0_6 = arith.constant 0 : index
    %6 = vector.load %arg5[%c0_5, %c0_6] : memref<56x512xf32, #tpu.memory_space<vmem>>, vector<56x512xf32>
    tpu.vector_store %arg5[%c0_5, %c0_6], %5 {strides = array<i32>} : memref<56x512xf32, #tpu.memory_space<vmem>>, vector<56x512xf32>,
    return
  }
  func.func @transform_0(%arg0: i32, %arg1: i32) -> (i32, i32) {
    %c0_i32 = arith.constant 0 : i32
    %c0_i32_0 = arith.constant 0 : i32
    return %arg0, %c0_i32 : i32, i32
  }
  func.func @transform_1(%arg0: i32, %arg1: i32) -> (i32, i32) {
    %c0_i32 = arith.constant 0 : i32
    %c0_i32_0 = arith.constant 0 : i32
    return %c0_i32, %arg1 : i32, i32
  }
  func.func @transform_2(%arg0: i32, %arg1: i32) -> (i32, i32) {
    %c0_i32 = arith.constant 0 : i32
    %c0_i32_0 = arith.constant 0 : i32
    return %c0_i32, %arg1 : i32, i32
  }
  func.func @transform_3(%arg0: i32, %arg1: i32) -> (i32, i32) {
    %c0_i32 = arith.constant 0 : i32
    return %arg0, %arg1 : i32, i32
  }
}

module attributes {stable_mosaic.version = 11 : i64} {
  func.func @_mm_single_kernel(%arg0: i32, %arg1: i32, %arg2: memref<344x128xbf16, #tpu.memory_space<vmem>>, %arg3: memref<128x512xbf16, #tpu.memory_space<vmem>>, %arg4: memref<1x512xf32, #tpu.memory_space<vmem>>, %arg5: memref<344x512xf32, #tpu.memory_space<vmem>>) attributes {dimension_semantics = [#tpu.dimension_semantics<parallel>, #tpu.dimension_semantics<parallel>], iteration_bounds = array<i64: 1, 3>, scalar_prefetch = 0 : i64, scratch_operands = 0 : i64, tpu.core_type = #tpu.core_type<tc>, window_params = [{transform_indices = @transform_0, window_bounds = array<i64: 344, 128>}, {transform_indices = @transform_1, window_bounds = array<i64: 128, 512>}, {transform_indices = @transform_2, window_bounds = array<i64: 1, 512>}, {transform_indices = @transform_3, window_bounds = array<i64: 344, 512>}]} {
    %c0 = arith.constant 0 : index
    %c0_0 = arith.constant 0 : index
    %0 = vector.load %arg2[%c0, %c0_0] : memref<344x128xbf16, #tpu.memory_space<vmem>>, vector<344x128xbf16>
    %c0_1 = arith.constant 0 : index
    %c0_2 = arith.constant 0 : index
    %1 = vector.load %arg3[%c0_1, %c0_2] : memref<128x512xbf16, #tpu.memory_space<vmem>>, vector<128x512xbf16>
    %cst = arith.constant dense<0.000000e+00> : vector<344x512xf32>
    %2 = tpu.matmul %0, %1, %cst {dimension_numbers = #tpu.dot_dimension_numbers<[1], [0], [0], [1], [0, 0, 1, 1], [], []>} : vector<344x128xbf16>, vector<128x512xbf16>, vector<344x512xf32> -> vector<344x512xf32>
    %c0_3 = arith.constant 0 : index
    %c0_4 = arith.constant 0 : index
    %3 = vector.load %arg4[%c0_3, %c0_4] : memref<1x512xf32, #tpu.memory_space<vmem>>, vector<1x512xf32>
    %4 = vector.broadcast %3 : vector<1x512xf32> to vector<344x512xf32>
    %5 = arith.addf %2, %4 : vector<344x512xf32>
    %c0_5 = arith.constant 0 : index
    %c0_6 = arith.constant 0 : index
    %6 = vector.load %arg5[%c0_5, %c0_6] : memref<344x512xf32, #tpu.memory_space<vmem>>, vector<344x512xf32>
    tpu.vector_store %arg5[%c0_5, %c0_6], %5 {strides = array<i32>} : memref<344x512xf32, #tpu.memory_space<vmem>>, vector<344x512xf32>,
    return
  }
  func.func @transform_0(%arg0: i32, %arg1: i32) -> (i32, i32) {
    %c0_i32 = arith.constant 0 : i32
    %c0_i32_0 = arith.constant 0 : i32
    return %arg0, %c0_i32 : i32, i32
  }
  func.func @transform_1(%arg0: i32, %arg1: i32) -> (i32, i32) {
    %c0_i32 = arith.constant 0 : i32
    %c0_i32_0 = arith.constant 0 : i32
    return %c0_i32, %arg1 : i32, i32
  }
  func.func @transform_2(%arg0: i32, %arg1: i32) -> (i32, i32) {
    %c0_i32 = arith.constant 0 : i32
    %c0_i32_0 = arith.constant 0 : i32
    return %c0_i32, %arg1 : i32, i32
  }
  func.func @transform_3(%arg0: i32, %arg1: i32) -> (i32, i32) {
    %c0_i32 = arith.constant 0 : i32
    return %arg0, %arg1 : i32, i32
  }
}

module attributes {stable_mosaic.version = 11 : i64} {
  func.func @_mm_single_kernel(%arg0: i32, %arg1: i32, %arg2: memref<512x128xbf16, #tpu.memory_space<vmem>>, %arg3: memref<128x128xbf16, #tpu.memory_space<vmem>>, %arg4: memref<1x128xf32, #tpu.memory_space<vmem>>, %arg5: memref<512x128xf32, #tpu.memory_space<vmem>>) attributes {dimension_semantics = [#tpu.dimension_semantics<parallel>, #tpu.dimension_semantics<parallel>], iteration_bounds = array<i64: 4, 1>, scalar_prefetch = 0 : i64, scratch_operands = 0 : i64, tpu.core_type = #tpu.core_type<tc>, window_params = [{transform_indices = @transform_0, window_bounds = array<i64: 512, 128>}, {transform_indices = @transform_1, window_bounds = array<i64: 128, 128>}, {transform_indices = @transform_2, window_bounds = array<i64: 1, 128>}, {transform_indices = @transform_3, window_bounds = array<i64: 512, 128>}]} {
    %c0 = arith.constant 0 : index
    %c0_0 = arith.constant 0 : index
    %0 = vector.load %arg2[%c0, %c0_0] : memref<512x128xbf16, #tpu.memory_space<vmem>>, vector<512x128xbf16>
    %c0_1 = arith.constant 0 : index
    %c0_2 = arith.constant 0 : index
    %1 = vector.load %arg3[%c0_1, %c0_2] : memref<128x128xbf16, #tpu.memory_space<vmem>>, vector<128x128xbf16>
    %cst = arith.constant dense<0.000000e+00> : vector<512x128xf32>
    %2 = tpu.matmul %0, %1, %cst {dimension_numbers = #tpu.dot_dimension_numbers<[1], [0], [0], [1], [0, 0, 1, 1], [], []>} : vector<512x128xbf16>, vector<128x128xbf16>, vector<512x128xf32> -> vector<512x128xf32>
    %c0_3 = arith.constant 0 : index
    %c0_4 = arith.constant 0 : index
    %3 = vector.load %arg4[%c0_3, %c0_4] : memref<1x128xf32, #tpu.memory_space<vmem>>, vector<1x128xf32>
    %4 = vector.broadcast %3 : vector<1x128xf32> to vector<512x128xf32>
    %5 = arith.addf %2, %4 : vector<512x128xf32>
    %c0_5 = arith.constant 0 : index
    %c0_6 = arith.constant 0 : index
    %6 = vector.load %arg5[%c0_5, %c0_6] : memref<512x128xf32, #tpu.memory_space<vmem>>, vector<512x128xf32>
    tpu.vector_store %arg5[%c0_5, %c0_6], %5 {strides = array<i32>} : memref<512x128xf32, #tpu.memory_space<vmem>>, vector<512x128xf32>,
    return
  }
  func.func @transform_0(%arg0: i32, %arg1: i32) -> (i32, i32) {
    %c0_i32 = arith.constant 0 : i32
    %c0_i32_0 = arith.constant 0 : i32
    return %arg0, %c0_i32 : i32, i32
  }
  func.func @transform_1(%arg0: i32, %arg1: i32) -> (i32, i32) {
    %c0_i32 = arith.constant 0 : i32
    %c0_i32_0 = arith.constant 0 : i32
    return %c0_i32, %arg1 : i32, i32
  }
  func.func @transform_2(%arg0: i32, %arg1: i32) -> (i32, i32) {
    %c0_i32 = arith.constant 0 : i32
    %c0_i32_0 = arith.constant 0 : i32
    return %c0_i32, %arg1 : i32, i32
  }
  func.func @transform_3(%arg0: i32, %arg1: i32) -> (i32, i32) {
    %c0_i32 = arith.constant 0 : i32
    return %arg0, %arg1 : i32, i32
  }
}

</mosaic_0001>

<bundles_post_ra>
// kernel: _lambda_.10
= control target key start
LH: loop header
LB: loop body
LE: loop exit
PB: predicated region body
PF: predicated region fallthrough
CT: control target
= control target key end

     0   :  { %s1370_s12 = smov 0   ;;  %s1372_s13 = smov 0   ;;  %s1600_s0 = inlined_call_operand.vmem [shape: bf16[2048,128], index: 0, kind: input, shape index: {}]   ;;  %s1601_s1 = inlined_call_operand.vmem [shape: bf16[128,128], index: 1, kind: input, shape index: {}]   ;;  %s1602_s2 = inlined_call_operand.vmem [shape: f32[1,128], index: 2, kind: input, shape index: {}]   ;;  %s1603_s3 = inlined_call_operand.vmem [shape: f32[2048,128], index: 3, kind: output, shape index: {}]  }
   0x1   :  { %s1374_s14 = smov 0  }
   0x2 LB: > { %s25_s15 = sadd.s32 1, %s1344_s13  ;;  %p1078_p0 = scmp.ge.s32.totalorder %s1348_s14, 1  ;;  %s1348_s14 = sphi %s1374_s14, %s13_s14   ;;  %s1344_s13 = sphi %s1372_s13, %s1605_s13   ;;  %s1340_s12 = sphi %s1370_s12, %s1604_s12  }
   0x3   : > { %p27_p1 = scmp.ge.s32.totalorder %s25_s15, 4  ;;  %p169_p2 = scmp.lt.s32.totalorder %s1348_s14, 5 }
   0x5   : > { %s1607_s15 = smov (%p27_p1, %s25_s15), 0  ;;  %p170_p3 = pnand %p1078_p0, %p169_p2 }
   0x6   : > { %s1079_s18 = sshll.u32 (!%p170_p3), %s1340_s12, 6 }
   0x7   : > { %173 = sbr.rel (%p170_p3) target bundleno = 305 (0x131), region = 32  ;;  %p204_p4 = scmp.lt.s32.totalorder (!%p170_p3), %s1079_s18, 255 }
   0xc   : > { %v1286_v0 = vld [vmem:[%s1601_s1 + $0x38] sm:$0xff]   ;;  %v1287_v1 = vld [vmem:[%s1601_s1 + $0x30] sm:$0xff]   ;;  %s1609_s18 = smov (!%p204_p4, %s1079_s18), 255  ;;  %v1288_v2 = vld [vmem:[%s1601_s1 + $0x28] sm:$0xff]  }
   0xd   : > { %1166 = vmatprep.subr.bf16.mxu0 %v1286_v0  ;;  %1246 = vmatprep.subr.bf16.mxu1 %v1286_v0  ;;  %s1080_s23 = sshll.u32 %s1609_s18, 2  ;;  %v1289_v3 = vld [vmem:[%s1601_s1 + $0x20] sm:$0xff]   ;;  %v1290_v6 = vld [vmem:[%s1601_s1 + $0x18] sm:$0xff]   ;;  %v1291_v7 = vld [vmem:[%s1601_s1 + $0x10] sm:$0xff]   ;;  %s1082_s12 = sshll.u32 %s1609_s18, 3 }
   0xe   : > { %1167 = vmatpush3.bf16.msra.mxu0 %v1286_v0  ;;  %1254 = vmatpush3.bf16.msra.mxu1 %v1286_v0  ;;  %s1403_s26 = scalar_lea.vmem %s1600_s0, %s1080_s23  ;;  %v1292_v8 = vld [vmem:[%s1601_s1 + $0x8] sm:$0xff]   ;;  %v1293_v9 = vld [vmem:[%s1601_s1] sm:$0xff]   ;;  %s1463_s19 = scalar_lea.vmem %s1603_s3, %s1082_s12 }
   0xf   : > { %1168 = vmatprep.subr.bf16.mxu0 %v1287_v1  ;;  %1247 = vmatprep.subr.bf16.mxu1 %v1287_v1  ;;  %v1294_v4 = vld [vmem:[%s1403_s26] sm:$0xff]   ;;  %v1296_v10 = vld [vmem:[%s1403_s26 + $0x8] sm:$0xff]   ;;  %v1298_v12 = vld [vmem:[%s1403_s26 + $0x10] sm:$0xff]  }
  0x10   : > { %v1295_v5 = vld [vmem:[%s1403_s26 + $0x80] sm:$0xff]   ;;  %1182 = vmatprep.mubr.bf16.mxu0 %v1294_v4  ;;  %v1297_v11 = vld [vmem:[%s1403_s26 + $0x88] sm:$0xff]   ;;  %v1299_v13 = vld [vmem:[%s1403_s26 + $0x90] sm:$0xff]  }
  0x11   : > { %1214 = vmatprep.mubr.bf16.mxu1 %v1295_v5  ;;  %v1300_v14 = vld [vmem:[%s1403_s26 + $0x18] sm:$0xff]   ;;  %v1302_v16 = vld [vmem:[%s1403_s26 + $0x20] sm:$0xff]   ;;  %v1304_v18 = vld [vmem:[%s1403_s26 + $0x28] sm:$0xff]  }
  0x12   : > { %1169 = vmatpush3.bf16.msra.mxu0 %v1287_v1  ;;  %1255 = vmatpush3.bf16.msra.mxu1 %v1287_v1  ;;  %v1301_v15 = vld [vmem:[%s1403_s26 + $0x98] sm:$0xff]   ;;  %v1303_v17 = vld [vmem:[%s1403_s26 + $0xa0] sm:$0xff]   ;;  %v1305_v19 = vld [vmem:[%s1403_s26 + $0xa8] sm:$0xff]  }
  0x13   : > { %1170 = vmatprep.subr.bf16.mxu0 %v1288_v2  ;;  %1248 = vmatprep.subr.bf16.mxu1 %v1288_v2  ;;  %v1306_v20 = vld [vmem:[%s1403_s26 + $0x30] sm:$0xff]   ;;  %v1308_v22 = vld [vmem:[%s1403_s26 + $0x38] sm:$0xff]   ;;  %v1310_v24 = vld [vmem:[%s1403_s26 + $0x40] sm:$0xff]  }
  0x14   : > { %v1307_v21 = vld [vmem:[%s1403_s26 + $0xb0] sm:$0xff]   ;;  %v1309_v23 = vld [vmem:[%s1403_s26 + $0xb8] sm:$0xff]   ;;  %v1311_v25 = vld [vmem:[%s1403_s26 + $0xc0] sm:$0xff]  }
  0x15   : > { %v1312_v26 = vld [vmem:[%s1403_s26 + $0x48] sm:$0xff]   ;;  %v1314_v28 = vld [vmem:[%s1403_s26 + $0x50] sm:$0xff]   ;;  %v1316_v30 = vld [vmem:[%s1403_s26 + $0x58] sm:$0xff]  }
  0x16   : > { %1171 = vmatpush3.bf16.msra.mxu0 %v1288_v2  ;;  %1256 = vmatpush3.bf16.msra.mxu1 %v1288_v2  ;;  %v1313_v27 = vld [vmem:[%s1403_s26 + $0xc8] sm:$0xff]   ;;  %v1315_v29 = vld [vmem:[%s1403_s26 + $0xd0] sm:$0xff]   ;;  %v1317_v31 = vld [vmem:[%s1403_s26 + $0xd8] sm:$0xff]  }
  0x17   : > { %1172 = vmatprep.subr.bf16.mxu0 %v1289_v3  ;;  %1249 = vmatprep.subr.bf16.mxu1 %v1289_v3  ;;  %v1318_v32 = vld [vmem:[%s1403_s26 + $0x60] sm:$0xff]   ;;  %v1320_v34 = vld [vmem:[%s1403_s26 + $0x68] sm:$0xff]   ;;  %v1322_v36 = vld [vmem:[%s1403_s26 + $0x70] sm:$0xff]  }
  0x18   : > { %v1319_v33 = vld [vmem:[%s1403_s26 + $0xe0] sm:$0xff]   ;;  %v1321_v35 = vld [vmem:[%s1403_s26 + $0xe8] sm:$0xff]   ;;  %v1323_v37 = vld [vmem:[%s1403_s26 + $0xf0] sm:$0xff]  }
  0x19   : > { %v1324_v38 = vld [vmem:[%s1403_s26 + $0x78] sm:$0xff]   ;;  %v1455_v40 = vld [vmem:[%s1602_s2] ss:$0 sm:$0xff] }
  0x1a   : > { %1173 = vmatpush3.bf16.msra.mxu0 %v1289_v3  ;;  %1257 = vmatpush3.bf16.msra.mxu1 %v1289_v3  ;;  %v1325_v39 = vld [vmem:[%s1403_s26 + $0xf8] sm:$0xff]  }
  0x1b   : > { %1174 = vmatprep.subr.bf16.mxu0 %v1290_v6  ;;  %1250 = vmatprep.subr.bf16.mxu1 %v1290_v6 }
  0x1e   : > { %1175 = vmatpush3.bf16.msra.mxu0 %v1290_v6  ;;  %1258 = vmatpush3.bf16.msra.mxu1 %v1290_v6 }
  0x1f   : > { %1176 = vmatprep.subr.bf16.mxu0 %v1291_v7  ;;  %1251 = vmatprep.subr.bf16.mxu1 %v1291_v7 }
  0x22   : > { %1177 = vmatpush3.bf16.msra.mxu0 %v1291_v7  ;;  %1259 = vmatpush3.bf16.msra.mxu1 %v1291_v7 }
  0x23   : > { %1178 = vmatprep.subr.bf16.mxu0 %v1292_v8  ;;  %1252 = vmatprep.subr.bf16.mxu1 %v1292_v8 }
  0x26   : > { %1179 = vmatpush3.bf16.msra.mxu0 %v1292_v8  ;;  %1260 = vmatpush3.bf16.msra.mxu1 %v1292_v8 }
  0x27   : > { %1180 = vmatprep.subr.bf16.mxu0 %v1293_v9  ;;  %1253 = vmatprep.subr.bf16.mxu1 %v1293_v9 }
  0x2a   : > { %1181 = vmatpush3.bf16.msra.mxu0 %v1293_v9  ;;  %1261 = vmatpush3.bf16.msra.mxu1 %v1293_v9 }
  0x2d   : > { %1183 = vmatmul.mubr.bf16.vlgmr.msra.gmra.mxu0 %v1296_v10  ;;  %1215 = vmatmul.mubr.bf16.vlgmr.msra.gmra.mxu1 %v1297_v11 }
  0x2e   : > { %1186 = vmatprep.mubr.bf16.mxu0 %v1298_v12  ;;  %1218 = vmatprep.mubr.bf16.mxu1 %v1299_v13 }
  0x35   : > { %1187 = vmatmul.mubr.bf16.gmra.mxu0 %v1300_v14  ;;  %1219 = vmatmul.mubr.bf16.gmra.mxu1 %v1301_v15 }
  0x36   : > { %1190 = vmatprep.mubr.bf16.mxu0 %v1302_v16  ;;  %1222 = vmatprep.mubr.bf16.mxu1 %v1303_v17 }
  0x3d   : > { %1191 = vmatmul.mubr.bf16.gmra.mxu0 %v1304_v18  ;;  %1223 = vmatmul.mubr.bf16.gmra.mxu1 %v1305_v19 }
  0x3e   : > { %1194 = vmatprep.mubr.bf16.mxu0 %v1306_v20  ;;  %1226 = vmatprep.mubr.bf16.mxu1 %v1307_v21 }
  0x45   : > { %1195 = vmatmul.mubr.bf16.gmra.mxu0 %v1308_v22  ;;  %1227 = vmatmul.mubr.bf16.gmra.mxu1 %v1309_v23 }
  0x46   : > { %1198 = vmatprep.mubr.bf16.mxu0 %v1310_v24  ;;  %1230 = vmatprep.mubr.bf16.mxu1 %v1311_v25 }
  0x4d   : > { %1199 = vmatmul.mubr.bf16.gmra.mxu0 %v1312_v26  ;;  %1231 = vmatmul.mubr.bf16.gmra.mxu1 %v1313_v27 }
  0x4e   : > { %1202 = vmatprep.mubr.bf16.mxu0 %v1314_v28  ;;  %1234 = vmatprep.mubr.bf16.mxu1 %v1315_v29 }
  0x55   : > { %1203 = vmatmul.mubr.bf16.gmra.mxu0 %v1316_v30  ;;  %1235 = vmatmul.mubr.bf16.gmra.mxu1 %v1317_v31 }
  0x56   : > { %1206 = vmatprep.mubr.bf16.mxu0 %v1318_v32  ;;  %1238 = vmatprep.mubr.bf16.mxu1 %v1319_v33 }
  0x5d   : > { %1207 = vmatmul.mubr.bf16.gmra.mxu0 %v1320_v34  ;;  %1239 = vmatmul.mubr.bf16.gmra.mxu1 %v1321_v35 }
  0x5e   : > { %1210 = vmatprep.mubr.bf16.mxu0 %v1322_v36  ;;  %1242 = vmatprep.mubr.bf16.mxu1 %v1323_v37 }
  0x65   : > { %1211 = vmatmul.mubr.bf16.gmra.mxu0 %v1324_v38  ;;  %1243 = vmatmul.mubr.bf16.gmra.mxu1 %v1325_v39 }
  0xed   : > { %v1184_v41 = vpop.f32.mrf.mxu0  ;;  %v1216_v42 = vpop.f32.mrf.mxu1 }
  0xee   : > { %v596_v43 = vadd.f32 %v1184_v41, %v1455_v40  ;;  %v724_v44 = vadd.f32 %v1216_v42, %v1455_v40 }
  0xef   : > { %v587_v45 = vpop.f32.mrf.mxu0  ;;  %v715_v46 = vpop.f32.mrf.mxu1 }
  0xf0   : > { %v844_v47 = vmax.f32 %v596_v43, 0.0  ;;  %v876_v48 = vmax.f32 %v724_v44, 0.0  ;;  %v588_v49 = vadd.f32 %v1455_v40, %v587_v45  ;;  %v716_v50 = vadd.f32 %v1455_v40, %v715_v46 }
  0xf1   : > { %v1185_v51 = vpop.f32.mrf.mxu0  ;;  %v1217_v52 = vpop.f32.mrf.mxu1 }
  0xf2   : > { %908 = vst [vmem:[%s1463_s19 + $0x10] sm:$0xff] %v844_v47  ;;  %940 = vst [vmem:[%s1463_s19 + $0x110] sm:$0xff] %v876_v48  ;;  %v842_v53 = vmax.f32 %v588_v49, 0.0  ;;  %v874_v54 = vmax.f32 %v716_v50, 0.0  ;;  %v599_v55 = vadd.f32 %v1185_v51, %v1455_v40  ;;  %v727_v56 = vadd.f32 %v1217_v52, %v1455_v40 }
  0xf3   : > { %v590_v57 = vpop.f32.mrf.mxu0  ;;  %v718_v58 = vpop.f32.mrf.mxu1 }
  0xf4   : > { %906 = vst [vmem:[%s1463_s19] sm:$0xff] %v842_v53  ;;  %938 = vst [vmem:[%s1463_s19 + $0x100] sm:$0xff] %v874_v54  ;;  %v845_v59 = vmax.f32 %v599_v55, 0.0  ;;  %v877_v60 = vmax.f32 %v727_v56, 0.0  ;;  %v591_v61 = vadd.f32 %v1455_v40, %v590_v57  ;;  %v719_v62 = vadd.f32 %v1455_v40, %v718_v58 }
  0xf5   : > { %v1188_v63 = vpop.f32.mrf.mxu0  ;;  %v1220_v0 = vpop.f32.mrf.mxu1 }
  0xf6   : > { %909 = vst [vmem:[%s1463_s19 + $0x18] sm:$0xff] %v845_v59  ;;  %941 = vst [vmem:[%s1463_s19 + $0x118] sm:$0xff] %v877_v60  ;;  %v843_v1 = vmax.f32 %v591_v61, 0.0  ;;  %v875_v2 = vmax.f32 %v719_v62, 0.0  ;;  %v612_v3 = vadd.f32 %v1188_v63, %v1455_v40  ;;  %v740_v4 = vadd.f32 %v1220_v0, %v1455_v40 }
  0xf7   : > { %v603_v5 = vpop.f32.mrf.mxu0  ;;  %v731_v6 = vpop.f32.mrf.mxu1 }
  0xf8   : > { %907 = vst [vmem:[%s1463_s19 + $0x8] sm:$0xff] %v843_v1  ;;  %939 = vst [vmem:[%s1463_s19 + $0x108] sm:$0xff] %v875_v2  ;;  %v848_v7 = vmax.f32 %v612_v3, 0.0  ;;  %v880_v8 = vmax.f32 %v740_v4, 0.0  ;;  %v604_v9 = vadd.f32 %v1455_v40, %v603_v5  ;;  %v732_v10 = vadd.f32 %v1455_v40, %v731_v6 }
  0xf9   : > { %v1189_v11 = vpop.f32.mrf.mxu0  ;;  %v1221_v12 = vpop.f32.mrf.mxu1 }
  0xfa   : > { %912 = vst [vmem:[%s1463_s19 + $0x30] sm:$0xff] %v848_v7  ;;  %944 = vst [vmem:[%s1463_s19 + $0x130] sm:$0xff] %v880_v8  ;;  %v846_v13 = vmax.f32 %v604_v9, 0.0  ;;  %v878_v14 = vmax.f32 %v732_v10, 0.0  ;;  %v615_v15 = vadd.f32 %v1189_v11, %v1455_v40  ;;  %v743_v16 = vadd.f32 %v1221_v12, %v1455_v40 }
  0xfb   : > { %v606_v17 = vpop.f32.mrf.mxu0  ;;  %v734_v18 = vpop.f32.mrf.mxu1 }
  0xfc   : > { %910 = vst [vmem:[%s1463_s19 + $0x20] sm:$0xff] %v846_v13  ;;  %942 = vst [vmem:[%s1463_s19 + $0x120] sm:$0xff] %v878_v14  ;;  %v849_v19 = vmax.f32 %v615_v15, 0.0  ;;  %v881_v20 = vmax.f32 %v743_v16, 0.0  ;;  %v607_v21 = vadd.f32 %v1455_v40, %v606_v17  ;;  %v735_v22 = vadd.f32 %v1455_v40, %v734_v18 }
  0xfd   : > { %v1192_v23 = vpop.f32.mrf.mxu0  ;;  %v1224_v24 = vpop.f32.mrf.mxu1 }
  0xfe   : > { %913 = vst [vmem:[%s1463_s19 + $0x38] sm:$0xff] %v849_v19  ;;  %945 = vst [vmem:[%s1463_s19 + $0x138] sm:$0xff] %v881_v20  ;;  %v847_v25 = vmax.f32 %v607_v21, 0.0  ;;  %v879_v26 = vmax.f32 %v735_v22, 0.0  ;;  %v628_v27 = vadd.f32 %v1192_v23, %v1455_v40  ;;  %v756_v28 = vadd.f32 %v1224_v24, %v1455_v40 }
  0xff   : > { %v619_v29 = vpop.f32.mrf.mxu0  ;;  %v747_v30 = vpop.f32.mrf.mxu1 }
 0x100   : > { %911 = vst [vmem:[%s1463_s19 + $0x28] sm:$0xff] %v847_v25  ;;  %943 = vst [vmem:[%s1463_s19 + $0x128] sm:$0xff] %v879_v26  ;;  %v852_v31 = vmax.f32 %v628_v27, 0.0  ;;  %v884_v32 = vmax.f32 %v756_v28, 0.0  ;;  %v620_v33 = vadd.f32 %v1455_v40, %v619_v29  ;;  %v748_v34 = vadd.f32 %v1455_v40, %v747_v30 }
 0x101   : > { %v1193_v35 = vpop.f32.mrf.mxu0  ;;  %v1225_v36 = vpop.f32.mrf.mxu1 }
 0x102   : > { %916 = vst [vmem:[%s1463_s19 + $0x50] sm:$0xff] %v852_v31  ;;  %948 = vst [vmem:[%s1463_s19 + $0x150] sm:$0xff] %v884_v32  ;;  %v850_v37 = vmax.f32 %v620_v33, 0.0  ;;  %v882_v38 = vmax.f32 %v748_v34, 0.0  ;;  %v631_v39 = vadd.f32 %v1193_v35, %v1455_v40  ;;  %v759_v41 = vadd.f32 %v1225_v36, %v1455_v40 }
 0x103   : > { %v622_v42 = vpop.f32.mrf.mxu0  ;;  %v750_v43 = vpop.f32.mrf.mxu1 }
 0x104   : > { %914 = vst [vmem:[%s1463_s19 + $0x40] sm:$0xff] %v850_v37  ;;  %946 = vst [vmem:[%s1463_s19 + $0x140] sm:$0xff] %v882_v38  ;;  %v853_v44 = vmax.f32 %v631_v39, 0.0  ;;  %v885_v45 = vmax.f32 %v759_v41, 0.0  ;;  %v623_v46 = vadd.f32 %v1455_v40, %v622_v42  ;;  %v751_v47 = vadd.f32 %v1455_v40, %v750_v43 }
 0x105   : > { %v1196_v48 = vpop.f32.mrf.mxu0  ;;  %v1228_v49 = vpop.f32.mrf.mxu1 }
 0x106   : > { %917 = vst [vmem:[%s1463_s19 + $0x58] sm:$0xff] %v853_v44  ;;  %949 = vst [vmem:[%s1463_s19 + $0x158] sm:$0xff] %v885_v45  ;;  %v851_v50 = vmax.f32 %v623_v46, 0.0  ;;  %v883_v51 = vmax.f32 %v751_v47, 0.0  ;;  %v644_v52 = vadd.f32 %v1196_v48, %v1455_v40  ;;  %v772_v53 = vadd.f32 %v1228_v49, %v1455_v40 }
 0x107   : > { %v635_v54 = vpop.f32.mrf.mxu0  ;;  %v763_v55 = vpop.f32.mrf.mxu1 }
 0x108   : > { %915 = vst [vmem:[%s1463_s19 + $0x48] sm:$0xff] %v851_v50  ;;  %947 = vst [vmem:[%s1463_s19 + $0x148] sm:$0xff] %v883_v51  ;;  %v856_v56 = vmax.f32 %v644_v52, 0.0  ;;  %v888_v57 = vmax.f32 %v772_v53, 0.0  ;;  %v636_v58 = vadd.f32 %v1455_v40, %v635_v54  ;;  %v764_v59 = vadd.f32 %v1455_v40, %v763_v55 }
 0x109   : > { %v1197_v60 = vpop.f32.mrf.mxu0  ;;  %v1229_v61 = vpop.f32.mrf.mxu1 }
 0x10a   : > { %920 = vst [vmem:[%s1463_s19 + $0x70] sm:$0xff] %v856_v56  ;;  %952 = vst [vmem:[%s1463_s19 + $0x170] sm:$0xff] %v888_v57  ;;  %v854_v62 = vmax.f32 %v636_v58, 0.0  ;;  %v886_v63 = vmax.f32 %v764_v59, 0.0  ;;  %v647_v0 = vadd.f32 %v1197_v60, %v1455_v40  ;;  %v775_v1 = vadd.f32 %v1229_v61, %v1455_v40 }
 0x10b   : > { %v638_v2 = vpop.f32.mrf.mxu0  ;;  %v766_v3 = vpop.f32.mrf.mxu1 }
 0x10c   : > { %918 = vst [vmem:[%s1463_s19 + $0x60] sm:$0xff] %v854_v62  ;;  %950 = vst [vmem:[%s1463_s19 + $0x160] sm:$0xff] %v886_v63  ;;  %v857_v4 = vmax.f32 %v647_v0, 0.0  ;;  %v889_v5 = vmax.f32 %v775_v1, 0.0  ;;  %v639_v6 = vadd.f32 %v1455_v40, %v638_v2  ;;  %v767_v7 = vadd.f32 %v1455_v40, %v766_v3 }
 0x10d   : > { %v1200_v8 = vpop.f32.mrf.mxu0  ;;  %v1232_v9 = vpop.f32.mrf.mxu1 }
 0x10e   : > { %921 = vst [vmem:[%s1463_s19 + $0x78] sm:$0xff] %v857_v4  ;;  %953 = vst [vmem:[%s1463_s19 + $0x178] sm:$0xff] %v889_v5  ;;  %v855_v10 = vmax.f32 %v639_v6, 0.0  ;;  %v887_v11 = vmax.f32 %v767_v7, 0.0  ;;  %v660_v12 = vadd.f32 %v1200_v8, %v1455_v40  ;;  %v788_v13 = vadd.f32 %v1232_v9, %v1455_v40 }
 0x10f   : > { %v651_v14 = vpop.f32.mrf.mxu0  ;;  %v779_v15 = vpop.f32.mrf.mxu1 }
 0x110   : > { %919 = vst [vmem:[%s1463_s19 + $0x68] sm:$0xff] %v855_v10  ;;  %951 = vst [vmem:[%s1463_s19 + $0x168] sm:$0xff] %v887_v11  ;;  %v860_v16 = vmax.f32 %v660_v12, 0.0  ;;  %v892_v17 = vmax.f32 %v788_v13, 0.0  ;;  %v652_v18 = vadd.f32 %v1455_v40, %v651_v14  ;;  %v780_v19 = vadd.f32 %v1455_v40, %v779_v15 }
 0x111   : > { %v1201_v20 = vpop.f32.mrf.mxu0  ;;  %v1233_v21 = vpop.f32.mrf.mxu1 }
 0x112   : > { %924 = vst [vmem:[%s1463_s19 + $0x90] sm:$0xff] %v860_v16  ;;  %956 = vst [vmem:[%s1463_s19 + $0x190] sm:$0xff] %v892_v17  ;;  %v858_v22 = vmax.f32 %v652_v18, 0.0  ;;  %v890_v23 = vmax.f32 %v780_v19, 0.0  ;;  %v663_v24 = vadd.f32 %v1201_v20, %v1455_v40  ;;  %v791_v25 = vadd.f32 %v1233_v21, %v1455_v40 }
 0x113   : > { %v654_v26 = vpop.f32.mrf.mxu0  ;;  %v782_v27 = vpop.f32.mrf.mxu1 }
 0x114   : > { %922 = vst [vmem:[%s1463_s19 + $0x80] sm:$0xff] %v858_v22  ;;  %954 = vst [vmem:[%s1463_s19 + $0x180] sm:$0xff] %v890_v23  ;;  %v861_v28 = vmax.f32 %v663_v24, 0.0  ;;  %v893_v29 = vmax.f32 %v791_v25, 0.0  ;;  %v655_v30 = vadd.f32 %v1455_v40, %v654_v26  ;;  %v783_v31 = vadd.f32 %v1455_v40, %v782_v27 }
 0x115   : > { %v1204_v32 = vpop.f32.mrf.mxu0  ;;  %v1236_v33 = vpop.f32.mrf.mxu1 }
 0x116   : > { %925 = vst [vmem:[%s1463_s19 + $0x98] sm:$0xff] %v861_v28  ;;  %957 = vst [vmem:[%s1463_s19 + $0x198] sm:$0xff] %v893_v29  ;;  %v859_v34 = vmax.f32 %v655_v30, 0.0  ;;  %v891_v35 = vmax.f32 %v783_v31, 0.0  ;;  %v676_v36 = vadd.f32 %v1204_v32, %v1455_v40  ;;  %v804_v37 = vadd.f32 %v1236_v33, %v1455_v40 }
 0x117   : > { %v667_v38 = vpop.f32.mrf.mxu0  ;;  %v795_v39 = vpop.f32.mrf.mxu1 }
 0x118   : > { %923 = vst [vmem:[%s1463_s19 + $0x88] sm:$0xff] %v859_v34  ;;  %955 = vst [vmem:[%s1463_s19 + $0x188] sm:$0xff] %v891_v35  ;;  %v864_v41 = vmax.f32 %v676_v36, 0.0  ;;  %v896_v42 = vmax.f32 %v804_v37, 0.0  ;;  %v668_v43 = vadd.f32 %v1455_v40, %v667_v38  ;;  %v796_v44 = vadd.f32 %v1455_v40, %v795_v39 }
 0x119   : > { %v1205_v45 = vpop.f32.mrf.mxu0  ;;  %v1237_v46 = vpop.f32.mrf.mxu1 }
 0x11a   : > { %928 = vst [vmem:[%s1463_s19 + $0xb0] sm:$0xff] %v864_v41  ;;  %960 = vst [vmem:[%s1463_s19 + $0x1b0] sm:$0xff] %v896_v42  ;;  %v862_v47 = vmax.f32 %v668_v43, 0.0  ;;  %v894_v48 = vmax.f32 %v796_v44, 0.0  ;;  %v679_v49 = vadd.f32 %v1205_v45, %v1455_v40  ;;  %v807_v50 = vadd.f32 %v1237_v46, %v1455_v40 }
 0x11b   : > { %v670_v51 = vpop.f32.mrf.mxu0  ;;  %v798_v52 = vpop.f32.mrf.mxu1 }
 0x11c   : > { %926 = vst [vmem:[%s1463_s19 + $0xa0] sm:$0xff] %v862_v47  ;;  %958 = vst [vmem:[%s1463_s19 + $0x1a0] sm:$0xff] %v894_v48  ;;  %v865_v53 = vmax.f32 %v679_v49, 0.0  ;;  %v897_v54 = vmax.f32 %v807_v50, 0.0  ;;  %v671_v55 = vadd.f32 %v1455_v40, %v670_v51  ;;  %v799_v56 = vadd.f32 %v1455_v40, %v798_v52 }
 0x11d   : > { %v1208_v57 = vpop.f32.mrf.mxu0  ;;  %v1240_v58 = vpop.f32.mrf.mxu1 }
 0x11e   : > { %929 = vst [vmem:[%s1463_s19 + $0xb8] sm:$0xff] %v865_v53  ;;  %961 = vst [vmem:[%s1463_s19 + $0x1b8] sm:$0xff] %v897_v54  ;;  %v863_v59 = vmax.f32 %v671_v55, 0.0  ;;  %v895_v60 = vmax.f32 %v799_v56, 0.0  ;;  %v692_v61 = vadd.f32 %v1208_v57, %v1455_v40  ;;  %v820_v62 = vadd.f32 %v1240_v58, %v1455_v40 }
 0x11f   : > { %v683_v63 = vpop.f32.mrf.mxu0  ;;  %v811_v0 = vpop.f32.mrf.mxu1 }
 0x120   : > { %927 = vst [vmem:[%s1463_s19 + $0xa8] sm:$0xff] %v863_v59  ;;  %959 = vst [vmem:[%s1463_s19 + $0x1a8] sm:$0xff] %v895_v60  ;;  %v868_v1 = vmax.f32 %v692_v61, 0.0  ;;  %v900_v2 = vmax.f32 %v820_v62, 0.0  ;;  %v684_v3 = vadd.f32 %v1455_v40, %v683_v63  ;;  %v812_v4 = vadd.f32 %v1455_v40, %v811_v0 }
 0x121   : > { %v1209_v5 = vpop.f32.mrf.mxu0  ;;  %v1241_v6 = vpop.f32.mrf.mxu1 }
 0x122   : > { %932 = vst [vmem:[%s1463_s19 + $0xd0] sm:$0xff] %v868_v1  ;;  %964 = vst [vmem:[%s1463_s19 + $0x1d0] sm:$0xff] %v900_v2  ;;  %v866_v7 = vmax.f32 %v684_v3, 0.0  ;;  %v898_v8 = vmax.f32 %v812_v4, 0.0  ;;  %v695_v9 = vadd.f32 %v1209_v5, %v1455_v40  ;;  %v823_v10 = vadd.f32 %v1241_v6, %v1455_v40 }
 0x123   : > { %v686_v11 = vpop.f32.mrf.mxu0  ;;  %v814_v12 = vpop.f32.mrf.mxu1 }
 0x124   : > { %930 = vst [vmem:[%s1463_s19 + $0xc0] sm:$0xff] %v866_v7  ;;  %962 = vst [vmem:[%s1463_s19 + $0x1c0] sm:$0xff] %v898_v8  ;;  %v869_v13 = vmax.f32 %v695_v9, 0.0  ;;  %v901_v14 = vmax.f32 %v823_v10, 0.0  ;;  %v687_v15 = vadd.f32 %v1455_v40, %v686_v11  ;;  %v815_v16 = vadd.f32 %v1455_v40, %v814_v12 }
 0x125   : > { %v1212_v17 = vpop.f32.mrf.mxu0  ;;  %v1244_v18 = vpop.f32.mrf.mxu1 }
 0x126   : > { %933 = vst [vmem:[%s1463_s19 + $0xd8] sm:$0xff] %v869_v13  ;;  %965 = vst [vmem:[%s1463_s19 + $0x1d8] sm:$0xff] %v901_v14  ;;  %v867_v19 = vmax.f32 %v687_v15, 0.0  ;;  %v899_v20 = vmax.f32 %v815_v16, 0.0  ;;  %v708_v21 = vadd.f32 %v1212_v17, %v1455_v40  ;;  %v836_v22 = vadd.f32 %v1244_v18, %v1455_v40 }
 0x127   : > { %v699_v23 = vpop.f32.mrf.mxu0  ;;  %v827_v24 = vpop.f32.mrf.mxu1 }
 0x128   : > { %931 = vst [vmem:[%s1463_s19 + $0xc8] sm:$0xff] %v867_v19  ;;  %963 = vst [vmem:[%s1463_s19 + $0x1c8] sm:$0xff] %v899_v20  ;;  %v872_v25 = vmax.f32 %v708_v21, 0.0  ;;  %v904_v26 = vmax.f32 %v836_v22, 0.0  ;;  %v700_v27 = vadd.f32 %v1455_v40, %v699_v23  ;;  %v828_v28 = vadd.f32 %v1455_v40, %v827_v24 }
 0x129   : > { %v1213_v29 = vpop.f32.mrf.mxu0  ;;  %v1245_v30 = vpop.f32.mrf.mxu1 }
 0x12a   : > { %936 = vst [vmem:[%s1463_s19 + $0xf0] sm:$0xff] %v872_v25  ;;  %968 = vst [vmem:[%s1463_s19 + $0x1f0] sm:$0xff] %v904_v26  ;;  %v870_v31 = vmax.f32 %v700_v27, 0.0  ;;  %v902_v32 = vmax.f32 %v828_v28, 0.0  ;;  %v711_v33 = vadd.f32 %v1213_v29, %v1455_v40  ;;  %v839_v34 = vadd.f32 %v1245_v30, %v1455_v40 }
 0x12b   : > { %v702_v35 = vpop.f32.mrf.mxu0  ;;  %v830_v36 = vpop.f32.mrf.mxu1 }
 0x12c   : > { %934 = vst [vmem:[%s1463_s19 + $0xe0] sm:$0xff] %v870_v31  ;;  %966 = vst [vmem:[%s1463_s19 + $0x1e0] sm:$0xff] %v902_v32  ;;  %v873_v37 = vmax.f32 %v711_v33, 0.0  ;;  %v905_v38 = vmax.f32 %v839_v34, 0.0  ;;  %v703_v39 = vadd.f32 %v1455_v40, %v702_v35  ;;  %v831_v41 = vadd.f32 %v1455_v40, %v830_v36 }
 0x12e   : > { %937 = vst [vmem:[%s1463_s19 + $0xf8] sm:$0xff] %v873_v37  ;;  %969 = vst [vmem:[%s1463_s19 + $0x1f8] sm:$0xff] %v905_v38  ;;  %v871_v42 = vmax.f32 %v703_v39, 0.0  ;;  %v903_v43 = vmax.f32 %v831_v41, 0.0 }
 0x130   : > { %935 = vst [vmem:[%s1463_s19 + $0xe8] sm:$0xff] %v871_v42  ;;  %967 = vst [vmem:[%s1463_s19 + $0x1e8] sm:$0xff] %v903_v43 }
 0x131 PF: > { %s13_s14 = sadd.s32 1, %s1348_s14   ;;  %s1604_s12 = smov %s1344_s13 }
 0x132   : > { %p10_p5 = scmp.ge.s32.totalorder %s13_s14, 6   ;;  %s1605_s13 = smov %s1607_s15 }
 0x134   :  { %12 = sbr.rel (!%p10_p5) target bundleno = 2 (0x2), region = 68 }

// kernel: _lambda_.11
= control target key start
LH: loop header
LB: loop body
LE: loop exit
PB: predicated region body
PF: predicated region fallthrough
CT: control target
= control target key end

     0   :  { %v1750_v0 = vmov 0   ;;  %s2394_s1 = inlined_call_operand.vmem [shape: bf16[512,128], index: 1, kind: input, shape index: {}]   ;;  %s2395_s0 = inlined_call_operand.vmem [shape: bf16[392,512], index: 0, kind: input, shape index: {}]   ;;  %s2396_s2 = inlined_call_operand.vmem [shape: f32[1,128], index: 2, kind: input, shape index: {}]   ;;  %s2397_s3 = inlined_call_operand.vmem [shape: f32[392,128], index: 3, kind: output, shape index: {}]  }
   0x1   :  { %870 = vmatprep.subr.bf16.mxu0 %v1750_v0  ;;  %1102 = vmatprep.subr.bf16.mxu1 %v1750_v0  ;;  %v1570_v1 = vld [vmem:[%s2394_s1 + $0x38] sm:$0xff]   ;;  %v1572_v3 = vld [vmem:[%s2394_s1 + $0x30] sm:$0xff]   ;;  %v1574_v5 = vld [vmem:[%s2394_s1 + $0x28] sm:$0xff]  }
   0x2   :  { %v1571_v2 = vld [vmem:[%s2394_s1 + $0xb8] sm:$0xff]   ;;  %871 = vmatpush1.bf16.msra.mxu0 %v1570_v1  ;;  %v1573_v4 = vld [vmem:[%s2394_s1 + $0xb0] sm:$0xff]   ;;  %v1575_v6 = vld [vmem:[%s2394_s1 + $0xa8] sm:$0xff]  }
   0x3   :  { %1103 = vmatpush1.bf16.msra.mxu1 %v1571_v2  ;;  %872 = vmatprep.subr.bf16.mxu0 %v1750_v0  ;;  %v1576_v7 = vld [vmem:[%s2394_s1 + $0x20] sm:$0xff]   ;;  %v1578_v9 = vld [vmem:[%s2394_s1 + $0x18] sm:$0xff]   ;;  %v1580_v11 = vld [vmem:[%s2394_s1 + $0x10] sm:$0xff]  }
   0x4   :  { %1104 = vmatprep.subr.bf16.mxu1 %v1750_v0  ;;  %v1577_v8 = vld [vmem:[%s2394_s1 + $0xa0] sm:$0xff]   ;;  %v1579_v10 = vld [vmem:[%s2394_s1 + $0x98] sm:$0xff]   ;;  %v1581_v12 = vld [vmem:[%s2394_s1 + $0x90] sm:$0xff]  }
   0x5   :  { %v1582_v13 = vld [vmem:[%s2394_s1 + $0x8] sm:$0xff]   ;;  %v1584_v15 = vld [vmem:[%s2394_s1] sm:$0xff]   ;;  %v1586_v17 = vld [vmem:[%s2394_s1 + $0x78] sm:$0xff]  }
   0x6   :  { %873 = vmatpush1.bf16.msra.mxu0 %v1572_v3  ;;  %v1583_v14 = vld [vmem:[%s2394_s1 + $0x88] sm:$0xff]   ;;  %v1585_v16 = vld [vmem:[%s2394_s1 + $0x80] sm:$0xff]   ;;  %v1587_v18 = vld [vmem:[%s2394_s1 + $0xf8] sm:$0xff]  }
   0x7   :  { %1105 = vmatpush1.bf16.msra.mxu1 %v1573_v4  ;;  %874 = vmatprep.subr.bf16.mxu0 %v1750_v0  ;;  %v1604_v19 = vld [vmem:[%s2395_s0 + $0x4] ss:$16 sps:$4 sm:$0xff]   ;;  %v1607_v21 = vld [vmem:[%s2395_s0 + $0xc] ss:$16 sps:$4 sm:$0xff]   ;;  %v1602_v35 = vld [vmem:[%s2395_s0] ss:$16 sps:$4 sm:$0xff]  }
   0x8   :  { %1106 = vmatprep.subr.bf16.mxu1 %v1750_v0  ;;  %v1588_v20 = vld [vmem:[%s2394_s1 + $0x70] sm:$0xff]   ;;  %902 = vmatprep.mubr.bf16.mxu0 %v1604_v19  ;;  %v1590_v23 = vld [vmem:[%s2394_s1 + $0x68] sm:$0xff]   ;;  %v1592_v25 = vld [vmem:[%s2394_s1 + $0x60] sm:$0xff]  }
   0x9   :  { %v1589_v22 = vld [vmem:[%s2394_s1 + $0xf0] sm:$0xff]   ;;  %1134 = vmatprep.mubr.bf16.mxu1 %v1607_v21  ;;  %v1591_v24 = vld [vmem:[%s2394_s1 + $0xe8] sm:$0xff]   ;;  %v1593_v26 = vld [vmem:[%s2394_s1 + $0xe0] sm:$0xff]  }
   0xa   :  { %875 = vmatpush1.bf16.msra.mxu0 %v1574_v5  ;;  %v1594_v27 = vld [vmem:[%s2394_s1 + $0x58] sm:$0xff]   ;;  %v1596_v29 = vld [vmem:[%s2394_s1 + $0x50] sm:$0xff]   ;;  %v1598_v31 = vld [vmem:[%s2394_s1 + $0x48] sm:$0xff]  }
   0xb   :  { %1107 = vmatpush1.bf16.msra.mxu1 %v1575_v6  ;;  %876 = vmatprep.subr.bf16.mxu0 %v1750_v0  ;;  %v1595_v28 = vld [vmem:[%s2394_s1 + $0xd8] sm:$0xff]   ;;  %v1597_v30 = vld [vmem:[%s2394_s1 + $0xd0] sm:$0xff]   ;;  %v1599_v32 = vld [vmem:[%s2394_s1 + $0xc8] sm:$0xff]  }
   0xc   :  { %1108 = vmatprep.subr.bf16.mxu1 %v1750_v0  ;;  %v1600_v33 = vld [vmem:[%s2394_s1 + $0x40] sm:$0xff]   ;;  %v1605_v36 = vld [vmem:[%s2395_s0 + $0x8] ss:$16 sps:$4 sm:$0xff]   ;;  %v1610_v38 = vld [vmem:[%s2395_s0 + $0x2c] ss:$16 sps:$4 sm:$0xff]  }
   0xd   :  { %v1601_v34 = vld [vmem:[%s2394_s1 + $0xc0] sm:$0xff]   ;;  %v1613_v40 = vld [vmem:[%s2395_s0 + $0x28] ss:$16 sps:$4 sm:$0xff]   ;;  %v1616_v42 = vld [vmem:[%s2395_s0 + $0x4c] ss:$16 sps:$4 sm:$0xff]  }
   0xe   :  { %877 = vmatpush1.bf16.msra.mxu0 %v1576_v7  ;;  %v1608_v37 = vld [vmem:[%s2395_s0 + $0x24] ss:$16 sps:$4 sm:$0xff]   ;;  %v1612_v39 = vld [vmem:[%s2395_s0 + $0x20] ss:$16 sps:$4 sm:$0xff]   ;;  %v1619_v44 = vld [vmem:[%s2395_s0 + $0x48] ss:$16 sps:$4 sm:$0xff]  }
   0xf   :  { %1109 = vmatpush1.bf16.msra.mxu1 %v1577_v8  ;;  %878 = vmatprep.subr.bf16.mxu0 %v1750_v0  ;;  %v1614_v41 = vld [vmem:[%s2395_s0 + $0x44] ss:$16 sps:$4 sm:$0xff]   ;;  %v1618_v43 = vld [vmem:[%s2395_s0 + $0x40] ss:$16 sps:$4 sm:$0xff]   ;;  %v1622_v46 = vld [vmem:[%s2395_s0 + $0x6c] ss:$16 sps:$4 sm:$0xff]  }
  0x10   :  { %1110 = vmatprep.subr.bf16.mxu1 %v1750_v0  ;;  %v1620_v45 = vld [vmem:[%s2395_s0 + $0x64] ss:$16 sps:$4 sm:$0xff]   ;;  %v1624_v47 = vld [vmem:[%s2395_s0 + $0x60] ss:$16 sps:$4 sm:$0xff]   ;;  %v1625_v48 = vld [vmem:[%s2395_s0 + $0x68] ss:$16 sps:$4 sm:$0xff]  }
  0x11   :  { %v1626_v49 = vld [vmem:[%s2395_s0 + $0x84] ss:$16 sps:$4 sm:$0xff]   ;;  %v1628_v50 = vld [vmem:[%s2395_s0 + $0x8c] ss:$16 sps:$4 sm:$0xff]   ;;  %v1630_v51 = vld [vmem:[%s2395_s0 + $0x80] ss:$16 sps:$4 sm:$0xff]  }
  0x12   :  { %879 = vmatpush1.bf16.msra.mxu0 %v1578_v9  ;;  %v1631_v52 = vld [vmem:[%s2395_s0 + $0x88] ss:$16 sps:$4 sm:$0xff]   ;;  %v1632_v53 = vld [vmem:[%s2395_s0 + $0xa4] ss:$16 sps:$4 sm:$0xff]   ;;  %v1634_v54 = vld [vmem:[%s2395_s0 + $0xac] ss:$16 sps:$4 sm:$0xff]  }
  0x13   :  { %1111 = vmatpush1.bf16.msra.mxu1 %v1579_v10  ;;  %880 = vmatprep.subr.bf16.mxu0 %v1750_v0  ;;  %v1636_v55 = vld [vmem:[%s2395_s0 + $0xa0] ss:$16 sps:$4 sm:$0xff]   ;;  %v1637_v56 = vld [vmem:[%s2395_s0 + $0xa8] ss:$16 sps:$4 sm:$0xff]   ;;  %v1638_v57 = vld [vmem:[%s2395_s0 + $0xc4] ss:$16 sps:$4 sm:$0xff]  }
  0x14   :  { %1112 = vmatprep.subr.bf16.mxu1 %v1750_v0  ;;  %v1640_v58 = vld [vmem:[%s2395_s0 + $0xcc] ss:$16 sps:$4 sm:$0xff]   ;;  %v1642_v59 = vld [vmem:[%s2395_s0 + $0xc0] ss:$16 sps:$4 sm:$0xff]   ;;  %v1643_v60 = vld [vmem:[%s2395_s0 + $0xc8] ss:$16 sps:$4 sm:$0xff]  }
  0x15   :  { %v1644_v61 = vld [vmem:[%s2395_s0 + $0xe4] ss:$16 sps:$4 sm:$0xff]   ;;  %v1646_v62 = vld [vmem:[%s2395_s0 + $0xec] ss:$16 sps:$4 sm:$0xff]   ;;  %v1648_v63 = vld [vmem:[%s2395_s0 + $0xe0] ss:$16 sps:$4 sm:$0xff]  }
  0x16   :  { %881 = vmatpush1.bf16.msra.mxu0 %v1580_v11  ;;  %v1650_v1 = vld [vmem:[%s2395_s0 + $0x104] ss:$16 sps:$4 sm:$0xff]   ;;  %v1652_v2 = vld [vmem:[%s2395_s0 + $0x10c] ss:$16 sps:$4 sm:$0xff]   ;;  %v1654_v3 = vld [vmem:[%s2395_s0 + $0x100] ss:$16 sps:$4 sm:$0xff]  }
  0x17   :  { %1113 = vmatpush1.bf16.msra.mxu1 %v1581_v12  ;;  %882 = vmatprep.subr.bf16.mxu0 %v1750_v0  ;;  %v1655_v4 = vld [vmem:[%s2395_s0 + $0x108] ss:$16 sps:$4 sm:$0xff]   ;;  %v1656_v5 = vld [vmem:[%s2395_s0 + $0x124] ss:$16 sps:$4 sm:$0xff]   ;;  %v1658_v6 = vld [vmem:[%s2395_s0 + $0x12c] ss:$16 sps:$4 sm:$0xff]  }
  0x18   :  { %1114 = vmatprep.subr.bf16.mxu1 %v1750_v0  ;;  %v1660_v7 = vld [vmem:[%s2395_s0 + $0x120] ss:$16 sps:$4 sm:$0xff]   ;;  %v1661_v8 = vld [vmem:[%s2395_s0 + $0x128] ss:$16 sps:$4 sm:$0xff]   ;;  %v1662_v9 = vld [vmem:[%s2395_s0 + $0x144] ss:$16 sps:$4 sm:$0xff]  }
  0x19   :  { %v1664_v10 = vld [vmem:[%s2395_s0 + $0x14c] ss:$16 sps:$4 sm:$0xff]   ;;  %v1666_v11 = vld [vmem:[%s2395_s0 + $0x140] ss:$16 sps:$4 sm:$0xff]   ;;  %v1667_v12 = vld [vmem:[%s2395_s0 + $0x148] ss:$16 sps:$4 sm:$0xff]  }
  0x1a   :  { %883 = vmatpush1.bf16.msra.mxu0 %v1582_v13  ;;  %v1668_v13 = vld [vmem:[%s2395_s0 + $0x164] ss:$16 sps:$4 sm:$0xff]   ;;  %v1678_v19 = vld [vmem:[%s2395_s0 + $0x180] ss:$16 sps:$4 sm:$0xff]  }
  0x1b   :  { %1115 = vmatpush1.bf16.msra.mxu1 %v1583_v14  ;;  %884 = vmatprep.subr.bf16.mxu0 %v1750_v0  ;;  %v1670_v14 = vld [vmem:[%s2395_s0 + $0x16c] ss:$16 sps:$4 sm:$0xff]   ;;  %v1680_v21 = vld [vmem:[%s2395_s0 + $0x1a4] ss:$16 sps:$4 sm:$0xff]  }
  0x1c   :  { %1116 = vmatprep.subr.bf16.mxu1 %v1750_v0 }
  0x1e   :  { %885 = vmatpush1.bf16.msra.mxu0 %v1584_v15  ;;  %v1672_v15 = vld [vmem:[%s2395_s0 + $0x160] ss:$16 sps:$4 sm:$0xff]  }
  0x1f   :  { %1117 = vmatpush1.bf16.msra.mxu1 %v1585_v16  ;;  %886 = vmatprep.subr.bf16.mxu0 %v1750_v0  ;;  %v1673_v16 = vld [vmem:[%s2395_s0 + $0x168] ss:$16 sps:$4 sm:$0xff]  }
  0x20   :  { %1118 = vmatprep.subr.bf16.mxu1 %v1750_v0 }
  0x22   :  { %887 = vmatpush2.bf16.msra.mxu0 %v1586_v17  ;;  %v1674_v17 = vld [vmem:[%s2395_s0 + $0x184] ss:$16 sps:$4 sm:$0xff]  }
  0x23   :  { %1119 = vmatpush2.bf16.msra.mxu1 %v1587_v18  ;;  %888 = vmatprep.subr.bf16.mxu0 %v1750_v0  ;;  %v1676_v18 = vld [vmem:[%s2395_s0 + $0x18c] ss:$16 sps:$4 sm:$0xff]  }
  0x24   :  { %1120 = vmatprep.subr.bf16.mxu1 %v1750_v0 }
  0x26   :  { %889 = vmatpush2.bf16.msra.mxu0 %v1588_v20  ;;  %v1679_v20 = vld [vmem:[%s2395_s0 + $0x188] ss:$16 sps:$4 sm:$0xff]  }
  0x27   :  { %1121 = vmatpush2.bf16.msra.mxu1 %v1589_v22  ;;  %890 = vmatprep.subr.bf16.mxu0 %v1750_v0  ;;  %v1682_v22 = vld [vmem:[%s2395_s0 + $0x1ac] ss:$16 sps:$4 sm:$0xff]  }
  0x28   :  { %1122 = vmatprep.subr.bf16.mxu1 %v1750_v0 }
  0x2a   :  { %891 = vmatpush2.bf16.msra.mxu0 %v1590_v23  ;;  %v1684_v23 = vld [vmem:[%s2395_s0 + $0x1a0] ss:$16 sps:$4 sm:$0xff]  }
  0x2b   :  { %1123 = vmatpush2.bf16.msra.mxu1 %v1591_v24  ;;  %892 = vmatprep.subr.bf16.mxu0 %v1750_v0  ;;  %v1685_v24 = vld [vmem:[%s2395_s0 + $0x1a8] ss:$16 sps:$4 sm:$0xff]  }
  0x2c   :  { %1124 = vmatprep.subr.bf16.mxu1 %v1750_v0 }
  0x2e   :  { %893 = vmatpush2.bf16.msra.mxu0 %v1592_v25  ;;  %v1686_v25 = vld [vmem:[%s2395_s0 + $0x1c4] ss:$16 sps:$4 sm:$0xff]  }
  0x2f   :  { %1125 = vmatpush2.bf16.msra.mxu1 %v1593_v26  ;;  %894 = vmatprep.subr.bf16.mxu0 %v1750_v0  ;;  %v1688_v26 = vld [vmem:[%s2395_s0 + $0x1cc] ss:$16 sps:$4 sm:$0xff]  }
  0x30   :  { %1126 = vmatprep.subr.bf16.mxu1 %v1750_v0 }
  0x32   :  { %895 = vmatpush2.bf16.msra.mxu0 %v1594_v27  ;;  %v1690_v27 = vld [vmem:[%s2395_s0 + $0x1c0] ss:$16 sps:$4 sm:$0xff]  }
  0x33   :  { %1127 = vmatpush2.bf16.msra.mxu1 %v1595_v28  ;;  %896 = vmatprep.subr.bf16.mxu0 %v1750_v0  ;;  %v1691_v28 = vld [vmem:[%s2395_s0 + $0x1c8] ss:$16 sps:$4 sm:$0xff]  }
  0x34   :  { %1128 = vmatprep.subr.bf16.mxu1 %v1750_v0 }
  0x36   :  { %897 = vmatpush2.bf16.msra.mxu0 %v1596_v29  ;;  %v1692_v29 = vld [vmem:[%s2395_s0 + $0x1e4] ss:$16 sps:$4 sm:$0xff]  }
  0x37   :  { %1129 = vmatpush2.bf16.msra.mxu1 %v1597_v30  ;;  %898 = vmatprep.subr.bf16.mxu0 %v1750_v0  ;;  %v1694_v30 = vld [vmem:[%s2395_s0 + $0x1ec] ss:$16 sps:$4 sm:$0xff]  }
  0x38   :  { %1130 = vmatprep.subr.bf16.mxu1 %v1750_v0 }
  0x3a   :  { %899 = vmatpush2.bf16.msra.mxu0 %v1598_v31  ;;  %v1696_v31 = vld [vmem:[%s2395_s0 + $0x1e0] ss:$16 sps:$4 sm:$0xff]  }
  0x3b   :  { %1131 = vmatpush2.bf16.msra.mxu1 %v1599_v32  ;;  %900 = vmatprep.subr.bf16.mxu0 %v1750_v0  ;;  %v1697_v32 = vld [vmem:[%s2395_s0 + $0x1e8] ss:$16 sps:$4 sm:$0xff]  }
  0x3c   :  { %1132 = vmatprep.subr.bf16.mxu1 %v1750_v0  ;;  %v1649_v0 = vld [vmem:[%s2395_s0 + $0xe8] ss:$16 sps:$4 sm:$0xff]  }
  0x3e   :  { %901 = vmatpush2.bf16.msra.mxu0 %v1600_v33  ;;  %v1698_v33 = vld [vmem:[%s2395_s0 + $0x204] ss:$16 sps:$4 sm:$0xff]  }
  0x3f   :  { %1133 = vmatpush2.bf16.msra.mxu1 %v1601_v34  ;;  %v1700_v34 = vld [vmem:[%s2395_s0 + $0x20c] ss:$16 sps:$4 sm:$0xff]  }
  0x41   :  { %903 = vmatmul.mubr.bf16.vlgmr.msra.gmra.mxu0 %v1602_v35  ;;  %v1702_v35 = vld [vmem:[%s2395_s0 + $0x200] ss:$16 sps:$4 sm:$0xff]  }
  0x42   :  { %1135 = vmatmul.mubr.bf16.vlgmr.msra.gmra.mxu1 %v1605_v36  ;;  %910 = vmatprep.mubr.bf16.mxu0 %v1608_v37  ;;  %v1703_v36 = vld [vmem:[%s2395_s0 + $0x208] ss:$16 sps:$4 sm:$0xff]   ;;  %v1704_v37 = vld [vmem:[%s2395_s0 + $0x224] ss:$16 sps:$4 sm:$0xff]  }
  0x43   :  { %1142 = vmatprep.mubr.bf16.mxu1 %v1610_v38  ;;  %v1706_v38 = vld [vmem:[%s2395_s0 + $0x22c] ss:$16 sps:$4 sm:$0xff]  }
  0x49   :  { %911 = vmatmul.mubr.bf16.gmra.mxu0 %v1612_v39  ;;  %v1708_v39 = vld [vmem:[%s2395_s0 + $0x220] ss:$16 sps:$4 sm:$0xff]  }
  0x4a   :  { %1143 = vmatmul.mubr.bf16.gmra.mxu1 %v1613_v40  ;;  %918 = vmatprep.mubr.bf16.mxu0 %v1614_v41  ;;  %v1709_v40 = vld [vmem:[%s2395_s0 + $0x228] ss:$16 sps:$4 sm:$0xff]   ;;  %v1710_v41 = vld [vmem:[%s2395_s0 + $0x244] ss:$16 sps:$4 sm:$0xff]  }
  0x4b   :  { %1150 = vmatprep.mubr.bf16.mxu1 %v1616_v42  ;;  %v1712_v42 = vld [vmem:[%s2395_s0 + $0x24c] ss:$16 sps:$4 sm:$0xff]  }
  0x51   :  { %919 = vmatmul.mubr.bf16.gmra.mxu0 %v1618_v43  ;;  %v1714_v43 = vld [vmem:[%s2395_s0 + $0x240] ss:$16 sps:$4 sm:$0xff]  }
  0x52   :  { %1151 = vmatmul.mubr.bf16.gmra.mxu1 %v1619_v44  ;;  %926 = vmatprep.mubr.bf16.mxu0 %v1620_v45  ;;  %v1715_v44 = vld [vmem:[%s2395_s0 + $0x248] ss:$16 sps:$4 sm:$0xff]   ;;  %v1716_v45 = vld [vmem:[%s2395_s0 + $0x264] ss:$16 sps:$4 sm:$0xff]  }
  0x53   :  { %1158 = vmatprep.mubr.bf16.mxu1 %v1622_v46  ;;  %v1718_v46 = vld [vmem:[%s2395_s0 + $0x26c] ss:$16 sps:$4 sm:$0xff]  }
  0x59   :  { %927 = vmatmul.mubr.bf16.gmra.mxu0 %v1624_v47  ;;  %v1720_v47 = vld [vmem:[%s2395_s0 + $0x260] ss:$16 sps:$4 sm:$0xff]  }
  0x5a   :  { %1159 = vmatmul.mubr.bf16.gmra.mxu1 %v1625_v48  ;;  %934 = vmatprep.mubr.bf16.mxu0 %v1626_v49  ;;  %v1721_v48 = vld [vmem:[%s2395_s0 + $0x268] ss:$16 sps:$4 sm:$0xff]   ;;  %v1722_v49 = vld [vmem:[%s2395_s0 + $0x284] ss:$16 sps:$4 sm:$0xff]  }
  0x5b   :  { %1166 = vmatprep.mubr.bf16.mxu1 %v1628_v50  ;;  %v1724_v50 = vld [vmem:[%s2395_s0 + $0x28c] ss:$16 sps:$4 sm:$0xff]  }
  0x61   :  { %935 = vmatmul.mubr.bf16.gmra.mxu0 %v1630_v51  ;;  %v1726_v51 = vld [vmem:[%s2395_s0 + $0x280] ss:$16 sps:$4 sm:$0xff]  }
  0x62   :  { %1167 = vmatmul.mubr.bf16.gmra.mxu1 %v1631_v52  ;;  %942 = vmatprep.mubr.bf16.mxu0 %v1632_v53  ;;  %v1727_v52 = vld [vmem:[%s2395_s0 + $0x288] ss:$16 sps:$4 sm:$0xff]   ;;  %v1728_v53 = vld [vmem:[%s2395_s0 + $0x2a4] ss:$16 sps:$4 sm:$0xff]  }
  0x63   :  { %1174 = vmatprep.mubr.bf16.mxu1 %v1634_v54  ;;  %v1730_v54 = vld [vmem:[%s2395_s0 + $0x2ac] ss:$16 sps:$4 sm:$0xff]  }
  0x69   :  { %943 = vmatmul.mubr.bf16.gmra.mxu0 %v1636_v55  ;;  %v1732_v55 = vld [vmem:[%s2395_s0 + $0x2a0] ss:$16 sps:$4 sm:$0xff]  }
  0x6a   :  { %1175 = vmatmul.mubr.bf16.gmra.mxu1 %v1637_v56  ;;  %950 = vmatprep.mubr.bf16.mxu0 %v1638_v57  ;;  %v1733_v56 = vld [vmem:[%s2395_s0 + $0x2a8] ss:$16 sps:$4 sm:$0xff]   ;;  %v1734_v57 = vld [vmem:[%s2395_s0 + $0x2c4] ss:$16 sps:$4 sm:$0xff]  }
  0x6b   :  { %1182 = vmatprep.mubr.bf16.mxu1 %v1640_v58  ;;  %v1736_v58 = vld [vmem:[%s2395_s0 + $0x2cc] ss:$16 sps:$4 sm:$0xff]  }
  0x71   :  { %951 = vmatmul.mubr.bf16.gmra.mxu0 %v1642_v59  ;;  %v1738_v59 = vld [vmem:[%s2395_s0 + $0x2c0] ss:$16 sps:$4 sm:$0xff]  }
  0x72   :  { %1183 = vmatmul.mubr.bf16.gmra.mxu1 %v1643_v60  ;;  %958 = vmatprep.mubr.bf16.mxu0 %v1644_v61  ;;  %v1739_v60 = vld [vmem:[%s2395_s0 + $0x2c8] ss:$16 sps:$4 sm:$0xff]   ;;  %v1740_v61 = vld [vmem:[%s2395_s0 + $0x2e4] ss:$16 sps:$4 sm:$0xff]  }
  0x73   :  { %1190 = vmatprep.mubr.bf16.mxu1 %v1646_v62  ;;  %v1742_v62 = vld [vmem:[%s2395_s0 + $0x2ec] ss:$16 sps:$4 sm:$0xff]  }
  0x79   :  { %959 = vmatmul.mubr.bf16.gmra.mxu0 %v1648_v63  ;;  %v111_v63 = vld [vmem:[%s2395_s0 + $0x300] sm:$0xff] }
  0x7a   :  { %1191 = vmatmul.mubr.bf16.gmra.mxu1 %v1649_v0  ;;  %966 = vmatprep.mubr.bf16.mxu0 %v1650_v1  ;;  %v112_v0 = vld [vmem:[%s2395_s0 + $0x308] sm:$0xff]  ;;  %v1744_v1 = vld [vmem:[%s2395_s0 + $0x2e0] ss:$16 sps:$4 sm:$0xff]  }
  0x7b   :  { %1198 = vmatprep.mubr.bf16.mxu1 %v1652_v2  ;;  %v1745_v2 = vld [vmem:[%s2395_s0 + $0x2e8] ss:$16 sps:$4 sm:$0xff]  }
  0x81   :  { %967 = vmatmul.mubr.bf16.gmra.mxu0 %v1654_v3  ;;  %v1534_v3 = vcombine.high %v111_v63, %v111_v63 }
  0x82   :  { %1199 = vmatmul.mubr.bf16.gmra.mxu1 %v1655_v4  ;;  %974 = vmatprep.mubr.bf16.mxu0 %v1656_v5  ;;  %v1536_v4 = vcombine.high %v112_v0, %v112_v0  ;;  %v1533_v5 = vcombine.low %v111_v63, %v111_v63 }
  0x83   :  { %1206 = vmatprep.mubr.bf16.mxu1 %v1658_v6  ;;  %v1535_v6 = vcombine.low %v112_v0, %v112_v0 }
  0x89   :  { %975 = vmatmul.mubr.bf16.gmra.mxu0 %v1660_v7  ;;  %v2196_v7 = vld [vmem:[%s2396_s2] ss:$0 sm:$0xff] }
  0x8a   :  { %1207 = vmatmul.mubr.bf16.gmra.mxu1 %v1661_v8  ;;  %982 = vmatprep.mubr.bf16.mxu0 %v1662_v9 }
  0x8b   :  { %1214 = vmatprep.mubr.bf16.mxu1 %v1664_v10 }
  0x91   :  { %983 = vmatmul.mubr.bf16.gmra.mxu0 %v1666_v11 }
  0x92   :  { %1215 = vmatmul.mubr.bf16.gmra.mxu1 %v1667_v12  ;;  %990 = vmatprep.mubr.bf16.mxu0 %v1668_v13 }
  0x93   :  { %1222 = vmatprep.mubr.bf16.mxu1 %v1670_v14 }
  0x99   :  { %991 = vmatmul.mubr.bf16.gmra.mxu0 %v1672_v15 }
  0x9a   :  { %1223 = vmatmul.mubr.bf16.gmra.mxu1 %v1673_v16  ;;  %998 = vmatprep.mubr.bf16.mxu0 %v1674_v17 }
  0x9b   :  { %1230 = vmatprep.mubr.bf16.mxu1 %v1676_v18 }
  0xa1   :  { %999 = vmatmul.mubr.bf16.gmra.mxu0 %v1678_v19 }
  0xa2   :  { %1231 = vmatmul.mubr.bf16.gmra.mxu1 %v1679_v20  ;;  %1006 = vmatprep.mubr.bf16.mxu0 %v1680_v21 }
  0xa3   :  { %1238 = vmatprep.mubr.bf16.mxu1 %v1682_v22 }
  0xa9   :  { %1007 = vmatmul.mubr.bf16.gmra.mxu0 %v1684_v23 }
  0xaa   :  { %1239 = vmatmul.mubr.bf16.gmra.mxu1 %v1685_v24  ;;  %1014 = vmatprep.mubr.bf16.mxu0 %v1686_v25 }
  0xab   :  { %1246 = vmatprep.mubr.bf16.mxu1 %v1688_v26 }
  0xb1   :  { %1015 = vmatmul.mubr.bf16.gmra.mxu0 %v1690_v27 }
  0xb2   :  { %1247 = vmatmul.mubr.bf16.gmra.mxu1 %v1691_v28  ;;  %1022 = vmatprep.mubr.bf16.mxu0 %v1692_v29 }
  0xb3   :  { %1254 = vmatprep.mubr.bf16.mxu1 %v1694_v30 }
  0xb9   :  { %1023 = vmatmul.mubr.bf16.gmra.mxu0 %v1696_v31 }
  0xba   :  { %1255 = vmatmul.mubr.bf16.gmra.mxu1 %v1697_v32  ;;  %1030 = vmatprep.mubr.bf16.mxu0 %v1698_v33 }
  0xbb   :  { %1262 = vmatprep.mubr.bf16.mxu1 %v1700_v34 }
  0xc1   :  { %1031 = vmatmul.mubr.bf16.gmra.mxu0 %v1702_v35 }
  0xc2   :  { %1263 = vmatmul.mubr.bf16.gmra.mxu1 %v1703_v36  ;;  %1038 = vmatprep.mubr.bf16.mxu0 %v1704_v37 }
  0xc3   :  { %1270 = vmatprep.mubr.bf16.mxu1 %v1706_v38 }
  0xc9   :  { %1039 = vmatmul.mubr.bf16.gmra.mxu0 %v1708_v39 }
  0xca   :  { %1271 = vmatmul.mubr.bf16.gmra.mxu1 %v1709_v40  ;;  %1046 = vmatprep.mubr.bf16.mxu0 %v1710_v41 }
  0xcb   :  { %1278 = vmatprep.mubr.bf16.mxu1 %v1712_v42 }
  0xd1   :  { %1047 = vmatmul.mubr.bf16.gmra.mxu0 %v1714_v43 }
  0xd2   :  { %1279 = vmatmul.mubr.bf16.gmra.mxu1 %v1715_v44  ;;  %1054 = vmatprep.mubr.bf16.mxu0 %v1716_v45 }
  0xd3   :  { %1286 = vmatprep.mubr.bf16.mxu1 %v1718_v46 }
  0xd9   :  { %1055 = vmatmul.mubr.bf16.gmra.mxu0 %v1720_v47 }
  0xda   :  { %1287 = vmatmul.mubr.bf16.gmra.mxu1 %v1721_v48  ;;  %1062 = vmatprep.mubr.bf16.mxu0 %v1722_v49 }
  0xdb   :  { %1294 = vmatprep.mubr.bf16.mxu1 %v1724_v50 }
  0xe1   :  { %1063 = vmatmul.mubr.bf16.gmra.mxu0 %v1726_v51 }
  0xe2   :  { %1295 = vmatmul.mubr.bf16.gmra.mxu1 %v1727_v52  ;;  %1070 = vmatprep.mubr.bf16.mxu0 %v1728_v53 }
  0xe3   :  { %1302 = vmatprep.mubr.bf16.mxu1 %v1730_v54 }
  0xe9   :  { %1071 = vmatmul.mubr.bf16.gmra.mxu0 %v1732_v55 }
  0xea   :  { %1303 = vmatmul.mubr.bf16.gmra.mxu1 %v1733_v56  ;;  %1078 = vmatprep.mubr.bf16.mxu0 %v1734_v57 }
  0xeb   :  { %1310 = vmatprep.mubr.bf16.mxu1 %v1736_v58 }
  0xf1   :  { %1079 = vmatmul.mubr.bf16.gmra.mxu0 %v1738_v59 }
  0xf2   :  { %1311 = vmatmul.mubr.bf16.gmra.mxu1 %v1739_v60  ;;  %1086 = vmatprep.mubr.bf16.mxu0 %v1740_v61 }
  0xf3   :  { %1318 = vmatprep.mubr.bf16.mxu1 %v1742_v62 }
  0xf9   :  { %1087 = vmatmul.mubr.bf16.gmra.mxu0 %v1744_v1 }
  0xfa   :  { %1319 = vmatmul.mubr.bf16.gmra.mxu1 %v1745_v2  ;;  %1094 = vmatprep.mubr.bf16.mxu0 %v1534_v3 }
  0xfb   :  { %1326 = vmatprep.mubr.bf16.mxu1 %v1536_v4 }
 0x101   :  { %v904_v8 = vpop.f32.mrf.mxu0  ;;  %1095 = vmatmul.mubr.bf16.gmra.mxu0 %v1533_v5 }
 0x102   :  { %v905_v9 = vadd.f32 %v2196_v7, %v904_v8  ;;  %v1136_v10 = vpop.f32.mrf.mxu1  ;;  %1327 = vmatmul.mubr.bf16.gmra.mxu1 %v1535_v6 }
 0x103   :  { %v906_v11 = vpop.f32.mrf.mxu0 }
 0x104   :  { %v1137_v12 = vadd.f32 %v1136_v10, %v905_v9  ;;  %v1138_v13 = vpop.f32.mrf.mxu1 }
 0x105   :  { %v907_v14 = vpop.f32.mrf.mxu0 }
 0x106   :  { %v1334_v15 = vmax.f32 %v1137_v12, 0.0  ;;  %v908_v16 = vadd.f32 %v2196_v7, %v907_v14  ;;  %v1139_v17 = vpop.f32.mrf.mxu1 }
 0x107   :  { %v909_v18 = vpop.f32.mrf.mxu0 }
 0x108   :  { %1383 = vst [vmem:[%s2397_s3] sm:$0xff] %v1334_v15  ;;  %v1140_v19 = vadd.f32 %v1139_v17, %v908_v16  ;;  %v1141_v20 = vpop.f32.mrf.mxu1 }
 0x109   :  { %v912_v21 = vpop.f32.mrf.mxu0 }
 0x10a   :  { %v1335_v22 = vmax.f32 %v1140_v19, 0.0  ;;  %v913_v23 = vadd.f32 %v2196_v7, %v912_v21  ;;  %v1144_v24 = vpop.f32.mrf.mxu1 }
 0x10b   :  { %v914_v25 = vpop.f32.mrf.mxu0 }
 0x10c   :  { %1384 = vst [vmem:[%s2397_s3 + $0x8] sm:$0xff] %v1335_v22  ;;  %v1145_v26 = vadd.f32 %v1144_v24, %v913_v23  ;;  %v1146_v27 = vpop.f32.mrf.mxu1 }
 0x10d   :  { %v915_v28 = vpop.f32.mrf.mxu0 }
 0x10e   :  { %v1336_v29 = vmax.f32 %v1145_v26, 0.0  ;;  %v916_v30 = vadd.f32 %v2196_v7, %v915_v28  ;;  %v1147_v31 = vpop.f32.mrf.mxu1 }
 0x10f   :  { %v917_v32 = vpop.f32.mrf.mxu0 }
 0x110   :  { %1385 = vst [vmem:[%s2397_s3 + $0x10] sm:$0xff] %v1336_v29  ;;  %v1148_v33 = vadd.f32 %v1147_v31, %v916_v30  ;;  %v1149_v34 = vpop.f32.mrf.mxu1 }
 0x111   :  { %v920_v35 = vpop.f32.mrf.mxu0 }
 0x112   :  { %v1337_v36 = vmax.f32 %v1148_v33, 0.0  ;;  %v921_v37 = vadd.f32 %v2196_v7, %v920_v35  ;;  %v1152_v38 = vpop.f32.mrf.mxu1 }
 0x113   :  { %v922_v39 = vpop.f32.mrf.mxu0 }
 0x114   :  { %1386 = vst [vmem:[%s2397_s3 + $0x18] sm:$0xff] %v1337_v36  ;;  %v1153_v40 = vadd.f32 %v1152_v38, %v921_v37  ;;  %v1154_v41 = vpop.f32.mrf.mxu1 }
 0x115   :  { %v923_v42 = vpop.f32.mrf.mxu0 }
 0x116   :  { %v1338_v43 = vmax.f32 %v1153_v40, 0.0  ;;  %v924_v44 = vadd.f32 %v2196_v7, %v923_v42  ;;  %v1155_v45 = vpop.f32.mrf.mxu1 }
 0x117   :  { %v925_v46 = vpop.f32.mrf.mxu0 }
 0x118   :  { %1387 = vst [vmem:[%s2397_s3 + $0x20] sm:$0xff] %v1338_v43  ;;  %v1156_v47 = vadd.f32 %v1155_v45, %v924_v44  ;;  %v1157_v48 = vpop.f32.mrf.mxu1 }
 0x119   :  { %v928_v49 = vpop.f32.mrf.mxu0 }
 0x11a   :  { %v1339_v50 = vmax.f32 %v1156_v47, 0.0  ;;  %v929_v51 = vadd.f32 %v2196_v7, %v928_v49  ;;  %v1160_v52 = vpop.f32.mrf.mxu1 }
 0x11b   :  { %v930_v53 = vpop.f32.mrf.mxu0 }
 0x11c   :  { %1388 = vst [vmem:[%s2397_s3 + $0x28] sm:$0xff] %v1339_v50  ;;  %v1161_v54 = vadd.f32 %v1160_v52, %v929_v51  ;;  %v1162_v55 = vpop.f32.mrf.mxu1 }
 0x11d   :  { %v931_v56 = vpop.f32.mrf.mxu0 }
 0x11e   :  { %v1340_v57 = vmax.f32 %v1161_v54, 0.0  ;;  %v932_v58 = vadd.f32 %v2196_v7, %v931_v56  ;;  %v1163_v59 = vpop.f32.mrf.mxu1 }
 0x11f   :  { %v933_v60 = vpop.f32.mrf.mxu0 }
 0x120   :  { %1389 = vst [vmem:[%s2397_s3 + $0x30] sm:$0xff] %v1340_v57  ;;  %v1164_v61 = vadd.f32 %v1163_v59, %v932_v58  ;;  %v1165_v62 = vpop.f32.mrf.mxu1 }
 0x121   :  { %v936_v63 = vpop.f32.mrf.mxu0 }
 0x122   :  { %v1341_v0 = vmax.f32 %v1164_v61, 0.0  ;;  %v937_v1 = vadd.f32 %v2196_v7, %v936_v63  ;;  %v1168_v2 = vpop.f32.mrf.mxu1 }
 0x123   :  { %v938_v3 = vpop.f32.mrf.mxu0 }
 0x124   :  { %1390 = vst [vmem:[%s2397_s3 + $0x38] sm:$0xff] %v1341_v0  ;;  %v1169_v4 = vadd.f32 %v1168_v2, %v937_v1  ;;  %v1170_v5 = vpop.f32.mrf.mxu1 }
 0x125   :  { %v939_v6 = vpop.f32.mrf.mxu0 }
 0x126   :  { %v1342_v8 = vmax.f32 %v1169_v4, 0.0  ;;  %v940_v9 = vadd.f32 %v2196_v7, %v939_v6  ;;  %v1171_v10 = vpop.f32.mrf.mxu1 }
 0x127   :  { %v941_v11 = vpop.f32.mrf.mxu0 }
 0x128   :  { %1391 = vst [vmem:[%s2397_s3 + $0x40] sm:$0xff] %v1342_v8  ;;  %v1172_v12 = vadd.f32 %v1171_v10, %v940_v9  ;;  %v1173_v13 = vpop.f32.mrf.mxu1 }
 0x129   :  { %v944_v14 = vpop.f32.mrf.mxu0 }
 0x12a   :  { %v1343_v15 = vmax.f32 %v1172_v12, 0.0  ;;  %v945_v16 = vadd.f32 %v2196_v7, %v944_v14  ;;  %v1176_v17 = vpop.f32.mrf.mxu1 }
 0x12b   :  { %v946_v18 = vpop.f32.mrf.mxu0 }
 0x12c   :  { %1392 = vst [vmem:[%s2397_s3 + $0x48] sm:$0xff] %v1343_v15  ;;  %v1177_v19 = vadd.f32 %v1176_v17, %v945_v16  ;;  %v1178_v20 = vpop.f32.mrf.mxu1 }
 0x12d   :  { %v947_v21 = vpop.f32.mrf.mxu0 }
 0x12e   :  { %v1344_v22 = vmax.f32 %v1177_v19, 0.0  ;;  %v948_v23 = vadd.f32 %v2196_v7, %v947_v21  ;;  %v1179_v24 = vpop.f32.mrf.mxu1 }
 0x12f   :  { %v949_v25 = vpop.f32.mrf.mxu0 }
 0x130   :  { %1393 = vst [vmem:[%s2397_s3 + $0x50] sm:$0xff] %v1344_v22  ;;  %v1180_v26 = vadd.f32 %v1179_v24, %v948_v23  ;;  %v1181_v27 = vpop.f32.mrf.mxu1 }
 0x131   :  { %v952_v28 = vpop.f32.mrf.mxu0 }
 0x132   :  { %v1345_v29 = vmax.f32 %v1180_v26, 0.0  ;;  %v953_v30 = vadd.f32 %v2196_v7, %v952_v28  ;;  %v1184_v31 = vpop.f32.mrf.mxu1 }
 0x133   :  { %v954_v32 = vpop.f32.mrf.mxu0 }
 0x134   :  { %1394 = vst [vmem:[%s2397_s3 + $0x58] sm:$0xff] %v1345_v29  ;;  %v1185_v33 = vadd.f32 %v1184_v31, %v953_v30  ;;  %v1186_v34 = vpop.f32.mrf.mxu1 }
 0x135   :  { %v955_v35 = vpop.f32.mrf.mxu0 }
 0x136   :  { %v1346_v36 = vmax.f32 %v1185_v33, 0.0  ;;  %v956_v37 = vadd.f32 %v2196_v7, %v955_v35  ;;  %v1187_v38 = vpop.f32.mrf.mxu1 }
 0x137   :  { %v957_v39 = vpop.f32.mrf.mxu0 }
 0x138   :  { %1395 = vst [vmem:[%s2397_s3 + $0x60] sm:$0xff] %v1346_v36  ;;  %v1188_v40 = vadd.f32 %v1187_v38, %v956_v37  ;;  %v1189_v41 = vpop.f32.mrf.mxu1 }
 0x139   :  { %v960_v42 = vpop.f32.mrf.mxu0 }
 0x13a   :  { %v1347_v43 = vmax.f32 %v1188_v40, 0.0  ;;  %v961_v44 = vadd.f32 %v2196_v7, %v960_v42  ;;  %v1192_v45 = vpop.f32.mrf.mxu1 }
 0x13b   :  { %v962_v46 = vpop.f32.mrf.mxu0 }
 0x13c   :  { %1396 = vst [vmem:[%s2397_s3 + $0x68] sm:$0xff] %v1347_v43  ;;  %v1193_v47 = vadd.f32 %v1192_v45, %v961_v44  ;;  %v1194_v48 = vpop.f32.mrf.mxu1 }
 0x13d   :  { %v963_v49 = vpop.f32.mrf.mxu0 }
 0x13e   :  { %v1348_v50 = vmax.f32 %v1193_v47, 0.0  ;;  %v964_v51 = vadd.f32 %v2196_v7, %v963_v49  ;;  %v1195_v52 = vpop.f32.mrf.mxu1 }
 0x13f   :  { %v965_v53 = vpop.f32.mrf.mxu0 }
 0x140   :  { %1397 = vst [vmem:[%s2397_s3 + $0x70] sm:$0xff] %v1348_v50  ;;  %v1196_v54 = vadd.f32 %v1195_v52, %v964_v51  ;;  %v1197_v55 = vpop.f32.mrf.mxu1 }
 0x141   :  { %v968_v56 = vpop.f32.mrf.mxu0 }
 0x142   :  { %v1349_v57 = vmax.f32 %v1196_v54, 0.0  ;;  %v969_v58 = vadd.f32 %v2196_v7, %v968_v56  ;;  %v1200_v59 = vpop.f32.mrf.mxu1 }
 0x143   :  { %v970_v60 = vpop.f32.mrf.mxu0 }
 0x144   :  { %1398 = vst [vmem:[%s2397_s3 + $0x78] sm:$0xff] %v1349_v57  ;;  %v1201_v61 = vadd.f32 %v1200_v59, %v969_v58  ;;  %v1202_v62 = vpop.f32.mrf.mxu1 }
 0x145   :  { %v971_v63 = vpop.f32.mrf.mxu0 }
 0x146   :  { %v1350_v0 = vmax.f32 %v1201_v61, 0.0  ;;  %v972_v1 = vadd.f32 %v2196_v7, %v971_v63  ;;  %v1203_v2 = vpop.f32.mrf.mxu1 }
 0x147   :  { %v973_v3 = vpop.f32.mrf.mxu0 }
 0x148   :  { %1399 = vst [vmem:[%s2397_s3 + $0x80] sm:$0xff] %v1350_v0  ;;  %v1204_v4 = vadd.f32 %v1203_v2, %v972_v1  ;;  %v1205_v5 = vpop.f32.mrf.mxu1 }
 0x149   :  { %v976_v6 = vpop.f32.mrf.mxu0 }
 0x14a   :  { %v1351_v8 = vmax.f32 %v1204_v4, 0.0  ;;  %v977_v9 = vadd.f32 %v2196_v7, %v976_v6  ;;  %v1208_v10 = vpop.f32.mrf.mxu1 }
 0x14b   :  { %v978_v11 = vpop.f32.mrf.mxu0 }
 0x14c   :  { %1400 = vst [vmem:[%s2397_s3 + $0x88] sm:$0xff] %v1351_v8  ;;  %v1209_v12 = vadd.f32 %v1208_v10, %v977_v9  ;;  %v1210_v13 = vpop.f32.mrf.mxu1 }
 0x14d   :  { %v979_v14 = vpop.f32.mrf.mxu0 }
 0x14e   :  { %v1352_v15 = vmax.f32 %v1209_v12, 0.0  ;;  %v980_v16 = vadd.f32 %v2196_v7, %v979_v14  ;;  %v1211_v17 = vpop.f32.mrf.mxu1 }
 0x14f   :  { %v981_v18 = vpop.f32.mrf.mxu0 }
 0x150   :  { %1401 = vst [vmem:[%s2397_s3 + $0x90] sm:$0xff] %v1352_v15  ;;  %v1212_v19 = vadd.f32 %v1211_v17, %v980_v16  ;;  %v1213_v20 = vpop.f32.mrf.mxu1 }
 0x151   :  { %v984_v21 = vpop.f32.mrf.mxu0 }
 0x152   :  { %v1353_v22 = vmax.f32 %v1212_v19, 0.0  ;;  %v985_v23 = vadd.f32 %v2196_v7, %v984_v21  ;;  %v1216_v24 = vpop.f32.mrf.mxu1 }
 0x153   :  { %v986_v25 = vpop.f32.mrf.mxu0 }
 0x154   :  { %1402 = vst [vmem:[%s2397_s3 + $0x98] sm:$0xff] %v1353_v22  ;;  %v1217_v26 = vadd.f32 %v1216_v24, %v985_v23  ;;  %v1218_v27 = vpop.f32.mrf.mxu1 }
 0x155   :  { %v987_v28 = vpop.f32.mrf.mxu0 }
 0x156   :  { %v1354_v29 = vmax.f32 %v1217_v26, 0.0  ;;  %v988_v30 = vadd.f32 %v2196_v7, %v987_v28  ;;  %v1219_v31 = vpop.f32.mrf.mxu1 }
 0x157   :  { %v989_v32 = vpop.f32.mrf.mxu0 }
 0x158   :  { %1403 = vst [vmem:[%s2397_s3 + $0xa0] sm:$0xff] %v1354_v29  ;;  %v1220_v33 = vadd.f32 %v1219_v31, %v988_v30  ;;  %v1221_v34 = vpop.f32.mrf.mxu1 }
 0x159   :  { %v992_v35 = vpop.f32.mrf.mxu0 }
 0x15a   :  { %v1355_v36 = vmax.f32 %v1220_v33, 0.0  ;;  %v993_v37 = vadd.f32 %v2196_v7, %v992_v35  ;;  %v1224_v38 = vpop.f32.mrf.mxu1 }
 0x15b   :  { %v994_v39 = vpop.f32.mrf.mxu0 }
 0x15c   :  { %1404 = vst [vmem:[%s2397_s3 + $0xa8] sm:$0xff] %v1355_v36  ;;  %v1225_v40 = vadd.f32 %v1224_v38, %v993_v37  ;;  %v1226_v41 = vpop.f32.mrf.mxu1 }
 0x15d   :  { %v995_v42 = vpop.f32.mrf.mxu0 }
 0x15e   :  { %v1356_v43 = vmax.f32 %v1225_v40, 0.0  ;;  %v996_v44 = vadd.f32 %v2196_v7, %v995_v42  ;;  %v1227_v45 = vpop.f32.mrf.mxu1 }
 0x15f   :  { %v997_v46 = vpop.f32.mrf.mxu0 }
 0x160   :  { %1405 = vst [vmem:[%s2397_s3 + $0xb0] sm:$0xff] %v1356_v43  ;;  %v1228_v47 = vadd.f32 %v1227_v45, %v996_v44  ;;  %v1229_v48 = vpop.f32.mrf.mxu1 }
 0x161   :  { %v1000_v49 = vpop.f32.mrf.mxu0 }
 0x162   :  { %v1357_v50 = vmax.f32 %v1228_v47, 0.0  ;;  %v1001_v51 = vadd.f32 %v2196_v7, %v1000_v49  ;;  %v1232_v52 = vpop.f32.mrf.mxu1 }
 0x163   :  { %v1002_v53 = vpop.f32.mrf.mxu0 }
 0x164   :  { %1406 = vst [vmem:[%s2397_s3 + $0xb8] sm:$0xff] %v1357_v50  ;;  %v1233_v54 = vadd.f32 %v1232_v52, %v1001_v51  ;;  %v1234_v55 = vpop.f32.mrf.mxu1 }
 0x165   :  { %v1003_v56 = vpop.f32.mrf.mxu0 }
 0x166   :  { %v1358_v57 = vmax.f32 %v1233_v54, 0.0  ;;  %v1004_v58 = vadd.f32 %v2196_v7, %v1003_v56  ;;  %v1235_v59 = vpop.f32.mrf.mxu1 }
 0x167   :  { %v1005_v60 = vpop.f32.mrf.mxu0 }
 0x168   :  { %1407 = vst [vmem:[%s2397_s3 + $0xc0] sm:$0xff] %v1358_v57  ;;  %v1236_v61 = vadd.f32 %v1235_v59, %v1004_v58  ;;  %v1237_v62 = vpop.f32.mrf.mxu1 }
 0x169   :  { %v1008_v63 = vpop.f32.mrf.mxu0 }
 0x16a   :  { %v1359_v0 = vmax.f32 %v1236_v61, 0.0  ;;  %v1009_v1 = vadd.f32 %v2196_v7, %v1008_v63  ;;  %v1240_v2 = vpop.f32.mrf.mxu1 }
 0x16b   :  { %v1010_v3 = vpop.f32.mrf.mxu0 }
 0x16c   :  { %1408 = vst [vmem:[%s2397_s3 + $0xc8] sm:$0xff] %v1359_v0  ;;  %v1241_v4 = vadd.f32 %v1240_v2, %v1009_v1  ;;  %v1242_v5 = vpop.f32.mrf.mxu1 }
 0x16d   :  { %v1011_v6 = vpop.f32.mrf.mxu0 }
 0x16e   :  { %v1360_v8 = vmax.f32 %v1241_v4, 0.0  ;;  %v1012_v9 = vadd.f32 %v2196_v7, %v1011_v6  ;;  %v1243_v10 = vpop.f32.mrf.mxu1 }
 0x16f   :  { %v1013_v11 = vpop.f32.mrf.mxu0 }
 0x170   :  { %1409 = vst [vmem:[%s2397_s3 + $0xd0] sm:$0xff] %v1360_v8  ;;  %v1244_v12 = vadd.f32 %v1243_v10, %v1012_v9  ;;  %v1245_v13 = vpop.f32.mrf.mxu1 }
 0x171   :  { %v1016_v14 = vpop.f32.mrf.mxu0 }
 0x172   :  { %v1361_v15 = vmax.f32 %v1244_v12, 0.0  ;;  %v1017_v16 = vadd.f32 %v2196_v7, %v1016_v14  ;;  %v1248_v17 = vpop.f32.mrf.mxu1 }
 0x173   :  { %v1018_v18 = vpop.f32.mrf.mxu0 }
 0x174   :  { %1410 = vst [vmem:[%s2397_s3 + $0xd8] sm:$0xff] %v1361_v15  ;;  %v1249_v19 = vadd.f32 %v1248_v17, %v1017_v16  ;;  %v1250_v20 = vpop.f32.mrf.mxu1 }
 0x175   :  { %v1019_v21 = vpop.f32.mrf.mxu0 }
 0x176   :  { %v1362_v22 = vmax.f32 %v1249_v19, 0.0  ;;  %v1020_v23 = vadd.f32 %v2196_v7, %v1019_v21  ;;  %v1251_v24 = vpop.f32.mrf.mxu1 }
 0x177   :  { %v1021_v25 = vpop.f32.mrf.mxu0 }
 0x178   :  { %1411 = vst [vmem:[%s2397_s3 + $0xe0] sm:$0xff] %v1362_v22  ;;  %v1252_v26 = vadd.f32 %v1251_v24, %v1020_v23  ;;  %v1253_v27 = vpop.f32.mrf.mxu1 }
 0x179   :  { %v1024_v28 = vpop.f32.mrf.mxu0 }
 0x17a   :  { %v1363_v29 = vmax.f32 %v1252_v26, 0.0  ;;  %v1025_v30 = vadd.f32 %v2196_v7, %v1024_v28  ;;  %v1256_v31 = vpop.f32.mrf.mxu1 }
 0x17b   :  { %v1026_v32 = vpop.f32.mrf.mxu0 }
 0x17c   :  { %1412 = vst [vmem:[%s2397_s3 + $0xe8] sm:$0xff] %v1363_v29  ;;  %v1257_v33 = vadd.f32 %v1256_v31, %v1025_v30  ;;  %v1258_v34 = vpop.f32.mrf.mxu1 }
 0x17d   :  { %v1027_v35 = vpop.f32.mrf.mxu0 }
 0x17e   :  { %v1364_v36 = vmax.f32 %v1257_v33, 0.0  ;;  %v1028_v37 = vadd.f32 %v2196_v7, %v1027_v35  ;;  %v1259_v38 = vpop.f32.mrf.mxu1 }
 0x17f   :  { %v1029_v39 = vpop.f32.mrf.mxu0 }
 0x180   :  { %1413 = vst [vmem:[%s2397_s3 + $0xf0] sm:$0xff] %v1364_v36  ;;  %v1260_v40 = vadd.f32 %v1259_v38, %v1028_v37  ;;  %v1261_v41 = vpop.f32.mrf.mxu1 }
 0x181   :  { %v1032_v42 = vpop.f32.mrf.mxu0 }
 0x182   :  { %v1365_v43 = vmax.f32 %v1260_v40, 0.0  ;;  %v1033_v44 = vadd.f32 %v2196_v7, %v1032_v42  ;;  %v1264_v45 = vpop.f32.mrf.mxu1 }
 0x183   :  { %v1034_v46 = vpop.f32.mrf.mxu0 }
 0x184   :  { %1414 = vst [vmem:[%s2397_s3 + $0xf8] sm:$0xff] %v1365_v43  ;;  %v1265_v47 = vadd.f32 %v1264_v45, %v1033_v44  ;;  %v1266_v48 = vpop.f32.mrf.mxu1 }
 0x185   :  { %v1035_v49 = vpop.f32.mrf.mxu0 }
 0x186   :  { %v1366_v50 = vmax.f32 %v1265_v47, 0.0  ;;  %v1036_v51 = vadd.f32 %v2196_v7, %v1035_v49  ;;  %v1267_v52 = vpop.f32.mrf.mxu1 }
 0x187   :  { %v1037_v53 = vpop.f32.mrf.mxu0 }
 0x188   :  { %1415 = vst [vmem:[%s2397_s3 + $0x100] sm:$0xff] %v1366_v50  ;;  %v1268_v54 = vadd.f32 %v1267_v52, %v1036_v51  ;;  %v1269_v55 = vpop.f32.mrf.mxu1 }
 0x189   :  { %v1040_v56 = vpop.f32.mrf.mxu0 }
 0x18a   :  { %v1367_v57 = vmax.f32 %v1268_v54, 0.0  ;;  %v1041_v58 = vadd.f32 %v2196_v7, %v1040_v56  ;;  %v1272_v59 = vpop.f32.mrf.mxu1 }
 0x18b   :  { %v1042_v60 = vpop.f32.mrf.mxu0 }
 0x18c   :  { %1416 = vst [vmem:[%s2397_s3 + $0x108] sm:$0xff] %v1367_v57  ;;  %v1273_v61 = vadd.f32 %v1272_v59, %v1041_v58  ;;  %v1274_v62 = vpop.f32.mrf.mxu1 }
 0x18d   :  { %v1043_v63 = vpop.f32.mrf.mxu0 }
 0x18e   :  { %v1368_v0 = vmax.f32 %v1273_v61, 0.0  ;;  %v1044_v1 = vadd.f32 %v2196_v7, %v1043_v63  ;;  %v1275_v2 = vpop.f32.mrf.mxu1 }
 0x18f   :  { %v1045_v3 = vpop.f32.mrf.mxu0 }
 0x190   :  { %1417 = vst [vmem:[%s2397_s3 + $0x110] sm:$0xff] %v1368_v0  ;;  %v1276_v4 = vadd.f32 %v1275_v2, %v1044_v1  ;;  %v1277_v5 = vpop.f32.mrf.mxu1 }
 0x191   :  { %v1048_v6 = vpop.f32.mrf.mxu0 }
 0x192   :  { %v1369_v8 = vmax.f32 %v1276_v4, 0.0  ;;  %v1049_v9 = vadd.f32 %v2196_v7, %v1048_v6  ;;  %v1280_v10 = vpop.f32.mrf.mxu1 }
 0x193   :  { %v1050_v11 = vpop.f32.mrf.mxu0 }
 0x194   :  { %1418 = vst [vmem:[%s2397_s3 + $0x118] sm:$0xff] %v1369_v8  ;;  %v1281_v12 = vadd.f32 %v1280_v10, %v1049_v9  ;;  %v1282_v13 = vpop.f32.mrf.mxu1 }
 0x195   :  { %v1051_v14 = vpop.f32.mrf.mxu0 }
 0x196   :  { %v1370_v15 = vmax.f32 %v1281_v12, 0.0  ;;  %v1052_v16 = vadd.f32 %v2196_v7, %v1051_v14  ;;  %v1283_v17 = vpop.f32.mrf.mxu1 }
 0x197   :  { %v1053_v18 = vpop.f32.mrf.mxu0 }
 0x198   :  { %1419 = vst [vmem:[%s2397_s3 + $0x120] sm:$0xff] %v1370_v15  ;;  %v1284_v19 = vadd.f32 %v1283_v17, %v1052_v16  ;;  %v1285_v20 = vpop.f32.mrf.mxu1 }
 0x199   :  { %v1056_v21 = vpop.f32.mrf.mxu0 }
 0x19a   :  { %v1371_v22 = vmax.f32 %v1284_v19, 0.0  ;;  %v1057_v23 = vadd.f32 %v2196_v7, %v1056_v21  ;;  %v1288_v24 = vpop.f32.mrf.mxu1 }
 0x19b   :  { %v1058_v25 = vpop.f32.mrf.mxu0 }
 0x19c   :  { %1420 = vst [vmem:[%s2397_s3 + $0x128] sm:$0xff] %v1371_v22  ;;  %v1289_v26 = vadd.f32 %v1288_v24, %v1057_v23  ;;  %v1290_v27 = vpop.f32.mrf.mxu1 }
 0x19d   :  { %v1059_v28 = vpop.f32.mrf.mxu0 }
 0x19e   :  { %v1372_v29 = vmax.f32 %v1289_v26, 0.0  ;;  %v1060_v30 = vadd.f32 %v2196_v7, %v1059_v28  ;;  %v1291_v31 = vpop.f32.mrf.mxu1 }
 0x19f   :  { %v1061_v32 = vpop.f32.mrf.mxu0 }
 0x1a0   :  { %1421 = vst [vmem:[%s2397_s3 + $0x130] sm:$0xff] %v1372_v29  ;;  %v1292_v33 = vadd.f32 %v1291_v31, %v1060_v30  ;;  %v1293_v34 = vpop.f32.mrf.mxu1 }
 0x1a1   :  { %v1064_v35 = vpop.f32.mrf.mxu0 }
 0x1a2   :  { %v1373_v36 = vmax.f32 %v1292_v33, 0.0  ;;  %v1065_v37 = vadd.f32 %v2196_v7, %v1064_v35  ;;  %v1296_v38 = vpop.f32.mrf.mxu1 }
 0x1a3   :  { %v1066_v39 = vpop.f32.mrf.mxu0 }
 0x1a4   :  { %1422 = vst [vmem:[%s2397_s3 + $0x138] sm:$0xff] %v1373_v36  ;;  %v1297_v40 = vadd.f32 %v1296_v38, %v1065_v37  ;;  %v1298_v41 = vpop.f32.mrf.mxu1 }
 0x1a5   :  { %v1067_v42 = vpop.f32.mrf.mxu0 }
 0x1a6   :  { %v1374_v43 = vmax.f32 %v1297_v40, 0.0  ;;  %v1068_v44 = vadd.f32 %v2196_v7, %v1067_v42  ;;  %v1299_v45 = vpop.f32.mrf.mxu1 }
 0x1a7   :  { %v1069_v46 = vpop.f32.mrf.mxu0 }
 0x1a8   :  { %1423 = vst [vmem:[%s2397_s3 + $0x140] sm:$0xff] %v1374_v43  ;;  %v1300_v47 = vadd.f32 %v1299_v45, %v1068_v44  ;;  %v1301_v48 = vpop.f32.mrf.mxu1 }
 0x1a9   :  { %v1072_v49 = vpop.f32.mrf.mxu0 }
 0x1aa   :  { %v1375_v50 = vmax.f32 %v1300_v47, 0.0  ;;  %v1073_v51 = vadd.f32 %v2196_v7, %v1072_v49  ;;  %v1304_v52 = vpop.f32.mrf.mxu1 }
 0x1ab   :  { %v1074_v53 = vpop.f32.mrf.mxu0 }
 0x1ac   :  { %1424 = vst [vmem:[%s2397_s3 + $0x148] sm:$0xff] %v1375_v50  ;;  %v1305_v54 = vadd.f32 %v1304_v52, %v1073_v51  ;;  %v1306_v55 = vpop.f32.mrf.mxu1 }
 0x1ad   :  { %v1075_v56 = vpop.f32.mrf.mxu0 }
 0x1ae   :  { %v1376_v57 = vmax.f32 %v1305_v54, 0.0  ;;  %v1076_v58 = vadd.f32 %v2196_v7, %v1075_v56  ;;  %v1307_v59 = vpop.f32.mrf.mxu1 }
 0x1af   :  { %v1077_v60 = vpop.f32.mrf.mxu0 }
 0x1b0   :  { %1425 = vst [vmem:[%s2397_s3 + $0x150] sm:$0xff] %v1376_v57  ;;  %v1308_v61 = vadd.f32 %v1307_v59, %v1076_v58  ;;  %v1309_v62 = vpop.f32.mrf.mxu1 }
 0x1b1   :  { %v1080_v63 = vpop.f32.mrf.mxu0 }
 0x1b2   :  { %v1377_v0 = vmax.f32 %v1308_v61, 0.0  ;;  %v1081_v1 = vadd.f32 %v2196_v7, %v1080_v63  ;;  %v1312_v2 = vpop.f32.mrf.mxu1 }
 0x1b3   :  { %v1082_v3 = vpop.f32.mrf.mxu0 }
 0x1b4   :  { %1426 = vst [vmem:[%s2397_s3 + $0x158] sm:$0xff] %v1377_v0  ;;  %v1313_v4 = vadd.f32 %v1312_v2, %v1081_v1  ;;  %v1314_v5 = vpop.f32.mrf.mxu1 }
 0x1b5   :  { %v1083_v6 = vpop.f32.mrf.mxu0 }
 0x1b6   :  { %v1378_v8 = vmax.f32 %v1313_v4, 0.0  ;;  %v1084_v9 = vadd.f32 %v2196_v7, %v1083_v6  ;;  %v1315_v10 = vpop.f32.mrf.mxu1 }
 0x1b7   :  { %v1085_v11 = vpop.f32.mrf.mxu0 }
 0x1b8   :  { %1427 = vst [vmem:[%s2397_s3 + $0x160] sm:$0xff] %v1378_v8  ;;  %v1316_v12 = vadd.f32 %v1315_v10, %v1084_v9  ;;  %v1317_v13 = vpop.f32.mrf.mxu1 }
 0x1b9   :  { %v1088_v14 = vpop.f32.mrf.mxu0 }
 0x1ba   :  { %v1379_v15 = vmax.f32 %v1316_v12, 0.0  ;;  %v1089_v16 = vadd.f32 %v2196_v7, %v1088_v14  ;;  %v1320_v17 = vpop.f32.mrf.mxu1 }
 0x1bb   :  { %v1090_v18 = vpop.f32.mrf.mxu0 }
 0x1bc   :  { %1428 = vst [vmem:[%s2397_s3 + $0x168] sm:$0xff] %v1379_v15  ;;  %v1321_v19 = vadd.f32 %v1320_v17, %v1089_v16  ;;  %v1322_v20 = vpop.f32.mrf.mxu1 }
 0x1bd   :  { %v1091_v21 = vpop.f32.mrf.mxu0 }
 0x1be   :  { %v1380_v22 = vmax.f32 %v1321_v19, 0.0  ;;  %v1092_v23 = vadd.f32 %v2196_v7, %v1091_v21  ;;  %v1323_v24 = vpop.f32.mrf.mxu1 }
 0x1bf   :  { %v1093_v25 = vpop.f32.mrf.mxu0 }
 0x1c0   :  { %1429 = vst [vmem:[%s2397_s3 + $0x170] sm:$0xff] %v1380_v22  ;;  %v1324_v26 = vadd.f32 %v1323_v24, %v1092_v23  ;;  %v1325_v27 = vpop.f32.mrf.mxu1 }
 0x1c1   :  { %v1096_v28 = vpop.f32.mrf.mxu0 }
 0x1c2   :  { %v1381_v29 = vmax.f32 %v1324_v26, 0.0  ;;  %v1097_v30 = vadd.f32 %v2196_v7, %v1096_v28  ;;  %v1328_v31 = vpop.f32.mrf.mxu1 }
 0x1c3   :  { %v1098_v32 = vpop.f32.mrf.mxu0 }
 0x1c4   :  { %1430 = vst [vmem:[%s2397_s3 + $0x178] sm:$0xff] %v1381_v29  ;;  %v1329_v33 = vadd.f32 %v1328_v31, %v1097_v30  ;;  %v1330_v34 = vpop.f32.mrf.mxu1 }
 0x1c5   :  { %v1099_v35 = vpop.f32.mrf.mxu0 }
 0x1c6   :  { %v1382_v36 = vmax.f32 %v1329_v33, 0.0  ;;  %v1331_v37 = vpop.f32.mrf.mxu1 }
 0x1c7   :  { %v1100_v38 = vpop.f32.mrf.mxu0 }
 0x1c8   :  { %1431 = vst [vmem:[%s2397_s3 + $0x180] sm:$0xff] %v1382_v36  ;;  %v1332_v39 = vpop.f32.mrf.mxu1 }

// kernel: _lambda_.12
= control target key start
LH: loop header
LB: loop body
LE: loop exit
PB: predicated region body
PF: predicated region fallthrough
CT: control target
= control target key end

     0   :  { %s1850_s1 = inlined_call_operand.vmem [shape: bf16[1024,128], index: 1, kind: input, shape index: {}]   ;;  %s1851_s0 = inlined_call_operand.vmem [shape: bf16[72,1024], index: 0, kind: input, shape index: {}]   ;;  %s1852_s2 = inlined_call_operand.vmem [shape: f32[1,128], index: 2, kind: input, shape index: {}]   ;;  %s1853_s3 = inlined_call_operand.vmem [shape: f32[72,128], index: 3, kind: output, shape index: {}]  }
   0x1   :  { %v1357_v0 = vld [vmem:[%s1850_s1 + $0x78] sm:$0xff]   ;;  %v1361_v4 = vld [vmem:[%s1850_s1 + $0x70] sm:$0xff]   ;;  %v1365_v8 = vld [vmem:[%s1850_s1 + $0x68] sm:$0xff]  }
   0x2   :  { %v1358_v1 = vld [vmem:[%s1850_s1 + $0xf8] sm:$0xff]   ;;  %1173 = vmatprep.subr.bf16.mxu0 %v1357_v0  ;;  %v1362_v5 = vld [vmem:[%s1850_s1 + $0xf0] sm:$0xff]   ;;  %v1366_v9 = vld [vmem:[%s1850_s1 + $0xe8] sm:$0xff]  }
   0x3   :  { %v1359_v2 = vld [vmem:[%s1850_s1 + $0x38] sm:$0xff]   ;;  %1219 = vmatprep.subr.bf16.mxu1 %v1358_v1  ;;  %v1363_v6 = vld [vmem:[%s1850_s1 + $0x30] sm:$0xff]   ;;  %v1367_v10 = vld [vmem:[%s1850_s1 + $0x28] sm:$0xff]  }
   0x4   :  { %v1360_v3 = vld [vmem:[%s1850_s1 + $0xb8] sm:$0xff]   ;;  %1174 = vmatpush3.bf16.msra.mxu0 %v1359_v2  ;;  %v1364_v7 = vld [vmem:[%s1850_s1 + $0xb0] sm:$0xff]   ;;  %v1368_v11 = vld [vmem:[%s1850_s1 + $0xa8] sm:$0xff]  }
   0x5   :  { %1220 = vmatpush3.bf16.msra.mxu1 %v1360_v3  ;;  %1175 = vmatprep.subr.bf16.mxu0 %v1361_v4  ;;  %v1369_v12 = vld [vmem:[%s1850_s1 + $0x60] sm:$0xff]   ;;  %v1373_v16 = vld [vmem:[%s1850_s1 + $0x58] sm:$0xff]   ;;  %v1377_v20 = vld [vmem:[%s1850_s1 + $0x50] sm:$0xff]  }
   0x6   :  { %1221 = vmatprep.subr.bf16.mxu1 %v1362_v5  ;;  %v1370_v13 = vld [vmem:[%s1850_s1 + $0xe0] sm:$0xff]   ;;  %v1374_v17 = vld [vmem:[%s1850_s1 + $0xd8] sm:$0xff]   ;;  %v1378_v21 = vld [vmem:[%s1850_s1 + $0xd0] sm:$0xff]  }
   0x7   :  { %v1371_v14 = vld [vmem:[%s1850_s1 + $0x20] sm:$0xff]   ;;  %v1375_v18 = vld [vmem:[%s1850_s1 + $0x18] sm:$0xff]   ;;  %v1379_v22 = vld [vmem:[%s1850_s1 + $0x10] sm:$0xff]  }
   0x8   :  { %1176 = vmatpush3.bf16.msra.mxu0 %v1363_v6  ;;  %v1372_v15 = vld [vmem:[%s1850_s1 + $0xa0] sm:$0xff]   ;;  %v1376_v19 = vld [vmem:[%s1850_s1 + $0x98] sm:$0xff]   ;;  %v1380_v23 = vld [vmem:[%s1850_s1 + $0x90] sm:$0xff]  }
   0x9   :  { %1222 = vmatpush3.bf16.msra.mxu1 %v1364_v7  ;;  %1177 = vmatprep.subr.bf16.mxu0 %v1365_v8  ;;  %v1381_v24 = vld [vmem:[%s1850_s1 + $0x48] sm:$0xff]   ;;  %v1385_v28 = vld [vmem:[%s1850_s1 + $0x40] sm:$0xff]   ;;  %v1389_v40 = vld [vmem:[%s1850_s1 + $0x178] sm:$0xff]  }
   0xa   :  { %1223 = vmatprep.subr.bf16.mxu1 %v1366_v9  ;;  %v1382_v25 = vld [vmem:[%s1850_s1 + $0xc8] sm:$0xff]   ;;  %v1386_v29 = vld [vmem:[%s1850_s1 + $0xc0] sm:$0xff]   ;;  %v1390_v41 = vld [vmem:[%s1850_s1 + $0x138] sm:$0xff]  }
   0xb   :  { %v1383_v26 = vld [vmem:[%s1850_s1 + $0x8] sm:$0xff]   ;;  %v1387_v30 = vld [vmem:[%s1850_s1] sm:$0xff]   ;;  %v1391_v42 = vld [vmem:[%s1850_s1 + $0x1f8] sm:$0xff]  }
   0xc   :  { %1178 = vmatpush3.bf16.msra.mxu0 %v1367_v10  ;;  %v1384_v27 = vld [vmem:[%s1850_s1 + $0x88] sm:$0xff]   ;;  %v1388_v31 = vld [vmem:[%s1850_s1 + $0x80] sm:$0xff]   ;;  %v1392_v43 = vld [vmem:[%s1850_s1 + $0x1b8] sm:$0xff]  }
   0xd   :  { %1224 = vmatpush3.bf16.msra.mxu1 %v1368_v11  ;;  %1179 = vmatprep.subr.bf16.mxu0 %v1369_v12  ;;  %v15_v32 = vld [vmem:[%s1851_s0] sm:$0xff]  ;;  %v16_v34 = vld [vmem:[%s1851_s0 + $0x8] sm:$0xff]  ;;  %v1393_v44 = vld [vmem:[%s1850_s1 + $0x170] sm:$0xff]  }
   0xe   :  { %1225 = vmatprep.subr.bf16.mxu1 %v1370_v13  ;;  %v19_v33 = vld [vmem:[%s1851_s0 + $0x20] sm:$0xff]  ;;  %v20_v37 = vld [vmem:[%s1851_s0 + $0x28] sm:$0xff]  ;;  %v1394_v45 = vld [vmem:[%s1850_s1 + $0x130] sm:$0xff]  }
   0xf   :  { %v1069_v35 = vcombine.low %v15_v32, %v19_v33  ;;  %v1070_v36 = vcombine.high %v15_v32, %v19_v33  ;;  %v1071_v38 = vcombine.low %v16_v34, %v20_v37  ;;  %v1072_v39 = vcombine.high %v16_v34, %v20_v37  ;;  %v23_v46 = vld [vmem:[%s1851_s0 + $0x40] sm:$0xff]  ;;  %v24_v49 = vld [vmem:[%s1851_s0 + $0x48] sm:$0xff]  ;;  %v1395_v53 = vld [vmem:[%s1850_s1 + $0x1f0] sm:$0xff]  }
  0x10   :  { %1180 = vmatpush3.bf16.msra.mxu0 %v1371_v14  ;;  %v27_v47 = vld [vmem:[%s1851_s0 + $0x60] sm:$0xff]  ;;  %v28_v50 = vld [vmem:[%s1851_s0 + $0x68] sm:$0xff]  ;;  %v1396_v55 = vld [vmem:[%s1850_s1 + $0x1b0] sm:$0xff]  }
  0x11   :  { %1226 = vmatpush3.bf16.msra.mxu1 %v1372_v15  ;;  %1181 = vmatprep.subr.bf16.mxu0 %v1373_v16  ;;  %v1078_v48 = vcombine.high %v23_v46, %v27_v47  ;;  %v1077_v51 = vcombine.low %v23_v46, %v27_v47  ;;  %v1080_v52 = vcombine.high %v24_v49, %v28_v50  ;;  %v1397_v56 = vld [vmem:[%s1850_s1 + $0x168] sm:$0xff]   ;;  %v31_v60 = vld [vmem:[%s1851_s0 + $0x80] sm:$0xff]  ;;  %v1405_v8 = vld [vmem:[%s1850_s1 + $0x158] sm:$0xff]  }
  0x12   :  { %1227 = vmatprep.subr.bf16.mxu1 %v1374_v17  ;;  %790 = vmatprep.mubr.bf16.mxu0 %v1070_v36  ;;  %v1079_v54 = vcombine.low %v24_v49, %v28_v50  ;;  %v1398_v57 = vld [vmem:[%s1850_s1 + $0x128] sm:$0xff]   ;;  %v35_v61 = vld [vmem:[%s1851_s0 + $0xa0] sm:$0xff]  ;;  %v1406_v9 = vld [vmem:[%s1850_s1 + $0x118] sm:$0xff]  }
  0x13   :  { %862 = vmatprep.mubr.bf16.mxu1 %v1072_v39  ;;  %v1399_v58 = vld [vmem:[%s1850_s1 + $0x1e8] sm:$0xff]   ;;  %v1086_v0 = vcombine.high %v31_v60, %v35_v61  ;;  %v1401_v2 = vld [vmem:[%s1850_s1 + $0x160] sm:$0xff]   ;;  %v1085_v3 = vcombine.low %v31_v60, %v35_v61  ;;  %v1407_v10 = vld [vmem:[%s1850_s1 + $0x1d8] sm:$0xff]  }
  0x14   :  { %1182 = vmatpush3.bf16.msra.mxu0 %v1375_v18  ;;  %v1400_v59 = vld [vmem:[%s1850_s1 + $0x1a8] sm:$0xff]   ;;  %v1402_v5 = vld [vmem:[%s1850_s1 + $0x120] sm:$0xff]   ;;  %v1408_v18 = vld [vmem:[%s1850_s1 + $0x198] sm:$0xff]  }
  0x15   :  { %1228 = vmatpush3.bf16.msra.mxu1 %v1376_v19  ;;  %1183 = vmatprep.subr.bf16.mxu0 %v1377_v20  ;;  %v32_v62 = vld [vmem:[%s1851_s0 + $0x88] sm:$0xff]  ;;  %v1403_v6 = vld [vmem:[%s1850_s1 + $0x1e0] sm:$0xff]   ;;  %v1409_v20 = vld [vmem:[%s1850_s1 + $0x150] sm:$0xff]  }
  0x16   :  { %1229 = vmatprep.subr.bf16.mxu1 %v1378_v21  ;;  %v36_v63 = vld [vmem:[%s1851_s0 + $0xa8] sm:$0xff]  ;;  %v1404_v7 = vld [vmem:[%s1850_s1 + $0x1a0] sm:$0xff]   ;;  %v1410_v21 = vld [vmem:[%s1850_s1 + $0x110] sm:$0xff]  }
  0x17   :  { %v1088_v1 = vcombine.high %v32_v62, %v36_v63  ;;  %v1087_v4 = vcombine.low %v32_v62, %v36_v63  ;;  %v39_v11 = vld [vmem:[%s1851_s0 + $0xc0] sm:$0xff]  ;;  %v40_v13 = vld [vmem:[%s1851_s0 + $0xc8] sm:$0xff]  ;;  %v21_v39 = vld [vmem:[%s1851_s0 + $0x30] sm:$0xff] }
  0x18   :  { %1184 = vmatpush3.bf16.msra.mxu0 %v1379_v22  ;;  %v43_v12 = vld [vmem:[%s1851_s0 + $0xe0] sm:$0xff]  ;;  %v44_v15 = vld [vmem:[%s1851_s0 + $0xe8] sm:$0xff]  ;;  %v1411_v22 = vld [vmem:[%s1850_s1 + $0x1d0] sm:$0xff]  }
  0x19   :  { %1230 = vmatpush3.bf16.msra.mxu1 %v1380_v23  ;;  %1185 = vmatprep.subr.bf16.mxu0 %v1381_v24  ;;  %v1094_v14 = vcombine.high %v39_v11, %v43_v12  ;;  %v1093_v16 = vcombine.low %v39_v11, %v43_v12  ;;  %v1096_v17 = vcombine.high %v40_v13, %v44_v15  ;;  %v1412_v23 = vld [vmem:[%s1850_s1 + $0x190] sm:$0xff]   ;;  %v1413_v24 = vld [vmem:[%s1850_s1 + $0x148] sm:$0xff]   ;;  %v1421_v34 = vld [vmem:[%s1850_s1 + $0x140] sm:$0xff]  }
  0x1a   :  { %1231 = vmatprep.subr.bf16.mxu1 %v1382_v25  ;;  %v1095_v19 = vcombine.low %v40_v13, %v44_v15  ;;  %v47_v25 = vld [vmem:[%s1851_s0 + $0x100] sm:$0xff]  ;;  %v1420_v33 = vld [vmem:[%s1850_s1 + $0x188] sm:$0xff]   ;;  %v26_v47 = vld [vmem:[%s1851_s0 + $0x58] sm:$0xff] }
  0x1b   :  { %v1423_v36 = vld [vmem:[%s1850_s1 + $0x1c0] sm:$0xff]   ;;  %v41_v60 = vld [vmem:[%s1851_s0 + $0xd0] sm:$0xff]  ;;  %v42_v62 = vld [vmem:[%s1851_s0 + $0xd8] sm:$0xff] }
  0x1c   :  { %1186 = vmatpush3.bf16.msra.mxu0 %v1383_v26  ;;  %v48_v26 = vld [vmem:[%s1851_s0 + $0x108] sm:$0xff]  ;;  %v1424_v37 = vld [vmem:[%s1850_s1 + $0x180] sm:$0xff]   ;;  %v45_v61 = vld [vmem:[%s1851_s0 + $0xf0] sm:$0xff] }
  0x1d   :  { %1232 = vmatpush3.bf16.msra.mxu1 %v1384_v27  ;;  %1187 = vmatprep.subr.bf16.mxu0 %v1385_v28  ;;  %v1102_v27 = vcombine.high %v47_v25, %v47_v25  ;;  %v1104_v28 = vcombine.high %v48_v26, %v48_v26  ;;  %v1103_v32 = vcombine.low %v48_v26, %v48_v26  ;;  %v46_v63 = vld [vmem:[%s1851_s0 + $0xf8] sm:$0xff] }
  0x1e   :  { %1233 = vmatprep.subr.bf16.mxu1 %v1386_v29  ;;  %v1416_v29 = vld [vmem:[%s1850_s1 + $0x108] sm:$0xff]  }
  0x20   :  { %1188 = vmatpush3.bf16.msra.mxu0 %v1387_v30  ;;  %v1101_v30 = vcombine.low %v47_v25, %v47_v25 }
  0x21   :  { %1234 = vmatpush3.bf16.msra.mxu1 %v1388_v31  ;;  %1265 = vmatprep.subr.bf16.mxu0 %v1389_v40  ;;  %v1419_v31 = vld [vmem:[%s1850_s1 + $0x1c8] sm:$0xff]   ;;  %v18_v40 = vld [vmem:[%s1851_s0 + $0x18] sm:$0xff] }
  0x22   :  { %1311 = vmatprep.subr.bf16.mxu1 %v1391_v42  ;;  %v22_v42 = vld [vmem:[%s1851_s0 + $0x38] sm:$0xff] }
  0x23   :  { %791 = vmatmul.mubr.bf16.vlgmr.msra.gmra.mxu0 %v1069_v35  ;;  %v1422_v35 = vld [vmem:[%s1850_s1 + $0x100] sm:$0xff]   ;;  %v1076_v46 = vcombine.high %v18_v40, %v22_v42  ;;  %v1075_v49 = vcombine.low %v18_v40, %v22_v42 }
  0x24   :  { %863 = vmatmul.mubr.bf16.vlgmr.msra.gmra.mxu1 %v1071_v38  ;;  %1266 = vmatpush3.bf16.msra.mxu0 %v1390_v41  ;;  %v17_v38 = vld [vmem:[%s1851_s0 + $0x10] sm:$0xff] }
  0x25   :  { %1312 = vmatpush3.bf16.msra.mxu1 %v1392_v43  ;;  %1267 = vmatprep.subr.bf16.mxu0 %v1393_v44  ;;  %v1074_v41 = vcombine.high %v17_v38, %v21_v39  ;;  %v25_v43 = vld [vmem:[%s1851_s0 + $0x50] sm:$0xff] }
  0x26   :  { %798 = vmatprep.mubr.bf16.mxu0 %v1078_v48  ;;  %870 = vmatprep.mubr.bf16.mxu1 %v1080_v52  ;;  %v29_v44 = vld [vmem:[%s1851_s0 + $0x70] sm:$0xff]  ;;  %v30_v48 = vld [vmem:[%s1851_s0 + $0x78] sm:$0xff] }
  0x27   :  { %1313 = vmatprep.subr.bf16.mxu1 %v1395_v53  ;;  %v1082_v50 = vcombine.high %v25_v43, %v29_v44  ;;  %v33_v52 = vld [vmem:[%s1851_s0 + $0x90] sm:$0xff] }
  0x28   :  { %1268 = vmatpush3.bf16.msra.mxu0 %v1394_v45  ;;  %v1073_v45 = vcombine.low %v17_v38, %v21_v39  ;;  %v37_v53 = vld [vmem:[%s1851_s0 + $0xb0] sm:$0xff] }
  0x29   :  { %1314 = vmatpush3.bf16.msra.mxu1 %v1396_v55  ;;  %1269 = vmatprep.subr.bf16.mxu0 %v1397_v56  ;;  %v38_v55 = vld [vmem:[%s1851_s0 + $0xb8] sm:$0xff]  ;;  %v1081_v56 = vcombine.low %v25_v43, %v29_v44 }
  0x2a   :  { %1315 = vmatprep.subr.bf16.mxu1 %v1399_v58  ;;  %v1090_v58 = vcombine.high %v33_v52, %v37_v53 }
  0x2b   :  { %799 = vmatmul.mubr.bf16.gmra.mxu0 %v1077_v51  ;;  %v1084_v51 = vcombine.high %v26_v47, %v30_v48 }
  0x2c   :  { %871 = vmatmul.mubr.bf16.gmra.mxu1 %v1079_v54  ;;  %1270 = vmatpush3.bf16.msra.mxu0 %v1398_v57  ;;  %v34_v54 = vld [vmem:[%s1851_s0 + $0x98] sm:$0xff]  ;;  %v1083_v57 = vcombine.low %v26_v47, %v30_v48 }
  0x2d   :  { %1316 = vmatpush3.bf16.msra.mxu1 %v1400_v59  ;;  %806 = vmatprep.mubr.bf16.mxu0 %v1086_v0  ;;  %v1092_v59 = vcombine.high %v34_v54, %v38_v55  ;;  %v1089_v0 = vcombine.low %v33_v52, %v37_v53 }
  0x2e   :  { %878 = vmatprep.mubr.bf16.mxu1 %v1088_v1  ;;  %1271 = vmatprep.subr.bf16.mxu0 %v1401_v2  ;;  %v1091_v1 = vcombine.low %v34_v54, %v38_v55  ;;  %v1098_v2 = vcombine.high %v41_v60, %v45_v61 }
  0x2f   :  { %1317 = vmatprep.subr.bf16.mxu1 %v1403_v6  ;;  %v1097_v6 = vcombine.low %v41_v60, %v45_v61 }
  0x30   :  { %1272 = vmatpush3.bf16.msra.mxu0 %v1402_v5  ;;  %v50_v5 = vld [vmem:[%s1851_s0 + $0x118] sm:$0xff] }
  0x31   :  { %1318 = vmatpush3.bf16.msra.mxu1 %v1404_v7  ;;  %1273 = vmatprep.subr.bf16.mxu0 %v1405_v8  ;;  %v1099_v7 = vcombine.low %v42_v62, %v46_v63  ;;  %v1107_v11 = vcombine.low %v50_v5, %v50_v5 }
  0x32   :  { %1319 = vmatprep.subr.bf16.mxu1 %v1407_v10 }
  0x33   :  { %807 = vmatmul.mubr.bf16.gmra.mxu0 %v1085_v3  ;;  %v1100_v3 = vcombine.high %v42_v62, %v46_v63 }
  0x34   :  { %879 = vmatmul.mubr.bf16.gmra.mxu1 %v1087_v4  ;;  %1274 = vmatpush3.bf16.msra.mxu0 %v1406_v9  ;;  %v49_v4 = vld [vmem:[%s1851_s0 + $0x110] sm:$0xff]  ;;  %v1108_v9 = vcombine.high %v50_v5, %v50_v5 }
  0x35   :  { %814 = vmatprep.mubr.bf16.mxu0 %v1094_v14  ;;  %886 = vmatprep.mubr.bf16.mxu1 %v1096_v17  ;;  %v1106_v8 = vcombine.high %v49_v4, %v49_v4  ;;  %v1105_v10 = vcombine.low %v49_v4, %v49_v4 }
  0x36   :  { %1320 = vmatpush3.bf16.msra.mxu1 %v1408_v18  ;;  %1275 = vmatprep.subr.bf16.mxu0 %v1409_v20 }
  0x37   :  { %1321 = vmatprep.subr.bf16.mxu1 %v1411_v22 }
  0x38   :  { %1276 = vmatpush3.bf16.msra.mxu0 %v1410_v21 }
  0x39   :  { %1277 = vmatprep.subr.bf16.mxu0 %v1413_v24 }
  0x3a   :  { %1322 = vmatpush3.bf16.msra.mxu1 %v1412_v23 }
  0x3b   :  { %815 = vmatmul.mubr.bf16.gmra.mxu0 %v1093_v16  ;;  %1323 = vmatprep.subr.bf16.mxu1 %v1419_v31 }
  0x3c   :  { %887 = vmatmul.mubr.bf16.gmra.mxu1 %v1095_v19  ;;  %822 = vmatprep.mubr.bf16.mxu0 %v1102_v27 }
  0x3d   :  { %894 = vmatprep.mubr.bf16.mxu1 %v1104_v28  ;;  %1278 = vmatpush3.bf16.msra.mxu0 %v1416_v29 }
  0x3e   :  { %1324 = vmatpush3.bf16.msra.mxu1 %v1420_v33  ;;  %1279 = vmatprep.subr.bf16.mxu0 %v1421_v34 }
  0x3f   :  { %1325 = vmatprep.subr.bf16.mxu1 %v1423_v36 }
  0x41   :  { %1280 = vmatpush3.bf16.msra.mxu0 %v1422_v35 }
  0x42   :  { %1326 = vmatpush3.bf16.msra.mxu1 %v1424_v37 }
  0x43   :  { %823 = vmatmul.mubr.bf16.gmra.mxu0 %v1101_v30 }
  0x44   :  { %895 = vmatmul.mubr.bf16.gmra.mxu1 %v1103_v32  ;;  %934 = vmatprep.mubr.bf16.mxu0 %v1074_v41 }
  0x45   :  { %1006 = vmatprep.mubr.bf16.mxu1 %v1076_v46 }
  0x4b   :  { %935 = vmatmul.mubr.bf16.vlgmr.msra.gmra.mxu0 %v1073_v45 }
  0x4c   :  { %1007 = vmatmul.mubr.bf16.vlgmr.msra.gmra.mxu1 %v1075_v49  ;;  %942 = vmatprep.mubr.bf16.mxu0 %v1082_v50  ;;  %v1792_v49 = vld [vmem:[%s1852_s2] ss:$0 sm:$0xff] }
  0x4d   :  { %1014 = vmatprep.mubr.bf16.mxu1 %v1084_v51 }
  0x53   :  { %943 = vmatmul.mubr.bf16.gmra.mxu0 %v1081_v56 }
  0x54   :  { %1015 = vmatmul.mubr.bf16.gmra.mxu1 %v1083_v57  ;;  %950 = vmatprep.mubr.bf16.mxu0 %v1090_v58 }
  0x55   :  { %1022 = vmatprep.mubr.bf16.mxu1 %v1092_v59 }
  0x5b   :  { %951 = vmatmul.mubr.bf16.gmra.mxu0 %v1089_v0 }
  0x5c   :  { %1023 = vmatmul.mubr.bf16.gmra.mxu1 %v1091_v1  ;;  %958 = vmatprep.mubr.bf16.mxu0 %v1098_v2 }
  0x5d   :  { %1030 = vmatprep.mubr.bf16.mxu1 %v1100_v3 }
  0x63   :  { %959 = vmatmul.mubr.bf16.gmra.mxu0 %v1097_v6 }
  0x64   :  { %1031 = vmatmul.mubr.bf16.gmra.mxu1 %v1099_v7  ;;  %966 = vmatprep.mubr.bf16.mxu0 %v1106_v8 }
  0x65   :  { %1038 = vmatprep.mubr.bf16.mxu1 %v1108_v9 }
  0x6b   :  { %967 = vmatmul.mubr.bf16.gmra.mxu0 %v1105_v10 }
  0x6c   :  { %1039 = vmatmul.mubr.bf16.gmra.mxu1 %v1107_v11 }
  0xe3   :  { %v1189_v12 = vpop.f32.mrf.mxu0 }
  0xe4   :  { %v1235_v13 = vpop.f32.mrf.mxu1 }
  0xe5   :  { %v1190_v14 = vpop.f32.mrf.mxu0 }
  0xe6   :  { %v1236_v15 = vpop.f32.mrf.mxu1  ;;  %v1191_v47 = vadd.f32 %v1190_v14, %v1189_v12 }
  0xe7   :  { %v1192_v16 = vpop.f32.mrf.mxu0  ;;  %v1237_v57 = vadd.f32 %v1236_v15, %v1235_v13 }
  0xe8   :  { %v1238_v17 = vpop.f32.mrf.mxu1  ;;  %v793_v53 = vadd.f32 %v1191_v47, %v1792_v49 }
  0xe9   :  { %v1193_v18 = vpop.f32.mrf.mxu0 }
  0xea   :  { %v1239_v19 = vpop.f32.mrf.mxu1  ;;  %v1194_v54 = vadd.f32 %v1193_v18, %v1192_v16  ;;  %v865_v60 = vadd.f32 %v1237_v57, %v793_v53 }
  0xeb   :  { %v1195_v20 = vpop.f32.mrf.mxu0  ;;  %v1240_v2 = vadd.f32 %v1239_v19, %v1238_v17 }
  0xec   :  { %v1241_v21 = vpop.f32.mrf.mxu1  ;;  %v796_v61 = vadd.f32 %v1194_v54, %v1792_v49 }
  0xed   :  { %v1196_v22 = vpop.f32.mrf.mxu0 }
  0xee   :  { %v1242_v23 = vpop.f32.mrf.mxu1  ;;  %v1197_v62 = vadd.f32 %v1196_v22, %v1195_v20  ;;  %v868_v8 = vadd.f32 %v1240_v2, %v796_v61 }
  0xef   :  { %v1198_v24 = vpop.f32.mrf.mxu0  ;;  %v1243_v14 = vadd.f32 %v1242_v23, %v1241_v21 }
  0xf0   :  { %v1749_v25 = vpop.f32.mrf.mxu1  ;;  %v801_v9 = vadd.f32 %v1197_v62, %v1792_v49 }
  0xf1   :  { %v1199_v26 = vpop.f32.mrf.mxu0 }
  0xf2   :  { %v1751_v27 = vpop.f32.mrf.mxu1  ;;  %v1200_v6 = vadd.f32 %v1199_v26, %v1198_v24  ;;  %v873_v19 = vadd.f32 %v1243_v14, %v801_v9 }
  0xf3   :  { %v1201_v28 = vpop.f32.mrf.mxu0 }
  0xf4   :  { %v1753_v29 = vpop.f32.mrf.mxu1  ;;  %v804_v22 = vadd.f32 %v1200_v6, %v1792_v49 }
  0xf5   :  { %v1202_v30 = vpop.f32.mrf.mxu0 }
  0xf6   :  { %v1755_v31 = vpop.f32.mrf.mxu1  ;;  %v1203_v47 = vadd.f32 %v1202_v30, %v1201_v28 }
  0xf7   :  { %v1757_v32 = vpop.f32.mrf.mxu0 }
  0xf8   :  { %v1759_v33 = vpop.f32.mrf.mxu1  ;;  %v809_v57 = vadd.f32 %v1203_v47, %v1792_v49 }
  0xf9   :  { %v1761_v34 = vpop.f32.mrf.mxu0 }
  0xfa   :  { %v1763_v35 = vpop.f32.mrf.mxu1  ;;  %v1206_v28 = vadd.f32 %v1761_v34, %v1757_v32 }
  0xfb   :  { %v1765_v36 = vpop.f32.mrf.mxu0 }
  0xfc   :  { %v1767_v37 = vpop.f32.mrf.mxu1  ;;  %v812_v34 = vadd.f32 %v1206_v28, %v1792_v49 }
  0xfd   :  { %v1769_v38 = vpop.f32.mrf.mxu0 }
  0xfe   :  { %v1771_v39 = vpop.f32.mrf.mxu1 }
  0xff   :  { %v1773_v40 = vpop.f32.mrf.mxu0 }
 0x100   :  { %v1775_v41 = vpop.f32.mrf.mxu1 }
 0x101   :  { %v1777_v42 = vpop.f32.mrf.mxu0 }
 0x102   :  { %v1779_v43 = vpop.f32.mrf.mxu1 }
 0x103   :  { %v1781_v44 = vpop.f32.mrf.mxu0 }
 0x104   :  { %v1783_v45 = vpop.f32.mrf.mxu1 }
 0x105   :  { %v1785_v46 = vpop.f32.mrf.mxu0 }
 0x106   :  { %v1787_v48 = vpop.f32.mrf.mxu1 }
 0x107   :  { %v1216_v50 = vpop.f32.mrf.mxu0 }
 0x108   :  { %v1262_v51 = vpop.f32.mrf.mxu1 }
 0x109   :  { %v1217_v52 = vpop.f32.mrf.mxu0  ;;  %v1246_v51 = vadd.f32 %v1751_v27, %v1749_v25  ;;  %v1249_v27 = vadd.f32 %v1755_v31, %v1753_v29  ;;  %v1252_v29 = vadd.f32 %v1763_v35, %v1759_v33  ;;  %v1255_v33 = vadd.f32 %v1771_v39, %v1767_v37 }
 0x10a   :  { %v1263_v55 = vpop.f32.mrf.mxu1  ;;  %v1258_v39 = vadd.f32 %v1779_v43, %v1775_v41 }
 0x10b   :  { %v1281_v56 = vpop.f32.mrf.mxu0  ;;  %v876_v55 = vadd.f32 %v1246_v51, %v804_v22  ;;  %v881_v32 = vadd.f32 %v1249_v27, %v809_v57  ;;  %v884_v9 = vadd.f32 %v1252_v29, %v812_v34 }
 0x10c   :  { %v1327_v58 = vpop.f32.mrf.mxu1 }
 0x10d   :  { %v1282_v59 = vpop.f32.mrf.mxu0 }
 0x10e   :  { %v1283_v63 = vadd.f32 %v1282_v59, %v1281_v56  ;;  %v1328_v0 = vpop.f32.mrf.mxu1 }
 0x10f   :  { %v1284_v1 = vpop.f32.mrf.mxu0  ;;  %v1329_v4 = vadd.f32 %v1328_v0, %v1327_v58  ;;  %v1209_v0 = vadd.f32 %v1769_v38, %v1765_v36 }
 0x110   :  { %v937_v3 = vadd.f32 %v1283_v63, %v865_v60  ;;  %v1330_v5 = vpop.f32.mrf.mxu1 }
 0x111   :  { %v1285_v7 = vpop.f32.mrf.mxu0  ;;  %v817_v36 = vadd.f32 %v1209_v0, %v1792_v49 }
 0x112   :  { %v1009_v10 = vadd.f32 %v1329_v4, %v937_v3  ;;  %v1286_v11 = vadd.f32 %v1285_v7, %v1284_v1  ;;  %v1331_v12 = vpop.f32.mrf.mxu1 }
 0x113   :  { %v1287_v13 = vpop.f32.mrf.mxu0  ;;  %v1332_v18 = vadd.f32 %v1331_v12, %v1330_v5 }
 0x114   :  { %v1046_v15 = vmax.f32 %v1009_v10, 0.0  ;;  %v940_v16 = vadd.f32 %v1286_v11, %v868_v8  ;;  %v1333_v20 = vpop.f32.mrf.mxu1  ;;  %v1212_v10 = vadd.f32 %v1777_v42, %v1773_v40  ;;  %v1215_v40 = vadd.f32 %v1785_v46, %v1781_v44 }
 0x115   :  { %v1288_v17 = vpop.f32.mrf.mxu0 }
 0x116   :  { %1055 = vst [vmem:[%s1853_s3] sm:$0xff] %v1046_v15  ;;  %v1012_v24 = vadd.f32 %v1332_v18, %v940_v16  ;;  %v1289_v26 = vadd.f32 %v1288_v17, %v1287_v13  ;;  %v1334_v50 = vpop.f32.mrf.mxu1  ;;  %v820_v17 = vadd.f32 %v1212_v10, %v1792_v49 }
 0x117   :  { %v1290_v21 = vpop.f32.mrf.mxu0  ;;  %v1335_v53 = vadd.f32 %v1334_v50, %v1333_v20  ;;  %v889_v20 = vadd.f32 %v1255_v33, %v817_v36 }
 0x118   :  { %v1047_v23 = vmax.f32 %v1012_v24, 0.0  ;;  %v945_v52 = vadd.f32 %v1289_v26, %v873_v19  ;;  %v1336_v54 = vpop.f32.mrf.mxu1 }
 0x119   :  { %v1291_v56 = vpop.f32.mrf.mxu0 }
 0x11a   :  { %1056 = vst [vmem:[%s1853_s3 + $0x8] sm:$0xff] %v1047_v23  ;;  %v1017_v30 = vadd.f32 %v1335_v53, %v945_v52  ;;  %v1292_v58 = vadd.f32 %v1291_v56, %v1290_v21  ;;  %v1337_v59 = vpop.f32.mrf.mxu1  ;;  %v892_v23 = vadd.f32 %v1258_v39, %v820_v17  ;;  %v825_v52 = vadd.f32 %v1215_v40, %v1792_v49 }
 0x11b   :  { %v1293_v25 = vpop.f32.mrf.mxu0  ;;  %v1338_v62 = vadd.f32 %v1337_v59, %v1336_v54 }
 0x11c   :  { %v1048_v60 = vmax.f32 %v1017_v30, 0.0  ;;  %v948_v61 = vadd.f32 %v1292_v58, %v876_v55  ;;  %v1339_v63 = vpop.f32.mrf.mxu1  ;;  %v1261_v55 = vadd.f32 %v1787_v48, %v1783_v45 }
 0x11d   :  { %v1294_v1 = vpop.f32.mrf.mxu0 }
 0x11e   :  { %1057 = vst [vmem:[%s1853_s3 + $0x10] sm:$0xff] %v1048_v60  ;;  %v1020_v2 = vadd.f32 %v1338_v62, %v948_v61  ;;  %v1295_v3 = vadd.f32 %v1294_v1, %v1293_v25  ;;  %v1340_v4 = vpop.f32.mrf.mxu1  ;;  %v897_v30 = vadd.f32 %v1261_v55, %v825_v52 }
 0x11f   :  { %v1296_v5 = vpop.f32.mrf.mxu0  ;;  %v1341_v7 = vadd.f32 %v1340_v4, %v1339_v63 }
 0x120   :  { %v1049_v31 = vmax.f32 %v1020_v2, 0.0  ;;  %v953_v6 = vadd.f32 %v1295_v3, %v881_v32  ;;  %v1342_v8 = vpop.f32.mrf.mxu1 }
 0x121   :  { %v1297_v38 = vpop.f32.mrf.mxu0 }
 0x122   :  { %1058 = vst [vmem:[%s1853_s3 + $0x18] sm:$0xff] %v1049_v31  ;;  %v1025_v11 = vadd.f32 %v1341_v7, %v953_v6  ;;  %v1298_v12 = vadd.f32 %v1297_v38, %v1296_v5  ;;  %v1343_v13 = vpop.f32.mrf.mxu1 }
 0x123   :  { %v1299_v35 = vpop.f32.mrf.mxu0  ;;  %v1344_v16 = vadd.f32 %v1343_v13, %v1342_v8 }
 0x124   :  { %v1050_v14 = vmax.f32 %v1025_v11, 0.0  ;;  %v956_v15 = vadd.f32 %v1298_v12, %v884_v9  ;;  %v1345_v18 = vpop.f32.mrf.mxu1 }
 0x125   :  { %v1300_v22 = vpop.f32.mrf.mxu0 }
 0x126   :  { %1059 = vst [vmem:[%s1853_s3 + $0x20] sm:$0xff] %v1050_v14  ;;  %v1028_v42 = vadd.f32 %v1344_v16, %v956_v15  ;;  %v1301_v19 = vadd.f32 %v1300_v22, %v1299_v35  ;;  %v1346_v47 = vpop.f32.mrf.mxu1 }
 0x127   :  { %v1302_v37 = vpop.f32.mrf.mxu0  ;;  %v1347_v50 = vadd.f32 %v1346_v47, %v1345_v18 }
 0x128   :  { %v1051_v24 = vmax.f32 %v1028_v42, 0.0  ;;  %v961_v26 = vadd.f32 %v1301_v19, %v889_v20  ;;  %v1348_v51 = vpop.f32.mrf.mxu1 }
 0x129   :  { %v1303_v21 = vpop.f32.mrf.mxu0 }
 0x12a   :  { %1060 = vst [vmem:[%s1853_s3 + $0x28] sm:$0xff] %v1051_v24  ;;  %v1033_v44 = vadd.f32 %v1347_v50, %v961_v26  ;;  %v1304_v46 = vadd.f32 %v1303_v21, %v1302_v37  ;;  %v1349_v53 = vpop.f32.mrf.mxu1 }
 0x12b   :  { %v1305_v54 = vpop.f32.mrf.mxu0  ;;  %v1350_v56 = vadd.f32 %v1349_v53, %v1348_v51 }
 0x12c   :  { %v1052_v41 = vmax.f32 %v1033_v44, 0.0  ;;  %v964_v43 = vadd.f32 %v1304_v46, %v892_v23  ;;  %v1351_v57 = vpop.f32.mrf.mxu1 }
 0x12d   :  { %v1306_v28 = vpop.f32.mrf.mxu0 }
 0x12e   :  { %1061 = vst [vmem:[%s1853_s3 + $0x30] sm:$0xff] %v1052_v41  ;;  %v1036_v49 = vadd.f32 %v1350_v56, %v964_v43  ;;  %v1307_v58 = vadd.f32 %v1306_v28, %v1305_v54  ;;  %v1352_v59 = vpop.f32.mrf.mxu1 }
 0x12f   :  { %v1308_v25 = vpop.f32.mrf.mxu0  ;;  %v1353_v61 = vadd.f32 %v1352_v59, %v1351_v57 }
 0x130   :  { %v1053_v27 = vmax.f32 %v1036_v49, 0.0  ;;  %v969_v60 = vadd.f32 %v1307_v58, %v897_v30  ;;  %v1354_v62 = vpop.f32.mrf.mxu1 }
 0x131   :  { %v1309_v63 = vpop.f32.mrf.mxu0 }
 0x132   :  { %1062 = vst [vmem:[%s1853_s3 + $0x38] sm:$0xff] %v1053_v27  ;;  %v1041_v45 = vadd.f32 %v1353_v61, %v969_v60  ;;  %v1355_v48 = vpop.f32.mrf.mxu1 }
 0x134   :  { %v1054_v0 = vmax.f32 %v1041_v45, 0.0 }
 0x136   :  { %1063 = vst [vmem:[%s1853_s3 + $0x40] sm:$0xff] %v1054_v0 }

// kernel: _lambda_.15
= control target key start
LH: loop header
LB: loop body
LE: loop exit
PB: predicated region body
PF: predicated region fallthrough
CT: control target
= control target key end

     0   :  { %s924_s12 = smov 0   ;;  %s926_s13 = smov 0   ;;  %s1097_s0 = inlined_call_operand.vmem [shape: bf16[8,128], index: 0, kind: input, shape index: {}]   ;;  %s1098_s1 = inlined_call_operand.vmem [shape: bf16[128,1024], index: 1, kind: input, shape index: {}]   ;;  %s1099_s2 = inlined_call_operand.vmem [shape: f32[1,1024], index: 2, kind: input, shape index: {}]   ;;  %s1100_s3 = inlined_call_operand.vmem [shape: f32[8,1024], index: 3, kind: output, shape index: {}]  }
   0x1   :  { %s928_s14 = smov 0   ;;  %s930_s15 = smov 0  }
   0x2   :  { %s932_s16 = smov 0  }
   0x3 LB: > { %s22_s17 = sadd.s32 1, %s897_s15  ;;  %p65_p1 = scmp.ne.s32.totalorder %s889_s13, %s885_s12  ;;  %s901_s16 = sphi %s932_s16, %s13_s16   ;;  %s897_s15 = sphi %s930_s15, %s1104_s15   ;;  %s893_s14 = sphi %s928_s14, %s1103_s14   ;;  %s889_s13 = sphi %s926_s13, %s1102_s13   ;;  %s885_s12 = sphi %s924_s12, %s1101_s12  }
   0x4   : > { %p23_p0 = scmp.ge.s32.totalorder %s22_s17, 2  ;;  %p66_p2 = scmp.eq.s32.totalorder %s901_s16, 0 }
   0x5   : > { %s58_s19 = sadd.s32 1, %s889_s13  ;;  %p730_p5 = scmp.ge.s32.totalorder %s901_s16, 2 }
   0x6   : > { %s1106_s17 = smov (%p23_p0, %s22_s17), 0  ;;  %p67_p3 = por %p66_p2, %p65_p1 }
   0x7   : > { %s55_s18 = ssub.s32 %s897_s15, %s1106_s17  ;;  %152 = sbr.rel (%p730_p5) target bundleno = 32 (0x20), region = 20 }
   0x8   : > { %p56_p4 = scmp.eq.s32.totalorder %s55_s18, 0 }
   0xa   : > { %s959_s20 = scalar_select %p56_p4, %s889_s13, %s58_s19  }
   0xc   : > { %155 = sbr.rel (!%p67_p3) target bundleno = 32 (0x20), region = 24  ;;  %s157_s21 = sand.u32 (%p67_p3), 1, %s889_s13  }
   0xd   : > { %s773_s22 = sshll.u32 (%p67_p3), %s897_s15, 4  ;;  %s731_s23 = sshll.u32 (%p67_p3), %s157_s21, 8 }
   0xe   : > { %s967_s26 = scalar_lea.vmem (%p67_p3), %s1098_s1, %s773_s22  ;;  %s972_s27 = scalar_lea.vmem (%p67_p3), [#allocation2], %s731_s23 }
   0xf   : > { %v175_v0 = vld [vmem:[%s967_s26] sm:$0xff] (%p67_p3)  ;;  %v177_v1 = vld [vmem:[%s967_s26 + $0x8] sm:$0xff] (%p67_p3) }
  0x10   : > { %v179_v2 = vld [vmem:[%s967_s26 + $0x20] sm:$0xff] (%p67_p3)  ;;  %176 = vst [vmem:[%s972_s27] sm:$0xff] (%p67_p3), %v175_v0  ;;  %178 = vst [vmem:[%s972_s27 + $0x8] sm:$0xff] (%p67_p3), %v177_v1  ;;  %v181_v3 = vld [vmem:[%s967_s26 + $0x28] sm:$0xff] (%p67_p3) }
  0x11   : > { %180 = vst [vmem:[%s972_s27 + $0x10] sm:$0xff] %v179_v2  ;;  %v183_v4 = vld [vmem:[%s967_s26 + $0x40] sm:$0xff]  ;;  %v185_v5 = vld [vmem:[%s967_s26 + $0x48] sm:$0xff]  ;;  %182 = vst [vmem:[%s972_s27 + $0x18] sm:$0xff] %v181_v3 }
  0x12   : > { %184 = vst [vmem:[%s972_s27 + $0x20] sm:$0xff] %v183_v4  ;;  %186 = vst [vmem:[%s972_s27 + $0x28] sm:$0xff] %v185_v5  ;;  %v187_v6 = vld [vmem:[%s967_s26 + $0x60] sm:$0xff]  ;;  %v189_v7 = vld [vmem:[%s967_s26 + $0x68] sm:$0xff] }
  0x13   : > { %v191_v8 = vld [vmem:[%s967_s26 + $0x80] sm:$0xff]  ;;  %188 = vst [vmem:[%s972_s27 + $0x30] sm:$0xff] %v187_v6  ;;  %190 = vst [vmem:[%s972_s27 + $0x38] sm:$0xff] %v189_v7  ;;  %v193_v9 = vld [vmem:[%s967_s26 + $0x88] sm:$0xff] }
  0x14   : > { %192 = vst [vmem:[%s972_s27 + $0x40] sm:$0xff] %v191_v8  ;;  %v195_v10 = vld [vmem:[%s967_s26 + $0xa0] sm:$0xff]  ;;  %v197_v11 = vld [vmem:[%s967_s26 + $0xa8] sm:$0xff]  ;;  %194 = vst [vmem:[%s972_s27 + $0x48] sm:$0xff] %v193_v9 }
  0x15   : > { %196 = vst [vmem:[%s972_s27 + $0x50] sm:$0xff] %v195_v10  ;;  %198 = vst [vmem:[%s972_s27 + $0x58] sm:$0xff] %v197_v11  ;;  %v199_v12 = vld [vmem:[%s967_s26 + $0xc0] sm:$0xff]  ;;  %v201_v13 = vld [vmem:[%s967_s26 + $0xc8] sm:$0xff] }
  0x16   : > { %v203_v14 = vld [vmem:[%s967_s26 + $0xe0] sm:$0xff]  ;;  %200 = vst [vmem:[%s972_s27 + $0x60] sm:$0xff] %v199_v12  ;;  %202 = vst [vmem:[%s972_s27 + $0x68] sm:$0xff] %v201_v13  ;;  %v205_v15 = vld [vmem:[%s967_s26 + $0xe8] sm:$0xff] }
  0x17   : > { %204 = vst [vmem:[%s972_s27 + $0x70] sm:$0xff] %v203_v14  ;;  %v207_v16 = vld [vmem:[%s967_s26 + $0x100] sm:$0xff]  ;;  %v209_v17 = vld [vmem:[%s967_s26 + $0x108] sm:$0xff]  ;;  %206 = vst [vmem:[%s972_s27 + $0x78] sm:$0xff] %v205_v15 }
  0x18   : > { %208 = vst [vmem:[%s972_s27 + $0x80] sm:$0xff] %v207_v16  ;;  %210 = vst [vmem:[%s972_s27 + $0x88] sm:$0xff] %v209_v17  ;;  %v211_v18 = vld [vmem:[%s967_s26 + $0x120] sm:$0xff]  ;;  %v213_v19 = vld [vmem:[%s967_s26 + $0x128] sm:$0xff] }
  0x19   : > { %v215_v20 = vld [vmem:[%s967_s26 + $0x140] sm:$0xff]  ;;  %212 = vst [vmem:[%s972_s27 + $0x90] sm:$0xff] %v211_v18  ;;  %214 = vst [vmem:[%s972_s27 + $0x98] sm:$0xff] %v213_v19  ;;  %v217_v21 = vld [vmem:[%s967_s26 + $0x148] sm:$0xff] }
  0x1a   : > { %216 = vst [vmem:[%s972_s27 + $0xa0] sm:$0xff] %v215_v20  ;;  %v219_v22 = vld [vmem:[%s967_s26 + $0x160] sm:$0xff]  ;;  %v221_v23 = vld [vmem:[%s967_s26 + $0x168] sm:$0xff]  ;;  %218 = vst [vmem:[%s972_s27 + $0xa8] sm:$0xff] %v217_v21 }
  0x1b   : > { %220 = vst [vmem:[%s972_s27 + $0xb0] sm:$0xff] %v219_v22  ;;  %222 = vst [vmem:[%s972_s27 + $0xb8] sm:$0xff] %v221_v23  ;;  %v223_v24 = vld [vmem:[%s967_s26 + $0x180] sm:$0xff]  ;;  %v225_v25 = vld [vmem:[%s967_s26 + $0x188] sm:$0xff] }
  0x1c   : > { %v227_v26 = vld [vmem:[%s967_s26 + $0x1a0] sm:$0xff]  ;;  %224 = vst [vmem:[%s972_s27 + $0xc0] sm:$0xff] %v223_v24  ;;  %226 = vst [vmem:[%s972_s27 + $0xc8] sm:$0xff] %v225_v25  ;;  %v229_v27 = vld [vmem:[%s967_s26 + $0x1a8] sm:$0xff] }
  0x1d   : > { %228 = vst [vmem:[%s972_s27 + $0xd0] sm:$0xff] %v227_v26  ;;  %v231_v28 = vld [vmem:[%s967_s26 + $0x1c0] sm:$0xff]  ;;  %v233_v29 = vld [vmem:[%s967_s26 + $0x1c8] sm:$0xff]  ;;  %230 = vst [vmem:[%s972_s27 + $0xd8] sm:$0xff] %v229_v27 }
  0x1e   : > { %232 = vst [vmem:[%s972_s27 + $0xe0] sm:$0xff] %v231_v28  ;;  %234 = vst [vmem:[%s972_s27 + $0xe8] sm:$0xff] %v233_v29  ;;  %v235_v30 = vld [vmem:[%s967_s26 + $0x1e0] sm:$0xff]  ;;  %v237_v31 = vld [vmem:[%s967_s26 + $0x1e8] sm:$0xff] }
  0x1f   : > { %236 = vst [vmem:[%s972_s27 + $0xf0] sm:$0xff] %v235_v30  ;;  %238 = vst [vmem:[%s972_s27 + $0xf8] sm:$0xff] %v237_v31 }
  0x20 PF: > { %p734_p6 = scmp.ge.s32.totalorder %s901_s16, 1  ;;  %p251_p7 = scmp.lt.s32.totalorder %s901_s16, 3 }
  0x22   : > { %p252_p8 = pnand %p734_p6, %p251_p7 }
  0x23   : > { %s258_s28 = sand.u32 (!%p252_p8), 1, %s885_s12   ;;  %s736_s6 = sshll.u32 (!%p252_p8), %s893_s14, 2 }
  0x24   : > { %255 = sbr.rel (%p252_p8) target bundleno = 274 (0x112), region = 51  ;;  %s735_s29 = sshll.u32 (!%p252_p8), %s258_s28, 8 }
  0x25   : > { %s1038_s30 = scalar_lea.vmem (!%p252_p8), [#allocation2], %s735_s29  ;;  %p299_p9 = scmp.lt.s32.totalorder (!%p252_p8), %s736_s6, 7 }
  0x29   : > { %v903_v32 = vmov 0   ;;  %v815_v33 = vld [vmem:[%s1038_s30 + $0xe4] ss:$16 sps:$4 sm:$0xff]   ;;  %v817_v34 = vld [vmem:[%s1038_s30 + $0xec] ss:$16 sps:$4 sm:$0xff]   ;;  %v349_v2 = vlaneseq  ;;  %s1108_s6 = smov (!%p299_p9, %s736_s6), 7 }
  0x2a   : > { %561 = vmatprep.mubr.bf16.mxu0 %v903_v32  ;;  %602 = vmatprep.mubr.bf16.mxu1 %v903_v32  ;;  %v819_v35 = vld [vmem:[%s1038_s30 + $0xe0] ss:$16 sps:$4 sm:$0xff]   ;;  %v820_v36 = vld [vmem:[%s1038_s30 + $0xe8] ss:$16 sps:$4 sm:$0xff]   ;;  %v821_v37 = vld [vmem:[%s1038_s30 + $0xc4] ss:$16 sps:$4 sm:$0xff]   ;;  %s301_s9 = scalar_lea.vmem %s1099_s2, %s1108_s6 }
  0x2b   : > { %529 = vmatprep.subr.bf16.mxu0 %v815_v33  ;;  %570 = vmatprep.subr.bf16.mxu1 %v817_v34  ;;  %v823_v38 = vld [vmem:[%s1038_s30 + $0xcc] ss:$16 sps:$4 sm:$0xff]   ;;  %v825_v39 = vld [vmem:[%s1038_s30 + $0xc0] ss:$16 sps:$4 sm:$0xff]   ;;  %v826_v40 = vld [vmem:[%s1038_s30 + $0xc8] ss:$16 sps:$4 sm:$0xff]  }
  0x2c   : > { %530 = vmatpush1.bf16.msra.mxu0 %v819_v35  ;;  %571 = vmatpush1.bf16.msra.mxu1 %v820_v36  ;;  %v827_v41 = vld [vmem:[%s1038_s30 + $0xa4] ss:$16 sps:$4 sm:$0xff]   ;;  %v829_v42 = vld [vmem:[%s1038_s30 + $0xac] ss:$16 sps:$4 sm:$0xff]   ;;  %v831_v43 = vld [vmem:[%s1038_s30 + $0xa0] ss:$16 sps:$4 sm:$0xff]  }
  0x2d   : > { %531 = vmatprep.subr.bf16.mxu0 %v821_v37  ;;  %572 = vmatprep.subr.bf16.mxu1 %v823_v38  ;;  %v832_v44 = vld [vmem:[%s1038_s30 + $0xa8] ss:$16 sps:$4 sm:$0xff]   ;;  %v833_v45 = vld [vmem:[%s1038_s30 + $0x84] ss:$16 sps:$4 sm:$0xff]   ;;  %v835_v46 = vld [vmem:[%s1038_s30 + $0x8c] ss:$16 sps:$4 sm:$0xff]  }
  0x2e   : > { %v837_v47 = vld [vmem:[%s1038_s30 + $0x80] ss:$16 sps:$4 sm:$0xff]   ;;  %v838_v48 = vld [vmem:[%s1038_s30 + $0x88] ss:$16 sps:$4 sm:$0xff]   ;;  %v839_v49 = vld [vmem:[%s1038_s30 + $0x64] ss:$16 sps:$4 sm:$0xff]  }
  0x2f   : > { %v841_v50 = vld [vmem:[%s1038_s30 + $0x6c] ss:$16 sps:$4 sm:$0xff]   ;;  %v843_v51 = vld [vmem:[%s1038_s30 + $0x60] ss:$16 sps:$4 sm:$0xff]   ;;  %v844_v52 = vld [vmem:[%s1038_s30 + $0x68] ss:$16 sps:$4 sm:$0xff]  }
  0x30   : > { %532 = vmatpush1.bf16.msra.mxu0 %v825_v39  ;;  %573 = vmatpush1.bf16.msra.mxu1 %v826_v40  ;;  %v845_v53 = vld [vmem:[%s1038_s30 + $0x44] ss:$16 sps:$4 sm:$0xff]   ;;  %v847_v54 = vld [vmem:[%s1038_s30 + $0x4c] ss:$16 sps:$4 sm:$0xff]   ;;  %v849_v55 = vld [vmem:[%s1038_s30 + $0x40] ss:$16 sps:$4 sm:$0xff]  }
  0x31   : > { %533 = vmatprep.subr.bf16.mxu0 %v827_v41  ;;  %574 = vmatprep.subr.bf16.mxu1 %v829_v42  ;;  %v850_v56 = vld [vmem:[%s1038_s30 + $0x48] ss:$16 sps:$4 sm:$0xff]   ;;  %v851_v57 = vld [vmem:[%s1038_s30 + $0x24] ss:$16 sps:$4 sm:$0xff]   ;;  %v853_v58 = vld [vmem:[%s1038_s30 + $0x2c] ss:$16 sps:$4 sm:$0xff]  }
  0x32   : > { %v855_v59 = vld [vmem:[%s1038_s30 + $0x20] ss:$16 sps:$4 sm:$0xff]   ;;  %v856_v60 = vld [vmem:[%s1038_s30 + $0x28] ss:$16 sps:$4 sm:$0xff]   ;;  %v857_v61 = vld [vmem:[%s1038_s30 + $0x4] ss:$16 sps:$4 sm:$0xff]  }
  0x33   : > { %v859_v62 = vld [vmem:[%s1038_s30 + $0xc] ss:$16 sps:$4 sm:$0xff]   ;;  %v861_v63 = vld [vmem:[%s1038_s30] ss:$16 sps:$4 sm:$0xff]   ;;  %v862_v0 = vld [vmem:[%s1038_s30 + $0x8] ss:$16 sps:$4 sm:$0xff]  }
  0x34   : > { %534 = vmatpush1.bf16.msra.mxu0 %v831_v43  ;;  %575 = vmatpush1.bf16.msra.mxu1 %v832_v44  ;;  %v314_v1 = vld [vmem:[%s1097_s0] sm:$0xf]  ;;  %v350_v3 = vshrl.u32 %v349_v2, 7  ;;  %s738_s10 = sshll.u32 %s1108_s6, 3 }
  0x35   : > { %535 = vmatprep.subr.bf16.mxu0 %v833_v45  ;;  %576 = vmatprep.subr.bf16.mxu1 %v835_v46  ;;  %v347_v5 = vld [vmem:[%s301_s9] sm:$0xf]  ;;  %s311_s14 = scalar_lea.vmem %s1100_s3, %s738_s10 }
  0x36   : > { %v351_v4 = vsub.s32 0, %v350_v3  ;;  %v355_v6 = vsub.s32 1, %v350_v3  ;;  %v359_v7 = vsub.s32 2, %v350_v3  ;;  %v363_v9 = vsub.s32 3, %v350_v3 }
  0x38   : > { %536 = vmatpush1.bf16.msra.mxu0 %v837_v47  ;;  %577 = vmatpush1.bf16.msra.mxu1 %v838_v48  ;;  %v352_v8 = vrot.slane %v347_v5, %v351_v4  ;;  %v356_v10 = vrot.slane %v347_v5, %v355_v6  ;;  %v360_v12 = vrot.slane %v347_v5, %v359_v7 }
  0x39   : > { %537 = vmatprep.subr.bf16.mxu0 %v839_v49  ;;  %578 = vmatprep.subr.bf16.mxu1 %v841_v50  ;;  %v364_v15 = vrot.slane %v347_v5, %v363_v9 }
  0x3c   : > { %538 = vmatpush1.bf16.msra.mxu0 %v843_v51  ;;  %579 = vmatpush1.bf16.msra.mxu1 %v844_v52 }
  0x3d   : > { %539 = vmatprep.subr.bf16.mxu0 %v845_v53  ;;  %580 = vmatprep.subr.bf16.mxu1 %v847_v54 }
  0x40   : > { %540 = vmatpush1.bf16.msra.mxu0 %v849_v55  ;;  %581 = vmatpush1.bf16.msra.mxu1 %v850_v56 }
  0x41   : > { %541 = vmatprep.subr.bf16.mxu0 %v851_v57  ;;  %582 = vmatprep.subr.bf16.mxu1 %v853_v58 }
  0x44   : > { %542 = vmatpush1.bf16.msra.mxu0 %v855_v59  ;;  %583 = vmatpush1.bf16.msra.mxu1 %v856_v60 }
  0x45   : > { %543 = vmatprep.subr.bf16.mxu0 %v857_v61  ;;  %584 = vmatprep.subr.bf16.mxu1 %v859_v62 }
  0x48   : > { %544 = vmatpush1.bf16.msra.mxu0 %v861_v63  ;;  %585 = vmatpush1.bf16.msra.mxu1 %v862_v0 }
  0x4b   : > { %562 = vmatmul.mubr.bf16.vlgmr.msra.gmra.mxu0 %v314_v1  ;;  %603 = vmatmul.mubr.bf16.vlgmr.msra.gmra.mxu1 %v314_v1 }
 0x10b   : > { %v563_v11 = vpop.f32.mrf.mxu0  ;;  %v604_v13 = vpop.f32.mrf.mxu1 }
 0x10c   : > { %v564_v14 = vadd.f32 %v563_v11, %v352_v8  ;;  %v605_v19 = vadd.f32 %v604_v13, %v360_v12 }
 0x10d   : > { %v565_v16 = vpop.f32.mrf.mxu0  ;;  %v606_v17 = vpop.f32.mrf.mxu1 }
 0x10e   : > { %611 = vst [vmem:[%s311_s14] sm:$0xff] %v564_v14  ;;  %v566_v18 = vadd.f32 %v565_v16, %v356_v10  ;;  %v607_v22 = vadd.f32 %v606_v17, %v364_v15  ;;  %613 = vst [vmem:[%s311_s14 + $0x10] sm:$0xff] %v605_v19 }
 0x10f   : > { %v567_v20 = vpop.f32.mrf.mxu0  ;;  %v608_v21 = vpop.f32.mrf.mxu1 }
 0x110   : > { %612 = vst [vmem:[%s311_s14 + $0x8] sm:$0xff] %v566_v18  ;;  %614 = vst [vmem:[%s311_s14 + $0x18] sm:$0xff] %v607_v22 }
 0x111   : > { %v568_v23 = vpop.f32.mrf.mxu0  ;;  %v609_v24 = vpop.f32.mrf.mxu1 }
 0x112 PF: > { %s13_s16 = sadd.s32 1, %s901_s16   ;;  %s1101_s12 = smov %s889_s13 }
 0x113   : > { %p10_p10 = scmp.ge.s32.totalorder %s13_s16, 4   ;;  %s1102_s13 = smov %s959_s20 }
 0x114   : > { %s1103_s14 = smov %s897_s15  ;;  %s1104_s15 = smov %s1106_s17 }
 0x115   :  { %12 = sbr.rel (!%p10_p10) target bundleno = 3 (0x3), region = 96 }

// kernel: _lambda_.13
= control target key start
LH: loop header
LB: loop body
LE: loop exit
PB: predicated region body
PF: predicated region fallthrough
CT: control target
= control target key end

     0   :  { %s3491_s1 = inlined_call_operand.vmem [shape: bf16[2048,256], index: 1, kind: input, shape index: {}]   ;;  %s3492_s0 = inlined_call_operand.vmem [shape: bf16[8,2048], index: 0, kind: input, shape index: {}]   ;;  %s3493_s2 = inlined_call_operand.vmem [shape: f32[1,256], index: 2, kind: input, shape index: {}]   ;;  %s3494_s3 = inlined_call_operand.vmem [shape: f32[8,256], index: 3, kind: output, shape index: {}]  }
   0x1   :  { %v2234_v0 = vld [vmem:[%s3491_s1 + $0x74] ss:$8 sps:$4 sm:$0xff]   ;;  %v2238_v2 = vld [vmem:[%s3491_s1 + $0x70] ss:$8 sps:$4 sm:$0xff]   ;;  %v2240_v4 = vld [vmem:[%s3491_s1 + $0x64] ss:$8 sps:$4 sm:$0xff]  }
   0x2   :  { %v2236_v1 = vld [vmem:[%s3491_s1 + $0x174] ss:$8 sps:$4 sm:$0xff]   ;;  %1626 = vmatprep.subr.bf16.mxu0 %v2234_v0  ;;  %v2239_v3 = vld [vmem:[%s3491_s1 + $0x170] ss:$8 sps:$4 sm:$0xff]   ;;  %v2242_v5 = vld [vmem:[%s3491_s1 + $0x164] ss:$8 sps:$4 sm:$0xff]  }
   0x3   :  { %1667 = vmatprep.subr.bf16.mxu1 %v2236_v1  ;;  %1627 = vmatpush1.bf16.msra.mxu0 %v2238_v2  ;;  %v2244_v6 = vld [vmem:[%s3491_s1 + $0x60] ss:$8 sps:$4 sm:$0xff]   ;;  %v2246_v8 = vld [vmem:[%s3491_s1 + $0x54] ss:$8 sps:$4 sm:$0xff]   ;;  %v2250_v10 = vld [vmem:[%s3491_s1 + $0x50] ss:$8 sps:$4 sm:$0xff]  }
   0x4   :  { %1668 = vmatpush1.bf16.msra.mxu1 %v2239_v3  ;;  %1628 = vmatprep.subr.bf16.mxu0 %v2240_v4  ;;  %v2245_v7 = vld [vmem:[%s3491_s1 + $0x160] ss:$8 sps:$4 sm:$0xff]   ;;  %v2248_v9 = vld [vmem:[%s3491_s1 + $0x154] ss:$8 sps:$4 sm:$0xff]   ;;  %v2251_v11 = vld [vmem:[%s3491_s1 + $0x150] ss:$8 sps:$4 sm:$0xff]  }
   0x5   :  { %1669 = vmatprep.subr.bf16.mxu1 %v2242_v5  ;;  %v2252_v12 = vld [vmem:[%s3491_s1 + $0x44] ss:$8 sps:$4 sm:$0xff]   ;;  %v2256_v14 = vld [vmem:[%s3491_s1 + $0x40] ss:$8 sps:$4 sm:$0xff]   ;;  %v2258_v16 = vld [vmem:[%s3491_s1 + $0x34] ss:$8 sps:$4 sm:$0xff]  }
   0x6   :  { %v2254_v13 = vld [vmem:[%s3491_s1 + $0x144] ss:$8 sps:$4 sm:$0xff]   ;;  %v2257_v15 = vld [vmem:[%s3491_s1 + $0x140] ss:$8 sps:$4 sm:$0xff]   ;;  %v2260_v17 = vld [vmem:[%s3491_s1 + $0x134] ss:$8 sps:$4 sm:$0xff]  }
   0x7   :  { %1629 = vmatpush1.bf16.msra.mxu0 %v2244_v6  ;;  %v2262_v18 = vld [vmem:[%s3491_s1 + $0x30] ss:$8 sps:$4 sm:$0xff]   ;;  %v2264_v20 = vld [vmem:[%s3491_s1 + $0x24] ss:$8 sps:$4 sm:$0xff]   ;;  %v2268_v22 = vld [vmem:[%s3491_s1 + $0x20] ss:$8 sps:$4 sm:$0xff]  }
   0x8   :  { %1670 = vmatpush1.bf16.msra.mxu1 %v2245_v7  ;;  %1630 = vmatprep.subr.bf16.mxu0 %v2246_v8  ;;  %v2263_v19 = vld [vmem:[%s3491_s1 + $0x130] ss:$8 sps:$4 sm:$0xff]   ;;  %v2266_v21 = vld [vmem:[%s3491_s1 + $0x124] ss:$8 sps:$4 sm:$0xff]   ;;  %v2269_v23 = vld [vmem:[%s3491_s1 + $0x120] ss:$8 sps:$4 sm:$0xff]  }
   0x9   :  { %1671 = vmatprep.subr.bf16.mxu1 %v2248_v9  ;;  %v2270_v24 = vld [vmem:[%s3491_s1 + $0x14] ss:$8 sps:$4 sm:$0xff]   ;;  %v2274_v26 = vld [vmem:[%s3491_s1 + $0x10] ss:$8 sps:$4 sm:$0xff]   ;;  %v2276_v28 = vld [vmem:[%s3491_s1 + $0x4] ss:$8 sps:$4 sm:$0xff]  }
   0xa   :  { %v2272_v25 = vld [vmem:[%s3491_s1 + $0x114] ss:$8 sps:$4 sm:$0xff]   ;;  %v2275_v27 = vld [vmem:[%s3491_s1 + $0x110] ss:$8 sps:$4 sm:$0xff]   ;;  %v2278_v29 = vld [vmem:[%s3491_s1 + $0x104] ss:$8 sps:$4 sm:$0xff]  }
   0xb   :  { %1631 = vmatpush1.bf16.msra.mxu0 %v2250_v10  ;;  %v2280_v30 = vld [vmem:[%s3491_s1] ss:$8 sps:$4 sm:$0xff]   ;;  %v2282_v32 = vld [vmem:[%s3491_s1 + $0xf4] ss:$8 sps:$4 sm:$0xff]   ;;  %v2286_v34 = vld [vmem:[%s3491_s1 + $0xf0] ss:$8 sps:$4 sm:$0xff]  }
   0xc   :  { %1672 = vmatpush1.bf16.msra.mxu1 %v2251_v11  ;;  %1632 = vmatprep.subr.bf16.mxu0 %v2252_v12  ;;  %v2281_v31 = vld [vmem:[%s3491_s1 + $0x100] ss:$8 sps:$4 sm:$0xff]   ;;  %v2284_v33 = vld [vmem:[%s3491_s1 + $0x1f4] ss:$8 sps:$4 sm:$0xff]   ;;  %v2287_v35 = vld [vmem:[%s3491_s1 + $0x1f0] ss:$8 sps:$4 sm:$0xff]  }
   0xd   :  { %1673 = vmatprep.subr.bf16.mxu1 %v2254_v13  ;;  %v2288_v36 = vld [vmem:[%s3491_s1 + $0xe4] ss:$8 sps:$4 sm:$0xff]   ;;  %v2292_v38 = vld [vmem:[%s3491_s1 + $0xe0] ss:$8 sps:$4 sm:$0xff]   ;;  %v2294_v40 = vld [vmem:[%s3491_s1 + $0xd4] ss:$8 sps:$4 sm:$0xff]  }
   0xe   :  { %v2290_v37 = vld [vmem:[%s3491_s1 + $0x1e4] ss:$8 sps:$4 sm:$0xff]   ;;  %v2293_v39 = vld [vmem:[%s3491_s1 + $0x1e0] ss:$8 sps:$4 sm:$0xff]   ;;  %v2296_v41 = vld [vmem:[%s3491_s1 + $0x1d4] ss:$8 sps:$4 sm:$0xff]  }
   0xf   :  { %1633 = vmatpush1.bf16.msra.mxu0 %v2256_v14  ;;  %v2298_v42 = vld [vmem:[%s3491_s1 + $0xd0] ss:$8 sps:$4 sm:$0xff]   ;;  %v2300_v44 = vld [vmem:[%s3491_s1 + $0xc4] ss:$8 sps:$4 sm:$0xff]   ;;  %v2304_v49 = vld [vmem:[%s3491_s1 + $0xc0] ss:$8 sps:$4 sm:$0xff]  }
  0x10   :  { %1674 = vmatpush1.bf16.msra.mxu1 %v2257_v15  ;;  %1634 = vmatprep.subr.bf16.mxu0 %v2258_v16  ;;  %v2299_v43 = vld [vmem:[%s3491_s1 + $0x1d0] ss:$8 sps:$4 sm:$0xff]   ;;  %v2302_v45 = vld [vmem:[%s3491_s1 + $0x1c4] ss:$8 sps:$4 sm:$0xff]   ;;  %v2305_v50 = vld [vmem:[%s3491_s1 + $0x1c0] ss:$8 sps:$4 sm:$0xff]  }
  0x11   :  { %1675 = vmatprep.subr.bf16.mxu1 %v2260_v17  ;;  %v14_v46 = vld [vmem:[%s3492_s0] sm:$0xff]  ;;  %v15_v48 = vld [vmem:[%s3492_s0 + $0x8] sm:$0xff]  ;;  %v2306_v52 = vld [vmem:[%s3491_s1 + $0xb4] ss:$8 sps:$4 sm:$0xff]  }
  0x12   :  { %v1963_v47 = vcombine.high %v14_v46, %v14_v46  ;;  %v1965_v51 = vcombine.high %v15_v48, %v15_v48  ;;  %v2308_v53 = vld [vmem:[%s3491_s1 + $0x1b4] ss:$8 sps:$4 sm:$0xff]   ;;  %v2310_v54 = vld [vmem:[%s3491_s1 + $0xb0] ss:$8 sps:$4 sm:$0xff]   ;;  %v2312_v56 = vld [vmem:[%s3491_s1 + $0xa4] ss:$8 sps:$4 sm:$0xff]   ;;  %v1962_v6 = vcombine.low %v14_v46, %v14_v46  ;;  %v1964_v7 = vcombine.low %v15_v48, %v15_v48 }
  0x13   :  { %1635 = vmatpush1.bf16.msra.mxu0 %v2262_v18  ;;  %v2311_v55 = vld [vmem:[%s3491_s1 + $0x1b0] ss:$8 sps:$4 sm:$0xff]   ;;  %v2314_v57 = vld [vmem:[%s3491_s1 + $0x1a4] ss:$8 sps:$4 sm:$0xff]   ;;  %v2316_v58 = vld [vmem:[%s3491_s1 + $0xa0] ss:$8 sps:$4 sm:$0xff]  }
  0x14   :  { %1676 = vmatpush1.bf16.msra.mxu1 %v2263_v19  ;;  %1636 = vmatprep.subr.bf16.mxu0 %v2264_v20  ;;  %v2317_v59 = vld [vmem:[%s3491_s1 + $0x1a0] ss:$8 sps:$4 sm:$0xff]   ;;  %v2318_v60 = vld [vmem:[%s3491_s1 + $0x94] ss:$8 sps:$4 sm:$0xff]   ;;  %v2322_v62 = vld [vmem:[%s3491_s1 + $0x90] ss:$8 sps:$4 sm:$0xff]  }
  0x15   :  { %1677 = vmatprep.subr.bf16.mxu1 %v2266_v21  ;;  %1658 = vmatprep.mubr.bf16.mxu0 %v1963_v47  ;;  %v2320_v61 = vld [vmem:[%s3491_s1 + $0x194] ss:$8 sps:$4 sm:$0xff]   ;;  %v2323_v63 = vld [vmem:[%s3491_s1 + $0x190] ss:$8 sps:$4 sm:$0xff]   ;;  %v2324_v0 = vld [vmem:[%s3491_s1 + $0x84] ss:$8 sps:$4 sm:$0xff]  }
  0x16   :  { %1699 = vmatprep.mubr.bf16.mxu1 %v1965_v51  ;;  %v2326_v1 = vld [vmem:[%s3491_s1 + $0x184] ss:$8 sps:$4 sm:$0xff]   ;;  %v2328_v2 = vld [vmem:[%s3491_s1 + $0x80] ss:$8 sps:$4 sm:$0xff]   ;;  %v2336_v4 = vld [vmem:[%s3491_s1 + $0x274] ss:$8 sps:$4 sm:$0xff]  }
  0x17   :  { %1637 = vmatpush1.bf16.msra.mxu0 %v2268_v22  ;;  %v2329_v3 = vld [vmem:[%s3491_s1 + $0x180] ss:$8 sps:$4 sm:$0xff]   ;;  %v2339_v5 = vld [vmem:[%s3491_s1 + $0x374] ss:$8 sps:$4 sm:$0xff]   ;;  %v2334_v8 = vld [vmem:[%s3491_s1 + $0x270] ss:$8 sps:$4 sm:$0xff]  }
  0x18   :  { %1678 = vmatpush1.bf16.msra.mxu1 %v2269_v23  ;;  %1638 = vmatprep.subr.bf16.mxu0 %v2270_v24  ;;  %v2337_v9 = vld [vmem:[%s3491_s1 + $0x370] ss:$8 sps:$4 sm:$0xff]   ;;  %v2342_v10 = vld [vmem:[%s3491_s1 + $0x264] ss:$8 sps:$4 sm:$0xff]   ;;  %v2340_v12 = vld [vmem:[%s3491_s1 + $0x260] ss:$8 sps:$4 sm:$0xff]  }
  0x19   :  { %1679 = vmatprep.subr.bf16.mxu1 %v2272_v25  ;;  %v2345_v11 = vld [vmem:[%s3491_s1 + $0x364] ss:$8 sps:$4 sm:$0xff]   ;;  %v2343_v13 = vld [vmem:[%s3491_s1 + $0x360] ss:$8 sps:$4 sm:$0xff]   ;;  %v2348_v14 = vld [vmem:[%s3491_s1 + $0x254] ss:$8 sps:$4 sm:$0xff]  }
  0x1a   :  { %v2351_v15 = vld [vmem:[%s3491_s1 + $0x354] ss:$8 sps:$4 sm:$0xff]   ;;  %v2346_v16 = vld [vmem:[%s3491_s1 + $0x250] ss:$8 sps:$4 sm:$0xff]   ;;  %v2354_v18 = vld [vmem:[%s3491_s1 + $0x244] ss:$8 sps:$4 sm:$0xff]  }
  0x1b   :  { %1639 = vmatpush1.bf16.msra.mxu0 %v2274_v26  ;;  %v2349_v17 = vld [vmem:[%s3491_s1 + $0x350] ss:$8 sps:$4 sm:$0xff]   ;;  %v2357_v19 = vld [vmem:[%s3491_s1 + $0x344] ss:$8 sps:$4 sm:$0xff]   ;;  %v2352_v20 = vld [vmem:[%s3491_s1 + $0x240] ss:$8 sps:$4 sm:$0xff]  }
  0x1c   :  { %1680 = vmatpush1.bf16.msra.mxu1 %v2275_v27  ;;  %1640 = vmatprep.subr.bf16.mxu0 %v2276_v28  ;;  %v2355_v21 = vld [vmem:[%s3491_s1 + $0x340] ss:$8 sps:$4 sm:$0xff]   ;;  %v2360_v22 = vld [vmem:[%s3491_s1 + $0x234] ss:$8 sps:$4 sm:$0xff]   ;;  %v2358_v24 = vld [vmem:[%s3491_s1 + $0x230] ss:$8 sps:$4 sm:$0xff]  }
  0x1d   :  { %1681 = vmatprep.subr.bf16.mxu1 %v2278_v29  ;;  %v2363_v23 = vld [vmem:[%s3491_s1 + $0x334] ss:$8 sps:$4 sm:$0xff]   ;;  %v2361_v25 = vld [vmem:[%s3491_s1 + $0x330] ss:$8 sps:$4 sm:$0xff]   ;;  %v2366_v26 = vld [vmem:[%s3491_s1 + $0x224] ss:$8 sps:$4 sm:$0xff]  }
  0x1e   :  { %v2369_v27 = vld [vmem:[%s3491_s1 + $0x324] ss:$8 sps:$4 sm:$0xff]   ;;  %v2364_v28 = vld [vmem:[%s3491_s1 + $0x220] ss:$8 sps:$4 sm:$0xff]   ;;  %v2399_v51 = vld [vmem:[%s3491_s1 + $0x3d4] ss:$8 sps:$4 sm:$0xff]  }
  0x1f   :  { %1641 = vmatpush1.bf16.msra.mxu0 %v2280_v30  ;;  %v2367_v29 = vld [vmem:[%s3491_s1 + $0x320] ss:$8 sps:$4 sm:$0xff]   ;;  %v2372_v30 = vld [vmem:[%s3491_s1 + $0x214] ss:$8 sps:$4 sm:$0xff]   ;;  %v2390_v46 = vld [vmem:[%s3491_s1 + $0x2e4] ss:$8 sps:$4 sm:$0xff]  }
  0x20   :  { %1682 = vmatpush1.bf16.msra.mxu1 %v2281_v31  ;;  %1642 = vmatprep.subr.bf16.mxu0 %v2282_v32  ;;  %v2375_v31 = vld [vmem:[%s3491_s1 + $0x314] ss:$8 sps:$4 sm:$0xff]   ;;  %v2393_v47 = vld [vmem:[%s3491_s1 + $0x3e4] ss:$8 sps:$4 sm:$0xff]   ;;  %v2388_v48 = vld [vmem:[%s3491_s1 + $0x2e0] ss:$8 sps:$4 sm:$0xff]  }
  0x21   :  { %1683 = vmatprep.subr.bf16.mxu1 %v2284_v33  ;;  %v2933_v32 = vld [vmem:[%s3492_s0 + $0x10] sm:$0xff]  ;;  %v2938_v33 = vld [vmem:[%s3492_s0 + $0x18] sm:$0xff] }
  0x23   :  { %1643 = vmatpush2.bf16.msra.mxu0 %v2286_v34  ;;  %v2370_v34 = vld [vmem:[%s3491_s1 + $0x210] ss:$8 sps:$4 sm:$0xff]  }
  0x24   :  { %1684 = vmatpush2.bf16.msra.mxu1 %v2287_v35  ;;  %1644 = vmatprep.subr.bf16.mxu0 %v2288_v36  ;;  %v2373_v35 = vld [vmem:[%s3491_s1 + $0x310] ss:$8 sps:$4 sm:$0xff]   ;;  %v1967_v36 = vcombine.high %v2933_v32, %v2933_v32 }
  0x25   :  { %1685 = vmatprep.subr.bf16.mxu1 %v2290_v37  ;;  %v1969_v37 = vcombine.high %v2938_v33, %v2938_v33 }
  0x27   :  { %1645 = vmatpush2.bf16.msra.mxu0 %v2292_v38  ;;  %v2378_v38 = vld [vmem:[%s3491_s1 + $0x204] ss:$8 sps:$4 sm:$0xff]  }
  0x28   :  { %1686 = vmatpush2.bf16.msra.mxu1 %v2293_v39  ;;  %1646 = vmatprep.subr.bf16.mxu0 %v2294_v40  ;;  %v2381_v39 = vld [vmem:[%s3491_s1 + $0x304] ss:$8 sps:$4 sm:$0xff]   ;;  %v2376_v40 = vld [vmem:[%s3491_s1 + $0x200] ss:$8 sps:$4 sm:$0xff]  }
  0x29   :  { %1687 = vmatprep.subr.bf16.mxu1 %v2296_v41  ;;  %v2379_v41 = vld [vmem:[%s3491_s1 + $0x300] ss:$8 sps:$4 sm:$0xff]  }
  0x2b   :  { %1647 = vmatpush2.bf16.msra.mxu0 %v2298_v42  ;;  %v2384_v42 = vld [vmem:[%s3491_s1 + $0x2f4] ss:$8 sps:$4 sm:$0xff]  }
  0x2c   :  { %1688 = vmatpush2.bf16.msra.mxu1 %v2299_v43  ;;  %1648 = vmatprep.subr.bf16.mxu0 %v2300_v44  ;;  %v2387_v43 = vld [vmem:[%s3491_s1 + $0x3f4] ss:$8 sps:$4 sm:$0xff]   ;;  %v2382_v44 = vld [vmem:[%s3491_s1 + $0x2f0] ss:$8 sps:$4 sm:$0xff]  }
  0x2d   :  { %1689 = vmatprep.subr.bf16.mxu1 %v2302_v45  ;;  %v2385_v45 = vld [vmem:[%s3491_s1 + $0x3f0] ss:$8 sps:$4 sm:$0xff]  }
  0x2f   :  { %1649 = vmatpush2.bf16.msra.mxu0 %v2304_v49  ;;  %v2391_v49 = vld [vmem:[%s3491_s1 + $0x3e0] ss:$8 sps:$4 sm:$0xff]  }
  0x30   :  { %1690 = vmatpush2.bf16.msra.mxu1 %v2305_v50  ;;  %1650 = vmatprep.subr.bf16.mxu0 %v2306_v52  ;;  %v2396_v50 = vld [vmem:[%s3491_s1 + $0x2d4] ss:$8 sps:$4 sm:$0xff]   ;;  %v2394_v52 = vld [vmem:[%s3491_s1 + $0x2d0] ss:$8 sps:$4 sm:$0xff]  }
  0x31   :  { %1691 = vmatprep.subr.bf16.mxu1 %v2308_v53  ;;  %v2397_v53 = vld [vmem:[%s3491_s1 + $0x3d0] ss:$8 sps:$4 sm:$0xff]  }
  0x33   :  { %1651 = vmatpush2.bf16.msra.mxu0 %v2310_v54  ;;  %v2402_v54 = vld [vmem:[%s3491_s1 + $0x2c4] ss:$8 sps:$4 sm:$0xff]  }
  0x34   :  { %1692 = vmatpush2.bf16.msra.mxu1 %v2311_v55  ;;  %1652 = vmatprep.subr.bf16.mxu0 %v2312_v56  ;;  %v2405_v55 = vld [vmem:[%s3491_s1 + $0x3c4] ss:$8 sps:$4 sm:$0xff]   ;;  %v2400_v56 = vld [vmem:[%s3491_s1 + $0x2c0] ss:$8 sps:$4 sm:$0xff]  }
  0x35   :  { %1693 = vmatprep.subr.bf16.mxu1 %v2314_v57  ;;  %v2403_v57 = vld [vmem:[%s3491_s1 + $0x3c0] ss:$8 sps:$4 sm:$0xff]  }
  0x37   :  { %1653 = vmatpush2.bf16.msra.mxu0 %v2316_v58  ;;  %v2408_v58 = vld [vmem:[%s3491_s1 + $0x2b4] ss:$8 sps:$4 sm:$0xff]  }
  0x38   :  { %1694 = vmatpush2.bf16.msra.mxu1 %v2317_v59  ;;  %1654 = vmatprep.subr.bf16.mxu0 %v2318_v60  ;;  %v2411_v59 = vld [vmem:[%s3491_s1 + $0x3b4] ss:$8 sps:$4 sm:$0xff]   ;;  %v2406_v60 = vld [vmem:[%s3491_s1 + $0x2b0] ss:$8 sps:$4 sm:$0xff]  }
  0x39   :  { %1695 = vmatprep.subr.bf16.mxu1 %v2320_v61  ;;  %v2409_v61 = vld [vmem:[%s3491_s1 + $0x3b0] ss:$8 sps:$4 sm:$0xff]  }
  0x3b   :  { %1655 = vmatpush2.bf16.msra.mxu0 %v2322_v62  ;;  %v2414_v62 = vld [vmem:[%s3491_s1 + $0x2a4] ss:$8 sps:$4 sm:$0xff]  }
  0x3c   :  { %1696 = vmatpush2.bf16.msra.mxu1 %v2323_v63  ;;  %1656 = vmatprep.subr.bf16.mxu0 %v2324_v0  ;;  %v2417_v63 = vld [vmem:[%s3491_s1 + $0x3a4] ss:$8 sps:$4 sm:$0xff]   ;;  %v2412_v0 = vld [vmem:[%s3491_s1 + $0x2a0] ss:$8 sps:$4 sm:$0xff]  }
  0x3d   :  { %1697 = vmatprep.subr.bf16.mxu1 %v2326_v1  ;;  %v2415_v1 = vld [vmem:[%s3491_s1 + $0x3a0] ss:$8 sps:$4 sm:$0xff]  }
  0x3f   :  { %1657 = vmatpush2.bf16.msra.mxu0 %v2328_v2  ;;  %v2420_v2 = vld [vmem:[%s3491_s1 + $0x294] ss:$8 sps:$4 sm:$0xff]  }
  0x40   :  { %1698 = vmatpush2.bf16.msra.mxu1 %v2329_v3  ;;  %1708 = vmatprep.subr.bf16.mxu0 %v2336_v4  ;;  %v2423_v3 = vld [vmem:[%s3491_s1 + $0x394] ss:$8 sps:$4 sm:$0xff]   ;;  %v2418_v4 = vld [vmem:[%s3491_s1 + $0x290] ss:$8 sps:$4 sm:$0xff]  }
  0x41   :  { %1749 = vmatprep.subr.bf16.mxu1 %v2339_v5  ;;  %v2421_v5 = vld [vmem:[%s3491_s1 + $0x390] ss:$8 sps:$4 sm:$0xff]  }
  0x42   :  { %1659 = vmatmul.mubr.bf16.vlgmr.msra.gmra.mxu0 %v1962_v6  ;;  %v2426_v6 = vld [vmem:[%s3491_s1 + $0x284] ss:$8 sps:$4 sm:$0xff]  }
  0x43   :  { %1700 = vmatmul.mubr.bf16.vlgmr.msra.gmra.mxu1 %v1964_v7  ;;  %1709 = vmatpush1.bf16.msra.mxu0 %v2334_v8  ;;  %v2429_v7 = vld [vmem:[%s3491_s1 + $0x384] ss:$8 sps:$4 sm:$0xff]   ;;  %v2424_v8 = vld [vmem:[%s3491_s1 + $0x280] ss:$8 sps:$4 sm:$0xff]  }
  0x44   :  { %1750 = vmatpush1.bf16.msra.mxu1 %v2337_v9  ;;  %1710 = vmatprep.subr.bf16.mxu0 %v2342_v10  ;;  %v2427_v9 = vld [vmem:[%s3491_s1 + $0x380] ss:$8 sps:$4 sm:$0xff]   ;;  %v2436_v10 = vld [vmem:[%s3491_s1 + $0x474] ss:$8 sps:$4 sm:$0xff]  }
  0x45   :  { %1751 = vmatprep.subr.bf16.mxu1 %v2345_v11  ;;  %1740 = vmatprep.mubr.bf16.mxu0 %v1967_v36  ;;  %v2439_v11 = vld [vmem:[%s3491_s1 + $0x574] ss:$8 sps:$4 sm:$0xff]   ;;  %v2466_v36 = vld [vmem:[%s3491_s1 + $0x424] ss:$8 sps:$4 sm:$0xff]  }
  0x46   :  { %1781 = vmatprep.mubr.bf16.mxu1 %v1969_v37  ;;  %v2469_v37 = vld [vmem:[%s3491_s1 + $0x524] ss:$8 sps:$4 sm:$0xff]  }
  0x47   :  { %1711 = vmatpush1.bf16.msra.mxu0 %v2340_v12  ;;  %v1966_v12 = vcombine.low %v2933_v32, %v2933_v32  ;;  %v2460_v32 = vld [vmem:[%s3491_s1 + $0x434] ss:$8 sps:$4 sm:$0xff]  }
  0x48   :  { %1752 = vmatpush1.bf16.msra.mxu1 %v2343_v13  ;;  %1712 = vmatprep.subr.bf16.mxu0 %v2348_v14  ;;  %v1968_v13 = vcombine.low %v2938_v33, %v2938_v33  ;;  %v2434_v14 = vld [vmem:[%s3491_s1 + $0x470] ss:$8 sps:$4 sm:$0xff]   ;;  %v2463_v33 = vld [vmem:[%s3491_s1 + $0x534] ss:$8 sps:$4 sm:$0xff]  }
  0x49   :  { %1753 = vmatprep.subr.bf16.mxu1 %v2351_v15  ;;  %v2437_v15 = vld [vmem:[%s3491_s1 + $0x570] ss:$8 sps:$4 sm:$0xff]  }
  0x4b   :  { %1713 = vmatpush1.bf16.msra.mxu0 %v2346_v16  ;;  %v2442_v16 = vld [vmem:[%s3491_s1 + $0x464] ss:$8 sps:$4 sm:$0xff]  }
  0x4c   :  { %1754 = vmatpush1.bf16.msra.mxu1 %v2349_v17  ;;  %1714 = vmatprep.subr.bf16.mxu0 %v2354_v18  ;;  %v2445_v17 = vld [vmem:[%s3491_s1 + $0x564] ss:$8 sps:$4 sm:$0xff]  }
  0x4d   :  { %1755 = vmatprep.subr.bf16.mxu1 %v2357_v19  ;;  %v3083_v18 = vld [vmem:[%s3492_s0 + $0x20] sm:$0xff]  ;;  %v3088_v19 = vld [vmem:[%s3492_s0 + $0x28] sm:$0xff] }
  0x4f   :  { %1715 = vmatpush1.bf16.msra.mxu0 %v2352_v20  ;;  %v1971_v20 = vcombine.high %v3083_v18, %v3083_v18 }
  0x50   :  { %1756 = vmatpush1.bf16.msra.mxu1 %v2355_v21  ;;  %1716 = vmatprep.subr.bf16.mxu0 %v2360_v22  ;;  %v1973_v21 = vcombine.high %v3088_v19, %v3088_v19  ;;  %v2440_v22 = vld [vmem:[%s3491_s1 + $0x460] ss:$8 sps:$4 sm:$0xff]  }
  0x51   :  { %1757 = vmatprep.subr.bf16.mxu1 %v2363_v23  ;;  %v2443_v23 = vld [vmem:[%s3491_s1 + $0x560] ss:$8 sps:$4 sm:$0xff]  }
  0x53   :  { %1717 = vmatpush1.bf16.msra.mxu0 %v2358_v24  ;;  %v2448_v24 = vld [vmem:[%s3491_s1 + $0x454] ss:$8 sps:$4 sm:$0xff]  }
  0x54   :  { %1758 = vmatpush1.bf16.msra.mxu1 %v2361_v25  ;;  %1718 = vmatprep.subr.bf16.mxu0 %v2366_v26  ;;  %v2451_v25 = vld [vmem:[%s3491_s1 + $0x554] ss:$8 sps:$4 sm:$0xff]   ;;  %v2446_v26 = vld [vmem:[%s3491_s1 + $0x450] ss:$8 sps:$4 sm:$0xff]  }
  0x55   :  { %1759 = vmatprep.subr.bf16.mxu1 %v2369_v27  ;;  %v2449_v27 = vld [vmem:[%s3491_s1 + $0x550] ss:$8 sps:$4 sm:$0xff]  }
  0x57   :  { %1719 = vmatpush1.bf16.msra.mxu0 %v2364_v28  ;;  %v2454_v28 = vld [vmem:[%s3491_s1 + $0x444] ss:$8 sps:$4 sm:$0xff]  }
  0x58   :  { %1760 = vmatpush1.bf16.msra.mxu1 %v2367_v29  ;;  %1720 = vmatprep.subr.bf16.mxu0 %v2372_v30  ;;  %v2457_v29 = vld [vmem:[%s3491_s1 + $0x544] ss:$8 sps:$4 sm:$0xff]   ;;  %v2452_v30 = vld [vmem:[%s3491_s1 + $0x440] ss:$8 sps:$4 sm:$0xff]  }
  0x59   :  { %1761 = vmatprep.subr.bf16.mxu1 %v2375_v31  ;;  %v2455_v31 = vld [vmem:[%s3491_s1 + $0x540] ss:$8 sps:$4 sm:$0xff]  }
  0x5b   :  { %1721 = vmatpush1.bf16.msra.mxu0 %v2370_v34  ;;  %v2458_v34 = vld [vmem:[%s3491_s1 + $0x430] ss:$8 sps:$4 sm:$0xff]  }
  0x5c   :  { %1762 = vmatpush1.bf16.msra.mxu1 %v2373_v35  ;;  %1722 = vmatprep.subr.bf16.mxu0 %v2378_v38  ;;  %v2461_v35 = vld [vmem:[%s3491_s1 + $0x530] ss:$8 sps:$4 sm:$0xff]   ;;  %v2464_v38 = vld [vmem:[%s3491_s1 + $0x420] ss:$8 sps:$4 sm:$0xff]  }
  0x5d   :  { %1763 = vmatprep.subr.bf16.mxu1 %v2381_v39  ;;  %v2467_v39 = vld [vmem:[%s3491_s1 + $0x520] ss:$8 sps:$4 sm:$0xff]  }
  0x5f   :  { %1723 = vmatpush1.bf16.msra.mxu0 %v2376_v40  ;;  %v2472_v40 = vld [vmem:[%s3491_s1 + $0x414] ss:$8 sps:$4 sm:$0xff]  }
  0x60   :  { %1764 = vmatpush1.bf16.msra.mxu1 %v2379_v41  ;;  %1724 = vmatprep.subr.bf16.mxu0 %v2384_v42  ;;  %v2475_v41 = vld [vmem:[%s3491_s1 + $0x514] ss:$8 sps:$4 sm:$0xff]   ;;  %v2470_v42 = vld [vmem:[%s3491_s1 + $0x410] ss:$8 sps:$4 sm:$0xff]  }
  0x61   :  { %1765 = vmatprep.subr.bf16.mxu1 %v2387_v43  ;;  %v2473_v43 = vld [vmem:[%s3491_s1 + $0x510] ss:$8 sps:$4 sm:$0xff]  }
  0x63   :  { %1725 = vmatpush2.bf16.msra.mxu0 %v2382_v44  ;;  %v2478_v44 = vld [vmem:[%s3491_s1 + $0x404] ss:$8 sps:$4 sm:$0xff]  }
  0x64   :  { %1766 = vmatpush2.bf16.msra.mxu1 %v2385_v45  ;;  %1726 = vmatprep.subr.bf16.mxu0 %v2390_v46  ;;  %v2481_v45 = vld [vmem:[%s3491_s1 + $0x504] ss:$8 sps:$4 sm:$0xff]   ;;  %v2476_v46 = vld [vmem:[%s3491_s1 + $0x400] ss:$8 sps:$4 sm:$0xff]  }
  0x65   :  { %1767 = vmatprep.subr.bf16.mxu1 %v2393_v47  ;;  %v2479_v47 = vld [vmem:[%s3491_s1 + $0x500] ss:$8 sps:$4 sm:$0xff]  }
  0x67   :  { %1727 = vmatpush2.bf16.msra.mxu0 %v2388_v48  ;;  %v2484_v48 = vld [vmem:[%s3491_s1 + $0x4f4] ss:$8 sps:$4 sm:$0xff]  }
  0x68   :  { %1768 = vmatpush2.bf16.msra.mxu1 %v2391_v49  ;;  %1728 = vmatprep.subr.bf16.mxu0 %v2396_v50  ;;  %v2487_v49 = vld [vmem:[%s3491_s1 + $0x5f4] ss:$8 sps:$4 sm:$0xff]   ;;  %v2482_v50 = vld [vmem:[%s3491_s1 + $0x4f0] ss:$8 sps:$4 sm:$0xff]  }
  0x69   :  { %1769 = vmatprep.subr.bf16.mxu1 %v2399_v51  ;;  %v2485_v51 = vld [vmem:[%s3491_s1 + $0x5f0] ss:$8 sps:$4 sm:$0xff]  }
  0x6b   :  { %1729 = vmatpush2.bf16.msra.mxu0 %v2394_v52  ;;  %v2490_v52 = vld [vmem:[%s3491_s1 + $0x4e4] ss:$8 sps:$4 sm:$0xff]  }
  0x6c   :  { %1770 = vmatpush2.bf16.msra.mxu1 %v2397_v53  ;;  %1730 = vmatprep.subr.bf16.mxu0 %v2402_v54  ;;  %v2493_v53 = vld [vmem:[%s3491_s1 + $0x5e4] ss:$8 sps:$4 sm:$0xff]   ;;  %v2488_v54 = vld [vmem:[%s3491_s1 + $0x4e0] ss:$8 sps:$4 sm:$0xff]  }
  0x6d   :  { %1771 = vmatprep.subr.bf16.mxu1 %v2405_v55  ;;  %v2491_v55 = vld [vmem:[%s3491_s1 + $0x5e0] ss:$8 sps:$4 sm:$0xff]  }
  0x6f   :  { %1731 = vmatpush2.bf16.msra.mxu0 %v2400_v56  ;;  %v2496_v56 = vld [vmem:[%s3491_s1 + $0x4d4] ss:$8 sps:$4 sm:$0xff]  }
  0x70   :  { %1772 = vmatpush2.bf16.msra.mxu1 %v2403_v57  ;;  %1732 = vmatprep.subr.bf16.mxu0 %v2408_v58  ;;  %v2499_v57 = vld [vmem:[%s3491_s1 + $0x5d4] ss:$8 sps:$4 sm:$0xff]   ;;  %v2494_v58 = vld [vmem:[%s3491_s1 + $0x4d0] ss:$8 sps:$4 sm:$0xff]  }
  0x71   :  { %1773 = vmatprep.subr.bf16.mxu1 %v2411_v59  ;;  %v2497_v59 = vld [vmem:[%s3491_s1 + $0x5d0] ss:$8 sps:$4 sm:$0xff]  }
  0x73   :  { %1733 = vmatpush2.bf16.msra.mxu0 %v2406_v60  ;;  %v2502_v60 = vld [vmem:[%s3491_s1 + $0x4c4] ss:$8 sps:$4 sm:$0xff]  }
  0x74   :  { %1774 = vmatpush2.bf16.msra.mxu1 %v2409_v61  ;;  %1734 = vmatprep.subr.bf16.mxu0 %v2414_v62  ;;  %v2505_v61 = vld [vmem:[%s3491_s1 + $0x5c4] ss:$8 sps:$4 sm:$0xff]   ;;  %v2500_v62 = vld [vmem:[%s3491_s1 + $0x4c0] ss:$8 sps:$4 sm:$0xff]  }
  0x75   :  { %1775 = vmatprep.subr.bf16.mxu1 %v2417_v63  ;;  %v2503_v63 = vld [vmem:[%s3491_s1 + $0x5c0] ss:$8 sps:$4 sm:$0xff]  }
  0x77   :  { %1735 = vmatpush2.bf16.msra.mxu0 %v2412_v0  ;;  %v2508_v0 = vld [vmem:[%s3491_s1 + $0x4b4] ss:$8 sps:$4 sm:$0xff]  }
  0x78   :  { %1776 = vmatpush2.bf16.msra.mxu1 %v2415_v1  ;;  %1736 = vmatprep.subr.bf16.mxu0 %v2420_v2  ;;  %v2511_v1 = vld [vmem:[%s3491_s1 + $0x5b4] ss:$8 sps:$4 sm:$0xff]   ;;  %v2506_v2 = vld [vmem:[%s3491_s1 + $0x4b0] ss:$8 sps:$4 sm:$0xff]  }
  0x79   :  { %1777 = vmatprep.subr.bf16.mxu1 %v2423_v3  ;;  %v2509_v3 = vld [vmem:[%s3491_s1 + $0x5b0] ss:$8 sps:$4 sm:$0xff]  }
  0x7b   :  { %1737 = vmatpush2.bf16.msra.mxu0 %v2418_v4  ;;  %v2514_v4 = vld [vmem:[%s3491_s1 + $0x4a4] ss:$8 sps:$4 sm:$0xff]  }
  0x7c   :  { %1778 = vmatpush2.bf16.msra.mxu1 %v2421_v5  ;;  %1738 = vmatprep.subr.bf16.mxu0 %v2426_v6  ;;  %v2517_v5 = vld [vmem:[%s3491_s1 + $0x5a4] ss:$8 sps:$4 sm:$0xff]   ;;  %v2512_v6 = vld [vmem:[%s3491_s1 + $0x4a0] ss:$8 sps:$4 sm:$0xff]  }
  0x7d   :  { %1779 = vmatprep.subr.bf16.mxu1 %v2429_v7  ;;  %v2515_v7 = vld [vmem:[%s3491_s1 + $0x5a0] ss:$8 sps:$4 sm:$0xff]  }
  0x7f   :  { %1739 = vmatpush2.bf16.msra.mxu0 %v2424_v8  ;;  %v2520_v8 = vld [vmem:[%s3491_s1 + $0x494] ss:$8 sps:$4 sm:$0xff]  }
  0x80   :  { %1780 = vmatpush2.bf16.msra.mxu1 %v2427_v9  ;;  %1790 = vmatprep.subr.bf16.mxu0 %v2436_v10  ;;  %v2523_v9 = vld [vmem:[%s3491_s1 + $0x594] ss:$8 sps:$4 sm:$0xff]   ;;  %v2518_v10 = vld [vmem:[%s3491_s1 + $0x490] ss:$8 sps:$4 sm:$0xff]  }
  0x81   :  { %1831 = vmatprep.subr.bf16.mxu1 %v2439_v11  ;;  %v2521_v11 = vld [vmem:[%s3491_s1 + $0x590] ss:$8 sps:$4 sm:$0xff]  }
  0x82   :  { %1741 = vmatmul.mubr.bf16.vlgmr.msra.gmra.mxu0 %v1966_v12  ;;  %v2526_v12 = vld [vmem:[%s3491_s1 + $0x484] ss:$8 sps:$4 sm:$0xff]  }
  0x83   :  { %1782 = vmatmul.mubr.bf16.vlgmr.msra.gmra.mxu1 %v1968_v13  ;;  %1791 = vmatpush1.bf16.msra.mxu0 %v2434_v14  ;;  %v2529_v13 = vld [vmem:[%s3491_s1 + $0x584] ss:$8 sps:$4 sm:$0xff]   ;;  %v2524_v14 = vld [vmem:[%s3491_s1 + $0x480] ss:$8 sps:$4 sm:$0xff]  }
  0x84   :  { %1832 = vmatpush1.bf16.msra.mxu1 %v2437_v15  ;;  %1792 = vmatprep.subr.bf16.mxu0 %v2442_v16  ;;  %v2527_v15 = vld [vmem:[%s3491_s1 + $0x580] ss:$8 sps:$4 sm:$0xff]   ;;  %v2536_v16 = vld [vmem:[%s3491_s1 + $0x674] ss:$8 sps:$4 sm:$0xff]  }
  0x85   :  { %1833 = vmatprep.subr.bf16.mxu1 %v2445_v17  ;;  %1822 = vmatprep.mubr.bf16.mxu0 %v1971_v20  ;;  %v2539_v17 = vld [vmem:[%s3491_s1 + $0x774] ss:$8 sps:$4 sm:$0xff]   ;;  %v1970_v20 = vcombine.low %v3083_v18, %v3083_v18  ;;  %v2537_v18 = vld [vmem:[%s3491_s1 + $0x770] ss:$8 sps:$4 sm:$0xff]  }
  0x86   :  { %1863 = vmatprep.mubr.bf16.mxu1 %v1973_v21  ;;  %v1972_v21 = vcombine.low %v3088_v19, %v3088_v19  ;;  %v2542_v19 = vld [vmem:[%s3491_s1 + $0x664] ss:$8 sps:$4 sm:$0xff]  }
  0x87   :  { %1793 = vmatpush1.bf16.msra.mxu0 %v2440_v22  ;;  %v3281_v22 = vld [vmem:[%s3492_s0 + $0x30] sm:$0xff] }
  0x88   :  { %1834 = vmatpush1.bf16.msra.mxu1 %v2443_v23  ;;  %1794 = vmatprep.subr.bf16.mxu0 %v2448_v24  ;;  %v3286_v23 = vld [vmem:[%s3492_s0 + $0x38] sm:$0xff] }
  0x89   :  { %1835 = vmatprep.subr.bf16.mxu1 %v2451_v25  ;;  %v2534_v24 = vld [vmem:[%s3491_s1 + $0x670] ss:$8 sps:$4 sm:$0xff]   ;;  %v2545_v25 = vld [vmem:[%s3491_s1 + $0x764] ss:$8 sps:$4 sm:$0xff]  }
  0x8b   :  { %1795 = vmatpush1.bf16.msra.mxu0 %v2446_v26  ;;  %v1975_v26 = vcombine.high %v3281_v22, %v3281_v22 }
  0x8c   :  { %1836 = vmatpush1.bf16.msra.mxu1 %v2449_v27  ;;  %1796 = vmatprep.subr.bf16.mxu0 %v2454_v28  ;;  %v1977_v27 = vcombine.high %v3286_v23, %v3286_v23  ;;  %v2540_v28 = vld [vmem:[%s3491_s1 + $0x660] ss:$8 sps:$4 sm:$0xff]  }
  0x8d   :  { %1837 = vmatprep.subr.bf16.mxu1 %v2457_v29  ;;  %v2543_v29 = vld [vmem:[%s3491_s1 + $0x760] ss:$8 sps:$4 sm:$0xff]  }
  0x8f   :  { %1797 = vmatpush1.bf16.msra.mxu0 %v2452_v30  ;;  %v2548_v30 = vld [vmem:[%s3491_s1 + $0x654] ss:$8 sps:$4 sm:$0xff]  }
  0x90   :  { %1838 = vmatpush1.bf16.msra.mxu1 %v2455_v31  ;;  %1798 = vmatprep.subr.bf16.mxu0 %v2460_v32  ;;  %v2551_v31 = vld [vmem:[%s3491_s1 + $0x754] ss:$8 sps:$4 sm:$0xff]   ;;  %v2546_v32 = vld [vmem:[%s3491_s1 + $0x650] ss:$8 sps:$4 sm:$0xff]  }
  0x91   :  { %1839 = vmatprep.subr.bf16.mxu1 %v2463_v33  ;;  %v2549_v33 = vld [vmem:[%s3491_s1 + $0x750] ss:$8 sps:$4 sm:$0xff]  }
  0x93   :  { %1799 = vmatpush1.bf16.msra.mxu0 %v2458_v34  ;;  %v2554_v34 = vld [vmem:[%s3491_s1 + $0x644] ss:$8 sps:$4 sm:$0xff]  }
  0x94   :  { %1840 = vmatpush1.bf16.msra.mxu1 %v2461_v35  ;;  %1800 = vmatprep.subr.bf16.mxu0 %v2466_v36  ;;  %v2557_v35 = vld [vmem:[%s3491_s1 + $0x744] ss:$8 sps:$4 sm:$0xff]   ;;  %v2552_v36 = vld [vmem:[%s3491_s1 + $0x640] ss:$8 sps:$4 sm:$0xff]  }
  0x95   :  { %1841 = vmatprep.subr.bf16.mxu1 %v2469_v37  ;;  %v2555_v37 = vld [vmem:[%s3491_s1 + $0x740] ss:$8 sps:$4 sm:$0xff]  }
  0x97   :  { %1801 = vmatpush1.bf16.msra.mxu0 %v2464_v38  ;;  %v2560_v38 = vld [vmem:[%s3491_s1 + $0x634] ss:$8 sps:$4 sm:$0xff]  }
  0x98   :  { %1842 = vmatpush1.bf16.msra.mxu1 %v2467_v39  ;;  %1802 = vmatprep.subr.bf16.mxu0 %v2472_v40  ;;  %v2563_v39 = vld [vmem:[%s3491_s1 + $0x734] ss:$8 sps:$4 sm:$0xff]   ;;  %v2558_v40 = vld [vmem:[%s3491_s1 + $0x630] ss:$8 sps:$4 sm:$0xff]  }
  0x99   :  { %1843 = vmatprep.subr.bf16.mxu1 %v2475_v41  ;;  %v2561_v41 = vld [vmem:[%s3491_s1 + $0x730] ss:$8 sps:$4 sm:$0xff]  }
  0x9b   :  { %1803 = vmatpush1.bf16.msra.mxu0 %v2470_v42  ;;  %v2566_v42 = vld [vmem:[%s3491_s1 + $0x624] ss:$8 sps:$4 sm:$0xff]  }
  0x9c   :  { %1844 = vmatpush1.bf16.msra.mxu1 %v2473_v43  ;;  %1804 = vmatprep.subr.bf16.mxu0 %v2478_v44  ;;  %v2569_v43 = vld [vmem:[%s3491_s1 + $0x724] ss:$8 sps:$4 sm:$0xff]   ;;  %v2564_v44 = vld [vmem:[%s3491_s1 + $0x620] ss:$8 sps:$4 sm:$0xff]  }
  0x9d   :  { %1845 = vmatprep.subr.bf16.mxu1 %v2481_v45  ;;  %v2567_v45 = vld [vmem:[%s3491_s1 + $0x720] ss:$8 sps:$4 sm:$0xff]  }
  0x9f   :  { %1805 = vmatpush1.bf16.msra.mxu0 %v2476_v46  ;;  %v2572_v46 = vld [vmem:[%s3491_s1 + $0x614] ss:$8 sps:$4 sm:$0xff]  }
  0xa0   :  { %1846 = vmatpush1.bf16.msra.mxu1 %v2479_v47  ;;  %1806 = vmatprep.subr.bf16.mxu0 %v2484_v48  ;;  %v2575_v47 = vld [vmem:[%s3491_s1 + $0x714] ss:$8 sps:$4 sm:$0xff]   ;;  %v2570_v48 = vld [vmem:[%s3491_s1 + $0x610] ss:$8 sps:$4 sm:$0xff]  }
  0xa1   :  { %1847 = vmatprep.subr.bf16.mxu1 %v2487_v49  ;;  %v2573_v49 = vld [vmem:[%s3491_s1 + $0x710] ss:$8 sps:$4 sm:$0xff]  }
  0xa3   :  { %1807 = vmatpush2.bf16.msra.mxu0 %v2482_v50  ;;  %v2578_v50 = vld [vmem:[%s3491_s1 + $0x604] ss:$8 sps:$4 sm:$0xff]  }
  0xa4   :  { %1848 = vmatpush2.bf16.msra.mxu1 %v2485_v51  ;;  %1808 = vmatprep.subr.bf16.mxu0 %v2490_v52  ;;  %v2581_v51 = vld [vmem:[%s3491_s1 + $0x704] ss:$8 sps:$4 sm:$0xff]   ;;  %v2576_v52 = vld [vmem:[%s3491_s1 + $0x600] ss:$8 sps:$4 sm:$0xff]  }
  0xa5   :  { %1849 = vmatprep.subr.bf16.mxu1 %v2493_v53  ;;  %v2579_v53 = vld [vmem:[%s3491_s1 + $0x700] ss:$8 sps:$4 sm:$0xff]  }
  0xa7   :  { %1809 = vmatpush2.bf16.msra.mxu0 %v2488_v54  ;;  %v2584_v54 = vld [vmem:[%s3491_s1 + $0x6f4] ss:$8 sps:$4 sm:$0xff]  }
  0xa8   :  { %1850 = vmatpush2.bf16.msra.mxu1 %v2491_v55  ;;  %1810 = vmatprep.subr.bf16.mxu0 %v2496_v56  ;;  %v2587_v55 = vld [vmem:[%s3491_s1 + $0x7f4] ss:$8 sps:$4 sm:$0xff]   ;;  %v2582_v56 = vld [vmem:[%s3491_s1 + $0x6f0] ss:$8 sps:$4 sm:$0xff]  }
  0xa9   :  { %1851 = vmatprep.subr.bf16.mxu1 %v2499_v57  ;;  %v2585_v57 = vld [vmem:[%s3491_s1 + $0x7f0] ss:$8 sps:$4 sm:$0xff]  }
  0xab   :  { %1811 = vmatpush2.bf16.msra.mxu0 %v2494_v58  ;;  %v2590_v58 = vld [vmem:[%s3491_s1 + $0x6e4] ss:$8 sps:$4 sm:$0xff]  }
  0xac   :  { %1852 = vmatpush2.bf16.msra.mxu1 %v2497_v59  ;;  %1812 = vmatprep.subr.bf16.mxu0 %v2502_v60  ;;  %v2593_v59 = vld [vmem:[%s3491_s1 + $0x7e4] ss:$8 sps:$4 sm:$0xff]   ;;  %v2588_v60 = vld [vmem:[%s3491_s1 + $0x6e0] ss:$8 sps:$4 sm:$0xff]  }
  0xad   :  { %1853 = vmatprep.subr.bf16.mxu1 %v2505_v61  ;;  %v2591_v61 = vld [vmem:[%s3491_s1 + $0x7e0] ss:$8 sps:$4 sm:$0xff]  }
  0xaf   :  { %1813 = vmatpush2.bf16.msra.mxu0 %v2500_v62  ;;  %v2596_v62 = vld [vmem:[%s3491_s1 + $0x6d4] ss:$8 sps:$4 sm:$0xff]  }
  0xb0   :  { %1854 = vmatpush2.bf16.msra.mxu1 %v2503_v63  ;;  %1814 = vmatprep.subr.bf16.mxu0 %v2508_v0  ;;  %v2599_v63 = vld [vmem:[%s3491_s1 + $0x7d4] ss:$8 sps:$4 sm:$0xff]   ;;  %v2594_v0 = vld [vmem:[%s3491_s1 + $0x6d0] ss:$8 sps:$4 sm:$0xff]  }
  0xb1   :  { %1855 = vmatprep.subr.bf16.mxu1 %v2511_v1  ;;  %v2597_v1 = vld [vmem:[%s3491_s1 + $0x7d0] ss:$8 sps:$4 sm:$0xff]  }
  0xb3   :  { %1815 = vmatpush2.bf16.msra.mxu0 %v2506_v2  ;;  %v2602_v2 = vld [vmem:[%s3491_s1 + $0x6c4] ss:$8 sps:$4 sm:$0xff]  }
  0xb4   :  { %1856 = vmatpush2.bf16.msra.mxu1 %v2509_v3  ;;  %1816 = vmatprep.subr.bf16.mxu0 %v2514_v4  ;;  %v2605_v3 = vld [vmem:[%s3491_s1 + $0x7c4] ss:$8 sps:$4 sm:$0xff]   ;;  %v2600_v4 = vld [vmem:[%s3491_s1 + $0x6c0] ss:$8 sps:$4 sm:$0xff]  }
  0xb5   :  { %1857 = vmatprep.subr.bf16.mxu1 %v2517_v5  ;;  %v2603_v5 = vld [vmem:[%s3491_s1 + $0x7c0] ss:$8 sps:$4 sm:$0xff]  }
  0xb7   :  { %1817 = vmatpush2.bf16.msra.mxu0 %v2512_v6  ;;  %v2608_v6 = vld [vmem:[%s3491_s1 + $0x6b4] ss:$8 sps:$4 sm:$0xff]  }
  0xb8   :  { %1858 = vmatpush2.bf16.msra.mxu1 %v2515_v7  ;;  %1818 = vmatprep.subr.bf16.mxu0 %v2520_v8  ;;  %v2611_v7 = vld [vmem:[%s3491_s1 + $0x7b4] ss:$8 sps:$4 sm:$0xff]   ;;  %v2606_v8 = vld [vmem:[%s3491_s1 + $0x6b0] ss:$8 sps:$4 sm:$0xff]  }
  0xb9   :  { %1859 = vmatprep.subr.bf16.mxu1 %v2523_v9  ;;  %v2609_v9 = vld [vmem:[%s3491_s1 + $0x7b0] ss:$8 sps:$4 sm:$0xff]  }
  0xbb   :  { %1819 = vmatpush2.bf16.msra.mxu0 %v2518_v10  ;;  %v2614_v10 = vld [vmem:[%s3491_s1 + $0x6a4] ss:$8 sps:$4 sm:$0xff]  }
  0xbc   :  { %1860 = vmatpush2.bf16.msra.mxu1 %v2521_v11  ;;  %1820 = vmatprep.subr.bf16.mxu0 %v2526_v12  ;;  %v2617_v11 = vld [vmem:[%s3491_s1 + $0x7a4] ss:$8 sps:$4 sm:$0xff]   ;;  %v2612_v12 = vld [vmem:[%s3491_s1 + $0x6a0] ss:$8 sps:$4 sm:$0xff]  }
  0xbd   :  { %1861 = vmatprep.subr.bf16.mxu1 %v2529_v13  ;;  %v2615_v13 = vld [vmem:[%s3491_s1 + $0x7a0] ss:$8 sps:$4 sm:$0xff]  }
  0xbf   :  { %1821 = vmatpush2.bf16.msra.mxu0 %v2524_v14  ;;  %v280_v14 = vlaneseq }
  0xc0   :  { %1862 = vmatpush2.bf16.msra.mxu1 %v2527_v15  ;;  %1872 = vmatprep.subr.bf16.mxu0 %v2536_v16  ;;  %v2620_v15 = vld [vmem:[%s3491_s1 + $0x694] ss:$8 sps:$4 sm:$0xff]  }
  0xc1   :  { %1913 = vmatprep.subr.bf16.mxu1 %v2539_v17  ;;  %v2623_v16 = vld [vmem:[%s3491_s1 + $0x794] ss:$8 sps:$4 sm:$0xff]   ;;  %v2618_v17 = vld [vmem:[%s3491_s1 + $0x690] ss:$8 sps:$4 sm:$0xff]  }
  0xc2   :  { %1823 = vmatmul.mubr.bf16.vlgmr.msra.gmra.mxu0 %v1970_v20  ;;  %v2621_v20 = vld [vmem:[%s3491_s1 + $0x790] ss:$8 sps:$4 sm:$0xff]  }
  0xc3   :  { %1864 = vmatmul.mubr.bf16.vlgmr.msra.gmra.mxu1 %v1972_v21  ;;  %1873 = vmatpush1.bf16.msra.mxu0 %v2534_v24  ;;  %v281_v21 = vshrl.u32 %v280_v14, 7  ;;  %v2626_v24 = vld [vmem:[%s3491_s1 + $0x684] ss:$8 sps:$4 sm:$0xff]  }
  0xc4   :  { %1914 = vmatpush1.bf16.msra.mxu1 %v2537_v18  ;;  %1874 = vmatprep.subr.bf16.mxu0 %v2542_v19  ;;  %v2629_v18 = vld [vmem:[%s3491_s1 + $0x784] ss:$8 sps:$4 sm:$0xff]   ;;  %v2624_v19 = vld [vmem:[%s3491_s1 + $0x680] ss:$8 sps:$4 sm:$0xff]  }
  0xc5   :  { %1915 = vmatprep.subr.bf16.mxu1 %v2545_v25  ;;  %1904 = vmatprep.mubr.bf16.mxu0 %v1975_v26  ;;  %v2627_v25 = vld [vmem:[%s3491_s1 + $0x780] ss:$8 sps:$4 sm:$0xff]   ;;  %v282_v26 = vsub.s32 0, %v281_v21 }
  0xc6   :  { %1945 = vmatprep.mubr.bf16.mxu1 %v1977_v27  ;;  %v278_v27 = vld [vmem:[%s3493_s2] sm:$0x3] }
  0xc7   :  { %1875 = vmatpush1.bf16.msra.mxu0 %v2540_v28  ;;  %v286_v28 = vsub.s32 1, %v281_v21 }
  0xc8   :  { %1916 = vmatpush1.bf16.msra.mxu1 %v2543_v29  ;;  %1876 = vmatprep.subr.bf16.mxu0 %v2548_v30  ;;  %v1974_v29 = vcombine.low %v3281_v22, %v3281_v22  ;;  %v1976_v30 = vcombine.low %v3286_v23, %v3286_v23 }
  0xc9   :  { %1917 = vmatprep.subr.bf16.mxu1 %v2551_v31  ;;  %v283_v31 = vrot.slane %v278_v27, %v282_v26 }
  0xcb   :  { %1877 = vmatpush1.bf16.msra.mxu0 %v2546_v32  ;;  %v287_v32 = vrot.slane %v278_v27, %v286_v28 }
  0xcc   :  { %1918 = vmatpush1.bf16.msra.mxu1 %v2549_v33  ;;  %1878 = vmatprep.subr.bf16.mxu0 %v2554_v34 }
  0xcd   :  { %1919 = vmatprep.subr.bf16.mxu1 %v2557_v35 }
  0xcf   :  { %1879 = vmatpush1.bf16.msra.mxu0 %v2552_v36 }
  0xd0   :  { %1920 = vmatpush1.bf16.msra.mxu1 %v2555_v37  ;;  %1880 = vmatprep.subr.bf16.mxu0 %v2560_v38 }
  0xd1   :  { %1921 = vmatprep.subr.bf16.mxu1 %v2563_v39 }
  0xd3   :  { %1881 = vmatpush1.bf16.msra.mxu0 %v2558_v40 }
  0xd4   :  { %1922 = vmatpush1.bf16.msra.mxu1 %v2561_v41  ;;  %1882 = vmatprep.subr.bf16.mxu0 %v2566_v42 }
  0xd5   :  { %1923 = vmatprep.subr.bf16.mxu1 %v2569_v43 }
  0xd7   :  { %1883 = vmatpush1.bf16.msra.mxu0 %v2564_v44 }
  0xd8   :  { %1924 = vmatpush1.bf16.msra.mxu1 %v2567_v45  ;;  %1884 = vmatprep.subr.bf16.mxu0 %v2572_v46 }
  0xd9   :  { %1925 = vmatprep.subr.bf16.mxu1 %v2575_v47 }
  0xdb   :  { %1885 = vmatpush1.bf16.msra.mxu0 %v2570_v48 }
  0xdc   :  { %1926 = vmatpush1.bf16.msra.mxu1 %v2573_v49  ;;  %1886 = vmatprep.subr.bf16.mxu0 %v2578_v50 }
  0xdd   :  { %1927 = vmatprep.subr.bf16.mxu1 %v2581_v51 }
  0xdf   :  { %1887 = vmatpush1.bf16.msra.mxu0 %v2576_v52 }
  0xe0   :  { %1928 = vmatpush1.bf16.msra.mxu1 %v2579_v53  ;;  %1888 = vmatprep.subr.bf16.mxu0 %v2584_v54 }
  0xe1   :  { %1929 = vmatprep.subr.bf16.mxu1 %v2587_v55 }
  0xe3   :  { %1889 = vmatpush2.bf16.msra.mxu0 %v2582_v56 }
  0xe4   :  { %1930 = vmatpush2.bf16.msra.mxu1 %v2585_v57  ;;  %1890 = vmatprep.subr.bf16.mxu0 %v2590_v58 }
  0xe5   :  { %1931 = vmatprep.subr.bf16.mxu1 %v2593_v59 }
  0xe7   :  { %1891 = vmatpush2.bf16.msra.mxu0 %v2588_v60 }
  0xe8   :  { %1932 = vmatpush2.bf16.msra.mxu1 %v2591_v61  ;;  %1892 = vmatprep.subr.bf16.mxu0 %v2596_v62 }
  0xe9   :  { %1933 = vmatprep.subr.bf16.mxu1 %v2599_v63 }
  0xeb   :  { %1893 = vmatpush2.bf16.msra.mxu0 %v2594_v0 }
  0xec   :  { %1934 = vmatpush2.bf16.msra.mxu1 %v2597_v1  ;;  %1894 = vmatprep.subr.bf16.mxu0 %v2602_v2 }
  0xed   :  { %1935 = vmatprep.subr.bf16.mxu1 %v2605_v3 }
  0xef   :  { %1895 = vmatpush2.bf16.msra.mxu0 %v2600_v4 }
  0xf0   :  { %1936 = vmatpush2.bf16.msra.mxu1 %v2603_v5  ;;  %1896 = vmatprep.subr.bf16.mxu0 %v2608_v6 }
  0xf1   :  { %1937 = vmatprep.subr.bf16.mxu1 %v2611_v7 }
  0xf3   :  { %1897 = vmatpush2.bf16.msra.mxu0 %v2606_v8 }
  0xf4   :  { %1938 = vmatpush2.bf16.msra.mxu1 %v2609_v9  ;;  %1898 = vmatprep.subr.bf16.mxu0 %v2614_v10 }
  0xf5   :  { %1939 = vmatprep.subr.bf16.mxu1 %v2617_v11 }
  0xf7   :  { %1899 = vmatpush2.bf16.msra.mxu0 %v2612_v12 }
  0xf8   :  { %1940 = vmatpush2.bf16.msra.mxu1 %v2615_v13  ;;  %1900 = vmatprep.subr.bf16.mxu0 %v2620_v15 }
  0xf9   :  { %1941 = vmatprep.subr.bf16.mxu1 %v2623_v16 }
  0xfb   :  { %1901 = vmatpush2.bf16.msra.mxu0 %v2618_v17 }
  0xfc   :  { %1942 = vmatpush2.bf16.msra.mxu1 %v2621_v20  ;;  %1902 = vmatprep.subr.bf16.mxu0 %v2626_v24 }
  0xfd   :  { %1943 = vmatprep.subr.bf16.mxu1 %v2629_v18 }
  0xff   :  { %1903 = vmatpush2.bf16.msra.mxu0 %v2624_v19 }
 0x100   :  { %1944 = vmatpush2.bf16.msra.mxu1 %v2627_v25 }
 0x102   :  { %v1660_v33 = vpop.f32.mrf.mxu0  ;;  %1905 = vmatmul.mubr.bf16.vlgmr.msra.gmra.mxu0 %v1974_v29 }
 0x103   :  { %v1701_v34 = vpop.f32.mrf.mxu1  ;;  %1946 = vmatmul.mubr.bf16.vlgmr.msra.gmra.mxu1 %v1976_v30  ;;  %v1661_v35 = vadd.f32 %v1660_v33, %v283_v31 }
 0x104   :  { %v1662_v36 = vpop.f32.mrf.mxu0 }
 0x105   :  { %v1703_v37 = vpop.f32.mrf.mxu1  ;;  %v1702_v38 = vadd.f32 %v1701_v34, %v1661_v35  ;;  %v1663_v39 = vadd.f32 %v1662_v36, %v287_v32 }
 0x106   :  { %v1664_v40 = vpop.f32.mrf.mxu0 }
 0x107   :  { %v1705_v41 = vpop.f32.mrf.mxu1  ;;  %v1704_v42 = vadd.f32 %v1703_v37, %v1663_v39 }
 0x108   :  { %v1665_v22 = vpop.f32.mrf.mxu0 }
 0x109   :  { %v1706_v43 = vpop.f32.mrf.mxu1 }
 0x142   :  { %v1742_v44 = vpop.f32.mrf.mxu0 }
 0x143   :  { %v1783_v23 = vpop.f32.mrf.mxu1  ;;  %v1743_v45 = vadd.f32 %v1742_v44, %v1702_v38 }
 0x144   :  { %v1744_v46 = vpop.f32.mrf.mxu0 }
 0x145   :  { %v1785_v47 = vpop.f32.mrf.mxu1  ;;  %v1784_v48 = vadd.f32 %v1783_v23, %v1743_v45  ;;  %v1745_v49 = vadd.f32 %v1744_v46, %v1704_v42 }
 0x146   :  { %v1746_v50 = vpop.f32.mrf.mxu0 }
 0x147   :  { %v1787_v51 = vpop.f32.mrf.mxu1  ;;  %v1786_v52 = vadd.f32 %v1785_v47, %v1745_v49 }
 0x148   :  { %v1747_v53 = vpop.f32.mrf.mxu0 }
 0x149   :  { %v1788_v54 = vpop.f32.mrf.mxu1 }
 0x182   :  { %v1824_v55 = vpop.f32.mrf.mxu0 }
 0x183   :  { %v1865_v56 = vpop.f32.mrf.mxu1  ;;  %v1825_v63 = vadd.f32 %v1824_v55, %v1784_v48 }
 0x184   :  { %v1826_v57 = vpop.f32.mrf.mxu0 }
 0x185   :  { %v1867_v58 = vpop.f32.mrf.mxu1  ;;  %v1827_v0 = vadd.f32 %v1826_v57, %v1786_v52  ;;  %v1866_v1 = vadd.f32 %v1865_v56, %v1825_v63 }
 0x186   :  { %v1828_v59 = vpop.f32.mrf.mxu0 }
 0x187   :  { %v1869_v60 = vpop.f32.mrf.mxu1  ;;  %v1868_v4 = vadd.f32 %v1867_v58, %v1827_v0 }
 0x188   :  { %v1829_v61 = vpop.f32.mrf.mxu0 }
 0x189   :  { %v1870_v62 = vpop.f32.mrf.mxu1 }
 0x1c2   :  { %v1906_v2 = vpop.f32.mrf.mxu0 }
 0x1c3   :  { %v1947_v3 = vpop.f32.mrf.mxu1  ;;  %v1907_v5 = vadd.f32 %v1906_v2, %v1866_v1 }
 0x1c4   :  { %v1908_v6 = vpop.f32.mrf.mxu0 }
 0x1c5   :  { %v1949_v7 = vpop.f32.mrf.mxu1  ;;  %v1948_v8 = vadd.f32 %v1947_v3, %v1907_v5  ;;  %v1909_v9 = vadd.f32 %v1908_v6, %v1868_v4 }
 0x1c6   :  { %v1910_v10 = vpop.f32.mrf.mxu0 }
 0x1c7   :  { %v1951_v11 = vpop.f32.mrf.mxu1  ;;  %v1954_v12 = vmax.f32 %v1948_v8, 0.0  ;;  %v1950_v13 = vadd.f32 %v1949_v7, %v1909_v9 }
 0x1c8   :  { %v1911_v14 = vpop.f32.mrf.mxu0 }
 0x1c9   :  { %v1952_v15 = vpop.f32.mrf.mxu1  ;;  %1956 = vst [vmem:[%s3494_s3] sm:$0xff] %v1954_v12  ;;  %v1955_v16 = vmax.f32 %v1950_v13, 0.0 }
 0x1cb   :  { %1957 = vst [vmem:[%s3494_s3 + $0x8] sm:$0xff] %v1955_v16 }

// kernel: _lambda_.14
= control target key start
LH: loop header
LB: loop body
LE: loop exit
PB: predicated region body
PF: predicated region fallthrough
CT: control target
= control target key end

     0   :  { %s1194_s1 = inlined_call_operand.vmem [shape: bf16[1024,128], index: 1, kind: input, shape index: {}]   ;;  %s1195_s0 = inlined_call_operand.vmem [shape: bf16[8,1024], index: 0, kind: input, shape index: {}]   ;;  %s1196_s2 = inlined_call_operand.vmem [shape: f32[1,128], index: 2, kind: input, shape index: {}]   ;;  %s1197_s3 = inlined_call_operand.vmem [shape: f32[8,128], index: 3, kind: output, shape index: {}]  }
   0x1   :  { %v892_v0 = vld [vmem:[%s1194_s1 + $0x78] sm:$0xff]   ;;  %v896_v4 = vld [vmem:[%s1194_s1 + $0x70] sm:$0xff]   ;;  %v900_v8 = vld [vmem:[%s1194_s1 + $0x68] sm:$0xff]  }
   0x2   :  { %v893_v1 = vld [vmem:[%s1194_s1 + $0xf8] sm:$0xff]   ;;  %804 = vmatprep.subr.bf16.mxu0 %v892_v0  ;;  %v897_v5 = vld [vmem:[%s1194_s1 + $0xf0] sm:$0xff]   ;;  %v901_v9 = vld [vmem:[%s1194_s1 + $0xe8] sm:$0xff]  }
   0x3   :  { %v894_v2 = vld [vmem:[%s1194_s1 + $0x38] sm:$0xff]   ;;  %826 = vmatprep.subr.bf16.mxu1 %v893_v1  ;;  %v898_v6 = vld [vmem:[%s1194_s1 + $0x30] sm:$0xff]   ;;  %v902_v10 = vld [vmem:[%s1194_s1 + $0x28] sm:$0xff]  }
   0x4   :  { %v895_v3 = vld [vmem:[%s1194_s1 + $0xb8] sm:$0xff]   ;;  %805 = vmatpush3.bf16.msra.mxu0 %v894_v2  ;;  %v899_v7 = vld [vmem:[%s1194_s1 + $0xb0] sm:$0xff]   ;;  %v903_v11 = vld [vmem:[%s1194_s1 + $0xa8] sm:$0xff]  }
   0x5   :  { %827 = vmatpush3.bf16.msra.mxu1 %v895_v3  ;;  %806 = vmatprep.subr.bf16.mxu0 %v896_v4  ;;  %v904_v12 = vld [vmem:[%s1194_s1 + $0x60] sm:$0xff]   ;;  %v908_v16 = vld [vmem:[%s1194_s1 + $0x58] sm:$0xff]   ;;  %v912_v20 = vld [vmem:[%s1194_s1 + $0x50] sm:$0xff]  }
   0x6   :  { %828 = vmatprep.subr.bf16.mxu1 %v897_v5  ;;  %v905_v13 = vld [vmem:[%s1194_s1 + $0xe0] sm:$0xff]   ;;  %v909_v17 = vld [vmem:[%s1194_s1 + $0xd8] sm:$0xff]   ;;  %v913_v21 = vld [vmem:[%s1194_s1 + $0xd0] sm:$0xff]  }
   0x7   :  { %v906_v14 = vld [vmem:[%s1194_s1 + $0x20] sm:$0xff]   ;;  %v910_v18 = vld [vmem:[%s1194_s1 + $0x18] sm:$0xff]   ;;  %v914_v22 = vld [vmem:[%s1194_s1 + $0x10] sm:$0xff]  }
   0x8   :  { %807 = vmatpush3.bf16.msra.mxu0 %v898_v6  ;;  %v907_v15 = vld [vmem:[%s1194_s1 + $0xa0] sm:$0xff]   ;;  %v911_v19 = vld [vmem:[%s1194_s1 + $0x98] sm:$0xff]   ;;  %v915_v23 = vld [vmem:[%s1194_s1 + $0x90] sm:$0xff]  }
   0x9   :  { %829 = vmatpush3.bf16.msra.mxu1 %v899_v7  ;;  %808 = vmatprep.subr.bf16.mxu0 %v900_v8  ;;  %v916_v24 = vld [vmem:[%s1194_s1 + $0x48] sm:$0xff]   ;;  %v920_v28 = vld [vmem:[%s1194_s1 + $0x40] sm:$0xff]   ;;  %v928_v38 = vld [vmem:[%s1194_s1 + $0x178] sm:$0xff]  }
   0xa   :  { %830 = vmatprep.subr.bf16.mxu1 %v901_v9  ;;  %v917_v25 = vld [vmem:[%s1194_s1 + $0xc8] sm:$0xff]   ;;  %v921_v29 = vld [vmem:[%s1194_s1 + $0xc0] sm:$0xff]   ;;  %v929_v39 = vld [vmem:[%s1194_s1 + $0x1f8] sm:$0xff]  }
   0xb   :  { %v918_v26 = vld [vmem:[%s1194_s1 + $0x8] sm:$0xff]   ;;  %v922_v30 = vld [vmem:[%s1194_s1] sm:$0xff]   ;;  %v930_v40 = vld [vmem:[%s1194_s1 + $0x138] sm:$0xff]  }
   0xc   :  { %809 = vmatpush3.bf16.msra.mxu0 %v902_v10  ;;  %v919_v27 = vld [vmem:[%s1194_s1 + $0x88] sm:$0xff]   ;;  %v923_v31 = vld [vmem:[%s1194_s1 + $0x80] sm:$0xff]   ;;  %v931_v41 = vld [vmem:[%s1194_s1 + $0x1b8] sm:$0xff]  }
   0xd   :  { %831 = vmatpush3.bf16.msra.mxu1 %v903_v11  ;;  %810 = vmatprep.subr.bf16.mxu0 %v904_v12  ;;  %v15_v32 = vld [vmem:[%s1195_s0] sm:$0xff]  ;;  %v16_v33 = vld [vmem:[%s1195_s0 + $0x8] sm:$0xff]  ;;  %v932_v42 = vld [vmem:[%s1194_s1 + $0x170] sm:$0xff]  }
   0xe   :  { %832 = vmatprep.subr.bf16.mxu1 %v905_v13  ;;  %v732_v34 = vcombine.low %v15_v32, %v15_v32  ;;  %v733_v35 = vcombine.high %v15_v32, %v15_v32  ;;  %v734_v36 = vcombine.low %v16_v33, %v16_v33  ;;  %v735_v37 = vcombine.high %v16_v33, %v16_v33  ;;  %v933_v43 = vld [vmem:[%s1194_s1 + $0x1f0] sm:$0xff]   ;;  %v936_v46 = vld [vmem:[%s1194_s1 + $0x168] sm:$0xff]   ;;  %v940_v50 = vld [vmem:[%s1194_s1 + $0x160] sm:$0xff]  }
   0xf   :  { %v934_v44 = vld [vmem:[%s1194_s1 + $0x130] sm:$0xff]   ;;  %v937_v47 = vld [vmem:[%s1194_s1 + $0x1e8] sm:$0xff]   ;;  %v941_v51 = vld [vmem:[%s1194_s1 + $0x1e0] sm:$0xff]  }
  0x10   :  { %811 = vmatpush3.bf16.msra.mxu0 %v906_v14  ;;  %598 = vmatprep.mubr.bf16.mxu0 %v733_v35  ;;  %v935_v45 = vld [vmem:[%s1194_s1 + $0x1b0] sm:$0xff]   ;;  %v938_v48 = vld [vmem:[%s1194_s1 + $0x128] sm:$0xff]   ;;  %v942_v52 = vld [vmem:[%s1194_s1 + $0x120] sm:$0xff]  }
  0x11   :  { %833 = vmatpush3.bf16.msra.mxu1 %v907_v15  ;;  %812 = vmatprep.subr.bf16.mxu0 %v908_v16  ;;  %v939_v49 = vld [vmem:[%s1194_s1 + $0x1a8] sm:$0xff]   ;;  %v943_v53 = vld [vmem:[%s1194_s1 + $0x1a0] sm:$0xff]   ;;  %v944_v54 = vld [vmem:[%s1194_s1 + $0x158] sm:$0xff]  }
  0x12   :  { %834 = vmatprep.subr.bf16.mxu1 %v909_v17  ;;  %638 = vmatprep.mubr.bf16.mxu1 %v735_v37  ;;  %v945_v55 = vld [vmem:[%s1194_s1 + $0x1d8] sm:$0xff]   ;;  %v948_v58 = vld [vmem:[%s1194_s1 + $0x150] sm:$0xff]   ;;  %v952_v62 = vld [vmem:[%s1194_s1 + $0x148] sm:$0xff]  }
  0x13   :  { %v946_v56 = vld [vmem:[%s1194_s1 + $0x118] sm:$0xff]   ;;  %v949_v59 = vld [vmem:[%s1194_s1 + $0x1d0] sm:$0xff]   ;;  %v953_v63 = vld [vmem:[%s1194_s1 + $0x1c8] sm:$0xff]  }
  0x14   :  { %813 = vmatpush3.bf16.msra.mxu0 %v910_v18  ;;  %v947_v57 = vld [vmem:[%s1194_s1 + $0x198] sm:$0xff]   ;;  %v950_v60 = vld [vmem:[%s1194_s1 + $0x110] sm:$0xff]   ;;  %v954_v0 = vld [vmem:[%s1194_s1 + $0x108] sm:$0xff]  }
  0x15   :  { %835 = vmatpush3.bf16.msra.mxu1 %v911_v19  ;;  %814 = vmatprep.subr.bf16.mxu0 %v912_v20  ;;  %v951_v61 = vld [vmem:[%s1194_s1 + $0x190] sm:$0xff]   ;;  %v955_v1 = vld [vmem:[%s1194_s1 + $0x188] sm:$0xff]   ;;  %v956_v2 = vld [vmem:[%s1194_s1 + $0x140] sm:$0xff]  }
  0x16   :  { %836 = vmatprep.subr.bf16.mxu1 %v913_v21  ;;  %v957_v3 = vld [vmem:[%s1194_s1 + $0x1c0] sm:$0xff]   ;;  %v17_v6 = vld [vmem:[%s1195_s0 + $0x10] sm:$0xff]  ;;  %v18_v9 = vld [vmem:[%s1195_s0 + $0x18] sm:$0xff] }
  0x17   :  { %v958_v4 = vld [vmem:[%s1194_s1 + $0x100] sm:$0xff]   ;;  %v736_v7 = vcombine.low %v17_v6, %v17_v6  ;;  %v737_v8 = vcombine.high %v17_v6, %v17_v6  ;;  %v738_v10 = vcombine.low %v18_v9, %v18_v9  ;;  %v739_v11 = vcombine.high %v18_v9, %v18_v9 }
  0x18   :  { %815 = vmatpush3.bf16.msra.mxu0 %v914_v22  ;;  %v959_v5 = vld [vmem:[%s1194_s1 + $0x180] sm:$0xff]  }
  0x19   :  { %837 = vmatpush3.bf16.msra.mxu1 %v915_v23  ;;  %816 = vmatprep.subr.bf16.mxu0 %v916_v24  ;;  %v731_v21 = vld [vmem:[%s1196_s2] ss:$0 sm:$0xff] }
  0x1a   :  { %838 = vmatprep.subr.bf16.mxu1 %v917_v25 }
  0x1c   :  { %817 = vmatpush3.bf16.msra.mxu0 %v918_v26 }
  0x1d   :  { %839 = vmatpush3.bf16.msra.mxu1 %v919_v27  ;;  %818 = vmatprep.subr.bf16.mxu0 %v920_v28 }
  0x1e   :  { %840 = vmatprep.subr.bf16.mxu1 %v921_v29 }
  0x20   :  { %819 = vmatpush3.bf16.msra.mxu0 %v922_v30 }
  0x21   :  { %841 = vmatpush3.bf16.msra.mxu1 %v923_v31  ;;  %848 = vmatprep.subr.bf16.mxu0 %v928_v38 }
  0x22   :  { %870 = vmatprep.subr.bf16.mxu1 %v929_v39 }
  0x23   :  { %599 = vmatmul.mubr.bf16.vlgmr.msra.gmra.mxu0 %v732_v34 }
  0x24   :  { %639 = vmatmul.mubr.bf16.vlgmr.msra.gmra.mxu1 %v734_v36  ;;  %849 = vmatpush3.bf16.msra.mxu0 %v930_v40 }
  0x25   :  { %871 = vmatpush3.bf16.msra.mxu1 %v931_v41  ;;  %850 = vmatprep.subr.bf16.mxu0 %v932_v42 }
  0x26   :  { %872 = vmatprep.subr.bf16.mxu1 %v933_v43  ;;  %678 = vmatprep.mubr.bf16.mxu0 %v737_v8 }
  0x27   :  { %718 = vmatprep.mubr.bf16.mxu1 %v739_v11 }
  0x28   :  { %851 = vmatpush3.bf16.msra.mxu0 %v934_v44 }
  0x29   :  { %873 = vmatpush3.bf16.msra.mxu1 %v935_v45  ;;  %852 = vmatprep.subr.bf16.mxu0 %v936_v46 }
  0x2a   :  { %874 = vmatprep.subr.bf16.mxu1 %v937_v47 }
  0x2c   :  { %853 = vmatpush3.bf16.msra.mxu0 %v938_v48 }
  0x2d   :  { %875 = vmatpush3.bf16.msra.mxu1 %v939_v49  ;;  %854 = vmatprep.subr.bf16.mxu0 %v940_v50 }
  0x2e   :  { %876 = vmatprep.subr.bf16.mxu1 %v941_v51 }
  0x30   :  { %855 = vmatpush3.bf16.msra.mxu0 %v942_v52 }
  0x31   :  { %877 = vmatpush3.bf16.msra.mxu1 %v943_v53  ;;  %856 = vmatprep.subr.bf16.mxu0 %v944_v54 }
  0x32   :  { %878 = vmatprep.subr.bf16.mxu1 %v945_v55 }
  0x34   :  { %857 = vmatpush3.bf16.msra.mxu0 %v946_v56 }
  0x35   :  { %879 = vmatpush3.bf16.msra.mxu1 %v947_v57  ;;  %858 = vmatprep.subr.bf16.mxu0 %v948_v58 }
  0x36   :  { %880 = vmatprep.subr.bf16.mxu1 %v949_v59 }
  0x38   :  { %859 = vmatpush3.bf16.msra.mxu0 %v950_v60 }
  0x39   :  { %881 = vmatpush3.bf16.msra.mxu1 %v951_v61  ;;  %860 = vmatprep.subr.bf16.mxu0 %v952_v62 }
  0x3a   :  { %882 = vmatprep.subr.bf16.mxu1 %v953_v63 }
  0x3c   :  { %861 = vmatpush3.bf16.msra.mxu0 %v954_v0 }
  0x3d   :  { %883 = vmatpush3.bf16.msra.mxu1 %v955_v1  ;;  %862 = vmatprep.subr.bf16.mxu0 %v956_v2 }
  0x3e   :  { %884 = vmatprep.subr.bf16.mxu1 %v957_v3 }
  0x40   :  { %863 = vmatpush3.bf16.msra.mxu0 %v958_v4 }
  0x41   :  { %885 = vmatpush3.bf16.msra.mxu1 %v959_v5 }
  0x43   :  { %679 = vmatmul.mubr.bf16.vlgmr.msra.gmra.mxu0 %v736_v7 }
  0x44   :  { %719 = vmatmul.mubr.bf16.vlgmr.msra.gmra.mxu1 %v738_v10 }
  0xe3   :  { %v820_v12 = vpop.f32.mrf.mxu0 }
  0xe4   :  { %v842_v13 = vpop.f32.mrf.mxu1 }
  0xe5   :  { %v821_v14 = vpop.f32.mrf.mxu0 }
  0xe6   :  { %v843_v15 = vpop.f32.mrf.mxu1  ;;  %v822_v20 = vadd.f32 %v821_v14, %v820_v12 }
  0xe7   :  { %v823_v16 = vpop.f32.mrf.mxu0  ;;  %v844_v23 = vadd.f32 %v843_v15, %v842_v13 }
  0xe8   :  { %v845_v17 = vpop.f32.mrf.mxu1  ;;  %v601_v22 = vadd.f32 %v822_v20, %v731_v21 }
  0xe9   :  { %v824_v18 = vpop.f32.mrf.mxu0 }
  0xea   :  { %v846_v19 = vpop.f32.mrf.mxu1  ;;  %v641_v28 = vadd.f32 %v844_v23, %v601_v22 }
 0x103   :  { %v864_v24 = vpop.f32.mrf.mxu0 }
 0x104   :  { %v886_v25 = vpop.f32.mrf.mxu1 }
 0x105   :  { %v865_v26 = vpop.f32.mrf.mxu0 }
 0x106   :  { %v887_v27 = vpop.f32.mrf.mxu1  ;;  %v866_v29 = vadd.f32 %v865_v26, %v864_v24 }
 0x107   :  { %v867_v30 = vpop.f32.mrf.mxu0  ;;  %v888_v33 = vadd.f32 %v887_v27, %v886_v25 }
 0x108   :  { %v889_v31 = vpop.f32.mrf.mxu1  ;;  %v681_v32 = vadd.f32 %v866_v29, %v641_v28 }
 0x109   :  { %v868_v34 = vpop.f32.mrf.mxu0 }
 0x10a   :  { %v890_v35 = vpop.f32.mrf.mxu1  ;;  %v721_v36 = vadd.f32 %v888_v33, %v681_v32 }
 0x10c   :  { %726 = vst [vmem:[%s1197_s3] sm:$0xff] %v721_v36 }

// kernel: _lambda_.16
= control target key start
LH: loop header
LB: loop body
LE: loop exit
PB: predicated region body
PF: predicated region fallthrough
CT: control target
= control target key end

     0   :  { %s3569_s12 = smov 0   ;;  %s3571_s13 = smov 0   ;;  %s4485_s0 = inlined_call_operand.vmem [shape: bf16[8,1024], index: 0, kind: input, shape index: {}]   ;;  %s4486_s1 = inlined_call_operand.vmem [shape: bf16[1024,3584], index: 1, kind: input, shape index: {}]   ;;  %s4487_s2 = inlined_call_operand.vmem [shape: f32[1,3584], index: 2, kind: input, shape index: {}]   ;;  %s4488_s3 = inlined_call_operand.vmem [shape: f32[8,3584], index: 3, kind: output, shape index: {}]  }
   0x1   :  { %s3573_s14 = smov 0   ;;  %s3575_s15 = smov 0  }
   0x2   :  { %s3577_s16 = smov 0  }
   0x3 LB: > { %s22_s17 = sadd.s32 1, %s3543_s15  ;;  %p65_p1 = scmp.ne.s32.totalorder %s3535_s13, %s3531_s12  ;;  %s3547_s16 = sphi %s3577_s16, %s13_s16   ;;  %s3543_s15 = sphi %s3575_s15, %s4492_s15   ;;  %s3539_s14 = sphi %s3573_s14, %s4491_s14   ;;  %s3535_s13 = sphi %s3571_s13, %s4490_s13   ;;  %s3531_s12 = sphi %s3569_s12, %s4489_s12  }
   0x4   : > { %p23_p0 = scmp.ge.s32.totalorder %s22_s17, 7  ;;  %p66_p2 = scmp.eq.s32.totalorder %s3547_s16, 0 }
   0x5   : > { %s58_s19 = sadd.s32 1, %s3535_s13  ;;  %p2801_p5 = scmp.ge.s32.totalorder %s3547_s16, 7 }
   0x6   : > { %s4494_s17 = smov (%p23_p0, %s22_s17), 0  ;;  %p67_p3 = por %p66_p2, %p65_p1 }
   0x7   : > { %s55_s18 = ssub.s32 %s3543_s15, %s4494_s17  ;;  %153 = sbr.rel (%p2801_p5) target bundleno = 144 (0x90), region = 20 }
   0x8   : > { %p56_p4 = scmp.eq.s32.totalorder %s55_s18, 0 }
   0xa   : > { %s3604_s20 = scalar_select %p56_p4, %s3535_s13, %s58_s19  }
   0xc   : > { %156 = sbr.rel (!%p67_p3) target bundleno = 144 (0x90), region = 24  ;;  %s158_s21 = sand.u32 (%p67_p3), 1, %s3535_s13  }
   0xd   : > { %s3076_s22 = sshll.u32 (%p67_p3), %s3543_s15, 4  ;;  %s2802_s23 = sshll.u32 (%p67_p3), %s158_s21, 11 }
   0xe   : > { %s3612_s26 = scalar_lea.vmem (%p67_p3), %s4486_s1, %s3076_s22  ;;  %s3617_s27 = scalar_lea.vmem (%p67_p3), [#allocation2], %s2802_s23 }
   0xf   : > { %v176_v0 = vld [vmem:[%s3612_s26] sm:$0xff] (%p67_p3)  ;;  %v178_v1 = vld [vmem:[%s3612_s26 + $0x8] sm:$0xff] (%p67_p3)  ;;  %v180_v2 = vld [vmem:[%s3612_s26 + $0x70] sm:$0xff] (%p67_p3) }
  0x10   : > { %177 = vst [vmem:[%s3617_s27] sm:$0xff] (%p67_p3), %v176_v0  ;;  %179 = vst [vmem:[%s3617_s27 + $0x8] sm:$0xff] (%p67_p3), %v178_v1  ;;  %v182_v3 = vld [vmem:[%s3612_s26 + $0x78] sm:$0xff] (%p67_p3)  ;;  %v184_v4 = vld [vmem:[%s3612_s26 + $0xe0] sm:$0xff] (%p67_p3) }
  0x11   : > { %181 = vst [vmem:[%s3617_s27 + $0x10] sm:$0xff] %v180_v2  ;;  %v186_v5 = vld [vmem:[%s3612_s26 + $0xe8] sm:$0xff]  ;;  %183 = vst [vmem:[%s3617_s27 + $0x18] sm:$0xff] %v182_v3  ;;  %v188_v6 = vld [vmem:[%s3612_s26 + $0x150] sm:$0xff] }
  0x12   : > { %185 = vst [vmem:[%s3617_s27 + $0x20] sm:$0xff] %v184_v4  ;;  %187 = vst [vmem:[%s3617_s27 + $0x28] sm:$0xff] %v186_v5  ;;  %v190_v7 = vld [vmem:[%s3612_s26 + $0x158] sm:$0xff]  ;;  %v192_v8 = vld [vmem:[%s3612_s26 + $0x1c0] sm:$0xff] }
  0x13   : > { %189 = vst [vmem:[%s3617_s27 + $0x30] sm:$0xff] %v188_v6  ;;  %191 = vst [vmem:[%s3617_s27 + $0x38] sm:$0xff] %v190_v7  ;;  %v194_v9 = vld [vmem:[%s3612_s26 + $0x1c8] sm:$0xff]  ;;  %v196_v10 = vld [vmem:[%s3612_s26 + $0x230] sm:$0xff] }
  0x14   : > { %193 = vst [vmem:[%s3617_s27 + $0x40] sm:$0xff] %v192_v8  ;;  %v198_v11 = vld [vmem:[%s3612_s26 + $0x238] sm:$0xff]  ;;  %195 = vst [vmem:[%s3617_s27 + $0x48] sm:$0xff] %v194_v9  ;;  %v200_v12 = vld [vmem:[%s3612_s26 + $0x2a0] sm:$0xff] }
  0x15   : > { %197 = vst [vmem:[%s3617_s27 + $0x50] sm:$0xff] %v196_v10  ;;  %199 = vst [vmem:[%s3617_s27 + $0x58] sm:$0xff] %v198_v11  ;;  %v202_v13 = vld [vmem:[%s3612_s26 + $0x2a8] sm:$0xff]  ;;  %v204_v14 = vld [vmem:[%s3612_s26 + $0x310] sm:$0xff] }
  0x16   : > { %201 = vst [vmem:[%s3617_s27 + $0x60] sm:$0xff] %v200_v12  ;;  %203 = vst [vmem:[%s3617_s27 + $0x68] sm:$0xff] %v202_v13  ;;  %v206_v15 = vld [vmem:[%s3612_s26 + $0x318] sm:$0xff]  ;;  %v208_v16 = vld [vmem:[%s3612_s26 + $0x380] sm:$0xff] }
  0x17   : > { %205 = vst [vmem:[%s3617_s27 + $0x70] sm:$0xff] %v204_v14  ;;  %v210_v17 = vld [vmem:[%s3612_s26 + $0x388] sm:$0xff]  ;;  %207 = vst [vmem:[%s3617_s27 + $0x78] sm:$0xff] %v206_v15  ;;  %v212_v18 = vld [vmem:[%s3612_s26 + $0x3f0] sm:$0xff] }
  0x18   : > { %209 = vst [vmem:[%s3617_s27 + $0x80] sm:$0xff] %v208_v16  ;;  %211 = vst [vmem:[%s3617_s27 + $0x88] sm:$0xff] %v210_v17  ;;  %v214_v19 = vld [vmem:[%s3612_s26 + $0x3f8] sm:$0xff]  ;;  %v216_v20 = vld [vmem:[%s3612_s26 + $0x460] sm:$0xff] }
  0x19   : > { %213 = vst [vmem:[%s3617_s27 + $0x90] sm:$0xff] %v212_v18  ;;  %215 = vst [vmem:[%s3617_s27 + $0x98] sm:$0xff] %v214_v19  ;;  %v218_v21 = vld [vmem:[%s3612_s26 + $0x468] sm:$0xff]  ;;  %v220_v22 = vld [vmem:[%s3612_s26 + $0x4d0] sm:$0xff] }
  0x1a   : > { %217 = vst [vmem:[%s3617_s27 + $0xa0] sm:$0xff] %v216_v20  ;;  %v222_v23 = vld [vmem:[%s3612_s26 + $0x4d8] sm:$0xff]  ;;  %219 = vst [vmem:[%s3617_s27 + $0xa8] sm:$0xff] %v218_v21  ;;  %v224_v24 = vld [vmem:[%s3612_s26 + $0x540] sm:$0xff] }
  0x1b   : > { %221 = vst [vmem:[%s3617_s27 + $0xb0] sm:$0xff] %v220_v22  ;;  %223 = vst [vmem:[%s3617_s27 + $0xb8] sm:$0xff] %v222_v23  ;;  %v226_v25 = vld [vmem:[%s3612_s26 + $0x548] sm:$0xff]  ;;  %v228_v26 = vld [vmem:[%s3612_s26 + $0x5b0] sm:$0xff] }
  0x1c   : > { %225 = vst [vmem:[%s3617_s27 + $0xc0] sm:$0xff] %v224_v24  ;;  %227 = vst [vmem:[%s3617_s27 + $0xc8] sm:$0xff] %v226_v25  ;;  %v230_v27 = vld [vmem:[%s3612_s26 + $0x5b8] sm:$0xff]  ;;  %v232_v28 = vld [vmem:[%s3612_s26 + $0x620] sm:$0xff] }
  0x1d   : > { %229 = vst [vmem:[%s3617_s27 + $0xd0] sm:$0xff] %v228_v26  ;;  %v234_v29 = vld [vmem:[%s3612_s26 + $0x628] sm:$0xff]  ;;  %231 = vst [vmem:[%s3617_s27 + $0xd8] sm:$0xff] %v230_v27  ;;  %v236_v30 = vld [vmem:[%s3612_s26 + $0x690] sm:$0xff] }
  0x1e   : > { %233 = vst [vmem:[%s3617_s27 + $0xe0] sm:$0xff] %v232_v28  ;;  %235 = vst [vmem:[%s3617_s27 + $0xe8] sm:$0xff] %v234_v29  ;;  %v238_v31 = vld [vmem:[%s3612_s26 + $0x698] sm:$0xff]  ;;  %v240_v32 = vld [vmem:[%s3612_s26 + $0x700] sm:$0xff] }
  0x1f   : > { %237 = vst [vmem:[%s3617_s27 + $0xf0] sm:$0xff] %v236_v30  ;;  %239 = vst [vmem:[%s3617_s27 + $0xf8] sm:$0xff] %v238_v31  ;;  %v242_v33 = vld [vmem:[%s3612_s26 + $0x708] sm:$0xff]  ;;  %v244_v34 = vld [vmem:[%s3612_s26 + $0x770] sm:$0xff] }
  0x20   : > { %241 = vst [vmem:[%s3617_s27 + $0x100] sm:$0xff] %v240_v32  ;;  %v246_v35 = vld [vmem:[%s3612_s26 + $0x778] sm:$0xff]  ;;  %243 = vst [vmem:[%s3617_s27 + $0x108] sm:$0xff] %v242_v33  ;;  %v248_v36 = vld [vmem:[%s3612_s26 + $0x7e0] sm:$0xff] }
  0x21   : > { %245 = vst [vmem:[%s3617_s27 + $0x110] sm:$0xff] %v244_v34  ;;  %247 = vst [vmem:[%s3617_s27 + $0x118] sm:$0xff] %v246_v35  ;;  %v250_v37 = vld [vmem:[%s3612_s26 + $0x7e8] sm:$0xff]  ;;  %v252_v38 = vld [vmem:[%s3612_s26 + $0x850] sm:$0xff] }
  0x22   : > { %249 = vst [vmem:[%s3617_s27 + $0x120] sm:$0xff] %v248_v36  ;;  %251 = vst [vmem:[%s3617_s27 + $0x128] sm:$0xff] %v250_v37  ;;  %v254_v39 = vld [vmem:[%s3612_s26 + $0x858] sm:$0xff]  ;;  %v256_v40 = vld [vmem:[%s3612_s26 + $0x8c0] sm:$0xff] }
  0x23   : > { %253 = vst [vmem:[%s3617_s27 + $0x130] sm:$0xff] %v252_v38  ;;  %v258_v41 = vld [vmem:[%s3612_s26 + $0x8c8] sm:$0xff]  ;;  %255 = vst [vmem:[%s3617_s27 + $0x138] sm:$0xff] %v254_v39  ;;  %v260_v42 = vld [vmem:[%s3612_s26 + $0x930] sm:$0xff] }
  0x24   : > { %257 = vst [vmem:[%s3617_s27 + $0x140] sm:$0xff] %v256_v40  ;;  %259 = vst [vmem:[%s3617_s27 + $0x148] sm:$0xff] %v258_v41  ;;  %v262_v43 = vld [vmem:[%s3612_s26 + $0x938] sm:$0xff]  ;;  %v264_v44 = vld [vmem:[%s3612_s26 + $0x9a0] sm:$0xff] }
  0x25   : > { %261 = vst [vmem:[%s3617_s27 + $0x150] sm:$0xff] %v260_v42  ;;  %263 = vst [vmem:[%s3617_s27 + $0x158] sm:$0xff] %v262_v43  ;;  %v266_v45 = vld [vmem:[%s3612_s26 + $0x9a8] sm:$0xff]  ;;  %v268_v46 = vld [vmem:[%s3612_s26 + $0xa10] sm:$0xff] }
  0x26   : > { %265 = vst [vmem:[%s3617_s27 + $0x160] sm:$0xff] %v264_v44  ;;  %v270_v47 = vld [vmem:[%s3612_s26 + $0xa18] sm:$0xff]  ;;  %267 = vst [vmem:[%s3617_s27 + $0x168] sm:$0xff] %v266_v45  ;;  %v272_v48 = vld [vmem:[%s3612_s26 + $0xa80] sm:$0xff] }
  0x27   : > { %269 = vst [vmem:[%s3617_s27 + $0x170] sm:$0xff] %v268_v46  ;;  %271 = vst [vmem:[%s3617_s27 + $0x178] sm:$0xff] %v270_v47  ;;  %v274_v49 = vld [vmem:[%s3612_s26 + $0xa88] sm:$0xff]  ;;  %v276_v50 = vld [vmem:[%s3612_s26 + $0xaf0] sm:$0xff] }
  0x28   : > { %273 = vst [vmem:[%s3617_s27 + $0x180] sm:$0xff] %v272_v48  ;;  %275 = vst [vmem:[%s3617_s27 + $0x188] sm:$0xff] %v274_v49  ;;  %v278_v51 = vld [vmem:[%s3612_s26 + $0xaf8] sm:$0xff]  ;;  %v280_v52 = vld [vmem:[%s3612_s26 + $0xb60] sm:$0xff] }
  0x29   : > { %277 = vst [vmem:[%s3617_s27 + $0x190] sm:$0xff] %v276_v50  ;;  %v282_v53 = vld [vmem:[%s3612_s26 + $0xb68] sm:$0xff]  ;;  %279 = vst [vmem:[%s3617_s27 + $0x198] sm:$0xff] %v278_v51  ;;  %v284_v54 = vld [vmem:[%s3612_s26 + $0xbd0] sm:$0xff] }
  0x2a   : > { %281 = vst [vmem:[%s3617_s27 + $0x1a0] sm:$0xff] %v280_v52  ;;  %283 = vst [vmem:[%s3617_s27 + $0x1a8] sm:$0xff] %v282_v53  ;;  %v286_v55 = vld [vmem:[%s3612_s26 + $0xbd8] sm:$0xff]  ;;  %v288_v56 = vld [vmem:[%s3612_s26 + $0xc40] sm:$0xff] }
  0x2b   : > { %285 = vst [vmem:[%s3617_s27 + $0x1b0] sm:$0xff] %v284_v54  ;;  %287 = vst [vmem:[%s3617_s27 + $0x1b8] sm:$0xff] %v286_v55  ;;  %v290_v57 = vld [vmem:[%s3612_s26 + $0xc48] sm:$0xff]  ;;  %v292_v58 = vld [vmem:[%s3612_s26 + $0xcb0] sm:$0xff] }
  0x2c   : > { %289 = vst [vmem:[%s3617_s27 + $0x1c0] sm:$0xff] %v288_v56  ;;  %v294_v59 = vld [vmem:[%s3612_s26 + $0xcb8] sm:$0xff]  ;;  %291 = vst [vmem:[%s3617_s27 + $0x1c8] sm:$0xff] %v290_v57  ;;  %v296_v60 = vld [vmem:[%s3612_s26 + $0xd20] sm:$0xff] }
  0x2d   : > { %293 = vst [vmem:[%s3617_s27 + $0x1d0] sm:$0xff] %v292_v58  ;;  %295 = vst [vmem:[%s3617_s27 + $0x1d8] sm:$0xff] %v294_v59  ;;  %v298_v61 = vld [vmem:[%s3612_s26 + $0xd28] sm:$0xff]  ;;  %v300_v62 = vld [vmem:[%s3612_s26 + $0xd90] sm:$0xff] }
  0x2e   : > { %297 = vst [vmem:[%s3617_s27 + $0x1e0] sm:$0xff] %v296_v60  ;;  %299 = vst [vmem:[%s3617_s27 + $0x1e8] sm:$0xff] %v298_v61  ;;  %v302_v63 = vld [vmem:[%s3612_s26 + $0xd98] sm:$0xff]  ;;  %v304_v0 = vld [vmem:[%s3612_s26 + $0xe00] sm:$0xff] }
  0x2f   : > { %301 = vst [vmem:[%s3617_s27 + $0x1f0] sm:$0xff] %v300_v62  ;;  %v306_v1 = vld [vmem:[%s3612_s26 + $0xe08] sm:$0xff]  ;;  %303 = vst [vmem:[%s3617_s27 + $0x1f8] sm:$0xff] %v302_v63  ;;  %v308_v2 = vld [vmem:[%s3612_s26 + $0xe70] sm:$0xff] }
  0x30   : > { %305 = vst [vmem:[%s3617_s27 + $0x200] sm:$0xff] %v304_v0  ;;  %307 = vst [vmem:[%s3617_s27 + $0x208] sm:$0xff] %v306_v1  ;;  %v310_v3 = vld [vmem:[%s3612_s26 + $0xe78] sm:$0xff]  ;;  %v312_v4 = vld [vmem:[%s3612_s26 + $0xee0] sm:$0xff] }
  0x31   : > { %309 = vst [vmem:[%s3617_s27 + $0x210] sm:$0xff] %v308_v2  ;;  %311 = vst [vmem:[%s3617_s27 + $0x218] sm:$0xff] %v310_v3  ;;  %v314_v5 = vld [vmem:[%s3612_s26 + $0xee8] sm:$0xff]  ;;  %v316_v6 = vld [vmem:[%s3612_s26 + $0xf50] sm:$0xff] }
  0x32   : > { %313 = vst [vmem:[%s3617_s27 + $0x220] sm:$0xff] %v312_v4  ;;  %v318_v7 = vld [vmem:[%s3612_s26 + $0xf58] sm:$0xff]  ;;  %315 = vst [vmem:[%s3617_s27 + $0x228] sm:$0xff] %v314_v5  ;;  %v320_v8 = vld [vmem:[%s3612_s26 + $0xfc0] sm:$0xff] }
  0x33   : > { %317 = vst [vmem:[%s3617_s27 + $0x230] sm:$0xff] %v316_v6  ;;  %319 = vst [vmem:[%s3617_s27 + $0x238] sm:$0xff] %v318_v7  ;;  %v322_v9 = vld [vmem:[%s3612_s26 + $0xfc8] sm:$0xff]  ;;  %v324_v10 = vld [vmem:[%s3612_s26 + $0x1030] sm:$0xff] }
  0x34   : > { %321 = vst [vmem:[%s3617_s27 + $0x240] sm:$0xff] %v320_v8  ;;  %323 = vst [vmem:[%s3617_s27 + $0x248] sm:$0xff] %v322_v9  ;;  %v326_v11 = vld [vmem:[%s3612_s26 + $0x1038] sm:$0xff]  ;;  %v328_v12 = vld [vmem:[%s3612_s26 + $0x10a0] sm:$0xff] }
  0x35   : > { %325 = vst [vmem:[%s3617_s27 + $0x250] sm:$0xff] %v324_v10  ;;  %v330_v13 = vld [vmem:[%s3612_s26 + $0x10a8] sm:$0xff]  ;;  %327 = vst [vmem:[%s3617_s27 + $0x258] sm:$0xff] %v326_v11  ;;  %v332_v14 = vld [vmem:[%s3612_s26 + $0x1110] sm:$0xff] }
  0x36   : > { %329 = vst [vmem:[%s3617_s27 + $0x260] sm:$0xff] %v328_v12  ;;  %331 = vst [vmem:[%s3617_s27 + $0x268] sm:$0xff] %v330_v13  ;;  %v334_v15 = vld [vmem:[%s3612_s26 + $0x1118] sm:$0xff]  ;;  %v336_v16 = vld [vmem:[%s3612_s26 + $0x1180] sm:$0xff] }
  0x37   : > { %333 = vst [vmem:[%s3617_s27 + $0x270] sm:$0xff] %v332_v14  ;;  %335 = vst [vmem:[%s3617_s27 + $0x278] sm:$0xff] %v334_v15  ;;  %v338_v17 = vld [vmem:[%s3612_s26 + $0x1188] sm:$0xff]  ;;  %v340_v18 = vld [vmem:[%s3612_s26 + $0x11f0] sm:$0xff] }
  0x38   : > { %337 = vst [vmem:[%s3617_s27 + $0x280] sm:$0xff] %v336_v16  ;;  %v342_v19 = vld [vmem:[%s3612_s26 + $0x11f8] sm:$0xff]  ;;  %339 = vst [vmem:[%s3617_s27 + $0x288] sm:$0xff] %v338_v17  ;;  %v344_v20 = vld [vmem:[%s3612_s26 + $0x1260] sm:$0xff] }
  0x39   : > { %341 = vst [vmem:[%s3617_s27 + $0x290] sm:$0xff] %v340_v18  ;;  %343 = vst [vmem:[%s3617_s27 + $0x298] sm:$0xff] %v342_v19  ;;  %v346_v21 = vld [vmem:[%s3612_s26 + $0x1268] sm:$0xff]  ;;  %v348_v22 = vld [vmem:[%s3612_s26 + $0x12d0] sm:$0xff] }
  0x3a   : > { %345 = vst [vmem:[%s3617_s27 + $0x2a0] sm:$0xff] %v344_v20  ;;  %347 = vst [vmem:[%s3617_s27 + $0x2a8] sm:$0xff] %v346_v21  ;;  %v350_v23 = vld [vmem:[%s3612_s26 + $0x12d8] sm:$0xff]  ;;  %v352_v24 = vld [vmem:[%s3612_s26 + $0x1340] sm:$0xff] }
  0x3b   : > { %349 = vst [vmem:[%s3617_s27 + $0x2b0] sm:$0xff] %v348_v22  ;;  %v354_v25 = vld [vmem:[%s3612_s26 + $0x1348] sm:$0xff]  ;;  %351 = vst [vmem:[%s3617_s27 + $0x2b8] sm:$0xff] %v350_v23  ;;  %v356_v26 = vld [vmem:[%s3612_s26 + $0x13b0] sm:$0xff] }
  0x3c   : > { %353 = vst [vmem:[%s3617_s27 + $0x2c0] sm:$0xff] %v352_v24  ;;  %355 = vst [vmem:[%s3617_s27 + $0x2c8] sm:$0xff] %v354_v25  ;;  %v358_v27 = vld [vmem:[%s3612_s26 + $0x13b8] sm:$0xff]  ;;  %v360_v28 = vld [vmem:[%s3612_s26 + $0x1420] sm:$0xff] }
  0x3d   : > { %357 = vst [vmem:[%s3617_s27 + $0x2d0] sm:$0xff] %v356_v26  ;;  %359 = vst [vmem:[%s3617_s27 + $0x2d8] sm:$0xff] %v358_v27  ;;  %v362_v29 = vld [vmem:[%s3612_s26 + $0x1428] sm:$0xff]  ;;  %v364_v30 = vld [vmem:[%s3612_s26 + $0x1490] sm:$0xff] }
  0x3e   : > { %361 = vst [vmem:[%s3617_s27 + $0x2e0] sm:$0xff] %v360_v28  ;;  %v366_v31 = vld [vmem:[%s3612_s26 + $0x1498] sm:$0xff]  ;;  %363 = vst [vmem:[%s3617_s27 + $0x2e8] sm:$0xff] %v362_v29  ;;  %v368_v32 = vld [vmem:[%s3612_s26 + $0x1500] sm:$0xff] }
  0x3f   : > { %365 = vst [vmem:[%s3617_s27 + $0x2f0] sm:$0xff] %v364_v30  ;;  %367 = vst [vmem:[%s3617_s27 + $0x2f8] sm:$0xff] %v366_v31  ;;  %v370_v33 = vld [vmem:[%s3612_s26 + $0x1508] sm:$0xff]  ;;  %v372_v34 = vld [vmem:[%s3612_s26 + $0x1570] sm:$0xff] }
  0x40   : > { %369 = vst [vmem:[%s3617_s27 + $0x300] sm:$0xff] %v368_v32  ;;  %371 = vst [vmem:[%s3617_s27 + $0x308] sm:$0xff] %v370_v33  ;;  %v374_v35 = vld [vmem:[%s3612_s26 + $0x1578] sm:$0xff]  ;;  %v376_v36 = vld [vmem:[%s3612_s26 + $0x15e0] sm:$0xff] }
  0x41   : > { %373 = vst [vmem:[%s3617_s27 + $0x310] sm:$0xff] %v372_v34  ;;  %v378_v37 = vld [vmem:[%s3612_s26 + $0x15e8] sm:$0xff]  ;;  %375 = vst [vmem:[%s3617_s27 + $0x318] sm:$0xff] %v374_v35  ;;  %v380_v38 = vld [vmem:[%s3612_s26 + $0x1650] sm:$0xff] }
  0x42   : > { %377 = vst [vmem:[%s3617_s27 + $0x320] sm:$0xff] %v376_v36  ;;  %379 = vst [vmem:[%s3617_s27 + $0x328] sm:$0xff] %v378_v37  ;;  %v382_v39 = vld [vmem:[%s3612_s26 + $0x1658] sm:$0xff]  ;;  %v384_v40 = vld [vmem:[%s3612_s26 + $0x16c0] sm:$0xff] }
  0x43   : > { %381 = vst [vmem:[%s3617_s27 + $0x330] sm:$0xff] %v380_v38  ;;  %383 = vst [vmem:[%s3617_s27 + $0x338] sm:$0xff] %v382_v39  ;;  %v386_v41 = vld [vmem:[%s3612_s26 + $0x16c8] sm:$0xff]  ;;  %v388_v42 = vld [vmem:[%s3612_s26 + $0x1730] sm:$0xff] }
  0x44   : > { %385 = vst [vmem:[%s3617_s27 + $0x340] sm:$0xff] %v384_v40  ;;  %v390_v43 = vld [vmem:[%s3612_s26 + $0x1738] sm:$0xff]  ;;  %387 = vst [vmem:[%s3617_s27 + $0x348] sm:$0xff] %v386_v41  ;;  %v392_v44 = vld [vmem:[%s3612_s26 + $0x17a0] sm:$0xff] }
  0x45   : > { %389 = vst [vmem:[%s3617_s27 + $0x350] sm:$0xff] %v388_v42  ;;  %391 = vst [vmem:[%s3617_s27 + $0x358] sm:$0xff] %v390_v43  ;;  %v394_v45 = vld [vmem:[%s3612_s26 + $0x17a8] sm:$0xff]  ;;  %v396_v46 = vld [vmem:[%s3612_s26 + $0x1810] sm:$0xff] }
  0x46   : > { %393 = vst [vmem:[%s3617_s27 + $0x360] sm:$0xff] %v392_v44  ;;  %395 = vst [vmem:[%s3617_s27 + $0x368] sm:$0xff] %v394_v45  ;;  %v398_v47 = vld [vmem:[%s3612_s26 + $0x1818] sm:$0xff]  ;;  %v400_v48 = vld [vmem:[%s3612_s26 + $0x1880] sm:$0xff] }
  0x47   : > { %397 = vst [vmem:[%s3617_s27 + $0x370] sm:$0xff] %v396_v46  ;;  %v402_v49 = vld [vmem:[%s3612_s26 + $0x1888] sm:$0xff]  ;;  %399 = vst [vmem:[%s3617_s27 + $0x378] sm:$0xff] %v398_v47  ;;  %v404_v50 = vld [vmem:[%s3612_s26 + $0x18f0] sm:$0xff] }
  0x48   : > { %401 = vst [vmem:[%s3617_s27 + $0x380] sm:$0xff] %v400_v48  ;;  %403 = vst [vmem:[%s3617_s27 + $0x388] sm:$0xff] %v402_v49  ;;  %v406_v51 = vld [vmem:[%s3612_s26 + $0x18f8] sm:$0xff]  ;;  %v408_v52 = vld [vmem:[%s3612_s26 + $0x1960] sm:$0xff] }
  0x49   : > { %405 = vst [vmem:[%s3617_s27 + $0x390] sm:$0xff] %v404_v50  ;;  %407 = vst [vmem:[%s3617_s27 + $0x398] sm:$0xff] %v406_v51  ;;  %v410_v53 = vld [vmem:[%s3612_s26 + $0x1968] sm:$0xff]  ;;  %v412_v54 = vld [vmem:[%s3612_s26 + $0x19d0] sm:$0xff] }
  0x4a   : > { %409 = vst [vmem:[%s3617_s27 + $0x3a0] sm:$0xff] %v408_v52  ;;  %v414_v55 = vld [vmem:[%s3612_s26 + $0x19d8] sm:$0xff]  ;;  %411 = vst [vmem:[%s3617_s27 + $0x3a8] sm:$0xff] %v410_v53  ;;  %v416_v56 = vld [vmem:[%s3612_s26 + $0x1a40] sm:$0xff] }
  0x4b   : > { %413 = vst [vmem:[%s3617_s27 + $0x3b0] sm:$0xff] %v412_v54  ;;  %415 = vst [vmem:[%s3617_s27 + $0x3b8] sm:$0xff] %v414_v55  ;;  %v418_v57 = vld [vmem:[%s3612_s26 + $0x1a48] sm:$0xff]  ;;  %v420_v58 = vld [vmem:[%s3612_s26 + $0x1ab0] sm:$0xff] }
  0x4c   : > { %417 = vst [vmem:[%s3617_s27 + $0x3c0] sm:$0xff] %v416_v56  ;;  %419 = vst [vmem:[%s3617_s27 + $0x3c8] sm:$0xff] %v418_v57  ;;  %v422_v59 = vld [vmem:[%s3612_s26 + $0x1ab8] sm:$0xff]  ;;  %v424_v60 = vld [vmem:[%s3612_s26 + $0x1b20] sm:$0xff] }
  0x4d   : > { %421 = vst [vmem:[%s3617_s27 + $0x3d0] sm:$0xff] %v420_v58  ;;  %v426_v61 = vld [vmem:[%s3612_s26 + $0x1b28] sm:$0xff]  ;;  %423 = vst [vmem:[%s3617_s27 + $0x3d8] sm:$0xff] %v422_v59  ;;  %v428_v62 = vld [vmem:[%s3612_s26 + $0x1b90] sm:$0xff] }
  0x4e   : > { %425 = vst [vmem:[%s3617_s27 + $0x3e0] sm:$0xff] %v424_v60  ;;  %427 = vst [vmem:[%s3617_s27 + $0x3e8] sm:$0xff] %v426_v61  ;;  %v430_v63 = vld [vmem:[%s3612_s26 + $0x1b98] sm:$0xff]  ;;  %v432_v0 = vld [vmem:[%s3612_s26 + $0x1c00] sm:$0xff] }
  0x4f   : > { %429 = vst [vmem:[%s3617_s27 + $0x3f0] sm:$0xff] %v428_v62  ;;  %431 = vst [vmem:[%s3617_s27 + $0x3f8] sm:$0xff] %v430_v63  ;;  %v434_v1 = vld [vmem:[%s3612_s26 + $0x1c08] sm:$0xff]  ;;  %v436_v2 = vld [vmem:[%s3612_s26 + $0x1c70] sm:$0xff] }
  0x50   : > { %433 = vst [vmem:[%s3617_s27 + $0x400] sm:$0xff] %v432_v0  ;;  %v438_v3 = vld [vmem:[%s3612_s26 + $0x1c78] sm:$0xff]  ;;  %435 = vst [vmem:[%s3617_s27 + $0x408] sm:$0xff] %v434_v1  ;;  %v440_v4 = vld [vmem:[%s3612_s26 + $0x1ce0] sm:$0xff] }
  0x51   : > { %437 = vst [vmem:[%s3617_s27 + $0x410] sm:$0xff] %v436_v2  ;;  %439 = vst [vmem:[%s3617_s27 + $0x418] sm:$0xff] %v438_v3  ;;  %v442_v5 = vld [vmem:[%s3612_s26 + $0x1ce8] sm:$0xff]  ;;  %v444_v6 = vld [vmem:[%s3612_s26 + $0x1d50] sm:$0xff] }
  0x52   : > { %441 = vst [vmem:[%s3617_s27 + $0x420] sm:$0xff] %v440_v4  ;;  %443 = vst [vmem:[%s3617_s27 + $0x428] sm:$0xff] %v442_v5  ;;  %v446_v7 = vld [vmem:[%s3612_s26 + $0x1d58] sm:$0xff]  ;;  %v448_v8 = vld [vmem:[%s3612_s26 + $0x1dc0] sm:$0xff] }
  0x53   : > { %445 = vst [vmem:[%s3617_s27 + $0x430] sm:$0xff] %v444_v6  ;;  %v450_v9 = vld [vmem:[%s3612_s26 + $0x1dc8] sm:$0xff]  ;;  %447 = vst [vmem:[%s3617_s27 + $0x438] sm:$0xff] %v446_v7  ;;  %v452_v10 = vld [vmem:[%s3612_s26 + $0x1e30] sm:$0xff] }
  0x54   : > { %449 = vst [vmem:[%s3617_s27 + $0x440] sm:$0xff] %v448_v8  ;;  %451 = vst [vmem:[%s3617_s27 + $0x448] sm:$0xff] %v450_v9  ;;  %v454_v11 = vld [vmem:[%s3612_s26 + $0x1e38] sm:$0xff]  ;;  %v456_v12 = vld [vmem:[%s3612_s26 + $0x1ea0] sm:$0xff] }
  0x55   : > { %453 = vst [vmem:[%s3617_s27 + $0x450] sm:$0xff] %v452_v10  ;;  %455 = vst [vmem:[%s3617_s27 + $0x458] sm:$0xff] %v454_v11  ;;  %v458_v13 = vld [vmem:[%s3612_s26 + $0x1ea8] sm:$0xff]  ;;  %v460_v14 = vld [vmem:[%s3612_s26 + $0x1f10] sm:$0xff] }
  0x56   : > { %457 = vst [vmem:[%s3617_s27 + $0x460] sm:$0xff] %v456_v12  ;;  %v462_v15 = vld [vmem:[%s3612_s26 + $0x1f18] sm:$0xff]  ;;  %459 = vst [vmem:[%s3617_s27 + $0x468] sm:$0xff] %v458_v13  ;;  %v464_v16 = vld [vmem:[%s3612_s26 + $0x1f80] sm:$0xff] }
  0x57   : > { %461 = vst [vmem:[%s3617_s27 + $0x470] sm:$0xff] %v460_v14  ;;  %463 = vst [vmem:[%s3617_s27 + $0x478] sm:$0xff] %v462_v15  ;;  %v466_v17 = vld [vmem:[%s3612_s26 + $0x1f88] sm:$0xff]  ;;  %v468_v18 = vld [vmem:[%s3612_s26 + $0x1ff0] sm:$0xff] }
  0x58   : > { %465 = vst [vmem:[%s3617_s27 + $0x480] sm:$0xff] %v464_v16  ;;  %467 = vst [vmem:[%s3617_s27 + $0x488] sm:$0xff] %v466_v17  ;;  %v470_v19 = vld [vmem:[%s3612_s26 + $0x1ff8] sm:$0xff]  ;;  %v472_v20 = vld [vmem:[%s3612_s26 + $0x2060] sm:$0xff] }
  0x59   : > { %469 = vst [vmem:[%s3617_s27 + $0x490] sm:$0xff] %v468_v18  ;;  %v474_v21 = vld [vmem:[%s3612_s26 + $0x2068] sm:$0xff]  ;;  %471 = vst [vmem:[%s3617_s27 + $0x498] sm:$0xff] %v470_v19  ;;  %v476_v22 = vld [vmem:[%s3612_s26 + $0x20d0] sm:$0xff] }
  0x5a   : > { %473 = vst [vmem:[%s3617_s27 + $0x4a0] sm:$0xff] %v472_v20  ;;  %475 = vst [vmem:[%s3617_s27 + $0x4a8] sm:$0xff] %v474_v21  ;;  %v478_v23 = vld [vmem:[%s3612_s26 + $0x20d8] sm:$0xff]  ;;  %v480_v24 = vld [vmem:[%s3612_s26 + $0x2140] sm:$0xff] }
  0x5b   : > { %477 = vst [vmem:[%s3617_s27 + $0x4b0] sm:$0xff] %v476_v22  ;;  %479 = vst [vmem:[%s3617_s27 + $0x4b8] sm:$0xff] %v478_v23  ;;  %v482_v25 = vld [vmem:[%s3612_s26 + $0x2148] sm:$0xff]  ;;  %v484_v26 = vld [vmem:[%s3612_s26 + $0x21b0] sm:$0xff] }
  0x5c   : > { %481 = vst [vmem:[%s3617_s27 + $0x4c0] sm:$0xff] %v480_v24  ;;  %v486_v27 = vld [vmem:[%s3612_s26 + $0x21b8] sm:$0xff]  ;;  %483 = vst [vmem:[%s3617_s27 + $0x4c8] sm:$0xff] %v482_v25  ;;  %v488_v28 = vld [vmem:[%s3612_s26 + $0x2220] sm:$0xff] }
  0x5d   : > { %485 = vst [vmem:[%s3617_s27 + $0x4d0] sm:$0xff] %v484_v26  ;;  %487 = vst [vmem:[%s3617_s27 + $0x4d8] sm:$0xff] %v486_v27  ;;  %v490_v29 = vld [vmem:[%s3612_s26 + $0x2228] sm:$0xff]  ;;  %v492_v30 = vld [vmem:[%s3612_s26 + $0x2290] sm:$0xff] }
  0x5e   : > { %489 = vst [vmem:[%s3617_s27 + $0x4e0] sm:$0xff] %v488_v28  ;;  %491 = vst [vmem:[%s3617_s27 + $0x4e8] sm:$0xff] %v490_v29  ;;  %v494_v31 = vld [vmem:[%s3612_s26 + $0x2298] sm:$0xff]  ;;  %v496_v32 = vld [vmem:[%s3612_s26 + $0x2300] sm:$0xff] }
  0x5f   : > { %493 = vst [vmem:[%s3617_s27 + $0x4f0] sm:$0xff] %v492_v30  ;;  %v498_v33 = vld [vmem:[%s3612_s26 + $0x2308] sm:$0xff]  ;;  %495 = vst [vmem:[%s3617_s27 + $0x4f8] sm:$0xff] %v494_v31  ;;  %v500_v34 = vld [vmem:[%s3612_s26 + $0x2370] sm:$0xff] }
  0x60   : > { %497 = vst [vmem:[%s3617_s27 + $0x500] sm:$0xff] %v496_v32  ;;  %499 = vst [vmem:[%s3617_s27 + $0x508] sm:$0xff] %v498_v33  ;;  %v502_v35 = vld [vmem:[%s3612_s26 + $0x2378] sm:$0xff]  ;;  %v504_v36 = vld [vmem:[%s3612_s26 + $0x23e0] sm:$0xff] }
  0x61   : > { %501 = vst [vmem:[%s3617_s27 + $0x510] sm:$0xff] %v500_v34  ;;  %503 = vst [vmem:[%s3617_s27 + $0x518] sm:$0xff] %v502_v35  ;;  %v506_v37 = vld [vmem:[%s3612_s26 + $0x23e8] sm:$0xff]  ;;  %v508_v38 = vld [vmem:[%s3612_s26 + $0x2450] sm:$0xff] }
  0x62   : > { %505 = vst [vmem:[%s3617_s27 + $0x520] sm:$0xff] %v504_v36  ;;  %v510_v39 = vld [vmem:[%s3612_s26 + $0x2458] sm:$0xff]  ;;  %507 = vst [vmem:[%s3617_s27 + $0x528] sm:$0xff] %v506_v37  ;;  %v512_v40 = vld [vmem:[%s3612_s26 + $0x24c0] sm:$0xff] }
  0x63   : > { %509 = vst [vmem:[%s3617_s27 + $0x530] sm:$0xff] %v508_v38  ;;  %511 = vst [vmem:[%s3617_s27 + $0x538] sm:$0xff] %v510_v39  ;;  %v514_v41 = vld [vmem:[%s3612_s26 + $0x24c8] sm:$0xff]  ;;  %v516_v42 = vld [vmem:[%s3612_s26 + $0x2530] sm:$0xff] }
  0x64   : > { %513 = vst [vmem:[%s3617_s27 + $0x540] sm:$0xff] %v512_v40  ;;  %515 = vst [vmem:[%s3617_s27 + $0x548] sm:$0xff] %v514_v41  ;;  %v518_v43 = vld [vmem:[%s3612_s26 + $0x2538] sm:$0xff]  ;;  %v520_v44 = vld [vmem:[%s3612_s26 + $0x25a0] sm:$0xff] }
  0x65   : > { %517 = vst [vmem:[%s3617_s27 + $0x550] sm:$0xff] %v516_v42  ;;  %v522_v45 = vld [vmem:[%s3612_s26 + $0x25a8] sm:$0xff]  ;;  %519 = vst [vmem:[%s3617_s27 + $0x558] sm:$0xff] %v518_v43  ;;  %v524_v46 = vld [vmem:[%s3612_s26 + $0x2610] sm:$0xff] }
  0x66   : > { %521 = vst [vmem:[%s3617_s27 + $0x560] sm:$0xff] %v520_v44  ;;  %523 = vst [vmem:[%s3617_s27 + $0x568] sm:$0xff] %v522_v45  ;;  %v526_v47 = vld [vmem:[%s3612_s26 + $0x2618] sm:$0xff]  ;;  %v528_v48 = vld [vmem:[%s3612_s26 + $0x2680] sm:$0xff] }
  0x67   : > { %525 = vst [vmem:[%s3617_s27 + $0x570] sm:$0xff] %v524_v46  ;;  %527 = vst [vmem:[%s3617_s27 + $0x578] sm:$0xff] %v526_v47  ;;  %v530_v49 = vld [vmem:[%s3612_s26 + $0x2688] sm:$0xff]  ;;  %v532_v50 = vld [vmem:[%s3612_s26 + $0x26f0] sm:$0xff] }
  0x68   : > { %529 = vst [vmem:[%s3617_s27 + $0x580] sm:$0xff] %v528_v48  ;;  %v534_v51 = vld [vmem:[%s3612_s26 + $0x26f8] sm:$0xff]  ;;  %531 = vst [vmem:[%s3617_s27 + $0x588] sm:$0xff] %v530_v49  ;;  %v536_v52 = vld [vmem:[%s3612_s26 + $0x2760] sm:$0xff] }
  0x69   : > { %533 = vst [vmem:[%s3617_s27 + $0x590] sm:$0xff] %v532_v50  ;;  %535 = vst [vmem:[%s3617_s27 + $0x598] sm:$0xff] %v534_v51  ;;  %v538_v53 = vld [vmem:[%s3612_s26 + $0x2768] sm:$0xff]  ;;  %v540_v54 = vld [vmem:[%s3612_s26 + $0x27d0] sm:$0xff] }
  0x6a   : > { %537 = vst [vmem:[%s3617_s27 + $0x5a0] sm:$0xff] %v536_v52  ;;  %539 = vst [vmem:[%s3617_s27 + $0x5a8] sm:$0xff] %v538_v53  ;;  %v542_v55 = vld [vmem:[%s3612_s26 + $0x27d8] sm:$0xff]  ;;  %v544_v56 = vld [vmem:[%s3612_s26 + $0x2840] sm:$0xff] }
  0x6b   : > { %541 = vst [vmem:[%s3617_s27 + $0x5b0] sm:$0xff] %v540_v54  ;;  %v546_v57 = vld [vmem:[%s3612_s26 + $0x2848] sm:$0xff]  ;;  %543 = vst [vmem:[%s3617_s27 + $0x5b8] sm:$0xff] %v542_v55  ;;  %v548_v58 = vld [vmem:[%s3612_s26 + $0x28b0] sm:$0xff] }
  0x6c   : > { %545 = vst [vmem:[%s3617_s27 + $0x5c0] sm:$0xff] %v544_v56  ;;  %547 = vst [vmem:[%s3617_s27 + $0x5c8] sm:$0xff] %v546_v57  ;;  %v550_v59 = vld [vmem:[%s3612_s26 + $0x28b8] sm:$0xff]  ;;  %v552_v60 = vld [vmem:[%s3612_s26 + $0x2920] sm:$0xff] }
  0x6d   : > { %549 = vst [vmem:[%s3617_s27 + $0x5d0] sm:$0xff] %v548_v58  ;;  %551 = vst [vmem:[%s3617_s27 + $0x5d8] sm:$0xff] %v550_v59  ;;  %v554_v61 = vld [vmem:[%s3612_s26 + $0x2928] sm:$0xff]  ;;  %v556_v62 = vld [vmem:[%s3612_s26 + $0x2990] sm:$0xff] }
  0x6e   : > { %553 = vst [vmem:[%s3617_s27 + $0x5e0] sm:$0xff] %v552_v60  ;;  %v558_v63 = vld [vmem:[%s3612_s26 + $0x2998] sm:$0xff]  ;;  %555 = vst [vmem:[%s3617_s27 + $0x5e8] sm:$0xff] %v554_v61  ;;  %v560_v0 = vld [vmem:[%s3612_s26 + $0x2a00] sm:$0xff] }
  0x6f   : > { %557 = vst [vmem:[%s3617_s27 + $0x5f0] sm:$0xff] %v556_v62  ;;  %559 = vst [vmem:[%s3617_s27 + $0x5f8] sm:$0xff] %v558_v63  ;;  %v562_v1 = vld [vmem:[%s3612_s26 + $0x2a08] sm:$0xff]  ;;  %v564_v2 = vld [vmem:[%s3612_s26 + $0x2a70] sm:$0xff] }
  0x70   : > { %561 = vst [vmem:[%s3617_s27 + $0x600] sm:$0xff] %v560_v0  ;;  %563 = vst [vmem:[%s3617_s27 + $0x608] sm:$0xff] %v562_v1  ;;  %v566_v3 = vld [vmem:[%s3612_s26 + $0x2a78] sm:$0xff]  ;;  %v568_v4 = vld [vmem:[%s3612_s26 + $0x2ae0] sm:$0xff] }
  0x71   : > { %565 = vst [vmem:[%s3617_s27 + $0x610] sm:$0xff] %v564_v2  ;;  %v570_v5 = vld [vmem:[%s3612_s26 + $0x2ae8] sm:$0xff]  ;;  %567 = vst [vmem:[%s3617_s27 + $0x618] sm:$0xff] %v566_v3  ;;  %v572_v6 = vld [vmem:[%s3612_s26 + $0x2b50] sm:$0xff] }
  0x72   : > { %569 = vst [vmem:[%s3617_s27 + $0x620] sm:$0xff] %v568_v4  ;;  %571 = vst [vmem:[%s3617_s27 + $0x628] sm:$0xff] %v570_v5  ;;  %v574_v7 = vld [vmem:[%s3612_s26 + $0x2b58] sm:$0xff]  ;;  %v576_v8 = vld [vmem:[%s3612_s26 + $0x2bc0] sm:$0xff] }
  0x73   : > { %573 = vst [vmem:[%s3617_s27 + $0x630] sm:$0xff] %v572_v6  ;;  %575 = vst [vmem:[%s3617_s27 + $0x638] sm:$0xff] %v574_v7  ;;  %v578_v9 = vld [vmem:[%s3612_s26 + $0x2bc8] sm:$0xff]  ;;  %v580_v10 = vld [vmem:[%s3612_s26 + $0x2c30] sm:$0xff] }
  0x74   : > { %577 = vst [vmem:[%s3617_s27 + $0x640] sm:$0xff] %v576_v8  ;;  %v582_v11 = vld [vmem:[%s3612_s26 + $0x2c38] sm:$0xff]  ;;  %579 = vst [vmem:[%s3617_s27 + $0x648] sm:$0xff] %v578_v9  ;;  %v584_v12 = vld [vmem:[%s3612_s26 + $0x2ca0] sm:$0xff] }
  0x75   : > { %581 = vst [vmem:[%s3617_s27 + $0x650] sm:$0xff] %v580_v10  ;;  %583 = vst [vmem:[%s3617_s27 + $0x658] sm:$0xff] %v582_v11  ;;  %v586_v13 = vld [vmem:[%s3612_s26 + $0x2ca8] sm:$0xff]  ;;  %v588_v14 = vld [vmem:[%s3612_s26 + $0x2d10] sm:$0xff] }
  0x76   : > { %585 = vst [vmem:[%s3617_s27 + $0x660] sm:$0xff] %v584_v12  ;;  %587 = vst [vmem:[%s3617_s27 + $0x668] sm:$0xff] %v586_v13  ;;  %v590_v15 = vld [vmem:[%s3612_s26 + $0x2d18] sm:$0xff]  ;;  %v592_v16 = vld [vmem:[%s3612_s26 + $0x2d80] sm:$0xff] }
  0x77   : > { %589 = vst [vmem:[%s3617_s27 + $0x670] sm:$0xff] %v588_v14  ;;  %v594_v17 = vld [vmem:[%s3612_s26 + $0x2d88] sm:$0xff]  ;;  %591 = vst [vmem:[%s3617_s27 + $0x678] sm:$0xff] %v590_v15  ;;  %v596_v18 = vld [vmem:[%s3612_s26 + $0x2df0] sm:$0xff] }
  0x78   : > { %593 = vst [vmem:[%s3617_s27 + $0x680] sm:$0xff] %v592_v16  ;;  %595 = vst [vmem:[%s3617_s27 + $0x688] sm:$0xff] %v594_v17  ;;  %v598_v19 = vld [vmem:[%s3612_s26 + $0x2df8] sm:$0xff]  ;;  %v600_v20 = vld [vmem:[%s3612_s26 + $0x2e60] sm:$0xff] }
  0x79   : > { %597 = vst [vmem:[%s3617_s27 + $0x690] sm:$0xff] %v596_v18  ;;  %599 = vst [vmem:[%s3617_s27 + $0x698] sm:$0xff] %v598_v19  ;;  %v602_v21 = vld [vmem:[%s3612_s26 + $0x2e68] sm:$0xff]  ;;  %v604_v22 = vld [vmem:[%s3612_s26 + $0x2ed0] sm:$0xff] }
  0x7a   : > { %601 = vst [vmem:[%s3617_s27 + $0x6a0] sm:$0xff] %v600_v20  ;;  %v606_v23 = vld [vmem:[%s3612_s26 + $0x2ed8] sm:$0xff]  ;;  %603 = vst [vmem:[%s3617_s27 + $0x6a8] sm:$0xff] %v602_v21  ;;  %v608_v24 = vld [vmem:[%s3612_s26 + $0x2f40] sm:$0xff] }
  0x7b   : > { %605 = vst [vmem:[%s3617_s27 + $0x6b0] sm:$0xff] %v604_v22  ;;  %607 = vst [vmem:[%s3617_s27 + $0x6b8] sm:$0xff] %v606_v23  ;;  %v610_v25 = vld [vmem:[%s3612_s26 + $0x2f48] sm:$0xff]  ;;  %v612_v26 = vld [vmem:[%s3612_s26 + $0x2fb0] sm:$0xff] }
  0x7c   : > { %609 = vst [vmem:[%s3617_s27 + $0x6c0] sm:$0xff] %v608_v24  ;;  %611 = vst [vmem:[%s3617_s27 + $0x6c8] sm:$0xff] %v610_v25  ;;  %v614_v27 = vld [vmem:[%s3612_s26 + $0x2fb8] sm:$0xff]  ;;  %v616_v28 = vld [vmem:[%s3612_s26 + $0x3020] sm:$0xff] }
  0x7d   : > { %613 = vst [vmem:[%s3617_s27 + $0x6d0] sm:$0xff] %v612_v26  ;;  %v618_v29 = vld [vmem:[%s3612_s26 + $0x3028] sm:$0xff]  ;;  %615 = vst [vmem:[%s3617_s27 + $0x6d8] sm:$0xff] %v614_v27  ;;  %v620_v30 = vld [vmem:[%s3612_s26 + $0x3090] sm:$0xff] }
  0x7e   : > { %617 = vst [vmem:[%s3617_s27 + $0x6e0] sm:$0xff] %v616_v28  ;;  %619 = vst [vmem:[%s3617_s27 + $0x6e8] sm:$0xff] %v618_v29  ;;  %v622_v31 = vld [vmem:[%s3612_s26 + $0x3098] sm:$0xff]  ;;  %v624_v32 = vld [vmem:[%s3612_s26 + $0x3100] sm:$0xff] }
  0x7f   : > { %621 = vst [vmem:[%s3617_s27 + $0x6f0] sm:$0xff] %v620_v30  ;;  %623 = vst [vmem:[%s3617_s27 + $0x6f8] sm:$0xff] %v622_v31  ;;  %v626_v33 = vld [vmem:[%s3612_s26 + $0x3108] sm:$0xff]  ;;  %v628_v34 = vld [vmem:[%s3612_s26 + $0x3170] sm:$0xff] }
  0x80   : > { %625 = vst [vmem:[%s3617_s27 + $0x700] sm:$0xff] %v624_v32  ;;  %v630_v35 = vld [vmem:[%s3612_s26 + $0x3178] sm:$0xff]  ;;  %627 = vst [vmem:[%s3617_s27 + $0x708] sm:$0xff] %v626_v33  ;;  %v632_v36 = vld [vmem:[%s3612_s26 + $0x31e0] sm:$0xff] }
  0x81   : > { %629 = vst [vmem:[%s3617_s27 + $0x710] sm:$0xff] %v628_v34  ;;  %631 = vst [vmem:[%s3617_s27 + $0x718] sm:$0xff] %v630_v35  ;;  %v634_v37 = vld [vmem:[%s3612_s26 + $0x31e8] sm:$0xff]  ;;  %v636_v38 = vld [vmem:[%s3612_s26 + $0x3250] sm:$0xff] }
  0x82   : > { %633 = vst [vmem:[%s3617_s27 + $0x720] sm:$0xff] %v632_v36  ;;  %635 = vst [vmem:[%s3617_s27 + $0x728] sm:$0xff] %v634_v37  ;;  %v638_v39 = vld [vmem:[%s3612_s26 + $0x3258] sm:$0xff]  ;;  %v640_v40 = vld [vmem:[%s3612_s26 + $0x32c0] sm:$0xff] }
  0x83   : > { %637 = vst [vmem:[%s3617_s27 + $0x730] sm:$0xff] %v636_v38  ;;  %v642_v41 = vld [vmem:[%s3612_s26 + $0x32c8] sm:$0xff]  ;;  %639 = vst [vmem:[%s3617_s27 + $0x738] sm:$0xff] %v638_v39  ;;  %v644_v42 = vld [vmem:[%s3612_s26 + $0x3330] sm:$0xff] }
  0x84   : > { %641 = vst [vmem:[%s3617_s27 + $0x740] sm:$0xff] %v640_v40  ;;  %643 = vst [vmem:[%s3617_s27 + $0x748] sm:$0xff] %v642_v41  ;;  %v646_v43 = vld [vmem:[%s3612_s26 + $0x3338] sm:$0xff]  ;;  %v648_v44 = vld [vmem:[%s3612_s26 + $0x33a0] sm:$0xff] }
  0x85   : > { %645 = vst [vmem:[%s3617_s27 + $0x750] sm:$0xff] %v644_v42  ;;  %647 = vst [vmem:[%s3617_s27 + $0x758] sm:$0xff] %v646_v43  ;;  %v650_v45 = vld [vmem:[%s3612_s26 + $0x33a8] sm:$0xff]  ;;  %v652_v46 = vld [vmem:[%s3612_s26 + $0x3410] sm:$0xff] }
  0x86   : > { %649 = vst [vmem:[%s3617_s27 + $0x760] sm:$0xff] %v648_v44  ;;  %v654_v47 = vld [vmem:[%s3612_s26 + $0x3418] sm:$0xff]  ;;  %651 = vst [vmem:[%s3617_s27 + $0x768] sm:$0xff] %v650_v45  ;;  %v656_v48 = vld [vmem:[%s3612_s26 + $0x3480] sm:$0xff] }
  0x87   : > { %653 = vst [vmem:[%s3617_s27 + $0x770] sm:$0xff] %v652_v46  ;;  %655 = vst [vmem:[%s3617_s27 + $0x778] sm:$0xff] %v654_v47  ;;  %v658_v49 = vld [vmem:[%s3612_s26 + $0x3488] sm:$0xff]  ;;  %v660_v50 = vld [vmem:[%s3612_s26 + $0x34f0] sm:$0xff] }
  0x88   : > { %657 = vst [vmem:[%s3617_s27 + $0x780] sm:$0xff] %v656_v48  ;;  %659 = vst [vmem:[%s3617_s27 + $0x788] sm:$0xff] %v658_v49  ;;  %v662_v51 = vld [vmem:[%s3612_s26 + $0x34f8] sm:$0xff]  ;;  %v664_v52 = vld [vmem:[%s3612_s26 + $0x3560] sm:$0xff] }
  0x89   : > { %661 = vst [vmem:[%s3617_s27 + $0x790] sm:$0xff] %v660_v50  ;;  %v666_v53 = vld [vmem:[%s3612_s26 + $0x3568] sm:$0xff]  ;;  %663 = vst [vmem:[%s3617_s27 + $0x798] sm:$0xff] %v662_v51  ;;  %v668_v54 = vld [vmem:[%s3612_s26 + $0x35d0] sm:$0xff] }
  0x8a   : > { %665 = vst [vmem:[%s3617_s27 + $0x7a0] sm:$0xff] %v664_v52  ;;  %667 = vst [vmem:[%s3617_s27 + $0x7a8] sm:$0xff] %v666_v53  ;;  %v670_v55 = vld [vmem:[%s3612_s26 + $0x35d8] sm:$0xff]  ;;  %v672_v56 = vld [vmem:[%s3612_s26 + $0x3640] sm:$0xff] }
  0x8b   : > { %669 = vst [vmem:[%s3617_s27 + $0x7b0] sm:$0xff] %v668_v54  ;;  %671 = vst [vmem:[%s3617_s27 + $0x7b8] sm:$0xff] %v670_v55  ;;  %v674_v57 = vld [vmem:[%s3612_s26 + $0x3648] sm:$0xff]  ;;  %v676_v58 = vld [vmem:[%s3612_s26 + $0x36b0] sm:$0xff] }
  0x8c   : > { %673 = vst [vmem:[%s3617_s27 + $0x7c0] sm:$0xff] %v672_v56  ;;  %v678_v59 = vld [vmem:[%s3612_s26 + $0x36b8] sm:$0xff]  ;;  %675 = vst [vmem:[%s3617_s27 + $0x7c8] sm:$0xff] %v674_v57  ;;  %v680_v60 = vld [vmem:[%s3612_s26 + $0x3720] sm:$0xff] }
  0x8d   : > { %677 = vst [vmem:[%s3617_s27 + $0x7d0] sm:$0xff] %v676_v58  ;;  %679 = vst [vmem:[%s3617_s27 + $0x7d8] sm:$0xff] %v678_v59  ;;  %v682_v61 = vld [vmem:[%s3612_s26 + $0x3728] sm:$0xff]  ;;  %v684_v62 = vld [vmem:[%s3612_s26 + $0x3790] sm:$0xff] }
  0x8e   : > { %681 = vst [vmem:[%s3617_s27 + $0x7e0] sm:$0xff] %v680_v60  ;;  %683 = vst [vmem:[%s3617_s27 + $0x7e8] sm:$0xff] %v682_v61  ;;  %v686_v63 = vld [vmem:[%s3612_s26 + $0x3798] sm:$0xff] }
  0x8f   : > { %685 = vst [vmem:[%s3617_s27 + $0x7f0] sm:$0xff] %v684_v62  ;;  %687 = vst [vmem:[%s3617_s27 + $0x7f8] sm:$0xff] %v686_v63 }
  0x90 PF: > { %p2805_p6 = scmp.ge.s32.totalorder %s3547_s16, 1  ;;  %p700_p7 = scmp.lt.s32.totalorder %s3547_s16, 8 }
  0x92   : > { %p701_p8 = pnand %p2805_p6, %p700_p7 }
  0x93   : > { %s707_s28 = sand.u32 (!%p701_p8), 1, %s3531_s12   ;;  %s2807_s12 = sshll.u32 (!%p701_p8), %s3539_s14, 2 }
  0x94   : > { %704 = sbr.rel (%p701_p8) target bundleno = 612 (0x264), region = 51  ;;  %s2806_s6 = sshll.u32 (!%p701_p8), %s707_s28, 11 }
  0x95   : > { %s4149_s7 = scalar_lea.vmem (!%p701_p8), [#allocation2], %s2806_s6  ;;  %p750_p9 = scmp.lt.s32.totalorder (!%p701_p8), %s2807_s12, 27 }
  0x99   : > { %v4134_v0 = vld [vmem:[%s4485_s0] sm:$0xff]  ;;  %v4139_v1 = vld [vmem:[%s4485_s0 + $0x8] sm:$0xff]  ;;  %s4496_s12 = smov (!%p750_p9, %s2807_s12), 27 }
  0x9a   : > { %v4143_v2 = vcombine.high %v4134_v0, %v4134_v0  ;;  %v4147_v3 = vcombine.high %v4139_v1, %v4139_v1  ;;  %v3117_v4 = vld [vmem:[%s4149_s7 + $0xe4] ss:$16 sps:$4 sm:$0xff]   ;;  %v3121_v6 = vld [vmem:[%s4149_s7 + $0xe0] ss:$16 sps:$4 sm:$0xff]   ;;  %s752_s21 = scalar_lea.vmem %s4487_s2, %s4496_s12  ;;  %s2809_s22 = sshll.u32 %s4496_s12, 3 }
  0x9b   : > { %v3119_v5 = vld [vmem:[%s4149_s7 + $0x2e4] ss:$16 sps:$4 sm:$0xff]   ;;  %2354 = vmatprep.subr.bf16.mxu0 %v3117_v4  ;;  %v3122_v7 = vld [vmem:[%s4149_s7 + $0x2e0] ss:$16 sps:$4 sm:$0xff]   ;;  %s4464_s24 = scalar_lea.vmem %s4488_s3, %s2809_s22 }
  0x9c   : > { %2386 = vmatprep.mubr.bf16.mxu0 %v4143_v2  ;;  %2427 = vmatprep.mubr.bf16.mxu1 %v4147_v3  ;;  %v3123_v8 = vld [vmem:[%s4149_s7 + $0xc4] ss:$16 sps:$4 sm:$0xff]   ;;  %v3127_v10 = vld [vmem:[%s4149_s7 + $0xc0] ss:$16 sps:$4 sm:$0xff]  }
  0x9d   : > { %2395 = vmatprep.subr.bf16.mxu1 %v3119_v5  ;;  %2355 = vmatpush1.bf16.msra.mxu0 %v3121_v6  ;;  %v3125_v9 = vld [vmem:[%s4149_s7 + $0x2c4] ss:$16 sps:$4 sm:$0xff]   ;;  %v3128_v11 = vld [vmem:[%s4149_s7 + $0x2c0] ss:$16 sps:$4 sm:$0xff]  }
  0x9e   : > { %2396 = vmatpush1.bf16.msra.mxu1 %v3122_v7  ;;  %2356 = vmatprep.subr.bf16.mxu0 %v3123_v8  ;;  %v3129_v12 = vld [vmem:[%s4149_s7 + $0xa4] ss:$16 sps:$4 sm:$0xff]   ;;  %v3133_v14 = vld [vmem:[%s4149_s7 + $0xa0] ss:$16 sps:$4 sm:$0xff]  }
  0x9f   : > { %2397 = vmatprep.subr.bf16.mxu1 %v3125_v9  ;;  %v3131_v13 = vld [vmem:[%s4149_s7 + $0x2a4] ss:$16 sps:$4 sm:$0xff]   ;;  %v3134_v15 = vld [vmem:[%s4149_s7 + $0x2a0] ss:$16 sps:$4 sm:$0xff]  }
  0xa0   : > { %v3135_v16 = vld [vmem:[%s4149_s7 + $0x84] ss:$16 sps:$4 sm:$0xff]   ;;  %v3139_v18 = vld [vmem:[%s4149_s7 + $0x80] ss:$16 sps:$4 sm:$0xff]  }
  0xa1   : > { %2357 = vmatpush1.bf16.msra.mxu0 %v3127_v10  ;;  %v3137_v17 = vld [vmem:[%s4149_s7 + $0x284] ss:$16 sps:$4 sm:$0xff]   ;;  %v3140_v19 = vld [vmem:[%s4149_s7 + $0x280] ss:$16 sps:$4 sm:$0xff]  }
  0xa2   : > { %2398 = vmatpush1.bf16.msra.mxu1 %v3128_v11  ;;  %2358 = vmatprep.subr.bf16.mxu0 %v3129_v12  ;;  %v3141_v20 = vld [vmem:[%s4149_s7 + $0x64] ss:$16 sps:$4 sm:$0xff]   ;;  %v3145_v22 = vld [vmem:[%s4149_s7 + $0x60] ss:$16 sps:$4 sm:$0xff]   ;;  %v4227_v11 = vld [vmem:[%s4485_s0 + $0x18] sm:$0xff]  ;;  %v4231_v12 = vcombine.low %v4134_v0, %v4134_v0 }
  0xa3   : > { %2399 = vmatprep.subr.bf16.mxu1 %v3131_v13  ;;  %v3143_v21 = vld [vmem:[%s4149_s7 + $0x264] ss:$16 sps:$4 sm:$0xff]   ;;  %v3146_v23 = vld [vmem:[%s4149_s7 + $0x260] ss:$16 sps:$4 sm:$0xff]   ;;  %v4235_v13 = vcombine.low %v4139_v1, %v4139_v1  ;;  %v4247_v1 = vcombine.high %v4227_v11, %v4227_v11 }
  0xa4   : > { %v3147_v24 = vld [vmem:[%s4149_s7 + $0x44] ss:$16 sps:$4 sm:$0xff]   ;;  %v3151_v26 = vld [vmem:[%s4149_s7 + $0x40] ss:$16 sps:$4 sm:$0xff]  }
  0xa5   : > { %2359 = vmatpush1.bf16.msra.mxu0 %v3133_v14  ;;  %v3149_v25 = vld [vmem:[%s4149_s7 + $0x244] ss:$16 sps:$4 sm:$0xff]   ;;  %v3152_v27 = vld [vmem:[%s4149_s7 + $0x240] ss:$16 sps:$4 sm:$0xff]  }
  0xa6   : > { %2400 = vmatpush1.bf16.msra.mxu1 %v3134_v15  ;;  %2360 = vmatprep.subr.bf16.mxu0 %v3135_v16  ;;  %v3153_v28 = vld [vmem:[%s4149_s7 + $0x24] ss:$16 sps:$4 sm:$0xff]   ;;  %v3157_v30 = vld [vmem:[%s4149_s7 + $0x20] ss:$16 sps:$4 sm:$0xff]  }
  0xa7   : > { %2401 = vmatprep.subr.bf16.mxu1 %v3137_v17  ;;  %v3155_v29 = vld [vmem:[%s4149_s7 + $0x224] ss:$16 sps:$4 sm:$0xff]   ;;  %v3158_v31 = vld [vmem:[%s4149_s7 + $0x220] ss:$16 sps:$4 sm:$0xff]  }
  0xa8   : > { %v3159_v32 = vld [vmem:[%s4149_s7 + $0x4] ss:$16 sps:$4 sm:$0xff]   ;;  %v3163_v34 = vld [vmem:[%s4149_s7] ss:$16 sps:$4 sm:$0xff]  }
  0xa9   : > { %2361 = vmatpush1.bf16.msra.mxu0 %v3139_v18  ;;  %v3161_v33 = vld [vmem:[%s4149_s7 + $0x204] ss:$16 sps:$4 sm:$0xff]   ;;  %v3164_v35 = vld [vmem:[%s4149_s7 + $0x200] ss:$16 sps:$4 sm:$0xff]  }
  0xaa   : > { %2402 = vmatpush1.bf16.msra.mxu1 %v3140_v19  ;;  %2362 = vmatprep.subr.bf16.mxu0 %v3141_v20  ;;  %v3165_v36 = vld [vmem:[%s4149_s7 + $0x1e4] ss:$16 sps:$4 sm:$0xff]   ;;  %v3169_v38 = vld [vmem:[%s4149_s7 + $0x1e0] ss:$16 sps:$4 sm:$0xff]  }
  0xab   : > { %2403 = vmatprep.subr.bf16.mxu1 %v3143_v21  ;;  %v3167_v37 = vld [vmem:[%s4149_s7 + $0x3e4] ss:$16 sps:$4 sm:$0xff]   ;;  %v3170_v39 = vld [vmem:[%s4149_s7 + $0x3e0] ss:$16 sps:$4 sm:$0xff]  }
  0xac   : > { %v3171_v40 = vld [vmem:[%s4149_s7 + $0x1c4] ss:$16 sps:$4 sm:$0xff]   ;;  %v3175_v42 = vld [vmem:[%s4149_s7 + $0x1c0] ss:$16 sps:$4 sm:$0xff]  }
  0xad   : > { %2363 = vmatpush1.bf16.msra.mxu0 %v3145_v22  ;;  %v3173_v41 = vld [vmem:[%s4149_s7 + $0x3c4] ss:$16 sps:$4 sm:$0xff]   ;;  %v3176_v43 = vld [vmem:[%s4149_s7 + $0x3c0] ss:$16 sps:$4 sm:$0xff]  }
  0xae   : > { %2404 = vmatpush1.bf16.msra.mxu1 %v3146_v23  ;;  %2364 = vmatprep.subr.bf16.mxu0 %v3147_v24  ;;  %v3177_v44 = vld [vmem:[%s4149_s7 + $0x1a4] ss:$16 sps:$4 sm:$0xff]   ;;  %v3181_v46 = vld [vmem:[%s4149_s7 + $0x1a0] ss:$16 sps:$4 sm:$0xff]  }
  0xaf   : > { %2405 = vmatprep.subr.bf16.mxu1 %v3149_v25  ;;  %v3179_v45 = vld [vmem:[%s4149_s7 + $0x3a4] ss:$16 sps:$4 sm:$0xff]   ;;  %v3182_v47 = vld [vmem:[%s4149_s7 + $0x3a0] ss:$16 sps:$4 sm:$0xff]  }
  0xb0   : > { %v3183_v48 = vld [vmem:[%s4149_s7 + $0x184] ss:$16 sps:$4 sm:$0xff]   ;;  %v3187_v50 = vld [vmem:[%s4149_s7 + $0x180] ss:$16 sps:$4 sm:$0xff]  }
  0xb1   : > { %2365 = vmatpush1.bf16.msra.mxu0 %v3151_v26  ;;  %v3185_v49 = vld [vmem:[%s4149_s7 + $0x384] ss:$16 sps:$4 sm:$0xff]   ;;  %v3188_v51 = vld [vmem:[%s4149_s7 + $0x380] ss:$16 sps:$4 sm:$0xff]  }
  0xb2   : > { %2406 = vmatpush1.bf16.msra.mxu1 %v3152_v27  ;;  %2366 = vmatprep.subr.bf16.mxu0 %v3153_v28  ;;  %v3189_v52 = vld [vmem:[%s4149_s7 + $0x164] ss:$16 sps:$4 sm:$0xff]   ;;  %v3193_v54 = vld [vmem:[%s4149_s7 + $0x160] ss:$16 sps:$4 sm:$0xff]  }
  0xb3   : > { %2407 = vmatprep.subr.bf16.mxu1 %v3155_v29  ;;  %v3191_v53 = vld [vmem:[%s4149_s7 + $0x364] ss:$16 sps:$4 sm:$0xff]   ;;  %v3194_v55 = vld [vmem:[%s4149_s7 + $0x360] ss:$16 sps:$4 sm:$0xff]  }
  0xb4   : > { %v3195_v56 = vld [vmem:[%s4149_s7 + $0x144] ss:$16 sps:$4 sm:$0xff]   ;;  %v3199_v58 = vld [vmem:[%s4149_s7 + $0x140] ss:$16 sps:$4 sm:$0xff]  }
  0xb5   : > { %2367 = vmatpush1.bf16.msra.mxu0 %v3157_v30  ;;  %v3197_v57 = vld [vmem:[%s4149_s7 + $0x344] ss:$16 sps:$4 sm:$0xff]   ;;  %v3200_v59 = vld [vmem:[%s4149_s7 + $0x340] ss:$16 sps:$4 sm:$0xff]  }
  0xb6   : > { %2408 = vmatpush1.bf16.msra.mxu1 %v3158_v31  ;;  %2368 = vmatprep.subr.bf16.mxu0 %v3159_v32  ;;  %v3201_v60 = vld [vmem:[%s4149_s7 + $0x124] ss:$16 sps:$4 sm:$0xff]   ;;  %v3205_v62 = vld [vmem:[%s4149_s7 + $0x120] ss:$16 sps:$4 sm:$0xff]  }
  0xb7   : > { %2409 = vmatprep.subr.bf16.mxu1 %v3161_v33  ;;  %v3203_v61 = vld [vmem:[%s4149_s7 + $0x324] ss:$16 sps:$4 sm:$0xff]   ;;  %v3206_v63 = vld [vmem:[%s4149_s7 + $0x320] ss:$16 sps:$4 sm:$0xff]  }
  0xb8   : > { %v3207_v4 = vld [vmem:[%s4149_s7 + $0x104] ss:$16 sps:$4 sm:$0xff]   ;;  %v3211_v6 = vld [vmem:[%s4149_s7 + $0x100] ss:$16 sps:$4 sm:$0xff]  }
  0xb9   : > { %2369 = vmatpush1.bf16.msra.mxu0 %v3163_v34  ;;  %v3209_v5 = vld [vmem:[%s4149_s7 + $0x304] ss:$16 sps:$4 sm:$0xff]   ;;  %v3212_v7 = vld [vmem:[%s4149_s7 + $0x300] ss:$16 sps:$4 sm:$0xff]  }
  0xba   : > { %2410 = vmatpush1.bf16.msra.mxu1 %v3164_v35  ;;  %2370 = vmatprep.subr.bf16.mxu0 %v3165_v36  ;;  %v3219_v8 = vld [vmem:[%s4149_s7 + $0x4e4] ss:$16 sps:$4 sm:$0xff]   ;;  %v3217_v14 = vld [vmem:[%s4149_s7 + $0x4e0] ss:$16 sps:$4 sm:$0xff]  }
  0xbb   : > { %2411 = vmatprep.subr.bf16.mxu1 %v3167_v37  ;;  %v3222_v9 = vld [vmem:[%s4149_s7 + $0x6e4] ss:$16 sps:$4 sm:$0xff]   ;;  %v3220_v15 = vld [vmem:[%s4149_s7 + $0x6e0] ss:$16 sps:$4 sm:$0xff]  }
  0xbc   : > { %v4222_v10 = vld [vmem:[%s4485_s0 + $0x10] sm:$0xff] }
  0xbd   : > { %2371 = vmatpush2.bf16.msra.mxu0 %v3169_v38  ;;  %v3225_v16 = vld [vmem:[%s4149_s7 + $0x4c4] ss:$16 sps:$4 sm:$0xff]   ;;  %v4243_v0 = vcombine.high %v4222_v10, %v4222_v10  ;;  %v3223_v18 = vld [vmem:[%s4149_s7 + $0x4c0] ss:$16 sps:$4 sm:$0xff]  }
  0xbe   : > { %2412 = vmatpush2.bf16.msra.mxu1 %v3170_v39  ;;  %2372 = vmatprep.subr.bf16.mxu0 %v3171_v40  ;;  %v3228_v17 = vld [vmem:[%s4149_s7 + $0x6c4] ss:$16 sps:$4 sm:$0xff]   ;;  %v3226_v19 = vld [vmem:[%s4149_s7 + $0x6c0] ss:$16 sps:$4 sm:$0xff]  }
  0xbf   : > { %2413 = vmatprep.subr.bf16.mxu1 %v3173_v41  ;;  %v3231_v20 = vld [vmem:[%s4149_s7 + $0x4a4] ss:$16 sps:$4 sm:$0xff]   ;;  %v3229_v22 = vld [vmem:[%s4149_s7 + $0x4a0] ss:$16 sps:$4 sm:$0xff]  }
  0xc0   : > { %v3234_v21 = vld [vmem:[%s4149_s7 + $0x6a4] ss:$16 sps:$4 sm:$0xff]   ;;  %v3232_v23 = vld [vmem:[%s4149_s7 + $0x6a0] ss:$16 sps:$4 sm:$0xff]  }
  0xc1   : > { %2373 = vmatpush2.bf16.msra.mxu0 %v3175_v42  ;;  %v3237_v24 = vld [vmem:[%s4149_s7 + $0x484] ss:$16 sps:$4 sm:$0xff]   ;;  %v3235_v26 = vld [vmem:[%s4149_s7 + $0x480] ss:$16 sps:$4 sm:$0xff]  }
  0xc2   : > { %2414 = vmatpush2.bf16.msra.mxu1 %v3176_v43  ;;  %2374 = vmatprep.subr.bf16.mxu0 %v3177_v44  ;;  %v3240_v25 = vld [vmem:[%s4149_s7 + $0x684] ss:$16 sps:$4 sm:$0xff]   ;;  %v3238_v27 = vld [vmem:[%s4149_s7 + $0x680] ss:$16 sps:$4 sm:$0xff]  }
  0xc3   : > { %2415 = vmatprep.subr.bf16.mxu1 %v3179_v45  ;;  %v3243_v28 = vld [vmem:[%s4149_s7 + $0x464] ss:$16 sps:$4 sm:$0xff]   ;;  %v3241_v30 = vld [vmem:[%s4149_s7 + $0x460] ss:$16 sps:$4 sm:$0xff]  }
  0xc4   : > { %v3246_v29 = vld [vmem:[%s4149_s7 + $0x664] ss:$16 sps:$4 sm:$0xff]   ;;  %v3244_v31 = vld [vmem:[%s4149_s7 + $0x660] ss:$16 sps:$4 sm:$0xff]  }
  0xc5   : > { %2375 = vmatpush2.bf16.msra.mxu0 %v3181_v46  ;;  %v3249_v32 = vld [vmem:[%s4149_s7 + $0x444] ss:$16 sps:$4 sm:$0xff]   ;;  %v3247_v34 = vld [vmem:[%s4149_s7 + $0x440] ss:$16 sps:$4 sm:$0xff]  }
  0xc6   : > { %2416 = vmatpush2.bf16.msra.mxu1 %v3182_v47  ;;  %2376 = vmatprep.subr.bf16.mxu0 %v3183_v48  ;;  %v3252_v33 = vld [vmem:[%s4149_s7 + $0x644] ss:$16 sps:$4 sm:$0xff]   ;;  %v3250_v35 = vld [vmem:[%s4149_s7 + $0x640] ss:$16 sps:$4 sm:$0xff]  }
  0xc7   : > { %2417 = vmatprep.subr.bf16.mxu1 %v3185_v49  ;;  %v3255_v36 = vld [vmem:[%s4149_s7 + $0x424] ss:$16 sps:$4 sm:$0xff]   ;;  %v3253_v38 = vld [vmem:[%s4149_s7 + $0x420] ss:$16 sps:$4 sm:$0xff]  }
  0xc8   : > { %v3258_v37 = vld [vmem:[%s4149_s7 + $0x624] ss:$16 sps:$4 sm:$0xff]   ;;  %v3256_v39 = vld [vmem:[%s4149_s7 + $0x620] ss:$16 sps:$4 sm:$0xff]  }
  0xc9   : > { %2377 = vmatpush2.bf16.msra.mxu0 %v3187_v50  ;;  %v3261_v40 = vld [vmem:[%s4149_s7 + $0x404] ss:$16 sps:$4 sm:$0xff]   ;;  %v3259_v42 = vld [vmem:[%s4149_s7 + $0x400] ss:$16 sps:$4 sm:$0xff]  }
  0xca   : > { %2418 = vmatpush2.bf16.msra.mxu1 %v3188_v51  ;;  %2378 = vmatprep.subr.bf16.mxu0 %v3189_v52  ;;  %v3264_v41 = vld [vmem:[%s4149_s7 + $0x604] ss:$16 sps:$4 sm:$0xff]   ;;  %v3262_v43 = vld [vmem:[%s4149_s7 + $0x600] ss:$16 sps:$4 sm:$0xff]  }
  0xcb   : > { %2419 = vmatprep.subr.bf16.mxu1 %v3191_v53  ;;  %v3267_v44 = vld [vmem:[%s4149_s7 + $0x5e4] ss:$16 sps:$4 sm:$0xff]   ;;  %v3265_v46 = vld [vmem:[%s4149_s7 + $0x5e0] ss:$16 sps:$4 sm:$0xff]  }
  0xcc   : > { %v3270_v45 = vld [vmem:[%s4149_s7 + $0x7e4] ss:$16 sps:$4 sm:$0xff]   ;;  %v3268_v47 = vld [vmem:[%s4149_s7 + $0x7e0] ss:$16 sps:$4 sm:$0xff]  }
  0xcd   : > { %2379 = vmatpush2.bf16.msra.mxu0 %v3193_v54  ;;  %v3273_v48 = vld [vmem:[%s4149_s7 + $0x5c4] ss:$16 sps:$4 sm:$0xff]   ;;  %v3271_v50 = vld [vmem:[%s4149_s7 + $0x5c0] ss:$16 sps:$4 sm:$0xff]  }
  0xce   : > { %2420 = vmatpush2.bf16.msra.mxu1 %v3194_v55  ;;  %2380 = vmatprep.subr.bf16.mxu0 %v3195_v56  ;;  %v3276_v49 = vld [vmem:[%s4149_s7 + $0x7c4] ss:$16 sps:$4 sm:$0xff]   ;;  %v3274_v51 = vld [vmem:[%s4149_s7 + $0x7c0] ss:$16 sps:$4 sm:$0xff]  }
  0xcf   : > { %2421 = vmatprep.subr.bf16.mxu1 %v3197_v57  ;;  %v3279_v52 = vld [vmem:[%s4149_s7 + $0x5a4] ss:$16 sps:$4 sm:$0xff]   ;;  %v3277_v54 = vld [vmem:[%s4149_s7 + $0x5a0] ss:$16 sps:$4 sm:$0xff]  }
  0xd0   : > { %v3282_v53 = vld [vmem:[%s4149_s7 + $0x7a4] ss:$16 sps:$4 sm:$0xff]   ;;  %v3280_v55 = vld [vmem:[%s4149_s7 + $0x7a0] ss:$16 sps:$4 sm:$0xff]  }
  0xd1   : > { %2381 = vmatpush2.bf16.msra.mxu0 %v3199_v58  ;;  %v3285_v56 = vld [vmem:[%s4149_s7 + $0x584] ss:$16 sps:$4 sm:$0xff]   ;;  %v3283_v58 = vld [vmem:[%s4149_s7 + $0x580] ss:$16 sps:$4 sm:$0xff]  }
  0xd2   : > { %2422 = vmatpush2.bf16.msra.mxu1 %v3200_v59  ;;  %2382 = vmatprep.subr.bf16.mxu0 %v3201_v60  ;;  %v3288_v57 = vld [vmem:[%s4149_s7 + $0x784] ss:$16 sps:$4 sm:$0xff]   ;;  %v3286_v59 = vld [vmem:[%s4149_s7 + $0x780] ss:$16 sps:$4 sm:$0xff]  }
  0xd3   : > { %2423 = vmatprep.subr.bf16.mxu1 %v3203_v61  ;;  %v3291_v60 = vld [vmem:[%s4149_s7 + $0x564] ss:$16 sps:$4 sm:$0xff]  }
  0xd4   : > { %v3294_v61 = vld [vmem:[%s4149_s7 + $0x764] ss:$16 sps:$4 sm:$0xff]  }
  0xd5   : > { %2383 = vmatpush2.bf16.msra.mxu0 %v3205_v62  ;;  %v3289_v62 = vld [vmem:[%s4149_s7 + $0x560] ss:$16 sps:$4 sm:$0xff]  }
  0xd6   : > { %2424 = vmatpush2.bf16.msra.mxu1 %v3206_v63  ;;  %2384 = vmatprep.subr.bf16.mxu0 %v3207_v4  ;;  %v3292_v63 = vld [vmem:[%s4149_s7 + $0x760] ss:$16 sps:$4 sm:$0xff]   ;;  %v3297_v4 = vld [vmem:[%s4149_s7 + $0x544] ss:$16 sps:$4 sm:$0xff]  }
  0xd7   : > { %2425 = vmatprep.subr.bf16.mxu1 %v3209_v5  ;;  %v3300_v5 = vld [vmem:[%s4149_s7 + $0x744] ss:$16 sps:$4 sm:$0xff]  }
  0xd9   : > { %2385 = vmatpush2.bf16.msra.mxu0 %v3211_v6  ;;  %v3295_v6 = vld [vmem:[%s4149_s7 + $0x540] ss:$16 sps:$4 sm:$0xff]  }
  0xda   : > { %2426 = vmatpush2.bf16.msra.mxu1 %v3212_v7  ;;  %2436 = vmatprep.subr.bf16.mxu0 %v3219_v8  ;;  %v3298_v7 = vld [vmem:[%s4149_s7 + $0x740] ss:$16 sps:$4 sm:$0xff]   ;;  %v3303_v8 = vld [vmem:[%s4149_s7 + $0x524] ss:$16 sps:$4 sm:$0xff]  }
  0xdb   : > { %2477 = vmatprep.subr.bf16.mxu1 %v3222_v9  ;;  %v3306_v9 = vld [vmem:[%s4149_s7 + $0x724] ss:$16 sps:$4 sm:$0xff]  }
  0xdc   : > { %2387 = vmatmul.mubr.bf16.vlgmr.msra.gmra.mxu0 %v4231_v12 }
  0xdd   : > { %2428 = vmatmul.mubr.bf16.vlgmr.msra.gmra.mxu1 %v4235_v13  ;;  %2437 = vmatpush1.bf16.msra.mxu0 %v3217_v14  ;;  %v3301_v14 = vld [vmem:[%s4149_s7 + $0x520] ss:$16 sps:$4 sm:$0xff]  }
  0xde   : > { %2478 = vmatpush1.bf16.msra.mxu1 %v3220_v15  ;;  %2438 = vmatprep.subr.bf16.mxu0 %v3225_v16  ;;  %v3304_v15 = vld [vmem:[%s4149_s7 + $0x720] ss:$16 sps:$4 sm:$0xff]   ;;  %v3309_v16 = vld [vmem:[%s4149_s7 + $0x504] ss:$16 sps:$4 sm:$0xff]  }
  0xdf   : > { %2479 = vmatprep.subr.bf16.mxu1 %v3228_v17  ;;  %2468 = vmatprep.mubr.bf16.mxu0 %v4243_v0  ;;  %v3312_v17 = vld [vmem:[%s4149_s7 + $0x704] ss:$16 sps:$4 sm:$0xff]  }
  0xe0   : > { %2509 = vmatprep.mubr.bf16.mxu1 %v4247_v1 }
  0xe1   : > { %2439 = vmatpush1.bf16.msra.mxu0 %v3223_v18  ;;  %v3307_v18 = vld [vmem:[%s4149_s7 + $0x500] ss:$16 sps:$4 sm:$0xff]  }
  0xe2   : > { %2480 = vmatpush1.bf16.msra.mxu1 %v3226_v19  ;;  %2440 = vmatprep.subr.bf16.mxu0 %v3231_v20  ;;  %v3310_v19 = vld [vmem:[%s4149_s7 + $0x700] ss:$16 sps:$4 sm:$0xff]   ;;  %v3319_v20 = vld [vmem:[%s4149_s7 + $0xec] ss:$16 sps:$4 sm:$0xff]  }
  0xe3   : > { %2481 = vmatprep.subr.bf16.mxu1 %v3234_v21  ;;  %v3322_v21 = vld [vmem:[%s4149_s7 + $0x2ec] ss:$16 sps:$4 sm:$0xff]  }
  0xe5   : > { %2441 = vmatpush1.bf16.msra.mxu0 %v3229_v22  ;;  %v4315_v22 = vcombine.low %v4222_v10, %v4222_v10  ;;  %v3323_v10 = vld [vmem:[%s4149_s7 + $0xc8] ss:$16 sps:$4 sm:$0xff]  }
  0xe6   : > { %2482 = vmatpush1.bf16.msra.mxu1 %v3232_v23  ;;  %2442 = vmatprep.subr.bf16.mxu0 %v3237_v24  ;;  %v4319_v23 = vcombine.low %v4227_v11, %v4227_v11  ;;  %v3317_v24 = vld [vmem:[%s4149_s7 + $0xe8] ss:$16 sps:$4 sm:$0xff]   ;;  %v3331_v11 = vld [vmem:[%s4149_s7 + $0xac] ss:$16 sps:$4 sm:$0xff]  }
  0xe7   : > { %2483 = vmatprep.subr.bf16.mxu1 %v3240_v25  ;;  %v3320_v25 = vld [vmem:[%s4149_s7 + $0x2e8] ss:$16 sps:$4 sm:$0xff]  }
  0xe9   : > { %2443 = vmatpush1.bf16.msra.mxu0 %v3235_v26  ;;  %v3325_v26 = vld [vmem:[%s4149_s7 + $0xcc] ss:$16 sps:$4 sm:$0xff]  }
  0xea   : > { %2484 = vmatpush1.bf16.msra.mxu1 %v3238_v27  ;;  %2444 = vmatprep.subr.bf16.mxu0 %v3243_v28  ;;  %v3328_v27 = vld [vmem:[%s4149_s7 + $0x2cc] ss:$16 sps:$4 sm:$0xff]   ;;  %v3326_v28 = vld [vmem:[%s4149_s7 + $0x2c8] ss:$16 sps:$4 sm:$0xff]  }
  0xeb   : > { %2485 = vmatprep.subr.bf16.mxu1 %v3246_v29  ;;  %v3334_v29 = vld [vmem:[%s4149_s7 + $0x2ac] ss:$16 sps:$4 sm:$0xff]  }
  0xed   : > { %2445 = vmatpush1.bf16.msra.mxu0 %v3241_v30  ;;  %v3329_v30 = vld [vmem:[%s4149_s7 + $0xa8] ss:$16 sps:$4 sm:$0xff]  }
  0xee   : > { %2486 = vmatpush1.bf16.msra.mxu1 %v3244_v31  ;;  %2446 = vmatprep.subr.bf16.mxu0 %v3249_v32  ;;  %v3332_v31 = vld [vmem:[%s4149_s7 + $0x2a8] ss:$16 sps:$4 sm:$0xff]   ;;  %v3337_v32 = vld [vmem:[%s4149_s7 + $0x8c] ss:$16 sps:$4 sm:$0xff]  }
  0xef   : > { %2487 = vmatprep.subr.bf16.mxu1 %v3252_v33  ;;  %v3340_v33 = vld [vmem:[%s4149_s7 + $0x28c] ss:$16 sps:$4 sm:$0xff]  }
  0xf1   : > { %2447 = vmatpush1.bf16.msra.mxu0 %v3247_v34  ;;  %v3335_v34 = vld [vmem:[%s4149_s7 + $0x88] ss:$16 sps:$4 sm:$0xff]  }
  0xf2   : > { %2488 = vmatpush1.bf16.msra.mxu1 %v3250_v35  ;;  %2448 = vmatprep.subr.bf16.mxu0 %v3255_v36  ;;  %v3338_v35 = vld [vmem:[%s4149_s7 + $0x288] ss:$16 sps:$4 sm:$0xff]  }
  0xf3   : > { %2489 = vmatprep.subr.bf16.mxu1 %v3258_v37  ;;  %v3341_v36 = vld [vmem:[%s4149_s7 + $0x68] ss:$16 sps:$4 sm:$0xff]  }
  0xf4   : > { %v3344_v37 = vld [vmem:[%s4149_s7 + $0x268] ss:$16 sps:$4 sm:$0xff]  }
  0xf5   : > { %2449 = vmatpush1.bf16.msra.mxu0 %v3253_v38  ;;  %v3349_v38 = vld [vmem:[%s4149_s7 + $0x4c] ss:$16 sps:$4 sm:$0xff]  }
  0xf6   : > { %2490 = vmatpush1.bf16.msra.mxu1 %v3256_v39  ;;  %2450 = vmatprep.subr.bf16.mxu0 %v3261_v40  ;;  %v3352_v39 = vld [vmem:[%s4149_s7 + $0x24c] ss:$16 sps:$4 sm:$0xff]   ;;  %v3347_v40 = vld [vmem:[%s4149_s7 + $0x48] ss:$16 sps:$4 sm:$0xff]  }
  0xf7   : > { %2491 = vmatprep.subr.bf16.mxu1 %v3264_v41  ;;  %v3350_v41 = vld [vmem:[%s4149_s7 + $0x248] ss:$16 sps:$4 sm:$0xff]  }
  0xf9   : > { %2451 = vmatpush1.bf16.msra.mxu0 %v3259_v42  ;;  %v3355_v42 = vld [vmem:[%s4149_s7 + $0x2c] ss:$16 sps:$4 sm:$0xff]  }
  0xfa   : > { %2492 = vmatpush1.bf16.msra.mxu1 %v3262_v43  ;;  %2452 = vmatprep.subr.bf16.mxu0 %v3267_v44  ;;  %v3358_v43 = vld [vmem:[%s4149_s7 + $0x22c] ss:$16 sps:$4 sm:$0xff]   ;;  %v3353_v44 = vld [vmem:[%s4149_s7 + $0x28] ss:$16 sps:$4 sm:$0xff]  }
  0xfb   : > { %2493 = vmatprep.subr.bf16.mxu1 %v3270_v45  ;;  %v3356_v45 = vld [vmem:[%s4149_s7 + $0x228] ss:$16 sps:$4 sm:$0xff]  }
  0xfd   : > { %2453 = vmatpush2.bf16.msra.mxu0 %v3265_v46  ;;  %v3361_v46 = vld [vmem:[%s4149_s7 + $0xc] ss:$16 sps:$4 sm:$0xff]  }
  0xfe   : > { %2494 = vmatpush2.bf16.msra.mxu1 %v3268_v47  ;;  %2454 = vmatprep.subr.bf16.mxu0 %v3273_v48  ;;  %v3364_v47 = vld [vmem:[%s4149_s7 + $0x20c] ss:$16 sps:$4 sm:$0xff]   ;;  %v3359_v48 = vld [vmem:[%s4149_s7 + $0x8] ss:$16 sps:$4 sm:$0xff]  }
  0xff   : > { %2495 = vmatprep.subr.bf16.mxu1 %v3276_v49  ;;  %v3362_v49 = vld [vmem:[%s4149_s7 + $0x208] ss:$16 sps:$4 sm:$0xff]  }
 0x101   : > { %2455 = vmatpush2.bf16.msra.mxu0 %v3271_v50  ;;  %v3367_v50 = vld [vmem:[%s4149_s7 + $0x1ec] ss:$16 sps:$4 sm:$0xff]  }
 0x102   : > { %2496 = vmatpush2.bf16.msra.mxu1 %v3274_v51  ;;  %2456 = vmatprep.subr.bf16.mxu0 %v3279_v52  ;;  %v3370_v51 = vld [vmem:[%s4149_s7 + $0x3ec] ss:$16 sps:$4 sm:$0xff]   ;;  %v3365_v52 = vld [vmem:[%s4149_s7 + $0x1e8] ss:$16 sps:$4 sm:$0xff]  }
 0x103   : > { %2497 = vmatprep.subr.bf16.mxu1 %v3282_v53  ;;  %v3368_v53 = vld [vmem:[%s4149_s7 + $0x3e8] ss:$16 sps:$4 sm:$0xff]  }
 0x105   : > { %2457 = vmatpush2.bf16.msra.mxu0 %v3277_v54  ;;  %v3373_v54 = vld [vmem:[%s4149_s7 + $0x1cc] ss:$16 sps:$4 sm:$0xff]  }
 0x106   : > { %2498 = vmatpush2.bf16.msra.mxu1 %v3280_v55  ;;  %2458 = vmatprep.subr.bf16.mxu0 %v3285_v56  ;;  %v3376_v55 = vld [vmem:[%s4149_s7 + $0x3cc] ss:$16 sps:$4 sm:$0xff]   ;;  %v3371_v56 = vld [vmem:[%s4149_s7 + $0x1c8] ss:$16 sps:$4 sm:$0xff]  }
 0x107   : > { %2499 = vmatprep.subr.bf16.mxu1 %v3288_v57  ;;  %v3374_v57 = vld [vmem:[%s4149_s7 + $0x3c8] ss:$16 sps:$4 sm:$0xff]  }
 0x109   : > { %2459 = vmatpush2.bf16.msra.mxu0 %v3283_v58  ;;  %v3379_v58 = vld [vmem:[%s4149_s7 + $0x1ac] ss:$16 sps:$4 sm:$0xff]  }
 0x10a   : > { %2500 = vmatpush2.bf16.msra.mxu1 %v3286_v59  ;;  %2460 = vmatprep.subr.bf16.mxu0 %v3291_v60  ;;  %v3382_v59 = vld [vmem:[%s4149_s7 + $0x3ac] ss:$16 sps:$4 sm:$0xff]   ;;  %v3377_v60 = vld [vmem:[%s4149_s7 + $0x1a8] ss:$16 sps:$4 sm:$0xff]  }
 0x10b   : > { %2501 = vmatprep.subr.bf16.mxu1 %v3294_v61  ;;  %v3380_v61 = vld [vmem:[%s4149_s7 + $0x3a8] ss:$16 sps:$4 sm:$0xff]  }
 0x10d   : > { %2461 = vmatpush2.bf16.msra.mxu0 %v3289_v62  ;;  %v3385_v62 = vld [vmem:[%s4149_s7 + $0x18c] ss:$16 sps:$4 sm:$0xff]  }
 0x10e   : > { %2502 = vmatpush2.bf16.msra.mxu1 %v3292_v63  ;;  %2462 = vmatprep.subr.bf16.mxu0 %v3297_v4  ;;  %v3388_v63 = vld [vmem:[%s4149_s7 + $0x38c] ss:$16 sps:$4 sm:$0xff]   ;;  %v3383_v4 = vld [vmem:[%s4149_s7 + $0x188] ss:$16 sps:$4 sm:$0xff]  }
 0x10f   : > { %2503 = vmatprep.subr.bf16.mxu1 %v3300_v5  ;;  %v3386_v5 = vld [vmem:[%s4149_s7 + $0x388] ss:$16 sps:$4 sm:$0xff]  }
 0x111   : > { %2463 = vmatpush2.bf16.msra.mxu0 %v3295_v6  ;;  %v3391_v6 = vld [vmem:[%s4149_s7 + $0x16c] ss:$16 sps:$4 sm:$0xff]  }
 0x112   : > { %2504 = vmatpush2.bf16.msra.mxu1 %v3298_v7  ;;  %2464 = vmatprep.subr.bf16.mxu0 %v3303_v8  ;;  %v3394_v7 = vld [vmem:[%s4149_s7 + $0x36c] ss:$16 sps:$4 sm:$0xff]   ;;  %v3389_v8 = vld [vmem:[%s4149_s7 + $0x168] ss:$16 sps:$4 sm:$0xff]  }
 0x113   : > { %2505 = vmatprep.subr.bf16.mxu1 %v3306_v9  ;;  %v3392_v9 = vld [vmem:[%s4149_s7 + $0x368] ss:$16 sps:$4 sm:$0xff]  }
 0x115   : > { %2465 = vmatpush2.bf16.msra.mxu0 %v3301_v14  ;;  %v3397_v14 = vld [vmem:[%s4149_s7 + $0x14c] ss:$16 sps:$4 sm:$0xff]  }
 0x116   : > { %2506 = vmatpush2.bf16.msra.mxu1 %v3304_v15  ;;  %2466 = vmatprep.subr.bf16.mxu0 %v3309_v16  ;;  %v3400_v15 = vld [vmem:[%s4149_s7 + $0x34c] ss:$16 sps:$4 sm:$0xff]   ;;  %v3395_v16 = vld [vmem:[%s4149_s7 + $0x148] ss:$16 sps:$4 sm:$0xff]  }
 0x117   : > { %2507 = vmatprep.subr.bf16.mxu1 %v3312_v17  ;;  %v3398_v17 = vld [vmem:[%s4149_s7 + $0x348] ss:$16 sps:$4 sm:$0xff]  }
 0x119   : > { %2467 = vmatpush2.bf16.msra.mxu0 %v3307_v18  ;;  %v3403_v18 = vld [vmem:[%s4149_s7 + $0x12c] ss:$16 sps:$4 sm:$0xff]  }
 0x11a   : > { %2508 = vmatpush2.bf16.msra.mxu1 %v3310_v19  ;;  %2518 = vmatprep.subr.bf16.mxu0 %v3319_v20  ;;  %v3406_v19 = vld [vmem:[%s4149_s7 + $0x32c] ss:$16 sps:$4 sm:$0xff]   ;;  %v3401_v20 = vld [vmem:[%s4149_s7 + $0x128] ss:$16 sps:$4 sm:$0xff]  }
 0x11b   : > { %2559 = vmatprep.subr.bf16.mxu1 %v3322_v21  ;;  %v3404_v21 = vld [vmem:[%s4149_s7 + $0x328] ss:$16 sps:$4 sm:$0xff]  }
 0x11c   : > { %2469 = vmatmul.mubr.bf16.vlgmr.msra.gmra.mxu0 %v4315_v22 }
 0x11d   : > { %2510 = vmatmul.mubr.bf16.vlgmr.msra.gmra.mxu1 %v4319_v23  ;;  %2519 = vmatpush1.bf16.msra.mxu0 %v3317_v24  ;;  %v3409_v24 = vld [vmem:[%s4149_s7 + $0x10c] ss:$16 sps:$4 sm:$0xff]  }
 0x11e   : > { %2560 = vmatpush1.bf16.msra.mxu1 %v3320_v25  ;;  %2520 = vmatprep.subr.bf16.mxu0 %v3325_v26  ;;  %v3412_v25 = vld [vmem:[%s4149_s7 + $0x30c] ss:$16 sps:$4 sm:$0xff]   ;;  %v3407_v26 = vld [vmem:[%s4149_s7 + $0x108] ss:$16 sps:$4 sm:$0xff]  }
 0x11f   : > { %2561 = vmatprep.subr.bf16.mxu1 %v3328_v27  ;;  %2550 = vmatprep.mubr.bf16.mxu0 %v4143_v2  ;;  %v3343_v2 = vld [vmem:[%s4149_s7 + $0x6c] ss:$16 sps:$4 sm:$0xff]   ;;  %v3410_v27 = vld [vmem:[%s4149_s7 + $0x308] ss:$16 sps:$4 sm:$0xff]  }
 0x120   : > { %2591 = vmatprep.mubr.bf16.mxu1 %v4147_v3  ;;  %v3346_v3 = vld [vmem:[%s4149_s7 + $0x26c] ss:$16 sps:$4 sm:$0xff]  }
 0x121   : > { %2521 = vmatpush1.bf16.msra.mxu0 %v3323_v10  ;;  %v3415_v10 = vld [vmem:[%s4149_s7 + $0x4ec] ss:$16 sps:$4 sm:$0xff]  }
 0x122   : > { %2562 = vmatpush1.bf16.msra.mxu1 %v3326_v28  ;;  %2522 = vmatprep.subr.bf16.mxu0 %v3331_v11  ;;  %v3418_v28 = vld [vmem:[%s4149_s7 + $0x6ec] ss:$16 sps:$4 sm:$0xff]   ;;  %v3413_v11 = vld [vmem:[%s4149_s7 + $0x4e8] ss:$16 sps:$4 sm:$0xff]  }
 0x123   : > { %2563 = vmatprep.subr.bf16.mxu1 %v3334_v29  ;;  %v3416_v29 = vld [vmem:[%s4149_s7 + $0x6e8] ss:$16 sps:$4 sm:$0xff]  }
 0x125   : > { %2523 = vmatpush1.bf16.msra.mxu0 %v3329_v30  ;;  %v3421_v30 = vld [vmem:[%s4149_s7 + $0x4cc] ss:$16 sps:$4 sm:$0xff]  }
 0x126   : > { %2564 = vmatpush1.bf16.msra.mxu1 %v3332_v31  ;;  %2524 = vmatprep.subr.bf16.mxu0 %v3337_v32  ;;  %v3424_v31 = vld [vmem:[%s4149_s7 + $0x6cc] ss:$16 sps:$4 sm:$0xff]   ;;  %v3419_v32 = vld [vmem:[%s4149_s7 + $0x4c8] ss:$16 sps:$4 sm:$0xff]  }
 0x127   : > { %2565 = vmatprep.subr.bf16.mxu1 %v3340_v33  ;;  %v3422_v33 = vld [vmem:[%s4149_s7 + $0x6c8] ss:$16 sps:$4 sm:$0xff]  }
 0x129   : > { %2525 = vmatpush1.bf16.msra.mxu0 %v3335_v34  ;;  %v3427_v34 = vld [vmem:[%s4149_s7 + $0x4ac] ss:$16 sps:$4 sm:$0xff]  }
 0x12a   : > { %2566 = vmatpush1.bf16.msra.mxu1 %v3338_v35  ;;  %2526 = vmatprep.subr.bf16.mxu0 %v3343_v2  ;;  %v3430_v35 = vld [vmem:[%s4149_s7 + $0x6ac] ss:$16 sps:$4 sm:$0xff]  }
 0x12b   : > { %2567 = vmatprep.subr.bf16.mxu1 %v3346_v3  ;;  %v3433_v2 = vld [vmem:[%s4149_s7 + $0x48c] ss:$16 sps:$4 sm:$0xff]  }
 0x12c   : > { %v3436_v3 = vld [vmem:[%s4149_s7 + $0x68c] ss:$16 sps:$4 sm:$0xff]  }
 0x12d   : > { %2527 = vmatpush1.bf16.msra.mxu0 %v3341_v36  ;;  %v3431_v36 = vld [vmem:[%s4149_s7 + $0x488] ss:$16 sps:$4 sm:$0xff]  }
 0x12e   : > { %2568 = vmatpush1.bf16.msra.mxu1 %v3344_v37  ;;  %2528 = vmatprep.subr.bf16.mxu0 %v3349_v38  ;;  %v3442_v37 = vld [vmem:[%s4149_s7 + $0x66c] ss:$16 sps:$4 sm:$0xff]   ;;  %v3437_v38 = vld [vmem:[%s4149_s7 + $0x468] ss:$16 sps:$4 sm:$0xff]  }
 0x12f   : > { %2569 = vmatprep.subr.bf16.mxu1 %v3352_v39  ;;  %v3440_v39 = vld [vmem:[%s4149_s7 + $0x668] ss:$16 sps:$4 sm:$0xff]  }
 0x131   : > { %2529 = vmatpush1.bf16.msra.mxu0 %v3347_v40  ;;  %v3445_v40 = vld [vmem:[%s4149_s7 + $0x44c] ss:$16 sps:$4 sm:$0xff]  }
 0x132   : > { %2570 = vmatpush1.bf16.msra.mxu1 %v3350_v41  ;;  %2530 = vmatprep.subr.bf16.mxu0 %v3355_v42  ;;  %v3448_v41 = vld [vmem:[%s4149_s7 + $0x64c] ss:$16 sps:$4 sm:$0xff]   ;;  %v3443_v42 = vld [vmem:[%s4149_s7 + $0x448] ss:$16 sps:$4 sm:$0xff]  }
 0x133   : > { %2571 = vmatprep.subr.bf16.mxu1 %v3358_v43  ;;  %v3446_v43 = vld [vmem:[%s4149_s7 + $0x648] ss:$16 sps:$4 sm:$0xff]  }
 0x135   : > { %2531 = vmatpush1.bf16.msra.mxu0 %v3353_v44  ;;  %v3451_v44 = vld [vmem:[%s4149_s7 + $0x42c] ss:$16 sps:$4 sm:$0xff]  }
 0x136   : > { %2572 = vmatpush1.bf16.msra.mxu1 %v3356_v45  ;;  %2532 = vmatprep.subr.bf16.mxu0 %v3361_v46  ;;  %v3454_v45 = vld [vmem:[%s4149_s7 + $0x62c] ss:$16 sps:$4 sm:$0xff]   ;;  %v3449_v46 = vld [vmem:[%s4149_s7 + $0x428] ss:$16 sps:$4 sm:$0xff]  }
 0x137   : > { %2573 = vmatprep.subr.bf16.mxu1 %v3364_v47  ;;  %v3452_v47 = vld [vmem:[%s4149_s7 + $0x628] ss:$16 sps:$4 sm:$0xff]  }
 0x139   : > { %2533 = vmatpush1.bf16.msra.mxu0 %v3359_v48  ;;  %v3457_v48 = vld [vmem:[%s4149_s7 + $0x40c] ss:$16 sps:$4 sm:$0xff]  }
 0x13a   : > { %2574 = vmatpush1.bf16.msra.mxu1 %v3362_v49  ;;  %2534 = vmatprep.subr.bf16.mxu0 %v3367_v50  ;;  %v3460_v49 = vld [vmem:[%s4149_s7 + $0x60c] ss:$16 sps:$4 sm:$0xff]   ;;  %v3455_v50 = vld [vmem:[%s4149_s7 + $0x408] ss:$16 sps:$4 sm:$0xff]  }
 0x13b   : > { %2575 = vmatprep.subr.bf16.mxu1 %v3370_v51  ;;  %v3458_v51 = vld [vmem:[%s4149_s7 + $0x608] ss:$16 sps:$4 sm:$0xff]  }
 0x13d   : > { %2535 = vmatpush2.bf16.msra.mxu0 %v3365_v52  ;;  %v3463_v52 = vld [vmem:[%s4149_s7 + $0x5ec] ss:$16 sps:$4 sm:$0xff]  }
 0x13e   : > { %2576 = vmatpush2.bf16.msra.mxu1 %v3368_v53  ;;  %2536 = vmatprep.subr.bf16.mxu0 %v3373_v54  ;;  %v3466_v53 = vld [vmem:[%s4149_s7 + $0x7ec] ss:$16 sps:$4 sm:$0xff]   ;;  %v3461_v54 = vld [vmem:[%s4149_s7 + $0x5e8] ss:$16 sps:$4 sm:$0xff]  }
 0x13f   : > { %2577 = vmatprep.subr.bf16.mxu1 %v3376_v55  ;;  %v3464_v55 = vld [vmem:[%s4149_s7 + $0x7e8] ss:$16 sps:$4 sm:$0xff]  }
 0x141   : > { %2537 = vmatpush2.bf16.msra.mxu0 %v3371_v56  ;;  %v3469_v56 = vld [vmem:[%s4149_s7 + $0x5cc] ss:$16 sps:$4 sm:$0xff]  }
 0x142   : > { %2578 = vmatpush2.bf16.msra.mxu1 %v3374_v57  ;;  %2538 = vmatprep.subr.bf16.mxu0 %v3379_v58  ;;  %v3472_v57 = vld [vmem:[%s4149_s7 + $0x7cc] ss:$16 sps:$4 sm:$0xff]   ;;  %v3467_v58 = vld [vmem:[%s4149_s7 + $0x5c8] ss:$16 sps:$4 sm:$0xff]  }
 0x143   : > { %2579 = vmatprep.subr.bf16.mxu1 %v3382_v59  ;;  %v3470_v59 = vld [vmem:[%s4149_s7 + $0x7c8] ss:$16 sps:$4 sm:$0xff]  }
 0x145   : > { %2539 = vmatpush2.bf16.msra.mxu0 %v3377_v60  ;;  %v3475_v60 = vld [vmem:[%s4149_s7 + $0x5ac] ss:$16 sps:$4 sm:$0xff]  }
 0x146   : > { %2580 = vmatpush2.bf16.msra.mxu1 %v3380_v61  ;;  %2540 = vmatprep.subr.bf16.mxu0 %v3385_v62  ;;  %v3478_v61 = vld [vmem:[%s4149_s7 + $0x7ac] ss:$16 sps:$4 sm:$0xff]   ;;  %v3473_v62 = vld [vmem:[%s4149_s7 + $0x5a8] ss:$16 sps:$4 sm:$0xff]  }
 0x147   : > { %2581 = vmatprep.subr.bf16.mxu1 %v3388_v63  ;;  %v3476_v63 = vld [vmem:[%s4149_s7 + $0x7a8] ss:$16 sps:$4 sm:$0xff]  }
 0x149   : > { %2541 = vmatpush2.bf16.msra.mxu0 %v3383_v4  ;;  %v3481_v4 = vld [vmem:[%s4149_s7 + $0x58c] ss:$16 sps:$4 sm:$0xff]  }
 0x14a   : > { %2582 = vmatpush2.bf16.msra.mxu1 %v3386_v5  ;;  %2542 = vmatprep.subr.bf16.mxu0 %v3391_v6  ;;  %v3484_v5 = vld [vmem:[%s4149_s7 + $0x78c] ss:$16 sps:$4 sm:$0xff]   ;;  %v3479_v6 = vld [vmem:[%s4149_s7 + $0x588] ss:$16 sps:$4 sm:$0xff]  }
 0x14b   : > { %2583 = vmatprep.subr.bf16.mxu1 %v3394_v7  ;;  %v3482_v7 = vld [vmem:[%s4149_s7 + $0x788] ss:$16 sps:$4 sm:$0xff]  }
 0x14d   : > { %2543 = vmatpush2.bf16.msra.mxu0 %v3389_v8  ;;  %v3487_v8 = vld [vmem:[%s4149_s7 + $0x56c] ss:$16 sps:$4 sm:$0xff]  }
 0x14e   : > { %2584 = vmatpush2.bf16.msra.mxu1 %v3392_v9  ;;  %2544 = vmatprep.subr.bf16.mxu0 %v3397_v14  ;;  %v3490_v9 = vld [vmem:[%s4149_s7 + $0x76c] ss:$16 sps:$4 sm:$0xff]   ;;  %v3485_v14 = vld [vmem:[%s4149_s7 + $0x568] ss:$16 sps:$4 sm:$0xff]  }
 0x14f   : > { %2585 = vmatprep.subr.bf16.mxu1 %v3400_v15  ;;  %v3488_v15 = vld [vmem:[%s4149_s7 + $0x768] ss:$16 sps:$4 sm:$0xff]  }
 0x151   : > { %2545 = vmatpush2.bf16.msra.mxu0 %v3395_v16  ;;  %v3493_v16 = vld [vmem:[%s4149_s7 + $0x54c] ss:$16 sps:$4 sm:$0xff]  }
 0x152   : > { %2586 = vmatpush2.bf16.msra.mxu1 %v3398_v17  ;;  %2546 = vmatprep.subr.bf16.mxu0 %v3403_v18  ;;  %v3496_v17 = vld [vmem:[%s4149_s7 + $0x74c] ss:$16 sps:$4 sm:$0xff]   ;;  %v3491_v18 = vld [vmem:[%s4149_s7 + $0x548] ss:$16 sps:$4 sm:$0xff]  }
 0x153   : > { %2587 = vmatprep.subr.bf16.mxu1 %v3406_v19  ;;  %v3494_v19 = vld [vmem:[%s4149_s7 + $0x748] ss:$16 sps:$4 sm:$0xff]  }
 0x155   : > { %2547 = vmatpush2.bf16.msra.mxu0 %v3401_v20  ;;  %v3499_v20 = vld [vmem:[%s4149_s7 + $0x52c] ss:$16 sps:$4 sm:$0xff]  }
 0x156   : > { %2588 = vmatpush2.bf16.msra.mxu1 %v3404_v21  ;;  %2548 = vmatprep.subr.bf16.mxu0 %v3409_v24  ;;  %v3502_v21 = vld [vmem:[%s4149_s7 + $0x72c] ss:$16 sps:$4 sm:$0xff]   ;;  %v3497_v24 = vld [vmem:[%s4149_s7 + $0x528] ss:$16 sps:$4 sm:$0xff]  }
 0x157   : > { %2589 = vmatprep.subr.bf16.mxu1 %v3412_v25  ;;  %v3500_v25 = vld [vmem:[%s4149_s7 + $0x728] ss:$16 sps:$4 sm:$0xff]  }
 0x159   : > { %2549 = vmatpush2.bf16.msra.mxu0 %v3407_v26  ;;  %v3505_v26 = vld [vmem:[%s4149_s7 + $0x50c] ss:$16 sps:$4 sm:$0xff]  }
 0x15a   : > { %2590 = vmatpush2.bf16.msra.mxu1 %v3410_v27  ;;  %2600 = vmatprep.subr.bf16.mxu0 %v3415_v10  ;;  %v3508_v27 = vld [vmem:[%s4149_s7 + $0x70c] ss:$16 sps:$4 sm:$0xff]   ;;  %v3503_v10 = vld [vmem:[%s4149_s7 + $0x508] ss:$16 sps:$4 sm:$0xff]  }
 0x15b   : > { %2641 = vmatprep.subr.bf16.mxu1 %v3418_v28  ;;  %v3506_v28 = vld [vmem:[%s4149_s7 + $0x708] ss:$16 sps:$4 sm:$0xff]  }
 0x15c   : > { %2551 = vmatmul.mubr.bf16.vlgmr.msra.gmra.mxu0 %v4231_v12  ;;  %v3425_v12 = vld [vmem:[%s4149_s7 + $0x4a8] ss:$16 sps:$4 sm:$0xff]  }
 0x15d   : > { %2592 = vmatmul.mubr.bf16.vlgmr.msra.gmra.mxu1 %v4235_v13  ;;  %2601 = vmatpush1.bf16.msra.mxu0 %v3413_v11  ;;  %v3428_v13 = vld [vmem:[%s4149_s7 + $0x6a8] ss:$16 sps:$4 sm:$0xff]  }
 0x15e   : > { %2642 = vmatpush1.bf16.msra.mxu1 %v3416_v29  ;;  %2602 = vmatprep.subr.bf16.mxu0 %v3421_v30 }
 0x15f   : > { %2643 = vmatprep.subr.bf16.mxu1 %v3424_v31  ;;  %2632 = vmatprep.mubr.bf16.mxu0 %v4243_v0  ;;  %v3434_v0 = vld [vmem:[%s4149_s7 + $0x688] ss:$16 sps:$4 sm:$0xff]  }
 0x160   : > { %2673 = vmatprep.mubr.bf16.mxu1 %v4247_v1  ;;  %v3439_v1 = vld [vmem:[%s4149_s7 + $0x46c] ss:$16 sps:$4 sm:$0xff]  }
 0x161   : > { %2603 = vmatpush1.bf16.msra.mxu0 %v3419_v32 }
 0x162   : > { %2644 = vmatpush1.bf16.msra.mxu1 %v3422_v33  ;;  %2604 = vmatprep.subr.bf16.mxu0 %v3427_v34 }
 0x163   : > { %2645 = vmatprep.subr.bf16.mxu1 %v3430_v35 }
 0x165   : > { %2605 = vmatpush1.bf16.msra.mxu0 %v3425_v12  ;;  %v1026_v12 = vlaneseq }
 0x166   : > { %2646 = vmatpush1.bf16.msra.mxu1 %v3428_v13  ;;  %2606 = vmatprep.subr.bf16.mxu0 %v3433_v2 }
 0x167   : > { %2647 = vmatprep.subr.bf16.mxu1 %v3436_v3  ;;  %v1027_v13 = vshrl.u32 %v1026_v12, 7  ;;  %v1024_v3 = vld [vmem:[%s752_s21] sm:$0xf] }
 0x169   : > { %2607 = vmatpush1.bf16.msra.mxu0 %v3431_v36  ;;  %v1028_v2 = vsub.s32 0, %v1027_v13 }
 0x16a   : > { %2648 = vmatpush1.bf16.msra.mxu1 %v3434_v0  ;;  %2608 = vmatprep.subr.bf16.mxu0 %v3439_v1 }
 0x16b   : > { %2649 = vmatprep.subr.bf16.mxu1 %v3442_v37  ;;  %v1029_v36 = vrot.slane %v1024_v3, %v1028_v2 }
 0x16d   : > { %2609 = vmatpush1.bf16.msra.mxu0 %v3437_v38 }
 0x16e   : > { %2650 = vmatpush1.bf16.msra.mxu1 %v3440_v39  ;;  %2610 = vmatprep.subr.bf16.mxu0 %v3445_v40 }
 0x16f   : > { %2651 = vmatprep.subr.bf16.mxu1 %v3448_v41 }
 0x171   : > { %2611 = vmatpush1.bf16.msra.mxu0 %v3443_v42 }
 0x172   : > { %2652 = vmatpush1.bf16.msra.mxu1 %v3446_v43  ;;  %2612 = vmatprep.subr.bf16.mxu0 %v3451_v44 }
 0x173   : > { %2653 = vmatprep.subr.bf16.mxu1 %v3454_v45 }
 0x175   : > { %2613 = vmatpush1.bf16.msra.mxu0 %v3449_v46 }
 0x176   : > { %2654 = vmatpush1.bf16.msra.mxu1 %v3452_v47  ;;  %2614 = vmatprep.subr.bf16.mxu0 %v3457_v48 }
 0x177   : > { %2655 = vmatprep.subr.bf16.mxu1 %v3460_v49 }
 0x179   : > { %2615 = vmatpush1.bf16.msra.mxu0 %v3455_v50 }
 0x17a   : > { %2656 = vmatpush1.bf16.msra.mxu1 %v3458_v51  ;;  %2616 = vmatprep.subr.bf16.mxu0 %v3463_v52 }
 0x17b   : > { %2657 = vmatprep.subr.bf16.mxu1 %v3466_v53 }
 0x17d   : > { %2617 = vmatpush2.bf16.msra.mxu0 %v3461_v54 }
 0x17e   : > { %2658 = vmatpush2.bf16.msra.mxu1 %v3464_v55  ;;  %2618 = vmatprep.subr.bf16.mxu0 %v3469_v56 }
 0x17f   : > { %2659 = vmatprep.subr.bf16.mxu1 %v3472_v57 }
 0x181   : > { %2619 = vmatpush2.bf16.msra.mxu0 %v3467_v58 }
 0x182   : > { %2660 = vmatpush2.bf16.msra.mxu1 %v3470_v59  ;;  %2620 = vmatprep.subr.bf16.mxu0 %v3475_v60  ;;  %v1036_v59 = vsub.s32 2, %v1027_v13  ;;  %v1040_v60 = vsub.s32 3, %v1027_v13 }
 0x183   : > { %2661 = vmatprep.subr.bf16.mxu1 %v3478_v61 }
 0x184   : > { %v1037_v61 = vrot.slane %v1024_v3, %v1036_v59 }
 0x185   : > { %2621 = vmatpush2.bf16.msra.mxu0 %v3473_v62  ;;  %v1041_v62 = vrot.slane %v1024_v3, %v1040_v60 }
 0x186   : > { %2662 = vmatpush2.bf16.msra.mxu1 %v3476_v63  ;;  %2622 = vmatprep.subr.bf16.mxu0 %v3481_v4 }
 0x187   : > { %2663 = vmatprep.subr.bf16.mxu1 %v3484_v5 }
 0x189   : > { %2623 = vmatpush2.bf16.msra.mxu0 %v3479_v6 }
 0x18a   : > { %2664 = vmatpush2.bf16.msra.mxu1 %v3482_v7  ;;  %2624 = vmatprep.subr.bf16.mxu0 %v3487_v8 }
 0x18b   : > { %2665 = vmatprep.subr.bf16.mxu1 %v3490_v9 }
 0x18d   : > { %2625 = vmatpush2.bf16.msra.mxu0 %v3485_v14 }
 0x18e   : > { %2666 = vmatpush2.bf16.msra.mxu1 %v3488_v15  ;;  %2626 = vmatprep.subr.bf16.mxu0 %v3493_v16 }
 0x18f   : > { %2667 = vmatprep.subr.bf16.mxu1 %v3496_v17 }
 0x191   : > { %2627 = vmatpush2.bf16.msra.mxu0 %v3491_v18 }
 0x192   : > { %2668 = vmatpush2.bf16.msra.mxu1 %v3494_v19  ;;  %2628 = vmatprep.subr.bf16.mxu0 %v3499_v20 }
 0x193   : > { %2669 = vmatprep.subr.bf16.mxu1 %v3502_v21 }
 0x195   : > { %2629 = vmatpush2.bf16.msra.mxu0 %v3497_v24 }
 0x196   : > { %2670 = vmatpush2.bf16.msra.mxu1 %v3500_v25  ;;  %2630 = vmatprep.subr.bf16.mxu0 %v3505_v26 }
 0x197   : > { %2671 = vmatprep.subr.bf16.mxu1 %v3508_v27 }
 0x199   : > { %2631 = vmatpush2.bf16.msra.mxu0 %v3503_v10 }
 0x19a   : > { %2672 = vmatpush2.bf16.msra.mxu1 %v3506_v28 }
 0x19c   : > { %v2388_v11 = vpop.f32.mrf.mxu0  ;;  %2633 = vmatmul.mubr.bf16.vlgmr.msra.gmra.mxu0 %v4315_v22  ;;  %v1032_v22 = vsub.s32 1, %v1027_v13 }
 0x19d   : > { %v2429_v29 = vpop.f32.mrf.mxu1  ;;  %2674 = vmatmul.mubr.bf16.vlgmr.msra.gmra.mxu1 %v4319_v23  ;;  %v2389_v0 = vadd.f32 %v2388_v11, %v1029_v36 }
 0x19e   : > { %v2390_v30 = vpop.f32.mrf.mxu0  ;;  %v1033_v23 = vrot.slane %v1024_v3, %v1032_v22 }
 0x19f   : > { %v2431_v31 = vpop.f32.mrf.mxu1  ;;  %v2430_v37 = vadd.f32 %v2429_v29, %v2389_v0 }
 0x1a0   : > { %v2392_v32 = vpop.f32.mrf.mxu0  ;;  %v2391_v1 = vadd.f32 %v2390_v30, %v1033_v23 }
 0x1a1   : > { %v2433_v33 = vpop.f32.mrf.mxu1 }
 0x1a2   : > { %v2393_v34 = vpop.f32.mrf.mxu0  ;;  %v2432_v40 = vadd.f32 %v2431_v31, %v2391_v1 }
 0x1a3   : > { %v2434_v35 = vpop.f32.mrf.mxu1 }
 0x1dc   : > { %v2470_v38 = vpop.f32.mrf.mxu0 }
 0x1dd   : > { %v2511_v39 = vpop.f32.mrf.mxu1  ;;  %v2471_v41 = vadd.f32 %v2470_v38, %v2430_v37 }
 0x1de   : > { %v2472_v42 = vpop.f32.mrf.mxu0 }
 0x1df   : > { %v2513_v43 = vpop.f32.mrf.mxu1  ;;  %v2512_v44 = vadd.f32 %v2511_v39, %v2471_v41  ;;  %v2473_v45 = vadd.f32 %v2472_v42, %v2432_v40 }
 0x1e0   : > { %v2474_v46 = vpop.f32.mrf.mxu0 }
 0x1e1   : > { %v2515_v47 = vpop.f32.mrf.mxu1  ;;  %2682 = vst [vmem:[%s4464_s24] sm:$0xff] %v2512_v44  ;;  %v2514_v48 = vadd.f32 %v2513_v43, %v2473_v45 }
 0x1e2   : > { %v2475_v49 = vpop.f32.mrf.mxu0 }
 0x1e3   : > { %v2516_v50 = vpop.f32.mrf.mxu1  ;;  %2683 = vst [vmem:[%s4464_s24 + $0x8] sm:$0xff] %v2514_v48 }
 0x21c   : > { %v2552_v51 = vpop.f32.mrf.mxu0 }
 0x21d   : > { %v2593_v52 = vpop.f32.mrf.mxu1  ;;  %v2553_v63 = vadd.f32 %v2552_v51, %v1037_v61 }
 0x21e   : > { %v2554_v53 = vpop.f32.mrf.mxu0 }
 0x21f   : > { %v2595_v54 = vpop.f32.mrf.mxu1  ;;  %v2555_v4 = vadd.f32 %v2554_v53, %v1041_v62  ;;  %v2594_v5 = vadd.f32 %v2593_v52, %v2553_v63 }
 0x220   : > { %v2556_v55 = vpop.f32.mrf.mxu0 }
 0x221   : > { %v2597_v56 = vpop.f32.mrf.mxu1  ;;  %v2596_v8 = vadd.f32 %v2595_v54, %v2555_v4 }
 0x222   : > { %v2557_v57 = vpop.f32.mrf.mxu0 }
 0x223   : > { %v2598_v58 = vpop.f32.mrf.mxu1 }
 0x25c   : > { %v2634_v6 = vpop.f32.mrf.mxu0 }
 0x25d   : > { %v2675_v7 = vpop.f32.mrf.mxu1  ;;  %v2635_v9 = vadd.f32 %v2634_v6, %v2594_v5 }
 0x25e   : > { %v2636_v14 = vpop.f32.mrf.mxu0 }
 0x25f   : > { %v2677_v15 = vpop.f32.mrf.mxu1  ;;  %v2676_v16 = vadd.f32 %v2675_v7, %v2635_v9  ;;  %v2637_v17 = vadd.f32 %v2636_v14, %v2596_v8 }
 0x260   : > { %v2638_v18 = vpop.f32.mrf.mxu0 }
 0x261   : > { %v2679_v19 = vpop.f32.mrf.mxu1  ;;  %2684 = vst [vmem:[%s4464_s24 + $0x10] sm:$0xff] %v2676_v16  ;;  %v2678_v20 = vadd.f32 %v2677_v15, %v2637_v17 }
 0x262   : > { %v2639_v21 = vpop.f32.mrf.mxu0 }
 0x263   : > { %v2680_v24 = vpop.f32.mrf.mxu1  ;;  %2685 = vst [vmem:[%s4464_s24 + $0x18] sm:$0xff] %v2678_v20 }
 0x264 PF: > { %s13_s16 = sadd.s32 1, %s3547_s16   ;;  %s4489_s12 = smov %s3535_s13 }
 0x265   : > { %p10_p10 = scmp.ge.s32.totalorder %s13_s16, 9   ;;  %s4490_s13 = smov %s3604_s20 }
 0x266   : > { %s4491_s14 = smov %s3543_s15  ;;  %s4492_s15 = smov %s4494_s17 }
 0x267   :  { %12 = sbr.rel (!%p10_p10) target bundleno = 3 (0x3), region = 96 }

// kernel: _lambda_.17
= control target key start
LH: loop header
LB: loop body
LE: loop exit
PB: predicated region body
PF: predicated region fallthrough
CT: control target
= control target key end

     0   :  { %s1103_s12 = smov 0   ;;  %s1105_s13 = smov 0   ;;  %s1429_s0 = inlined_call_operand.vmem [shape: bf16[56,128], index: 0, kind: input, shape index: {}]   ;;  %s1430_s1 = inlined_call_operand.vmem [shape: bf16[128,2048], index: 1, kind: input, shape index: {}]   ;;  %s1431_s2 = inlined_call_operand.vmem [shape: f32[1,2048], index: 2, kind: input, shape index: {}]   ;;  %s1432_s3 = inlined_call_operand.vmem [shape: f32[56,2048], index: 3, kind: output, shape index: {}]  }
   0x1   :  { %s1107_s14 = smov 0   ;;  %s1109_s15 = smov 0  }
   0x2   :  { %s1111_s16 = smov 0  }
   0x3 LB: > { %s22_s17 = sadd.s32 1, %s1076_s15  ;;  %s895_s18 = sadd.s32 4294967295, %s1080_s16   ;;  %s1080_s16 = sphi %s1111_s16, %s13_s16   ;;  %s1076_s15 = sphi %s1109_s15, %s1437_s15   ;;  %s1072_s14 = sphi %s1107_s14, %s1436_s14   ;;  %s1068_s13 = sphi %s1105_s13, %s1435_s13   ;;  %s1064_s12 = sphi %s1103_s12, %s1434_s12  }
   0x4   : > { %p23_p0 = scmp.ge.s32.totalorder %s22_s17, 4  ;;  %p65_p1 = scmp.ne.s32.totalorder %s1068_s13, %s1064_s12 }
   0x5   : > { %p66_p2 = scmp.eq.s32.totalorder %s1080_s16, 0  ;;  %p123_p4 = scmp.eq.s32.totalorder %s895_s18, 3 }
   0x6   : > { %s1439_s17 = smov (%p23_p0, %s22_s17), 0  ;;  %s58_s20 = sadd.s32 1, %s1068_s13 }
   0x7   : > { %p67_p3 = por %p66_p2, %p65_p1  ;;  %s55_s19 = ssub.s32 %s1076_s15, %s1439_s17 }
   0x8   : > { %p56_p5 = scmp.eq.s32.totalorder %s55_s19, 0  ;;  %p1138_p6 = por %p123_p4, %p65_p1 }
   0x9   : > { %p899_p7 = scmp.ge.s32.totalorder %s1080_s16, 4 }
   0xa   : > { %s1143_s22 = scalar_select %p56_p5, %s1068_s13, %s58_s20  }
   0xb   : > { %154 = sbr.rel (%p899_p7) target bundleno = 36 (0x24), region = 20 }
  0x10   : > { %157 = sbr.rel (!%p67_p3) target bundleno = 36 (0x24), region = 24  ;;  %s159_s23 = sand.u32 (%p67_p3), 1, %s1068_s13  }
  0x11   : > { %s946_s24 = sshll.u32 (%p67_p3), %s1076_s15, 4  ;;  %s900_s25 = sshll.u32 (%p67_p3), %s159_s23, 8 }
  0x12   : > { %s1151_s28 = scalar_lea.vmem (%p67_p3), %s1430_s1, %s946_s24  ;;  %s1156_s29 = scalar_lea.vmem (%p67_p3), [#allocation2], %s900_s25 }
  0x13   : > { %v177_v0 = vld [vmem:[%s1151_s28] sm:$0xff] (%p67_p3)  ;;  %v179_v1 = vld [vmem:[%s1151_s28 + $0x8] sm:$0xff] (%p67_p3) }
  0x14   : > { %v181_v2 = vld [vmem:[%s1151_s28 + $0x40] sm:$0xff] (%p67_p3)  ;;  %178 = vst [vmem:[%s1156_s29] sm:$0xff] (%p67_p3), %v177_v0  ;;  %180 = vst [vmem:[%s1156_s29 + $0x8] sm:$0xff] (%p67_p3), %v179_v1  ;;  %v183_v3 = vld [vmem:[%s1151_s28 + $0x48] sm:$0xff] (%p67_p3) }
  0x15   : > { %182 = vst [vmem:[%s1156_s29 + $0x10] sm:$0xff] %v181_v2  ;;  %v185_v4 = vld [vmem:[%s1151_s28 + $0x80] sm:$0xff]  ;;  %v187_v5 = vld [vmem:[%s1151_s28 + $0x88] sm:$0xff]  ;;  %184 = vst [vmem:[%s1156_s29 + $0x18] sm:$0xff] %v183_v3 }
  0x16   : > { %186 = vst [vmem:[%s1156_s29 + $0x20] sm:$0xff] %v185_v4  ;;  %188 = vst [vmem:[%s1156_s29 + $0x28] sm:$0xff] %v187_v5  ;;  %v189_v6 = vld [vmem:[%s1151_s28 + $0xc0] sm:$0xff]  ;;  %v191_v7 = vld [vmem:[%s1151_s28 + $0xc8] sm:$0xff] }
  0x17   : > { %v193_v8 = vld [vmem:[%s1151_s28 + $0x100] sm:$0xff]  ;;  %190 = vst [vmem:[%s1156_s29 + $0x30] sm:$0xff] %v189_v6  ;;  %192 = vst [vmem:[%s1156_s29 + $0x38] sm:$0xff] %v191_v7  ;;  %v195_v9 = vld [vmem:[%s1151_s28 + $0x108] sm:$0xff] }
  0x18   : > { %194 = vst [vmem:[%s1156_s29 + $0x40] sm:$0xff] %v193_v8  ;;  %v197_v10 = vld [vmem:[%s1151_s28 + $0x140] sm:$0xff]  ;;  %v199_v11 = vld [vmem:[%s1151_s28 + $0x148] sm:$0xff]  ;;  %196 = vst [vmem:[%s1156_s29 + $0x48] sm:$0xff] %v195_v9 }
  0x19   : > { %198 = vst [vmem:[%s1156_s29 + $0x50] sm:$0xff] %v197_v10  ;;  %200 = vst [vmem:[%s1156_s29 + $0x58] sm:$0xff] %v199_v11  ;;  %v201_v12 = vld [vmem:[%s1151_s28 + $0x180] sm:$0xff]  ;;  %v203_v13 = vld [vmem:[%s1151_s28 + $0x188] sm:$0xff] }
  0x1a   : > { %v205_v14 = vld [vmem:[%s1151_s28 + $0x1c0] sm:$0xff]  ;;  %202 = vst [vmem:[%s1156_s29 + $0x60] sm:$0xff] %v201_v12  ;;  %204 = vst [vmem:[%s1156_s29 + $0x68] sm:$0xff] %v203_v13  ;;  %v207_v15 = vld [vmem:[%s1151_s28 + $0x1c8] sm:$0xff] }
  0x1b   : > { %206 = vst [vmem:[%s1156_s29 + $0x70] sm:$0xff] %v205_v14  ;;  %v209_v16 = vld [vmem:[%s1151_s28 + $0x200] sm:$0xff]  ;;  %v211_v17 = vld [vmem:[%s1151_s28 + $0x208] sm:$0xff]  ;;  %208 = vst [vmem:[%s1156_s29 + $0x78] sm:$0xff] %v207_v15 }
  0x1c   : > { %210 = vst [vmem:[%s1156_s29 + $0x80] sm:$0xff] %v209_v16  ;;  %212 = vst [vmem:[%s1156_s29 + $0x88] sm:$0xff] %v211_v17  ;;  %v213_v18 = vld [vmem:[%s1151_s28 + $0x240] sm:$0xff]  ;;  %v215_v19 = vld [vmem:[%s1151_s28 + $0x248] sm:$0xff] }
  0x1d   : > { %v217_v20 = vld [vmem:[%s1151_s28 + $0x280] sm:$0xff]  ;;  %214 = vst [vmem:[%s1156_s29 + $0x90] sm:$0xff] %v213_v18  ;;  %216 = vst [vmem:[%s1156_s29 + $0x98] sm:$0xff] %v215_v19  ;;  %v219_v21 = vld [vmem:[%s1151_s28 + $0x288] sm:$0xff] }
  0x1e   : > { %218 = vst [vmem:[%s1156_s29 + $0xa0] sm:$0xff] %v217_v20  ;;  %v221_v22 = vld [vmem:[%s1151_s28 + $0x2c0] sm:$0xff]  ;;  %v223_v23 = vld [vmem:[%s1151_s28 + $0x2c8] sm:$0xff]  ;;  %220 = vst [vmem:[%s1156_s29 + $0xa8] sm:$0xff] %v219_v21 }
  0x1f   : > { %222 = vst [vmem:[%s1156_s29 + $0xb0] sm:$0xff] %v221_v22  ;;  %224 = vst [vmem:[%s1156_s29 + $0xb8] sm:$0xff] %v223_v23  ;;  %v225_v24 = vld [vmem:[%s1151_s28 + $0x300] sm:$0xff]  ;;  %v227_v25 = vld [vmem:[%s1151_s28 + $0x308] sm:$0xff] }
  0x20   : > { %v229_v26 = vld [vmem:[%s1151_s28 + $0x340] sm:$0xff]  ;;  %226 = vst [vmem:[%s1156_s29 + $0xc0] sm:$0xff] %v225_v24  ;;  %228 = vst [vmem:[%s1156_s29 + $0xc8] sm:$0xff] %v227_v25  ;;  %v231_v27 = vld [vmem:[%s1151_s28 + $0x348] sm:$0xff] }
  0x21   : > { %230 = vst [vmem:[%s1156_s29 + $0xd0] sm:$0xff] %v229_v26  ;;  %v233_v28 = vld [vmem:[%s1151_s28 + $0x380] sm:$0xff]  ;;  %v235_v29 = vld [vmem:[%s1151_s28 + $0x388] sm:$0xff]  ;;  %232 = vst [vmem:[%s1156_s29 + $0xd8] sm:$0xff] %v231_v27 }
  0x22   : > { %234 = vst [vmem:[%s1156_s29 + $0xe0] sm:$0xff] %v233_v28  ;;  %236 = vst [vmem:[%s1156_s29 + $0xe8] sm:$0xff] %v235_v29  ;;  %v237_v30 = vld [vmem:[%s1151_s28 + $0x3c0] sm:$0xff]  ;;  %v239_v31 = vld [vmem:[%s1151_s28 + $0x3c8] sm:$0xff] }
  0x23   : > { %238 = vst [vmem:[%s1156_s29 + $0xf0] sm:$0xff] %v237_v30  ;;  %240 = vst [vmem:[%s1156_s29 + $0xf8] sm:$0xff] %v239_v31 }
  0x24 PF: > { %p903_p8 = scmp.ge.s32.totalorder %s1080_s16, 1  ;;  %p253_p9 = scmp.lt.s32.totalorder %s1080_s16, 5 }
  0x26   : > { %p254_p10 = pnand %p903_p8, %p253_p9 }
  0x27   : > { %s260_s30 = sand.u32 (!%p254_p10), 1, %s1064_s12   ;;  %s905_s20 = sshll.u32 (!%p254_p10), %s1072_s14, 2 }
  0x28   : > { %257 = sbr.rel (%p254_p10) target bundleno = 309 (0x135), region = 51  ;;  %s904_s4 = sshll.u32 (!%p254_p10), %s260_s30, 8 }
  0x29   : > { %s1226_s5 = scalar_lea.vmem (!%p254_p10), [#allocation2], %s904_s4  ;;  %p299_p11 = scmp.lt.s32.totalorder (!%p254_p10), %s905_s20, 15 }
  0x2a   : > { %s948_s26 = smul.u32 (!%p254_p10), 224, %s260_s30 }
  0x2c   : > { %s1294_s27 = scalar_lea.vmem (!%p254_p10), [#allocation3], %s948_s26 }
  0x2d   : > { %v1082_v32 = vmov 0   ;;  %v990_v33 = vld [vmem:[%s1226_s5 + $0xe4] ss:$16 sps:$4 sm:$0xff]   ;;  %v992_v34 = vld [vmem:[%s1226_s5 + $0xec] ss:$16 sps:$4 sm:$0xff]   ;;  %v347_v5 = vlaneseq  ;;  %s1441_s20 = smov (!%p299_p11, %s905_s20), 15 }
  0x2e   : > { %581 = vmatprep.mubr.bf16.mxu0 %v1082_v32  ;;  %652 = vmatprep.mubr.bf16.mxu1 %v1082_v32  ;;  %v994_v35 = vld [vmem:[%s1226_s5 + $0xe0] ss:$16 sps:$4 sm:$0xff]   ;;  %v995_v36 = vld [vmem:[%s1226_s5 + $0xe8] ss:$16 sps:$4 sm:$0xff]   ;;  %v996_v37 = vld [vmem:[%s1226_s5 + $0xc4] ss:$16 sps:$4 sm:$0xff]   ;;  %s301_s25 = scalar_lea.vmem %s1431_s2, %s1441_s20 }
  0x2f   : > { %549 = vmatprep.subr.bf16.mxu0 %v990_v33  ;;  %620 = vmatprep.subr.bf16.mxu1 %v992_v34  ;;  %v998_v38 = vld [vmem:[%s1226_s5 + $0xcc] ss:$16 sps:$4 sm:$0xff]   ;;  %v1000_v39 = vld [vmem:[%s1226_s5 + $0xc0] ss:$16 sps:$4 sm:$0xff]   ;;  %v1001_v40 = vld [vmem:[%s1226_s5 + $0xc8] ss:$16 sps:$4 sm:$0xff]  }
  0x30   : > { %550 = vmatpush1.bf16.msra.mxu0 %v994_v35  ;;  %621 = vmatpush1.bf16.msra.mxu1 %v995_v36  ;;  %v1002_v41 = vld [vmem:[%s1226_s5 + $0xa4] ss:$16 sps:$4 sm:$0xff]   ;;  %v1004_v42 = vld [vmem:[%s1226_s5 + $0xac] ss:$16 sps:$4 sm:$0xff]   ;;  %v1006_v43 = vld [vmem:[%s1226_s5 + $0xa0] ss:$16 sps:$4 sm:$0xff]  }
  0x31   : > { %551 = vmatprep.subr.bf16.mxu0 %v996_v37  ;;  %622 = vmatprep.subr.bf16.mxu1 %v998_v38  ;;  %v1007_v44 = vld [vmem:[%s1226_s5 + $0xa8] ss:$16 sps:$4 sm:$0xff]   ;;  %v1008_v45 = vld [vmem:[%s1226_s5 + $0x84] ss:$16 sps:$4 sm:$0xff]   ;;  %v1010_v46 = vld [vmem:[%s1226_s5 + $0x8c] ss:$16 sps:$4 sm:$0xff]  }
  0x32   : > { %v1012_v47 = vld [vmem:[%s1226_s5 + $0x80] ss:$16 sps:$4 sm:$0xff]   ;;  %v1013_v48 = vld [vmem:[%s1226_s5 + $0x88] ss:$16 sps:$4 sm:$0xff]   ;;  %v1014_v49 = vld [vmem:[%s1226_s5 + $0x64] ss:$16 sps:$4 sm:$0xff]  }
  0x33   : > { %v1016_v50 = vld [vmem:[%s1226_s5 + $0x6c] ss:$16 sps:$4 sm:$0xff]   ;;  %v1018_v51 = vld [vmem:[%s1226_s5 + $0x60] ss:$16 sps:$4 sm:$0xff]   ;;  %v1019_v52 = vld [vmem:[%s1226_s5 + $0x68] ss:$16 sps:$4 sm:$0xff]  }
  0x34   : > { %552 = vmatpush1.bf16.msra.mxu0 %v1000_v39  ;;  %623 = vmatpush1.bf16.msra.mxu1 %v1001_v40  ;;  %v1020_v53 = vld [vmem:[%s1226_s5 + $0x44] ss:$16 sps:$4 sm:$0xff]   ;;  %v1022_v54 = vld [vmem:[%s1226_s5 + $0x4c] ss:$16 sps:$4 sm:$0xff]   ;;  %v1024_v55 = vld [vmem:[%s1226_s5 + $0x40] ss:$16 sps:$4 sm:$0xff]  }
  0x35   : > { %553 = vmatprep.subr.bf16.mxu0 %v1002_v41  ;;  %624 = vmatprep.subr.bf16.mxu1 %v1004_v42  ;;  %v1025_v56 = vld [vmem:[%s1226_s5 + $0x48] ss:$16 sps:$4 sm:$0xff]   ;;  %v1026_v57 = vld [vmem:[%s1226_s5 + $0x24] ss:$16 sps:$4 sm:$0xff]   ;;  %v1028_v58 = vld [vmem:[%s1226_s5 + $0x2c] ss:$16 sps:$4 sm:$0xff]  }
  0x36   : > { %v1030_v59 = vld [vmem:[%s1226_s5 + $0x20] ss:$16 sps:$4 sm:$0xff]   ;;  %v1031_v60 = vld [vmem:[%s1226_s5 + $0x28] ss:$16 sps:$4 sm:$0xff]   ;;  %v1032_v61 = vld [vmem:[%s1226_s5 + $0x4] ss:$16 sps:$4 sm:$0xff]  }
  0x37   : > { %v1034_v62 = vld [vmem:[%s1226_s5 + $0xc] ss:$16 sps:$4 sm:$0xff]   ;;  %v1036_v63 = vld [vmem:[%s1226_s5] ss:$16 sps:$4 sm:$0xff]   ;;  %v1037_v0 = vld [vmem:[%s1226_s5 + $0x8] ss:$16 sps:$4 sm:$0xff]  }
  0x38   : > { %554 = vmatpush1.bf16.msra.mxu0 %v1006_v43  ;;  %625 = vmatpush1.bf16.msra.mxu1 %v1007_v44  ;;  %v1038_v1 = vld [vmem:[%s1429_s0] sm:$0xff]   ;;  %v1039_v2 = vld [vmem:[%s1429_s0 + $0x8] sm:$0xff]   ;;  %v1040_v3 = vld [vmem:[%s1429_s0 + $0x10] sm:$0xff]   ;;  %v348_v6 = vshrl.u32 %v347_v5, 7  ;;  %s947_s12 = sshll.u32 (%p1138_p6), %s1072_s14, 5 }
  0x39   : > { %555 = vmatprep.subr.bf16.mxu0 %v1008_v45  ;;  %626 = vmatprep.subr.bf16.mxu1 %v1010_v46  ;;  %v1041_v4 = vld [vmem:[%s1429_s0 + $0x18] ss:$0 sps:$4 sm:$0xff]   ;;  %v345_v9 = vld [vmem:[%s301_s25] sm:$0xf]  ;;  %s1359_s30 = scalar_lea.vmem (%p1138_p6), %s1432_s3, %s947_s12 }
  0x3a   : > { %v349_v7 = vsub.s32 0, %v348_v6  ;;  %v357_v8 = vsub.s32 2, %v348_v6  ;;  %v353_v10 = vsub.s32 1, %v348_v6  ;;  %v361_v11 = vsub.s32 3, %v348_v6 }
  0x3c   : > { %556 = vmatpush1.bf16.msra.mxu0 %v1012_v47  ;;  %627 = vmatpush1.bf16.msra.mxu1 %v1013_v48  ;;  %v1284_v12 = vrot.slane %v345_v9, %v349_v7  ;;  %v1286_v13 = vrot.slane %v345_v9, %v357_v8  ;;  %v1288_v14 = vrot.slane %v345_v9, %v353_v10 }
  0x3d   : > { %557 = vmatprep.subr.bf16.mxu0 %v1014_v49  ;;  %628 = vmatprep.subr.bf16.mxu1 %v1016_v50  ;;  %v1290_v15 = vrot.slane %v345_v9, %v361_v11 }
  0x40   : > { %558 = vmatpush1.bf16.msra.mxu0 %v1018_v51  ;;  %629 = vmatpush1.bf16.msra.mxu1 %v1019_v52 }
  0x41   : > { %559 = vmatprep.subr.bf16.mxu0 %v1020_v53  ;;  %630 = vmatprep.subr.bf16.mxu1 %v1022_v54 }
  0x44   : > { %560 = vmatpush1.bf16.msra.mxu0 %v1024_v55  ;;  %631 = vmatpush1.bf16.msra.mxu1 %v1025_v56 }
  0x45   : > { %561 = vmatprep.subr.bf16.mxu0 %v1026_v57  ;;  %632 = vmatprep.subr.bf16.mxu1 %v1028_v58 }
  0x48   : > { %562 = vmatpush1.bf16.msra.mxu0 %v1030_v59  ;;  %633 = vmatpush1.bf16.msra.mxu1 %v1031_v60 }
  0x49   : > { %563 = vmatprep.subr.bf16.mxu0 %v1032_v61  ;;  %634 = vmatprep.subr.bf16.mxu1 %v1034_v62 }
  0x4c   : > { %564 = vmatpush1.bf16.msra.mxu0 %v1036_v63  ;;  %635 = vmatpush1.bf16.msra.mxu1 %v1037_v0 }
  0x4f   : > { %582 = vmatmul.mubr.bf16.vlgmr.msra.gmra.mxu0 %v1038_v1  ;;  %653 = vmatmul.mubr.bf16.vlgmr.msra.gmra.mxu1 %v1038_v1 }
  0x50   : > { %591 = vmatprep.mubr.bf16.mxu0 %v1082_v32  ;;  %662 = vmatprep.mubr.bf16.mxu1 %v1082_v32 }
  0x57   : > { %592 = vmatmul.mubr.bf16.gmra.mxu0 %v1039_v2  ;;  %663 = vmatmul.mubr.bf16.gmra.mxu1 %v1039_v2 }
  0x58   : > { %601 = vmatprep.mubr.bf16.mxu0 %v1082_v32  ;;  %672 = vmatprep.mubr.bf16.mxu1 %v1082_v32 }
  0x5f   : > { %602 = vmatmul.mubr.bf16.gmra.mxu0 %v1040_v3  ;;  %673 = vmatmul.mubr.bf16.gmra.mxu1 %v1040_v3 }
  0x60   : > { %611 = vmatprep.mubr.bf16.mxu0 %v1082_v32  ;;  %682 = vmatprep.mubr.bf16.mxu1 %v1082_v32 }
  0x67   : > { %612 = vmatmul.mubr.bf16.gmra.mxu0 %v1041_v4  ;;  %683 = vmatmul.mubr.bf16.gmra.mxu1 %v1041_v4 }
 0x10f   : > { %v583_v16 = vpop.f32.mrf.mxu0  ;;  %v654_v17 = vpop.f32.mrf.mxu1 }
 0x110   : > { %v584_v18 = vadd.f32 %v583_v16, %v1284_v12  ;;  %v655_v19 = vadd.f32 %v654_v17, %v1286_v13 }
 0x111   : > { %v585_v20 = vpop.f32.mrf.mxu0  ;;  %v656_v21 = vpop.f32.mrf.mxu1 }
 0x112   : > { %691 = vst [vmem:[%s1294_s27] sm:$0xff] %v584_v18  ;;  %693 = vst [vmem:[%s1294_s27 + $0x10] sm:$0xff] %v655_v19  ;;  %v586_v22 = vadd.f32 %v585_v20, %v1288_v14  ;;  %v657_v23 = vadd.f32 %v656_v21, %v1290_v15 }
 0x113   : > { %v587_v24 = vpop.f32.mrf.mxu0  ;;  %v658_v25 = vpop.f32.mrf.mxu1 }
 0x114   : > { %692 = vst [vmem:[%s1294_s27 + $0x8] sm:$0xff] %v586_v22  ;;  %694 = vst [vmem:[%s1294_s27 + $0x18] sm:$0xff] %v657_v23  ;;  %v588_v26 = vadd.f32 %v587_v24, %v1284_v12  ;;  %v659_v27 = vadd.f32 %v658_v25, %v1286_v13 }
 0x115   : > { %v589_v28 = vpop.f32.mrf.mxu0  ;;  %v660_v29 = vpop.f32.mrf.mxu1 }
 0x116   : > { %695 = vst [vmem:[%s1294_s27 + $0x20] sm:$0xff] %v588_v26  ;;  %697 = vst [vmem:[%s1294_s27 + $0x30] sm:$0xff] %v659_v27  ;;  %v590_v30 = vadd.f32 %v589_v28, %v1288_v14  ;;  %v661_v31 = vadd.f32 %v660_v29, %v1290_v15 }
 0x117   : > { %v593_v32 = vpop.f32.mrf.mxu0  ;;  %v664_v33 = vpop.f32.mrf.mxu1 }
 0x118   : > { %696 = vst [vmem:[%s1294_s27 + $0x28] sm:$0xff] %v590_v30  ;;  %698 = vst [vmem:[%s1294_s27 + $0x38] sm:$0xff] %v661_v31  ;;  %v594_v34 = vadd.f32 %v593_v32, %v1284_v12  ;;  %v665_v35 = vadd.f32 %v664_v33, %v1286_v13 }
 0x119   : > { %v595_v36 = vpop.f32.mrf.mxu0  ;;  %v666_v37 = vpop.f32.mrf.mxu1 }
 0x11a   : > { %699 = vst [vmem:[%s1294_s27 + $0x40] sm:$0xff] %v594_v34  ;;  %701 = vst [vmem:[%s1294_s27 + $0x50] sm:$0xff] %v665_v35  ;;  %v596_v38 = vadd.f32 %v595_v36, %v1288_v14  ;;  %v667_v39 = vadd.f32 %v666_v37, %v1290_v15 }
 0x11b   : > { %v597_v40 = vpop.f32.mrf.mxu0  ;;  %v668_v41 = vpop.f32.mrf.mxu1 }
 0x11c   : > { %700 = vst [vmem:[%s1294_s27 + $0x48] sm:$0xff] %v596_v38  ;;  %702 = vst [vmem:[%s1294_s27 + $0x58] sm:$0xff] %v667_v39  ;;  %v598_v42 = vadd.f32 %v597_v40, %v1284_v12  ;;  %v669_v43 = vadd.f32 %v668_v41, %v1286_v13 }
 0x11d   : > { %v599_v44 = vpop.f32.mrf.mxu0  ;;  %v670_v45 = vpop.f32.mrf.mxu1  ;;  %v752_v16 = vld [vmem:[%s1294_s27 + $0x20] sm:$0xff] (%p1138_p6)  ;;  %v756_v18 = vld [vmem:[%s1294_s27 + $0x30] sm:$0xff] (%p1138_p6) }
 0x11e   : > { %703 = vst [vmem:[%s1294_s27 + $0x60] sm:$0xff] %v598_v42  ;;  %705 = vst [vmem:[%s1294_s27 + $0x70] sm:$0xff] %v669_v43  ;;  %v600_v46 = vadd.f32 %v599_v44, %v1288_v14  ;;  %v671_v47 = vadd.f32 %v670_v45, %v1290_v15 }
 0x11f   : > { %v603_v48 = vpop.f32.mrf.mxu0  ;;  %v674_v49 = vpop.f32.mrf.mxu1  ;;  %v754_v17 = vld [vmem:[%s1294_s27 + $0x28] sm:$0xff] (%p1138_p6)  ;;  %753 = vst [vmem:[%s1359_s30 + $0x80] sm:$0xff] (%p1138_p6), %v752_v16  ;;  %v758_v19 = vld [vmem:[%s1294_s27 + $0x38] sm:$0xff] (%p1138_p6)  ;;  %757 = vst [vmem:[%s1359_s30 + $0x90] sm:$0xff] (%p1138_p6), %v756_v18 }
 0x120   : > { %704 = vst [vmem:[%s1294_s27 + $0x68] sm:$0xff] %v600_v46  ;;  %706 = vst [vmem:[%s1294_s27 + $0x78] sm:$0xff] %v671_v47  ;;  %v604_v50 = vadd.f32 %v603_v48, %v1284_v12  ;;  %v675_v51 = vadd.f32 %v674_v49, %v1286_v13 }
 0x121   : > { %v605_v52 = vpop.f32.mrf.mxu0  ;;  %v676_v53 = vpop.f32.mrf.mxu1  ;;  %755 = vst [vmem:[%s1359_s30 + $0x88] sm:$0xff] (%p1138_p6), %v754_v17  ;;  %v760_v20 = vld [vmem:[%s1294_s27 + $0x40] sm:$0xff] (%p1138_p6)  ;;  %759 = vst [vmem:[%s1359_s30 + $0x98] sm:$0xff] (%p1138_p6), %v758_v19  ;;  %v764_v22 = vld [vmem:[%s1294_s27 + $0x50] sm:$0xff] (%p1138_p6) }
 0x122   : > { %707 = vst [vmem:[%s1294_s27 + $0x80] sm:$0xff] %v604_v50  ;;  %709 = vst [vmem:[%s1294_s27 + $0x90] sm:$0xff] %v675_v51  ;;  %v606_v54 = vadd.f32 %v605_v52, %v1288_v14  ;;  %v677_v55 = vadd.f32 %v676_v53, %v1290_v15 }
 0x123   : > { %v607_v56 = vpop.f32.mrf.mxu0  ;;  %v678_v57 = vpop.f32.mrf.mxu1  ;;  %761 = vst [vmem:[%s1359_s30 + $0x100] sm:$0xff] (%p1138_p6), %v760_v20  ;;  %v762_v21 = vld [vmem:[%s1294_s27 + $0x48] sm:$0xff] (%p1138_p6)  ;;  %v766_v23 = vld [vmem:[%s1294_s27 + $0x58] sm:$0xff] (%p1138_p6)  ;;  %765 = vst [vmem:[%s1359_s30 + $0x110] sm:$0xff] (%p1138_p6), %v764_v22 }
 0x124   : > { %708 = vst [vmem:[%s1294_s27 + $0x88] sm:$0xff] %v606_v54  ;;  %710 = vst [vmem:[%s1294_s27 + $0x98] sm:$0xff] %v677_v55  ;;  %v608_v58 = vadd.f32 %v607_v56, %v1284_v12  ;;  %v679_v59 = vadd.f32 %v678_v57, %v1286_v13 }
 0x125   : > { %v609_v60 = vpop.f32.mrf.mxu0  ;;  %v680_v61 = vpop.f32.mrf.mxu1  ;;  %763 = vst [vmem:[%s1359_s30 + $0x108] sm:$0xff] (%p1138_p6), %v762_v21  ;;  %767 = vst [vmem:[%s1359_s30 + $0x118] sm:$0xff] (%p1138_p6), %v766_v23  ;;  %v768_v24 = vld [vmem:[%s1294_s27 + $0x60] sm:$0xff] (%p1138_p6)  ;;  %v772_v26 = vld [vmem:[%s1294_s27 + $0x70] sm:$0xff] (%p1138_p6) }
 0x126   : > { %711 = vst [vmem:[%s1294_s27 + $0xa0] sm:$0xff] %v608_v58  ;;  %713 = vst [vmem:[%s1294_s27 + $0xb0] sm:$0xff] %v679_v59  ;;  %v610_v62 = vadd.f32 %v609_v60, %v1288_v14  ;;  %v681_v63 = vadd.f32 %v680_v61, %v1290_v15 }
 0x127   : > { %v613_v0 = vpop.f32.mrf.mxu0  ;;  %v684_v1 = vpop.f32.mrf.mxu1  ;;  %v770_v25 = vld [vmem:[%s1294_s27 + $0x68] sm:$0xff] (%p1138_p6)  ;;  %769 = vst [vmem:[%s1359_s30 + $0x180] sm:$0xff] (%p1138_p6), %v768_v24  ;;  %773 = vst [vmem:[%s1359_s30 + $0x190] sm:$0xff] (%p1138_p6), %v772_v26  ;;  %v774_v27 = vld [vmem:[%s1294_s27 + $0x78] sm:$0xff] (%p1138_p6) }
 0x128   : > { %712 = vst [vmem:[%s1294_s27 + $0xa8] sm:$0xff] %v610_v62  ;;  %714 = vst [vmem:[%s1294_s27 + $0xb8] sm:$0xff] %v681_v63  ;;  %v614_v2 = vadd.f32 %v613_v0, %v1284_v12  ;;  %v685_v3 = vadd.f32 %v684_v1, %v1286_v13  ;;  %v744_v12 = vld [vmem:[%s1294_s27] sm:$0xff] (%p1138_p6)  ;;  %v746_v13 = vld [vmem:[%s1294_s27 + $0x8] sm:$0xff] (%p1138_p6) }
 0x129   : > { %v615_v4 = vpop.f32.mrf.mxu0  ;;  %v686_v5 = vpop.f32.mrf.mxu1  ;;  %725 = sbr.rel (!%p1138_p6) target bundleno = 309 (0x135), region = 59  ;;  %745 = vst [vmem:[%s1359_s30] sm:$0xff] (%p1138_p6), %v744_v12  ;;  %747 = vst [vmem:[%s1359_s30 + $0x8] sm:$0xff] (%p1138_p6), %v746_v13  ;;  %v776_v28 = vld [vmem:[%s1294_s27 + $0x80] sm:$0xff] (%p1138_p6)  ;;  %v780_v30 = vld [vmem:[%s1294_s27 + $0x90] sm:$0xff] (%p1138_p6) }
 0x12a   : > { %715 = vst [vmem:[%s1294_s27 + $0xc0] sm:$0xff] %v614_v2  ;;  %717 = vst [vmem:[%s1294_s27 + $0xd0] sm:$0xff] %v685_v3  ;;  %v616_v6 = vadd.f32 %v615_v4, %v1288_v14  ;;  %v687_v7 = vadd.f32 %v686_v5, %v1290_v15  ;;  %v748_v14 = vld [vmem:[%s1294_s27 + $0x10] sm:$0xff] (%p1138_p6)  ;;  %v750_v15 = vld [vmem:[%s1294_s27 + $0x18] sm:$0xff] (%p1138_p6) }
 0x12b   : > { %v617_v8 = vpop.f32.mrf.mxu0  ;;  %v688_v9 = vpop.f32.mrf.mxu1  ;;  %749 = vst [vmem:[%s1359_s30 + $0x10] sm:$0xff] (%p1138_p6), %v748_v14  ;;  %751 = vst [vmem:[%s1359_s30 + $0x18] sm:$0xff] (%p1138_p6), %v750_v15  ;;  %v778_v29 = vld [vmem:[%s1294_s27 + $0x88] sm:$0xff] (%p1138_p6)  ;;  %v782_v31 = vld [vmem:[%s1294_s27 + $0x98] sm:$0xff] (%p1138_p6) }
 0x12c   : > { %716 = vst [vmem:[%s1294_s27 + $0xc8] sm:$0xff] %v616_v6  ;;  %718 = vst [vmem:[%s1294_s27 + $0xd8] sm:$0xff] %v687_v7 }
 0x12d   : > { %v618_v10 = vpop.f32.mrf.mxu0  ;;  %v689_v11 = vpop.f32.mrf.mxu1  ;;  %771 = vst [vmem:[%s1359_s30 + $0x188] sm:$0xff] (%p1138_p6), %v770_v25  ;;  %775 = vst [vmem:[%s1359_s30 + $0x198] sm:$0xff] (%p1138_p6), %v774_v27  ;;  %v784_v32 = vld [vmem:[%s1294_s27 + $0xa0] sm:$0xff] (%p1138_p6)  ;;  %v788_v34 = vld [vmem:[%s1294_s27 + $0xb0] sm:$0xff] (%p1138_p6) }
 0x12e   : > { %777 = vst [vmem:[%s1359_s30 + $0x200] sm:$0xff] %v776_v28  ;;  %779 = vst [vmem:[%s1359_s30 + $0x208] sm:$0xff] %v778_v29 }
 0x12f   : > { %781 = vst [vmem:[%s1359_s30 + $0x210] sm:$0xff] %v780_v30  ;;  %783 = vst [vmem:[%s1359_s30 + $0x218] sm:$0xff] %v782_v31  ;;  %v786_v33 = vld [vmem:[%s1294_s27 + $0xa8] sm:$0xff]  ;;  %v790_v35 = vld [vmem:[%s1294_s27 + $0xb8] sm:$0xff] }
 0x130   : > { %785 = vst [vmem:[%s1359_s30 + $0x280] sm:$0xff] %v784_v32  ;;  %787 = vst [vmem:[%s1359_s30 + $0x288] sm:$0xff] %v786_v33 }
 0x131   : > { %789 = vst [vmem:[%s1359_s30 + $0x290] sm:$0xff] %v788_v34  ;;  %791 = vst [vmem:[%s1359_s30 + $0x298] sm:$0xff] %v790_v35  ;;  %v792_v36 = vld [vmem:[%s1294_s27 + $0xc0] sm:$0xff]  ;;  %v796_v38 = vld [vmem:[%s1294_s27 + $0xd0] sm:$0xff] }
 0x132   : > { %793 = vst [vmem:[%s1359_s30 + $0x300] sm:$0xff] %v792_v36  ;;  %797 = vst [vmem:[%s1359_s30 + $0x310] sm:$0xff] %v796_v38 }
 0x133   : > { %v794_v37 = vld [vmem:[%s1294_s27 + $0xc8] sm:$0xff]  ;;  %v798_v39 = vld [vmem:[%s1294_s27 + $0xd8] sm:$0xff] }
 0x134   : > { %795 = vst [vmem:[%s1359_s30 + $0x308] sm:$0xff] %v794_v37  ;;  %799 = vst [vmem:[%s1359_s30 + $0x318] sm:$0xff] %v798_v39 }
 0x135 PF: > { %s13_s16 = sadd.s32 1, %s1080_s16   ;;  %s1434_s12 = smov %s1068_s13 }
 0x136   : > { %p10_p12 = scmp.ge.s32.totalorder %s13_s16, 6   ;;  %s1435_s13 = smov %s1143_s22 }
 0x137   : > { %s1436_s14 = smov %s1076_s15  ;;  %s1437_s15 = smov %s1439_s17 }
 0x138   :  { %12 = sbr.rel (!%p10_p12) target bundleno = 3 (0x3), region = 119 }

// kernel: _lambda_.18
= control target key start
LH: loop header
LB: loop body
LE: loop exit
PB: predicated region body
PF: predicated region fallthrough
CT: control target
= control target key end

     0   :  { %s2075_s12 = smov 0   ;;  %s2077_s13 = smov 0   ;;  %s3067_s0 = inlined_call_operand.vmem [shape: bf16[344,128], index: 0, kind: input, shape index: {}]   ;;  %s3068_s1 = inlined_call_operand.vmem [shape: bf16[128,1536], index: 1, kind: input, shape index: {}]   ;;  %s3069_s2 = inlined_call_operand.vmem [shape: f32[1,1536], index: 2, kind: input, shape index: {}]   ;;  %s3070_s3 = inlined_call_operand.vmem [shape: f32[344,1536], index: 3, kind: output, shape index: {}]  }
   0x1   :  { %s2079_s14 = smov 0   ;;  %s2081_s15 = smov 0  }
   0x2   :  { %s2083_s16 = smov 0  }
   0x3 LB: > { %s22_s17 = sadd.s32 1, %s2048_s15  ;;  %s1831_s18 = sadd.s32 4294967295, %s2052_s16   ;;  %s2052_s16 = sphi %s2083_s16, %s13_s16   ;;  %s2048_s15 = sphi %s2081_s15, %s3075_s15   ;;  %s2044_s14 = sphi %s2079_s14, %s3074_s14   ;;  %s2040_s13 = sphi %s2077_s13, %s3073_s13   ;;  %s2036_s12 = sphi %s2075_s12, %s3072_s12  }
   0x4   : > { %p23_p0 = scmp.ge.s32.totalorder %s22_s17, 3  ;;  %p65_p1 = scmp.ne.s32.totalorder %s2040_s13, %s2036_s12 }
   0x5   : > { %p66_p2 = scmp.eq.s32.totalorder %s2052_s16, 0  ;;  %p123_p4 = scmp.eq.s32.totalorder %s1831_s18, 2 }
   0x6   : > { %s3077_s17 = smov (%p23_p0, %s22_s17), 0  ;;  %s58_s20 = sadd.s32 1, %s2040_s13 }
   0x7   : > { %p67_p3 = por %p66_p2, %p65_p1  ;;  %s55_s19 = ssub.s32 %s2048_s15, %s3077_s17 }
   0x8   : > { %p56_p5 = scmp.eq.s32.totalorder %s55_s19, 0  ;;  %p2110_p6 = por %p123_p4, %p65_p1 }
   0x9   : > { %p1835_p7 = scmp.ge.s32.totalorder %s2052_s16, 3 }
   0xa   : > { %s2115_s22 = scalar_select %p56_p5, %s2040_s13, %s58_s20  }
   0xb   : > { %154 = sbr.rel (%p1835_p7) target bundleno = 36 (0x24), region = 20 }
  0x10   : > { %157 = sbr.rel (!%p67_p3) target bundleno = 36 (0x24), region = 24  ;;  %s159_s23 = sand.u32 (%p67_p3), 1, %s2040_s13  }
  0x11   : > { %s1900_s24 = sshll.u32 (%p67_p3), %s2048_s15, 4  ;;  %s1836_s25 = sshll.u32 (%p67_p3), %s159_s23, 8 }
  0x12   : > { %s2123_s28 = scalar_lea.vmem (%p67_p3), %s3068_s1, %s1900_s24  ;;  %s2128_s29 = scalar_lea.vmem (%p67_p3), [#allocation2], %s1836_s25 }
  0x13   : > { %v177_v0 = vld [vmem:[%s2123_s28] sm:$0xff] (%p67_p3)  ;;  %v179_v1 = vld [vmem:[%s2123_s28 + $0x8] sm:$0xff] (%p67_p3)  ;;  %v181_v2 = vld [vmem:[%s2123_s28 + $0x30] sm:$0xff] (%p67_p3) }
  0x14   : > { %178 = vst [vmem:[%s2128_s29] sm:$0xff] (%p67_p3), %v177_v0  ;;  %180 = vst [vmem:[%s2128_s29 + $0x8] sm:$0xff] (%p67_p3), %v179_v1  ;;  %v183_v3 = vld [vmem:[%s2123_s28 + $0x38] sm:$0xff] (%p67_p3)  ;;  %v185_v4 = vld [vmem:[%s2123_s28 + $0x60] sm:$0xff] (%p67_p3) }
  0x15   : > { %182 = vst [vmem:[%s2128_s29 + $0x10] sm:$0xff] %v181_v2  ;;  %v187_v5 = vld [vmem:[%s2123_s28 + $0x68] sm:$0xff]  ;;  %184 = vst [vmem:[%s2128_s29 + $0x18] sm:$0xff] %v183_v3  ;;  %v189_v6 = vld [vmem:[%s2123_s28 + $0x90] sm:$0xff] }
  0x16   : > { %186 = vst [vmem:[%s2128_s29 + $0x20] sm:$0xff] %v185_v4  ;;  %188 = vst [vmem:[%s2128_s29 + $0x28] sm:$0xff] %v187_v5  ;;  %v191_v7 = vld [vmem:[%s2123_s28 + $0x98] sm:$0xff]  ;;  %v193_v8 = vld [vmem:[%s2123_s28 + $0xc0] sm:$0xff] }
  0x17   : > { %190 = vst [vmem:[%s2128_s29 + $0x30] sm:$0xff] %v189_v6  ;;  %192 = vst [vmem:[%s2128_s29 + $0x38] sm:$0xff] %v191_v7  ;;  %v195_v9 = vld [vmem:[%s2123_s28 + $0xc8] sm:$0xff]  ;;  %v197_v10 = vld [vmem:[%s2123_s28 + $0xf0] sm:$0xff] }
  0x18   : > { %194 = vst [vmem:[%s2128_s29 + $0x40] sm:$0xff] %v193_v8  ;;  %v199_v11 = vld [vmem:[%s2123_s28 + $0xf8] sm:$0xff]  ;;  %196 = vst [vmem:[%s2128_s29 + $0x48] sm:$0xff] %v195_v9  ;;  %v201_v12 = vld [vmem:[%s2123_s28 + $0x120] sm:$0xff] }
  0x19   : > { %198 = vst [vmem:[%s2128_s29 + $0x50] sm:$0xff] %v197_v10  ;;  %200 = vst [vmem:[%s2128_s29 + $0x58] sm:$0xff] %v199_v11  ;;  %v203_v13 = vld [vmem:[%s2123_s28 + $0x128] sm:$0xff]  ;;  %v205_v14 = vld [vmem:[%s2123_s28 + $0x150] sm:$0xff] }
  0x1a   : > { %202 = vst [vmem:[%s2128_s29 + $0x60] sm:$0xff] %v201_v12  ;;  %204 = vst [vmem:[%s2128_s29 + $0x68] sm:$0xff] %v203_v13  ;;  %v207_v15 = vld [vmem:[%s2123_s28 + $0x158] sm:$0xff]  ;;  %v209_v16 = vld [vmem:[%s2123_s28 + $0x180] sm:$0xff] }
  0x1b   : > { %206 = vst [vmem:[%s2128_s29 + $0x70] sm:$0xff] %v205_v14  ;;  %v211_v17 = vld [vmem:[%s2123_s28 + $0x188] sm:$0xff]  ;;  %208 = vst [vmem:[%s2128_s29 + $0x78] sm:$0xff] %v207_v15  ;;  %v213_v18 = vld [vmem:[%s2123_s28 + $0x1b0] sm:$0xff] }
  0x1c   : > { %210 = vst [vmem:[%s2128_s29 + $0x80] sm:$0xff] %v209_v16  ;;  %212 = vst [vmem:[%s2128_s29 + $0x88] sm:$0xff] %v211_v17  ;;  %v215_v19 = vld [vmem:[%s2123_s28 + $0x1b8] sm:$0xff]  ;;  %v217_v20 = vld [vmem:[%s2123_s28 + $0x1e0] sm:$0xff] }
  0x1d   : > { %214 = vst [vmem:[%s2128_s29 + $0x90] sm:$0xff] %v213_v18  ;;  %216 = vst [vmem:[%s2128_s29 + $0x98] sm:$0xff] %v215_v19  ;;  %v219_v21 = vld [vmem:[%s2123_s28 + $0x1e8] sm:$0xff]  ;;  %v221_v22 = vld [vmem:[%s2123_s28 + $0x210] sm:$0xff] }
  0x1e   : > { %218 = vst [vmem:[%s2128_s29 + $0xa0] sm:$0xff] %v217_v20  ;;  %v223_v23 = vld [vmem:[%s2123_s28 + $0x218] sm:$0xff]  ;;  %220 = vst [vmem:[%s2128_s29 + $0xa8] sm:$0xff] %v219_v21  ;;  %v225_v24 = vld [vmem:[%s2123_s28 + $0x240] sm:$0xff] }
  0x1f   : > { %222 = vst [vmem:[%s2128_s29 + $0xb0] sm:$0xff] %v221_v22  ;;  %224 = vst [vmem:[%s2128_s29 + $0xb8] sm:$0xff] %v223_v23  ;;  %v227_v25 = vld [vmem:[%s2123_s28 + $0x248] sm:$0xff]  ;;  %v229_v26 = vld [vmem:[%s2123_s28 + $0x270] sm:$0xff] }
  0x20   : > { %226 = vst [vmem:[%s2128_s29 + $0xc0] sm:$0xff] %v225_v24  ;;  %228 = vst [vmem:[%s2128_s29 + $0xc8] sm:$0xff] %v227_v25  ;;  %v231_v27 = vld [vmem:[%s2123_s28 + $0x278] sm:$0xff]  ;;  %v233_v28 = vld [vmem:[%s2123_s28 + $0x2a0] sm:$0xff] }
  0x21   : > { %230 = vst [vmem:[%s2128_s29 + $0xd0] sm:$0xff] %v229_v26  ;;  %v235_v29 = vld [vmem:[%s2123_s28 + $0x2a8] sm:$0xff]  ;;  %232 = vst [vmem:[%s2128_s29 + $0xd8] sm:$0xff] %v231_v27  ;;  %v237_v30 = vld [vmem:[%s2123_s28 + $0x2d0] sm:$0xff] }
  0x22   : > { %234 = vst [vmem:[%s2128_s29 + $0xe0] sm:$0xff] %v233_v28  ;;  %236 = vst [vmem:[%s2128_s29 + $0xe8] sm:$0xff] %v235_v29  ;;  %v239_v31 = vld [vmem:[%s2123_s28 + $0x2d8] sm:$0xff] }
  0x23   : > { %238 = vst [vmem:[%s2128_s29 + $0xf0] sm:$0xff] %v237_v30  ;;  %240 = vst [vmem:[%s2128_s29 + $0xf8] sm:$0xff] %v239_v31 }
  0x24 PF: > { %p1839_p8 = scmp.ge.s32.totalorder %s2052_s16, 1  ;;  %p253_p9 = scmp.lt.s32.totalorder %s2052_s16, 4 }
  0x26   : > { %p254_p10 = pnand %p1839_p8, %p253_p9 }
  0x27   : > { %s260_s30 = sand.u32 (!%p254_p10), 1, %s2036_s12   ;;  %s1841_s20 = sshll.u32 (!%p254_p10), %s2044_s14, 2 }
  0x28   : > { %257 = sbr.rel (%p254_p10) target bundleno = 517 (0x205), region = 51  ;;  %s1840_s4 = sshll.u32 (!%p254_p10), %s260_s30, 8 }
  0x29   : > { %s2198_s5 = scalar_lea.vmem (!%p254_p10), [#allocation2], %s1840_s4  ;;  %p299_p11 = scmp.lt.s32.totalorder (!%p254_p10), %s1841_s20, 11 }
  0x2a   : > { %s1902_s26 = smul.u32 (!%p254_p10), 1376, %s260_s30 }
  0x2c   : > { %s2356_s27 = scalar_lea.vmem (!%p254_p10), [#allocation3], %s1902_s26 }
  0x2d   : > { %v2054_v32 = vmov 0   ;;  %v1944_v33 = vld [vmem:[%s2198_s5 + $0xe4] ss:$16 sps:$4 sm:$0xff]   ;;  %v1946_v34 = vld [vmem:[%s2198_s5 + $0xec] ss:$16 sps:$4 sm:$0xff]   ;;  %v383_v23 = vlaneseq  ;;  %s3079_s20 = smov (!%p299_p11, %s1841_s20), 11 }
  0x2e   : > { %725 = vmatprep.mubr.bf16.mxu0 %v2054_v32  ;;  %976 = vmatprep.mubr.bf16.mxu1 %v2054_v32  ;;  %v1948_v35 = vld [vmem:[%s2198_s5 + $0xe0] ss:$16 sps:$4 sm:$0xff]   ;;  %v1949_v36 = vld [vmem:[%s2198_s5 + $0xe8] ss:$16 sps:$4 sm:$0xff]   ;;  %v1950_v37 = vld [vmem:[%s2198_s5 + $0xc4] ss:$16 sps:$4 sm:$0xff]   ;;  %s301_s25 = scalar_lea.vmem %s3069_s2, %s3079_s20 }
  0x2f   : > { %693 = vmatprep.subr.bf16.mxu0 %v1944_v33  ;;  %944 = vmatprep.subr.bf16.mxu1 %v1946_v34  ;;  %v1952_v38 = vld [vmem:[%s2198_s5 + $0xcc] ss:$16 sps:$4 sm:$0xff]   ;;  %v1954_v39 = vld [vmem:[%s2198_s5 + $0xc0] ss:$16 sps:$4 sm:$0xff]   ;;  %v1955_v40 = vld [vmem:[%s2198_s5 + $0xc8] ss:$16 sps:$4 sm:$0xff]  }
  0x30   : > { %694 = vmatpush1.bf16.msra.mxu0 %v1948_v35  ;;  %945 = vmatpush1.bf16.msra.mxu1 %v1949_v36  ;;  %v1956_v41 = vld [vmem:[%s2198_s5 + $0xa4] ss:$16 sps:$4 sm:$0xff]   ;;  %v1958_v42 = vld [vmem:[%s2198_s5 + $0xac] ss:$16 sps:$4 sm:$0xff]   ;;  %v1960_v43 = vld [vmem:[%s2198_s5 + $0xa0] ss:$16 sps:$4 sm:$0xff]  }
  0x31   : > { %695 = vmatprep.subr.bf16.mxu0 %v1950_v37  ;;  %946 = vmatprep.subr.bf16.mxu1 %v1952_v38  ;;  %v1961_v44 = vld [vmem:[%s2198_s5 + $0xa8] ss:$16 sps:$4 sm:$0xff]   ;;  %v1962_v45 = vld [vmem:[%s2198_s5 + $0x84] ss:$16 sps:$4 sm:$0xff]   ;;  %v1964_v46 = vld [vmem:[%s2198_s5 + $0x8c] ss:$16 sps:$4 sm:$0xff]  }
  0x32   : > { %v1966_v47 = vld [vmem:[%s2198_s5 + $0x80] ss:$16 sps:$4 sm:$0xff]   ;;  %v1967_v48 = vld [vmem:[%s2198_s5 + $0x88] ss:$16 sps:$4 sm:$0xff]   ;;  %v1968_v49 = vld [vmem:[%s2198_s5 + $0x64] ss:$16 sps:$4 sm:$0xff]  }
  0x33   : > { %v1970_v50 = vld [vmem:[%s2198_s5 + $0x6c] ss:$16 sps:$4 sm:$0xff]   ;;  %v1972_v51 = vld [vmem:[%s2198_s5 + $0x60] ss:$16 sps:$4 sm:$0xff]   ;;  %v1973_v52 = vld [vmem:[%s2198_s5 + $0x68] ss:$16 sps:$4 sm:$0xff]  }
  0x34   : > { %696 = vmatpush1.bf16.msra.mxu0 %v1954_v39  ;;  %947 = vmatpush1.bf16.msra.mxu1 %v1955_v40  ;;  %v1974_v53 = vld [vmem:[%s2198_s5 + $0x44] ss:$16 sps:$4 sm:$0xff]   ;;  %v1976_v54 = vld [vmem:[%s2198_s5 + $0x4c] ss:$16 sps:$4 sm:$0xff]   ;;  %v1978_v55 = vld [vmem:[%s2198_s5 + $0x40] ss:$16 sps:$4 sm:$0xff]  }
  0x35   : > { %697 = vmatprep.subr.bf16.mxu0 %v1956_v41  ;;  %948 = vmatprep.subr.bf16.mxu1 %v1958_v42  ;;  %v1979_v56 = vld [vmem:[%s2198_s5 + $0x48] ss:$16 sps:$4 sm:$0xff]   ;;  %v1980_v57 = vld [vmem:[%s2198_s5 + $0x24] ss:$16 sps:$4 sm:$0xff]   ;;  %v1982_v58 = vld [vmem:[%s2198_s5 + $0x2c] ss:$16 sps:$4 sm:$0xff]  }
  0x36   : > { %v1984_v59 = vld [vmem:[%s2198_s5 + $0x20] ss:$16 sps:$4 sm:$0xff]   ;;  %v1985_v60 = vld [vmem:[%s2198_s5 + $0x28] ss:$16 sps:$4 sm:$0xff]   ;;  %v1986_v61 = vld [vmem:[%s2198_s5 + $0x4] ss:$16 sps:$4 sm:$0xff]  }
  0x37   : > { %v1988_v62 = vld [vmem:[%s2198_s5 + $0xc] ss:$16 sps:$4 sm:$0xff]   ;;  %v1990_v63 = vld [vmem:[%s2198_s5] ss:$16 sps:$4 sm:$0xff]   ;;  %v1991_v0 = vld [vmem:[%s2198_s5 + $0x8] ss:$16 sps:$4 sm:$0xff]  }
  0x38   : > { %698 = vmatpush1.bf16.msra.mxu0 %v1960_v43  ;;  %949 = vmatpush1.bf16.msra.mxu1 %v1961_v44  ;;  %v1992_v1 = vld [vmem:[%s3067_s0] sm:$0xff]   ;;  %v1993_v2 = vld [vmem:[%s3067_s0 + $0x8] sm:$0xff]   ;;  %v1994_v3 = vld [vmem:[%s3067_s0 + $0x10] sm:$0xff]   ;;  %v384_v24 = vshrl.u32 %v383_v23, 7  ;;  %s1901_s12 = sshll.u32 (%p2110_p6), %s2044_s14, 5 }
  0x39   : > { %699 = vmatprep.subr.bf16.mxu0 %v1962_v45  ;;  %950 = vmatprep.subr.bf16.mxu1 %v1964_v46  ;;  %v1995_v4 = vld [vmem:[%s3067_s0 + $0x18] sm:$0xff]   ;;  %v1996_v5 = vld [vmem:[%s3067_s0 + $0x20] sm:$0xff]   ;;  %v1997_v6 = vld [vmem:[%s3067_s0 + $0x28] sm:$0xff]   ;;  %s2709_s29 = scalar_lea.vmem (%p2110_p6), %s3070_s3, %s1901_s12 }
  0x3a   : > { %v1998_v7 = vld [vmem:[%s3067_s0 + $0x30] sm:$0xff]   ;;  %v1999_v8 = vld [vmem:[%s3067_s0 + $0x38] sm:$0xff]   ;;  %v2000_v9 = vld [vmem:[%s3067_s0 + $0x40] sm:$0xff]   ;;  %v385_v25 = vsub.s32 0, %v384_v24  ;;  %v393_v26 = vsub.s32 2, %v384_v24  ;;  %v389_v28 = vsub.s32 1, %v384_v24 }
  0x3b   : > { %v2001_v10 = vld [vmem:[%s3067_s0 + $0x48] sm:$0xff]   ;;  %v2002_v11 = vld [vmem:[%s3067_s0 + $0x50] sm:$0xff]   ;;  %v2003_v12 = vld [vmem:[%s3067_s0 + $0x58] sm:$0xff]   ;;  %v397_v29 = vsub.s32 3, %v384_v24 }
  0x3c   : > { %700 = vmatpush1.bf16.msra.mxu0 %v1966_v47  ;;  %951 = vmatpush1.bf16.msra.mxu1 %v1967_v48  ;;  %v2004_v13 = vld [vmem:[%s3067_s0 + $0x60] sm:$0xff]   ;;  %v2005_v14 = vld [vmem:[%s3067_s0 + $0x68] sm:$0xff]   ;;  %v2006_v15 = vld [vmem:[%s3067_s0 + $0x70] sm:$0xff]  }
  0x3d   : > { %701 = vmatprep.subr.bf16.mxu0 %v1968_v49  ;;  %952 = vmatprep.subr.bf16.mxu1 %v1970_v50  ;;  %v2007_v16 = vld [vmem:[%s3067_s0 + $0x78] sm:$0xff]   ;;  %v2008_v17 = vld [vmem:[%s3067_s0 + $0x80] sm:$0xff]   ;;  %v2009_v18 = vld [vmem:[%s3067_s0 + $0x88] sm:$0xff]  }
  0x3e   : > { %v2010_v19 = vld [vmem:[%s3067_s0 + $0x90] sm:$0xff]   ;;  %v2011_v20 = vld [vmem:[%s3067_s0 + $0x98] sm:$0xff]   ;;  %v2012_v21 = vld [vmem:[%s3067_s0 + $0xa0] sm:$0xff]  }
  0x3f   : > { %v2013_v22 = vld [vmem:[%s3067_s0 + $0xa8] ss:$0 sps:$4 sm:$0xff]   ;;  %v381_v27 = vld [vmem:[%s301_s25] sm:$0xf] }
  0x40   : > { %702 = vmatpush1.bf16.msra.mxu0 %v1972_v51  ;;  %953 = vmatpush1.bf16.msra.mxu1 %v1973_v52  ;;  %v2346_v30 = vrot.slane %v381_v27, %v385_v25  ;;  %v2348_v31 = vrot.slane %v381_v27, %v393_v26  ;;  %v2352_v33 = vrot.slane %v381_v27, %v397_v29 }
  0x41   : > { %703 = vmatprep.subr.bf16.mxu0 %v1974_v53  ;;  %954 = vmatprep.subr.bf16.mxu1 %v1976_v54 }
  0x44   : > { %704 = vmatpush1.bf16.msra.mxu0 %v1978_v55  ;;  %955 = vmatpush1.bf16.msra.mxu1 %v1979_v56 }
  0x45   : > { %705 = vmatprep.subr.bf16.mxu0 %v1980_v57  ;;  %956 = vmatprep.subr.bf16.mxu1 %v1982_v58 }
  0x48   : > { %706 = vmatpush1.bf16.msra.mxu0 %v1984_v59  ;;  %957 = vmatpush1.bf16.msra.mxu1 %v1985_v60 }
  0x49   : > { %707 = vmatprep.subr.bf16.mxu0 %v1986_v61  ;;  %958 = vmatprep.subr.bf16.mxu1 %v1988_v62 }
  0x4c   : > { %708 = vmatpush1.bf16.msra.mxu0 %v1990_v63  ;;  %959 = vmatpush1.bf16.msra.mxu1 %v1991_v0 }
  0x4f   : > { %726 = vmatmul.mubr.bf16.vlgmr.msra.gmra.mxu0 %v1992_v1  ;;  %977 = vmatmul.mubr.bf16.vlgmr.msra.gmra.mxu1 %v1992_v1 }
  0x50   : > { %735 = vmatprep.mubr.bf16.mxu0 %v2054_v32  ;;  %986 = vmatprep.mubr.bf16.mxu1 %v2054_v32 }
  0x57   : > { %736 = vmatmul.mubr.bf16.gmra.mxu0 %v1993_v2  ;;  %987 = vmatmul.mubr.bf16.gmra.mxu1 %v1993_v2 }
  0x58   : > { %745 = vmatprep.mubr.bf16.mxu0 %v2054_v32  ;;  %996 = vmatprep.mubr.bf16.mxu1 %v2054_v32 }
  0x5f   : > { %746 = vmatmul.mubr.bf16.gmra.mxu0 %v1994_v3  ;;  %997 = vmatmul.mubr.bf16.gmra.mxu1 %v1994_v3 }
  0x60   : > { %755 = vmatprep.mubr.bf16.mxu0 %v2054_v32  ;;  %1006 = vmatprep.mubr.bf16.mxu1 %v2054_v32 }
  0x67   : > { %756 = vmatmul.mubr.bf16.gmra.mxu0 %v1995_v4  ;;  %1007 = vmatmul.mubr.bf16.gmra.mxu1 %v1995_v4 }
  0x68   : > { %765 = vmatprep.mubr.bf16.mxu0 %v2054_v32  ;;  %1016 = vmatprep.mubr.bf16.mxu1 %v2054_v32 }
  0x6f   : > { %766 = vmatmul.mubr.bf16.gmra.mxu0 %v1996_v5  ;;  %1017 = vmatmul.mubr.bf16.gmra.mxu1 %v1996_v5 }
  0x70   : > { %775 = vmatprep.mubr.bf16.mxu0 %v2054_v32  ;;  %1026 = vmatprep.mubr.bf16.mxu1 %v2054_v32 }
  0x77   : > { %776 = vmatmul.mubr.bf16.gmra.mxu0 %v1997_v6  ;;  %1027 = vmatmul.mubr.bf16.gmra.mxu1 %v1997_v6 }
  0x78   : > { %785 = vmatprep.mubr.bf16.mxu0 %v2054_v32  ;;  %1036 = vmatprep.mubr.bf16.mxu1 %v2054_v32 }
  0x7f   : > { %786 = vmatmul.mubr.bf16.gmra.mxu0 %v1998_v7  ;;  %1037 = vmatmul.mubr.bf16.gmra.mxu1 %v1998_v7 }
  0x80   : > { %795 = vmatprep.mubr.bf16.mxu0 %v2054_v32  ;;  %1046 = vmatprep.mubr.bf16.mxu1 %v2054_v32 }
  0x87   : > { %796 = vmatmul.mubr.bf16.gmra.mxu0 %v1999_v8  ;;  %1047 = vmatmul.mubr.bf16.gmra.mxu1 %v1999_v8 }
  0x88   : > { %805 = vmatprep.mubr.bf16.mxu0 %v2054_v32  ;;  %1056 = vmatprep.mubr.bf16.mxu1 %v2054_v32 }
  0x8f   : > { %806 = vmatmul.mubr.bf16.gmra.mxu0 %v2000_v9  ;;  %1057 = vmatmul.mubr.bf16.gmra.mxu1 %v2000_v9 }
  0x90   : > { %815 = vmatprep.mubr.bf16.mxu0 %v2054_v32  ;;  %1066 = vmatprep.mubr.bf16.mxu1 %v2054_v32 }
  0x97   : > { %816 = vmatmul.mubr.bf16.gmra.mxu0 %v2001_v10  ;;  %1067 = vmatmul.mubr.bf16.gmra.mxu1 %v2001_v10 }
  0x98   : > { %825 = vmatprep.mubr.bf16.mxu0 %v2054_v32  ;;  %1076 = vmatprep.mubr.bf16.mxu1 %v2054_v32 }
  0x9f   : > { %826 = vmatmul.mubr.bf16.gmra.mxu0 %v2002_v11  ;;  %1077 = vmatmul.mubr.bf16.gmra.mxu1 %v2002_v11 }
  0xa0   : > { %835 = vmatprep.mubr.bf16.mxu0 %v2054_v32  ;;  %1086 = vmatprep.mubr.bf16.mxu1 %v2054_v32 }
  0xa7   : > { %836 = vmatmul.mubr.bf16.gmra.mxu0 %v2003_v12  ;;  %1087 = vmatmul.mubr.bf16.gmra.mxu1 %v2003_v12 }
  0xa8   : > { %845 = vmatprep.mubr.bf16.mxu0 %v2054_v32  ;;  %1096 = vmatprep.mubr.bf16.mxu1 %v2054_v32 }
  0xaf   : > { %846 = vmatmul.mubr.bf16.gmra.mxu0 %v2004_v13  ;;  %1097 = vmatmul.mubr.bf16.gmra.mxu1 %v2004_v13 }
  0xb0   : > { %855 = vmatprep.mubr.bf16.mxu0 %v2054_v32  ;;  %1106 = vmatprep.mubr.bf16.mxu1 %v2054_v32 }
  0xb7   : > { %856 = vmatmul.mubr.bf16.gmra.mxu0 %v2005_v14  ;;  %1107 = vmatmul.mubr.bf16.gmra.mxu1 %v2005_v14 }
  0xb8   : > { %865 = vmatprep.mubr.bf16.mxu0 %v2054_v32  ;;  %1116 = vmatprep.mubr.bf16.mxu1 %v2054_v32 }
  0xbf   : > { %866 = vmatmul.mubr.bf16.gmra.mxu0 %v2006_v15  ;;  %1117 = vmatmul.mubr.bf16.gmra.mxu1 %v2006_v15 }
  0xc0   : > { %875 = vmatprep.mubr.bf16.mxu0 %v2054_v32  ;;  %1126 = vmatprep.mubr.bf16.mxu1 %v2054_v32 }
  0xc7   : > { %876 = vmatmul.mubr.bf16.gmra.mxu0 %v2007_v16  ;;  %1127 = vmatmul.mubr.bf16.gmra.mxu1 %v2007_v16 }
  0xc8   : > { %885 = vmatprep.mubr.bf16.mxu0 %v2054_v32  ;;  %1136 = vmatprep.mubr.bf16.mxu1 %v2054_v32 }
  0xcf   : > { %886 = vmatmul.mubr.bf16.gmra.mxu0 %v2008_v17  ;;  %1137 = vmatmul.mubr.bf16.gmra.mxu1 %v2008_v17 }
  0xd0   : > { %895 = vmatprep.mubr.bf16.mxu0 %v2054_v32  ;;  %1146 = vmatprep.mubr.bf16.mxu1 %v2054_v32 }
  0xd7   : > { %896 = vmatmul.mubr.bf16.gmra.mxu0 %v2009_v18  ;;  %1147 = vmatmul.mubr.bf16.gmra.mxu1 %v2009_v18 }
  0xd8   : > { %905 = vmatprep.mubr.bf16.mxu0 %v2054_v32  ;;  %1156 = vmatprep.mubr.bf16.mxu1 %v2054_v32 }
  0xdf   : > { %906 = vmatmul.mubr.bf16.gmra.mxu0 %v2010_v19  ;;  %1157 = vmatmul.mubr.bf16.gmra.mxu1 %v2010_v19 }
  0xe0   : > { %915 = vmatprep.mubr.bf16.mxu0 %v2054_v32  ;;  %1166 = vmatprep.mubr.bf16.mxu1 %v2054_v32 }
  0xe7   : > { %916 = vmatmul.mubr.bf16.gmra.mxu0 %v2011_v20  ;;  %1167 = vmatmul.mubr.bf16.gmra.mxu1 %v2011_v20 }
  0xe8   : > { %925 = vmatprep.mubr.bf16.mxu0 %v2054_v32  ;;  %1176 = vmatprep.mubr.bf16.mxu1 %v2054_v32 }
  0xef   : > { %926 = vmatmul.mubr.bf16.gmra.mxu0 %v2012_v21  ;;  %1177 = vmatmul.mubr.bf16.gmra.mxu1 %v2012_v21 }
  0xf0   : > { %935 = vmatprep.mubr.bf16.mxu0 %v2054_v32  ;;  %1186 = vmatprep.mubr.bf16.mxu1 %v2054_v32  ;;  %v2350_v32 = vrot.slane %v381_v27, %v389_v28 }
  0xf7   : > { %936 = vmatmul.mubr.bf16.gmra.mxu0 %v2013_v22  ;;  %1187 = vmatmul.mubr.bf16.gmra.mxu1 %v2013_v22 }
 0x10f   : > { %v727_v34 = vpop.f32.mrf.mxu0  ;;  %v978_v35 = vpop.f32.mrf.mxu1 }
 0x110   : > { %v728_v36 = vadd.f32 %v727_v34, %v2346_v30  ;;  %v979_v37 = vadd.f32 %v978_v35, %v2348_v31 }
 0x111   : > { %v729_v38 = vpop.f32.mrf.mxu0  ;;  %v980_v39 = vpop.f32.mrf.mxu1 }
 0x112   : > { %1195 = vst [vmem:[%s2356_s27] sm:$0xff] %v728_v36  ;;  %1197 = vst [vmem:[%s2356_s27 + $0x10] sm:$0xff] %v979_v37  ;;  %v730_v40 = vadd.f32 %v729_v38, %v2350_v32  ;;  %v981_v41 = vadd.f32 %v980_v39, %v2352_v33 }
 0x113   : > { %v731_v42 = vpop.f32.mrf.mxu0  ;;  %v982_v43 = vpop.f32.mrf.mxu1 }
 0x114   : > { %1196 = vst [vmem:[%s2356_s27 + $0x8] sm:$0xff] %v730_v40  ;;  %1198 = vst [vmem:[%s2356_s27 + $0x18] sm:$0xff] %v981_v41  ;;  %v732_v44 = vadd.f32 %v731_v42, %v2346_v30  ;;  %v983_v45 = vadd.f32 %v982_v43, %v2348_v31 }
 0x115   : > { %v733_v46 = vpop.f32.mrf.mxu0  ;;  %v984_v47 = vpop.f32.mrf.mxu1 }
 0x116   : > { %1199 = vst [vmem:[%s2356_s27 + $0x20] sm:$0xff] %v732_v44  ;;  %1201 = vst [vmem:[%s2356_s27 + $0x30] sm:$0xff] %v983_v45  ;;  %v734_v48 = vadd.f32 %v733_v46, %v2350_v32  ;;  %v985_v49 = vadd.f32 %v984_v47, %v2352_v33 }
 0x117   : > { %v737_v50 = vpop.f32.mrf.mxu0  ;;  %v988_v51 = vpop.f32.mrf.mxu1 }
 0x118   : > { %1200 = vst [vmem:[%s2356_s27 + $0x28] sm:$0xff] %v734_v48  ;;  %1202 = vst [vmem:[%s2356_s27 + $0x38] sm:$0xff] %v985_v49  ;;  %v738_v52 = vadd.f32 %v737_v50, %v2346_v30  ;;  %v989_v53 = vadd.f32 %v988_v51, %v2348_v31 }
 0x119   : > { %v739_v54 = vpop.f32.mrf.mxu0  ;;  %v990_v55 = vpop.f32.mrf.mxu1 }
 0x11a   : > { %1203 = vst [vmem:[%s2356_s27 + $0x40] sm:$0xff] %v738_v52  ;;  %1205 = vst [vmem:[%s2356_s27 + $0x50] sm:$0xff] %v989_v53  ;;  %v740_v56 = vadd.f32 %v739_v54, %v2350_v32  ;;  %v991_v57 = vadd.f32 %v990_v55, %v2352_v33 }
 0x11b   : > { %v741_v58 = vpop.f32.mrf.mxu0  ;;  %v992_v59 = vpop.f32.mrf.mxu1 }
 0x11c   : > { %1204 = vst [vmem:[%s2356_s27 + $0x48] sm:$0xff] %v740_v56  ;;  %1206 = vst [vmem:[%s2356_s27 + $0x58] sm:$0xff] %v991_v57  ;;  %v742_v60 = vadd.f32 %v741_v58, %v2346_v30  ;;  %v993_v61 = vadd.f32 %v992_v59, %v2348_v31 }
 0x11d   : > { %v743_v62 = vpop.f32.mrf.mxu0  ;;  %v994_v63 = vpop.f32.mrf.mxu1 }
 0x11e   : > { %1207 = vst [vmem:[%s2356_s27 + $0x60] sm:$0xff] %v742_v60  ;;  %1209 = vst [vmem:[%s2356_s27 + $0x70] sm:$0xff] %v993_v61  ;;  %v744_v0 = vadd.f32 %v743_v62, %v2350_v32  ;;  %v995_v1 = vadd.f32 %v994_v63, %v2352_v33 }
 0x11f   : > { %v747_v2 = vpop.f32.mrf.mxu0  ;;  %v998_v3 = vpop.f32.mrf.mxu1 }
 0x120   : > { %1208 = vst [vmem:[%s2356_s27 + $0x68] sm:$0xff] %v744_v0  ;;  %1210 = vst [vmem:[%s2356_s27 + $0x78] sm:$0xff] %v995_v1  ;;  %v748_v4 = vadd.f32 %v747_v2, %v2346_v30  ;;  %v999_v5 = vadd.f32 %v998_v3, %v2348_v31 }
 0x121   : > { %v749_v6 = vpop.f32.mrf.mxu0  ;;  %v1000_v7 = vpop.f32.mrf.mxu1 }
 0x122   : > { %1211 = vst [vmem:[%s2356_s27 + $0x80] sm:$0xff] %v748_v4  ;;  %1213 = vst [vmem:[%s2356_s27 + $0x90] sm:$0xff] %v999_v5  ;;  %v750_v8 = vadd.f32 %v749_v6, %v2350_v32  ;;  %v1001_v9 = vadd.f32 %v1000_v7, %v2352_v33 }
 0x123   : > { %v751_v10 = vpop.f32.mrf.mxu0  ;;  %v1002_v11 = vpop.f32.mrf.mxu1 }
 0x124   : > { %1212 = vst [vmem:[%s2356_s27 + $0x88] sm:$0xff] %v750_v8  ;;  %1214 = vst [vmem:[%s2356_s27 + $0x98] sm:$0xff] %v1001_v9  ;;  %v752_v12 = vadd.f32 %v751_v10, %v2346_v30  ;;  %v1003_v13 = vadd.f32 %v1002_v11, %v2348_v31 }
 0x125   : > { %v753_v14 = vpop.f32.mrf.mxu0  ;;  %v1004_v15 = vpop.f32.mrf.mxu1 }
 0x126   : > { %1215 = vst [vmem:[%s2356_s27 + $0xa0] sm:$0xff] %v752_v12  ;;  %1217 = vst [vmem:[%s2356_s27 + $0xb0] sm:$0xff] %v1003_v13  ;;  %v754_v16 = vadd.f32 %v753_v14, %v2350_v32  ;;  %v1005_v17 = vadd.f32 %v1004_v15, %v2352_v33 }
 0x127   : > { %v757_v18 = vpop.f32.mrf.mxu0  ;;  %v1008_v19 = vpop.f32.mrf.mxu1 }
 0x128   : > { %1216 = vst [vmem:[%s2356_s27 + $0xa8] sm:$0xff] %v754_v16  ;;  %1218 = vst [vmem:[%s2356_s27 + $0xb8] sm:$0xff] %v1005_v17  ;;  %v758_v20 = vadd.f32 %v757_v18, %v2346_v30  ;;  %v1009_v21 = vadd.f32 %v1008_v19, %v2348_v31 }
 0x129   : > { %v759_v22 = vpop.f32.mrf.mxu0  ;;  %v1010_v23 = vpop.f32.mrf.mxu1 }
 0x12a   : > { %1219 = vst [vmem:[%s2356_s27 + $0xc0] sm:$0xff] %v758_v20  ;;  %1221 = vst [vmem:[%s2356_s27 + $0xd0] sm:$0xff] %v1009_v21  ;;  %v760_v24 = vadd.f32 %v759_v22, %v2350_v32  ;;  %v1011_v25 = vadd.f32 %v1010_v23, %v2352_v33 }
 0x12b   : > { %v761_v26 = vpop.f32.mrf.mxu0  ;;  %v1012_v27 = vpop.f32.mrf.mxu1 }
 0x12c   : > { %1220 = vst [vmem:[%s2356_s27 + $0xc8] sm:$0xff] %v760_v24  ;;  %1222 = vst [vmem:[%s2356_s27 + $0xd8] sm:$0xff] %v1011_v25  ;;  %v762_v28 = vadd.f32 %v761_v26, %v2346_v30  ;;  %v1013_v29 = vadd.f32 %v1012_v27, %v2348_v31 }
 0x12d   : > { %v763_v34 = vpop.f32.mrf.mxu0  ;;  %v1014_v35 = vpop.f32.mrf.mxu1 }
 0x12e   : > { %1223 = vst [vmem:[%s2356_s27 + $0xe0] sm:$0xff] %v762_v28  ;;  %1225 = vst [vmem:[%s2356_s27 + $0xf0] sm:$0xff] %v1013_v29  ;;  %v764_v36 = vadd.f32 %v763_v34, %v2350_v32  ;;  %v1015_v37 = vadd.f32 %v1014_v35, %v2352_v33 }
 0x12f   : > { %v767_v38 = vpop.f32.mrf.mxu0  ;;  %v1018_v39 = vpop.f32.mrf.mxu1 }
 0x130   : > { %1224 = vst [vmem:[%s2356_s27 + $0xe8] sm:$0xff] %v764_v36  ;;  %1226 = vst [vmem:[%s2356_s27 + $0xf8] sm:$0xff] %v1015_v37  ;;  %v768_v40 = vadd.f32 %v767_v38, %v2346_v30  ;;  %v1019_v41 = vadd.f32 %v1018_v39, %v2348_v31 }
 0x131   : > { %v769_v42 = vpop.f32.mrf.mxu0  ;;  %v1020_v43 = vpop.f32.mrf.mxu1 }
 0x132   : > { %1227 = vst [vmem:[%s2356_s27 + $0x100] sm:$0xff] %v768_v40  ;;  %1229 = vst [vmem:[%s2356_s27 + $0x110] sm:$0xff] %v1019_v41  ;;  %v770_v44 = vadd.f32 %v769_v42, %v2350_v32  ;;  %v1021_v45 = vadd.f32 %v1020_v43, %v2352_v33 }
 0x133   : > { %v771_v46 = vpop.f32.mrf.mxu0  ;;  %v1022_v47 = vpop.f32.mrf.mxu1 }
 0x134   : > { %1228 = vst [vmem:[%s2356_s27 + $0x108] sm:$0xff] %v770_v44  ;;  %1230 = vst [vmem:[%s2356_s27 + $0x118] sm:$0xff] %v1021_v45  ;;  %v772_v48 = vadd.f32 %v771_v46, %v2346_v30  ;;  %v1023_v49 = vadd.f32 %v1022_v47, %v2348_v31 }
 0x135   : > { %v773_v50 = vpop.f32.mrf.mxu0  ;;  %v1024_v51 = vpop.f32.mrf.mxu1 }
 0x136   : > { %1231 = vst [vmem:[%s2356_s27 + $0x120] sm:$0xff] %v772_v48  ;;  %1233 = vst [vmem:[%s2356_s27 + $0x130] sm:$0xff] %v1023_v49  ;;  %v774_v52 = vadd.f32 %v773_v50, %v2350_v32  ;;  %v1025_v53 = vadd.f32 %v1024_v51, %v2352_v33 }
 0x137   : > { %v777_v54 = vpop.f32.mrf.mxu0  ;;  %v1028_v55 = vpop.f32.mrf.mxu1 }
 0x138   : > { %1232 = vst [vmem:[%s2356_s27 + $0x128] sm:$0xff] %v774_v52  ;;  %1234 = vst [vmem:[%s2356_s27 + $0x138] sm:$0xff] %v1025_v53  ;;  %v778_v56 = vadd.f32 %v777_v54, %v2346_v30  ;;  %v1029_v57 = vadd.f32 %v1028_v55, %v2348_v31 }
 0x139   : > { %v779_v58 = vpop.f32.mrf.mxu0  ;;  %v1030_v59 = vpop.f32.mrf.mxu1 }
 0x13a   : > { %1235 = vst [vmem:[%s2356_s27 + $0x140] sm:$0xff] %v778_v56  ;;  %1237 = vst [vmem:[%s2356_s27 + $0x150] sm:$0xff] %v1029_v57  ;;  %v780_v60 = vadd.f32 %v779_v58, %v2350_v32  ;;  %v1031_v61 = vadd.f32 %v1030_v59, %v2352_v33 }
 0x13b   : > { %v781_v62 = vpop.f32.mrf.mxu0  ;;  %v1032_v63 = vpop.f32.mrf.mxu1 }
 0x13c   : > { %1236 = vst [vmem:[%s2356_s27 + $0x148] sm:$0xff] %v780_v60  ;;  %1238 = vst [vmem:[%s2356_s27 + $0x158] sm:$0xff] %v1031_v61  ;;  %v782_v0 = vadd.f32 %v781_v62, %v2346_v30  ;;  %v1033_v1 = vadd.f32 %v1032_v63, %v2348_v31 }
 0x13d   : > { %v783_v2 = vpop.f32.mrf.mxu0  ;;  %v1034_v3 = vpop.f32.mrf.mxu1 }
 0x13e   : > { %1239 = vst [vmem:[%s2356_s27 + $0x160] sm:$0xff] %v782_v0  ;;  %1241 = vst [vmem:[%s2356_s27 + $0x170] sm:$0xff] %v1033_v1  ;;  %v784_v4 = vadd.f32 %v783_v2, %v2350_v32  ;;  %v1035_v5 = vadd.f32 %v1034_v3, %v2352_v33 }
 0x13f   : > { %v787_v6 = vpop.f32.mrf.mxu0  ;;  %v1038_v7 = vpop.f32.mrf.mxu1 }
 0x140   : > { %1240 = vst [vmem:[%s2356_s27 + $0x168] sm:$0xff] %v784_v4  ;;  %1242 = vst [vmem:[%s2356_s27 + $0x178] sm:$0xff] %v1035_v5  ;;  %v788_v8 = vadd.f32 %v787_v6, %v2346_v30  ;;  %v1039_v9 = vadd.f32 %v1038_v7, %v2348_v31 }
 0x141   : > { %v789_v10 = vpop.f32.mrf.mxu0  ;;  %v1040_v11 = vpop.f32.mrf.mxu1 }
 0x142   : > { %1243 = vst [vmem:[%s2356_s27 + $0x180] sm:$0xff] %v788_v8  ;;  %1245 = vst [vmem:[%s2356_s27 + $0x190] sm:$0xff] %v1039_v9  ;;  %v790_v12 = vadd.f32 %v789_v10, %v2350_v32  ;;  %v1041_v13 = vadd.f32 %v1040_v11, %v2352_v33 }
 0x143   : > { %v791_v14 = vpop.f32.mrf.mxu0  ;;  %v1042_v15 = vpop.f32.mrf.mxu1 }
 0x144   : > { %1244 = vst [vmem:[%s2356_s27 + $0x188] sm:$0xff] %v790_v12  ;;  %1246 = vst [vmem:[%s2356_s27 + $0x198] sm:$0xff] %v1041_v13  ;;  %v792_v16 = vadd.f32 %v791_v14, %v2346_v30  ;;  %v1043_v17 = vadd.f32 %v1042_v15, %v2348_v31 }
 0x145   : > { %v793_v18 = vpop.f32.mrf.mxu0  ;;  %v1044_v19 = vpop.f32.mrf.mxu1 }
 0x146   : > { %1247 = vst [vmem:[%s2356_s27 + $0x1a0] sm:$0xff] %v792_v16  ;;  %1249 = vst [vmem:[%s2356_s27 + $0x1b0] sm:$0xff] %v1043_v17  ;;  %v794_v20 = vadd.f32 %v793_v18, %v2350_v32  ;;  %v1045_v21 = vadd.f32 %v1044_v19, %v2352_v33 }
 0x147   : > { %v797_v22 = vpop.f32.mrf.mxu0  ;;  %v1048_v23 = vpop.f32.mrf.mxu1 }
 0x148   : > { %1248 = vst [vmem:[%s2356_s27 + $0x1a8] sm:$0xff] %v794_v20  ;;  %1250 = vst [vmem:[%s2356_s27 + $0x1b8] sm:$0xff] %v1045_v21  ;;  %v798_v24 = vadd.f32 %v797_v22, %v2346_v30  ;;  %v1049_v25 = vadd.f32 %v1048_v23, %v2348_v31 }
 0x149   : > { %v799_v26 = vpop.f32.mrf.mxu0  ;;  %v1050_v27 = vpop.f32.mrf.mxu1 }
 0x14a   : > { %1251 = vst [vmem:[%s2356_s27 + $0x1c0] sm:$0xff] %v798_v24  ;;  %1253 = vst [vmem:[%s2356_s27 + $0x1d0] sm:$0xff] %v1049_v25  ;;  %v800_v28 = vadd.f32 %v799_v26, %v2350_v32  ;;  %v1051_v29 = vadd.f32 %v1050_v27, %v2352_v33 }
 0x14b   : > { %v801_v34 = vpop.f32.mrf.mxu0  ;;  %v1052_v35 = vpop.f32.mrf.mxu1 }
 0x14c   : > { %1252 = vst [vmem:[%s2356_s27 + $0x1c8] sm:$0xff] %v800_v28  ;;  %1254 = vst [vmem:[%s2356_s27 + $0x1d8] sm:$0xff] %v1051_v29  ;;  %v802_v36 = vadd.f32 %v801_v34, %v2346_v30  ;;  %v1053_v37 = vadd.f32 %v1052_v35, %v2348_v31 }
 0x14d   : > { %v803_v38 = vpop.f32.mrf.mxu0  ;;  %v1054_v39 = vpop.f32.mrf.mxu1 }
 0x14e   : > { %1255 = vst [vmem:[%s2356_s27 + $0x1e0] sm:$0xff] %v802_v36  ;;  %1257 = vst [vmem:[%s2356_s27 + $0x1f0] sm:$0xff] %v1053_v37  ;;  %v804_v40 = vadd.f32 %v803_v38, %v2350_v32  ;;  %v1055_v41 = vadd.f32 %v1054_v39, %v2352_v33 }
 0x14f   : > { %v807_v42 = vpop.f32.mrf.mxu0  ;;  %v1058_v43 = vpop.f32.mrf.mxu1 }
 0x150   : > { %1256 = vst [vmem:[%s2356_s27 + $0x1e8] sm:$0xff] %v804_v40  ;;  %1258 = vst [vmem:[%s2356_s27 + $0x1f8] sm:$0xff] %v1055_v41  ;;  %v808_v44 = vadd.f32 %v807_v42, %v2346_v30  ;;  %v1059_v45 = vadd.f32 %v1058_v43, %v2348_v31 }
 0x151   : > { %v809_v46 = vpop.f32.mrf.mxu0  ;;  %v1060_v47 = vpop.f32.mrf.mxu1 }
 0x152   : > { %1259 = vst [vmem:[%s2356_s27 + $0x200] sm:$0xff] %v808_v44  ;;  %1261 = vst [vmem:[%s2356_s27 + $0x210] sm:$0xff] %v1059_v45  ;;  %v810_v48 = vadd.f32 %v809_v46, %v2350_v32  ;;  %v1061_v49 = vadd.f32 %v1060_v47, %v2352_v33 }
 0x153   : > { %v811_v50 = vpop.f32.mrf.mxu0  ;;  %v1062_v51 = vpop.f32.mrf.mxu1 }
 0x154   : > { %1260 = vst [vmem:[%s2356_s27 + $0x208] sm:$0xff] %v810_v48  ;;  %1262 = vst [vmem:[%s2356_s27 + $0x218] sm:$0xff] %v1061_v49  ;;  %v812_v52 = vadd.f32 %v811_v50, %v2346_v30  ;;  %v1063_v53 = vadd.f32 %v1062_v51, %v2348_v31 }
 0x155   : > { %v813_v54 = vpop.f32.mrf.mxu0  ;;  %v1064_v55 = vpop.f32.mrf.mxu1 }
 0x156   : > { %1263 = vst [vmem:[%s2356_s27 + $0x220] sm:$0xff] %v812_v52  ;;  %1265 = vst [vmem:[%s2356_s27 + $0x230] sm:$0xff] %v1063_v53  ;;  %v814_v56 = vadd.f32 %v813_v54, %v2350_v32  ;;  %v1065_v57 = vadd.f32 %v1064_v55, %v2352_v33 }
 0x157   : > { %v817_v58 = vpop.f32.mrf.mxu0  ;;  %v1068_v59 = vpop.f32.mrf.mxu1 }
 0x158   : > { %1264 = vst [vmem:[%s2356_s27 + $0x228] sm:$0xff] %v814_v56  ;;  %1266 = vst [vmem:[%s2356_s27 + $0x238] sm:$0xff] %v1065_v57  ;;  %v818_v60 = vadd.f32 %v817_v58, %v2346_v30  ;;  %v1069_v61 = vadd.f32 %v1068_v59, %v2348_v31 }
 0x159   : > { %v819_v62 = vpop.f32.mrf.mxu0  ;;  %v1070_v63 = vpop.f32.mrf.mxu1 }
 0x15a   : > { %1267 = vst [vmem:[%s2356_s27 + $0x240] sm:$0xff] %v818_v60  ;;  %1269 = vst [vmem:[%s2356_s27 + $0x250] sm:$0xff] %v1069_v61  ;;  %v820_v0 = vadd.f32 %v819_v62, %v2350_v32  ;;  %v1071_v1 = vadd.f32 %v1070_v63, %v2352_v33 }
 0x15b   : > { %v821_v2 = vpop.f32.mrf.mxu0  ;;  %v1072_v3 = vpop.f32.mrf.mxu1 }
 0x15c   : > { %1268 = vst [vmem:[%s2356_s27 + $0x248] sm:$0xff] %v820_v0  ;;  %1270 = vst [vmem:[%s2356_s27 + $0x258] sm:$0xff] %v1071_v1  ;;  %v822_v4 = vadd.f32 %v821_v2, %v2346_v30  ;;  %v1073_v5 = vadd.f32 %v1072_v3, %v2348_v31 }
 0x15d   : > { %v823_v6 = vpop.f32.mrf.mxu0  ;;  %v1074_v7 = vpop.f32.mrf.mxu1 }
 0x15e   : > { %1271 = vst [vmem:[%s2356_s27 + $0x260] sm:$0xff] %v822_v4  ;;  %1273 = vst [vmem:[%s2356_s27 + $0x270] sm:$0xff] %v1073_v5  ;;  %v824_v8 = vadd.f32 %v823_v6, %v2350_v32  ;;  %v1075_v9 = vadd.f32 %v1074_v7, %v2352_v33 }
 0x15f   : > { %v827_v10 = vpop.f32.mrf.mxu0  ;;  %v1078_v11 = vpop.f32.mrf.mxu1 }
 0x160   : > { %1272 = vst [vmem:[%s2356_s27 + $0x268] sm:$0xff] %v824_v8  ;;  %1274 = vst [vmem:[%s2356_s27 + $0x278] sm:$0xff] %v1075_v9  ;;  %v828_v12 = vadd.f32 %v827_v10, %v2346_v30  ;;  %v1079_v13 = vadd.f32 %v1078_v11, %v2348_v31 }
 0x161   : > { %v829_v14 = vpop.f32.mrf.mxu0  ;;  %v1080_v15 = vpop.f32.mrf.mxu1 }
 0x162   : > { %1275 = vst [vmem:[%s2356_s27 + $0x280] sm:$0xff] %v828_v12  ;;  %1277 = vst [vmem:[%s2356_s27 + $0x290] sm:$0xff] %v1079_v13  ;;  %v830_v16 = vadd.f32 %v829_v14, %v2350_v32  ;;  %v1081_v17 = vadd.f32 %v1080_v15, %v2352_v33 }
 0x163   : > { %v831_v18 = vpop.f32.mrf.mxu0  ;;  %v1082_v19 = vpop.f32.mrf.mxu1 }
 0x164   : > { %1276 = vst [vmem:[%s2356_s27 + $0x288] sm:$0xff] %v830_v16  ;;  %1278 = vst [vmem:[%s2356_s27 + $0x298] sm:$0xff] %v1081_v17  ;;  %v832_v20 = vadd.f32 %v831_v18, %v2346_v30  ;;  %v1083_v21 = vadd.f32 %v1082_v19, %v2348_v31 }
 0x165   : > { %v833_v22 = vpop.f32.mrf.mxu0  ;;  %v1084_v23 = vpop.f32.mrf.mxu1 }
 0x166   : > { %1279 = vst [vmem:[%s2356_s27 + $0x2a0] sm:$0xff] %v832_v20  ;;  %1281 = vst [vmem:[%s2356_s27 + $0x2b0] sm:$0xff] %v1083_v21  ;;  %v834_v24 = vadd.f32 %v833_v22, %v2350_v32  ;;  %v1085_v25 = vadd.f32 %v1084_v23, %v2352_v33 }
 0x167   : > { %v837_v26 = vpop.f32.mrf.mxu0  ;;  %v1088_v27 = vpop.f32.mrf.mxu1 }
 0x168   : > { %1280 = vst [vmem:[%s2356_s27 + $0x2a8] sm:$0xff] %v834_v24  ;;  %1282 = vst [vmem:[%s2356_s27 + $0x2b8] sm:$0xff] %v1085_v25  ;;  %v838_v28 = vadd.f32 %v837_v26, %v2346_v30  ;;  %v1089_v29 = vadd.f32 %v1088_v27, %v2348_v31 }
 0x169   : > { %v839_v34 = vpop.f32.mrf.mxu0  ;;  %v1090_v35 = vpop.f32.mrf.mxu1 }
 0x16a   : > { %1283 = vst [vmem:[%s2356_s27 + $0x2c0] sm:$0xff] %v838_v28  ;;  %1285 = vst [vmem:[%s2356_s27 + $0x2d0] sm:$0xff] %v1089_v29  ;;  %v840_v36 = vadd.f32 %v839_v34, %v2350_v32  ;;  %v1091_v37 = vadd.f32 %v1090_v35, %v2352_v33 }
 0x16b   : > { %v841_v38 = vpop.f32.mrf.mxu0  ;;  %v1092_v39 = vpop.f32.mrf.mxu1 }
 0x16c   : > { %1284 = vst [vmem:[%s2356_s27 + $0x2c8] sm:$0xff] %v840_v36  ;;  %1286 = vst [vmem:[%s2356_s27 + $0x2d8] sm:$0xff] %v1091_v37  ;;  %v842_v40 = vadd.f32 %v841_v38, %v2346_v30  ;;  %v1093_v41 = vadd.f32 %v1092_v39, %v2348_v31 }
 0x16d   : > { %v843_v42 = vpop.f32.mrf.mxu0  ;;  %v1094_v43 = vpop.f32.mrf.mxu1 }
 0x16e   : > { %1287 = vst [vmem:[%s2356_s27 + $0x2e0] sm:$0xff] %v842_v40  ;;  %1289 = vst [vmem:[%s2356_s27 + $0x2f0] sm:$0xff] %v1093_v41  ;;  %v844_v44 = vadd.f32 %v843_v42, %v2350_v32  ;;  %v1095_v45 = vadd.f32 %v1094_v43, %v2352_v33 }
 0x16f   : > { %v847_v46 = vpop.f32.mrf.mxu0  ;;  %v1098_v47 = vpop.f32.mrf.mxu1 }
 0x170   : > { %1288 = vst [vmem:[%s2356_s27 + $0x2e8] sm:$0xff] %v844_v44  ;;  %1290 = vst [vmem:[%s2356_s27 + $0x2f8] sm:$0xff] %v1095_v45  ;;  %v848_v48 = vadd.f32 %v847_v46, %v2346_v30  ;;  %v1099_v49 = vadd.f32 %v1098_v47, %v2348_v31 }
 0x171   : > { %v849_v50 = vpop.f32.mrf.mxu0  ;;  %v1100_v51 = vpop.f32.mrf.mxu1 }
 0x172   : > { %1291 = vst [vmem:[%s2356_s27 + $0x300] sm:$0xff] %v848_v48  ;;  %1293 = vst [vmem:[%s2356_s27 + $0x310] sm:$0xff] %v1099_v49  ;;  %v850_v52 = vadd.f32 %v849_v50, %v2350_v32  ;;  %v1101_v53 = vadd.f32 %v1100_v51, %v2352_v33 }
 0x173   : > { %v851_v54 = vpop.f32.mrf.mxu0  ;;  %v1102_v55 = vpop.f32.mrf.mxu1 }
 0x174   : > { %1292 = vst [vmem:[%s2356_s27 + $0x308] sm:$0xff] %v850_v52  ;;  %1294 = vst [vmem:[%s2356_s27 + $0x318] sm:$0xff] %v1101_v53  ;;  %v852_v56 = vadd.f32 %v851_v54, %v2346_v30  ;;  %v1103_v57 = vadd.f32 %v1102_v55, %v2348_v31 }
 0x175   : > { %v853_v58 = vpop.f32.mrf.mxu0  ;;  %v1104_v59 = vpop.f32.mrf.mxu1 }
 0x176   : > { %1295 = vst [vmem:[%s2356_s27 + $0x320] sm:$0xff] %v852_v56  ;;  %1297 = vst [vmem:[%s2356_s27 + $0x330] sm:$0xff] %v1103_v57  ;;  %v854_v60 = vadd.f32 %v853_v58, %v2350_v32  ;;  %v1105_v61 = vadd.f32 %v1104_v59, %v2352_v33 }
 0x177   : > { %v857_v62 = vpop.f32.mrf.mxu0  ;;  %v1108_v63 = vpop.f32.mrf.mxu1 }
 0x178   : > { %1296 = vst [vmem:[%s2356_s27 + $0x328] sm:$0xff] %v854_v60  ;;  %1298 = vst [vmem:[%s2356_s27 + $0x338] sm:$0xff] %v1105_v61  ;;  %v858_v0 = vadd.f32 %v857_v62, %v2346_v30  ;;  %v1109_v1 = vadd.f32 %v1108_v63, %v2348_v31 }
 0x179   : > { %v859_v2 = vpop.f32.mrf.mxu0  ;;  %v1110_v3 = vpop.f32.mrf.mxu1 }
 0x17a   : > { %1299 = vst [vmem:[%s2356_s27 + $0x340] sm:$0xff] %v858_v0  ;;  %1301 = vst [vmem:[%s2356_s27 + $0x350] sm:$0xff] %v1109_v1  ;;  %v860_v4 = vadd.f32 %v859_v2, %v2350_v32  ;;  %v1111_v5 = vadd.f32 %v1110_v3, %v2352_v33 }
 0x17b   : > { %v861_v6 = vpop.f32.mrf.mxu0  ;;  %v1112_v7 = vpop.f32.mrf.mxu1 }
 0x17c   : > { %1300 = vst [vmem:[%s2356_s27 + $0x348] sm:$0xff] %v860_v4  ;;  %1302 = vst [vmem:[%s2356_s27 + $0x358] sm:$0xff] %v1111_v5  ;;  %v862_v8 = vadd.f32 %v861_v6, %v2346_v30  ;;  %v1113_v9 = vadd.f32 %v1112_v7, %v2348_v31 }
 0x17d   : > { %v863_v10 = vpop.f32.mrf.mxu0  ;;  %v1114_v11 = vpop.f32.mrf.mxu1 }
 0x17e   : > { %1303 = vst [vmem:[%s2356_s27 + $0x360] sm:$0xff] %v862_v8  ;;  %1305 = vst [vmem:[%s2356_s27 + $0x370] sm:$0xff] %v1113_v9  ;;  %v864_v12 = vadd.f32 %v863_v10, %v2350_v32  ;;  %v1115_v13 = vadd.f32 %v1114_v11, %v2352_v33 }
 0x17f   : > { %v867_v14 = vpop.f32.mrf.mxu0  ;;  %v1118_v15 = vpop.f32.mrf.mxu1 }
 0x180   : > { %1304 = vst [vmem:[%s2356_s27 + $0x368] sm:$0xff] %v864_v12  ;;  %1306 = vst [vmem:[%s2356_s27 + $0x378] sm:$0xff] %v1115_v13  ;;  %v868_v16 = vadd.f32 %v867_v14, %v2346_v30  ;;  %v1119_v17 = vadd.f32 %v1118_v15, %v2348_v31 }
 0x181   : > { %v869_v18 = vpop.f32.mrf.mxu0  ;;  %v1120_v19 = vpop.f32.mrf.mxu1 }
 0x182   : > { %1307 = vst [vmem:[%s2356_s27 + $0x380] sm:$0xff] %v868_v16  ;;  %1309 = vst [vmem:[%s2356_s27 + $0x390] sm:$0xff] %v1119_v17  ;;  %v870_v20 = vadd.f32 %v869_v18, %v2350_v32  ;;  %v1121_v21 = vadd.f32 %v1120_v19, %v2352_v33 }
 0x183   : > { %v871_v22 = vpop.f32.mrf.mxu0  ;;  %v1122_v23 = vpop.f32.mrf.mxu1 }
 0x184   : > { %1308 = vst [vmem:[%s2356_s27 + $0x388] sm:$0xff] %v870_v20  ;;  %1310 = vst [vmem:[%s2356_s27 + $0x398] sm:$0xff] %v1121_v21  ;;  %v872_v24 = vadd.f32 %v871_v22, %v2346_v30  ;;  %v1123_v25 = vadd.f32 %v1122_v23, %v2348_v31 }
 0x185   : > { %v873_v26 = vpop.f32.mrf.mxu0  ;;  %v1124_v27 = vpop.f32.mrf.mxu1 }
 0x186   : > { %1311 = vst [vmem:[%s2356_s27 + $0x3a0] sm:$0xff] %v872_v24  ;;  %1313 = vst [vmem:[%s2356_s27 + $0x3b0] sm:$0xff] %v1123_v25  ;;  %v874_v28 = vadd.f32 %v873_v26, %v2350_v32  ;;  %v1125_v29 = vadd.f32 %v1124_v27, %v2352_v33 }
 0x187   : > { %v877_v34 = vpop.f32.mrf.mxu0  ;;  %v1128_v35 = vpop.f32.mrf.mxu1 }
 0x188   : > { %1312 = vst [vmem:[%s2356_s27 + $0x3a8] sm:$0xff] %v874_v28  ;;  %1314 = vst [vmem:[%s2356_s27 + $0x3b8] sm:$0xff] %v1125_v29  ;;  %v878_v36 = vadd.f32 %v877_v34, %v2346_v30  ;;  %v1129_v37 = vadd.f32 %v1128_v35, %v2348_v31 }
 0x189   : > { %v879_v38 = vpop.f32.mrf.mxu0  ;;  %v1130_v39 = vpop.f32.mrf.mxu1 }
 0x18a   : > { %1315 = vst [vmem:[%s2356_s27 + $0x3c0] sm:$0xff] %v878_v36  ;;  %1317 = vst [vmem:[%s2356_s27 + $0x3d0] sm:$0xff] %v1129_v37  ;;  %v880_v40 = vadd.f32 %v879_v38, %v2350_v32  ;;  %v1131_v41 = vadd.f32 %v1130_v39, %v2352_v33 }
 0x18b   : > { %v881_v42 = vpop.f32.mrf.mxu0  ;;  %v1132_v43 = vpop.f32.mrf.mxu1 }
 0x18c   : > { %1316 = vst [vmem:[%s2356_s27 + $0x3c8] sm:$0xff] %v880_v40  ;;  %1318 = vst [vmem:[%s2356_s27 + $0x3d8] sm:$0xff] %v1131_v41  ;;  %v882_v44 = vadd.f32 %v881_v42, %v2346_v30  ;;  %v1133_v45 = vadd.f32 %v1132_v43, %v2348_v31 }
 0x18d   : > { %v883_v46 = vpop.f32.mrf.mxu0  ;;  %v1134_v47 = vpop.f32.mrf.mxu1 }
 0x18e   : > { %1319 = vst [vmem:[%s2356_s27 + $0x3e0] sm:$0xff] %v882_v44  ;;  %1321 = vst [vmem:[%s2356_s27 + $0x3f0] sm:$0xff] %v1133_v45  ;;  %v884_v48 = vadd.f32 %v883_v46, %v2350_v32  ;;  %v1135_v49 = vadd.f32 %v1134_v47, %v2352_v33 }
 0x18f   : > { %v887_v50 = vpop.f32.mrf.mxu0  ;;  %v1138_v51 = vpop.f32.mrf.mxu1 }
 0x190   : > { %1320 = vst [vmem:[%s2356_s27 + $0x3e8] sm:$0xff] %v884_v48  ;;  %1322 = vst [vmem:[%s2356_s27 + $0x3f8] sm:$0xff] %v1135_v49  ;;  %v888_v52 = vadd.f32 %v887_v50, %v2346_v30  ;;  %v1139_v53 = vadd.f32 %v1138_v51, %v2348_v31 }
 0x191   : > { %v889_v54 = vpop.f32.mrf.mxu0  ;;  %v1140_v55 = vpop.f32.mrf.mxu1 }
 0x192   : > { %1323 = vst [vmem:[%s2356_s27 + $0x400] sm:$0xff] %v888_v52  ;;  %1325 = vst [vmem:[%s2356_s27 + $0x410] sm:$0xff] %v1139_v53  ;;  %v890_v56 = vadd.f32 %v889_v54, %v2350_v32  ;;  %v1141_v57 = vadd.f32 %v1140_v55, %v2352_v33 }
 0x193   : > { %v891_v58 = vpop.f32.mrf.mxu0  ;;  %v1142_v59 = vpop.f32.mrf.mxu1 }
 0x194   : > { %1324 = vst [vmem:[%s2356_s27 + $0x408] sm:$0xff] %v890_v56  ;;  %1326 = vst [vmem:[%s2356_s27 + $0x418] sm:$0xff] %v1141_v57  ;;  %v892_v60 = vadd.f32 %v891_v58, %v2346_v30  ;;  %v1143_v61 = vadd.f32 %v1142_v59, %v2348_v31 }
 0x195   : > { %v893_v62 = vpop.f32.mrf.mxu0  ;;  %v1144_v63 = vpop.f32.mrf.mxu1 }
 0x196   : > { %1327 = vst [vmem:[%s2356_s27 + $0x420] sm:$0xff] %v892_v60  ;;  %1329 = vst [vmem:[%s2356_s27 + $0x430] sm:$0xff] %v1143_v61  ;;  %v894_v0 = vadd.f32 %v893_v62, %v2350_v32  ;;  %v1145_v1 = vadd.f32 %v1144_v63, %v2352_v33 }
 0x197   : > { %v897_v2 = vpop.f32.mrf.mxu0  ;;  %v1148_v3 = vpop.f32.mrf.mxu1 }
 0x198   : > { %1328 = vst [vmem:[%s2356_s27 + $0x428] sm:$0xff] %v894_v0  ;;  %1330 = vst [vmem:[%s2356_s27 + $0x438] sm:$0xff] %v1145_v1  ;;  %v898_v4 = vadd.f32 %v897_v2, %v2346_v30  ;;  %v1149_v5 = vadd.f32 %v1148_v3, %v2348_v31 }
 0x199   : > { %v899_v6 = vpop.f32.mrf.mxu0  ;;  %v1150_v7 = vpop.f32.mrf.mxu1 }
 0x19a   : > { %1331 = vst [vmem:[%s2356_s27 + $0x440] sm:$0xff] %v898_v4  ;;  %1333 = vst [vmem:[%s2356_s27 + $0x450] sm:$0xff] %v1149_v5  ;;  %v900_v8 = vadd.f32 %v899_v6, %v2350_v32  ;;  %v1151_v9 = vadd.f32 %v1150_v7, %v2352_v33 }
 0x19b   : > { %v901_v10 = vpop.f32.mrf.mxu0  ;;  %v1152_v11 = vpop.f32.mrf.mxu1 }
 0x19c   : > { %1332 = vst [vmem:[%s2356_s27 + $0x448] sm:$0xff] %v900_v8  ;;  %1334 = vst [vmem:[%s2356_s27 + $0x458] sm:$0xff] %v1151_v9  ;;  %v902_v12 = vadd.f32 %v901_v10, %v2346_v30  ;;  %v1153_v13 = vadd.f32 %v1152_v11, %v2348_v31 }
 0x19d   : > { %v903_v14 = vpop.f32.mrf.mxu0  ;;  %v1154_v15 = vpop.f32.mrf.mxu1 }
 0x19e   : > { %1335 = vst [vmem:[%s2356_s27 + $0x460] sm:$0xff] %v902_v12  ;;  %1337 = vst [vmem:[%s2356_s27 + $0x470] sm:$0xff] %v1153_v13  ;;  %v904_v16 = vadd.f32 %v903_v14, %v2350_v32  ;;  %v1155_v17 = vadd.f32 %v1154_v15, %v2352_v33 }
 0x19f   : > { %v907_v18 = vpop.f32.mrf.mxu0  ;;  %v1158_v19 = vpop.f32.mrf.mxu1 }
 0x1a0   : > { %1336 = vst [vmem:[%s2356_s27 + $0x468] sm:$0xff] %v904_v16  ;;  %1338 = vst [vmem:[%s2356_s27 + $0x478] sm:$0xff] %v1155_v17  ;;  %v908_v20 = vadd.f32 %v907_v18, %v2346_v30  ;;  %v1159_v21 = vadd.f32 %v1158_v19, %v2348_v31  ;;  %v1400_v18 = vld [vmem:[%s2356_s27 + $0x20] sm:$0xff] (%p2110_p6)  ;;  %v1402_v19 = vld [vmem:[%s2356_s27 + $0x28] sm:$0xff] (%p2110_p6) }
 0x1a1   : > { %v909_v22 = vpop.f32.mrf.mxu0  ;;  %v1160_v23 = vpop.f32.mrf.mxu1  ;;  %1401 = vst [vmem:[%s2709_s29 + $0x60] sm:$0xff] (%p2110_p6), %v1400_v18  ;;  %1403 = vst [vmem:[%s2709_s29 + $0x68] sm:$0xff] (%p2110_p6), %v1402_v19  ;;  %v1528_v18 = vld [vmem:[%s2356_s27 + $0x220] sm:$0xff] (%p2110_p6)  ;;  %v1530_v19 = vld [vmem:[%s2356_s27 + $0x228] sm:$0xff] (%p2110_p6) }
 0x1a2   : > { %1339 = vst [vmem:[%s2356_s27 + $0x480] sm:$0xff] %v908_v20  ;;  %1341 = vst [vmem:[%s2356_s27 + $0x490] sm:$0xff] %v1159_v21  ;;  %v910_v24 = vadd.f32 %v909_v22, %v2350_v32  ;;  %v1161_v25 = vadd.f32 %v1160_v23, %v2352_v33  ;;  %v1404_v20 = vld [vmem:[%s2356_s27 + $0x30] sm:$0xff] (%p2110_p6)  ;;  %v1406_v21 = vld [vmem:[%s2356_s27 + $0x38] sm:$0xff] (%p2110_p6) }
 0x1a3   : > { %v911_v26 = vpop.f32.mrf.mxu0  ;;  %v1162_v27 = vpop.f32.mrf.mxu1  ;;  %v1408_v22 = vld [vmem:[%s2356_s27 + $0x40] sm:$0xff] (%p2110_p6)  ;;  %1405 = vst [vmem:[%s2709_s29 + $0x70] sm:$0xff] (%p2110_p6), %v1404_v20  ;;  %1407 = vst [vmem:[%s2709_s29 + $0x78] sm:$0xff] (%p2110_p6), %v1406_v21  ;;  %v1410_v23 = vld [vmem:[%s2356_s27 + $0x48] sm:$0xff] (%p2110_p6) }
 0x1a4   : > { %1340 = vst [vmem:[%s2356_s27 + $0x488] sm:$0xff] %v910_v24  ;;  %1342 = vst [vmem:[%s2356_s27 + $0x498] sm:$0xff] %v1161_v25  ;;  %v912_v28 = vadd.f32 %v911_v26, %v2346_v30  ;;  %v1163_v29 = vadd.f32 %v1162_v27, %v2348_v31  ;;  %v1412_v24 = vld [vmem:[%s2356_s27 + $0x50] sm:$0xff] (%p2110_p6)  ;;  %v1414_v25 = vld [vmem:[%s2356_s27 + $0x58] sm:$0xff] (%p2110_p6) }
 0x1a5   : > { %v913_v34 = vpop.f32.mrf.mxu0  ;;  %v1164_v35 = vpop.f32.mrf.mxu1  ;;  %1409 = vst [vmem:[%s2709_s29 + $0xc0] sm:$0xff] (%p2110_p6), %v1408_v22  ;;  %1411 = vst [vmem:[%s2709_s29 + $0xc8] sm:$0xff] (%p2110_p6), %v1410_v23  ;;  %v1416_v26 = vld [vmem:[%s2356_s27 + $0x60] sm:$0xff] (%p2110_p6)  ;;  %v1418_v27 = vld [vmem:[%s2356_s27 + $0x68] sm:$0xff] (%p2110_p6) }
 0x1a6   : > { %1343 = vst [vmem:[%s2356_s27 + $0x4a0] sm:$0xff] %v912_v28  ;;  %1345 = vst [vmem:[%s2356_s27 + $0x4b0] sm:$0xff] %v1163_v29  ;;  %v914_v36 = vadd.f32 %v913_v34, %v2350_v32  ;;  %v1165_v37 = vadd.f32 %v1164_v35, %v2352_v33  ;;  %v1420_v28 = vld [vmem:[%s2356_s27 + $0x70] sm:$0xff] (%p2110_p6)  ;;  %v1422_v29 = vld [vmem:[%s2356_s27 + $0x78] sm:$0xff] (%p2110_p6) }
 0x1a7   : > { %v917_v38 = vpop.f32.mrf.mxu0  ;;  %v1168_v39 = vpop.f32.mrf.mxu1  ;;  %1413 = vst [vmem:[%s2709_s29 + $0xd0] sm:$0xff] (%p2110_p6), %v1412_v24  ;;  %1415 = vst [vmem:[%s2709_s29 + $0xd8] sm:$0xff] (%p2110_p6), %v1414_v25  ;;  %v1424_v34 = vld [vmem:[%s2356_s27 + $0x80] sm:$0xff] (%p2110_p6)  ;;  %v1426_v35 = vld [vmem:[%s2356_s27 + $0x88] sm:$0xff] (%p2110_p6) }
 0x1a8   : > { %1344 = vst [vmem:[%s2356_s27 + $0x4a8] sm:$0xff] %v914_v36  ;;  %1346 = vst [vmem:[%s2356_s27 + $0x4b8] sm:$0xff] %v1165_v37  ;;  %v918_v40 = vadd.f32 %v917_v38, %v2346_v30  ;;  %v1169_v41 = vadd.f32 %v1168_v39, %v2348_v31  ;;  %v1428_v36 = vld [vmem:[%s2356_s27 + $0x90] sm:$0xff] (%p2110_p6)  ;;  %v1430_v37 = vld [vmem:[%s2356_s27 + $0x98] sm:$0xff] (%p2110_p6) }
 0x1a9   : > { %v919_v42 = vpop.f32.mrf.mxu0  ;;  %v1170_v43 = vpop.f32.mrf.mxu1  ;;  %1417 = vst [vmem:[%s2709_s29 + $0x120] sm:$0xff] (%p2110_p6), %v1416_v26  ;;  %1419 = vst [vmem:[%s2709_s29 + $0x128] sm:$0xff] (%p2110_p6), %v1418_v27  ;;  %v1432_v38 = vld [vmem:[%s2356_s27 + $0xa0] sm:$0xff] (%p2110_p6)  ;;  %v1434_v39 = vld [vmem:[%s2356_s27 + $0xa8] sm:$0xff] (%p2110_p6) }
 0x1aa   : > { %1347 = vst [vmem:[%s2356_s27 + $0x4c0] sm:$0xff] %v918_v40  ;;  %1349 = vst [vmem:[%s2356_s27 + $0x4d0] sm:$0xff] %v1169_v41  ;;  %v920_v44 = vadd.f32 %v919_v42, %v2350_v32  ;;  %v1171_v45 = vadd.f32 %v1170_v43, %v2352_v33  ;;  %v1436_v40 = vld [vmem:[%s2356_s27 + $0xb0] sm:$0xff] (%p2110_p6)  ;;  %v1438_v41 = vld [vmem:[%s2356_s27 + $0xb8] sm:$0xff] (%p2110_p6) }
 0x1ab   : > { %v921_v46 = vpop.f32.mrf.mxu0  ;;  %v1172_v47 = vpop.f32.mrf.mxu1  ;;  %1421 = vst [vmem:[%s2709_s29 + $0x130] sm:$0xff] (%p2110_p6), %v1420_v28  ;;  %1423 = vst [vmem:[%s2709_s29 + $0x138] sm:$0xff] (%p2110_p6), %v1422_v29  ;;  %v1440_v42 = vld [vmem:[%s2356_s27 + $0xc0] sm:$0xff] (%p2110_p6)  ;;  %v1442_v43 = vld [vmem:[%s2356_s27 + $0xc8] sm:$0xff] (%p2110_p6) }
 0x1ac   : > { %1348 = vst [vmem:[%s2356_s27 + $0x4c8] sm:$0xff] %v920_v44  ;;  %1350 = vst [vmem:[%s2356_s27 + $0x4d8] sm:$0xff] %v1171_v45  ;;  %v922_v48 = vadd.f32 %v921_v46, %v2346_v30  ;;  %v1173_v49 = vadd.f32 %v1172_v47, %v2348_v31  ;;  %v1444_v44 = vld [vmem:[%s2356_s27 + $0xd0] sm:$0xff] (%p2110_p6)  ;;  %v1446_v45 = vld [vmem:[%s2356_s27 + $0xd8] sm:$0xff] (%p2110_p6) }
 0x1ad   : > { %v923_v50 = vpop.f32.mrf.mxu0  ;;  %v1174_v51 = vpop.f32.mrf.mxu1  ;;  %1425 = vst [vmem:[%s2709_s29 + $0x180] sm:$0xff] (%p2110_p6), %v1424_v34  ;;  %1427 = vst [vmem:[%s2709_s29 + $0x188] sm:$0xff] (%p2110_p6), %v1426_v35  ;;  %v1448_v46 = vld [vmem:[%s2356_s27 + $0xe0] sm:$0xff] (%p2110_p6)  ;;  %v1450_v47 = vld [vmem:[%s2356_s27 + $0xe8] sm:$0xff] (%p2110_p6) }
 0x1ae   : > { %1351 = vst [vmem:[%s2356_s27 + $0x4e0] sm:$0xff] %v922_v48  ;;  %1353 = vst [vmem:[%s2356_s27 + $0x4f0] sm:$0xff] %v1173_v49  ;;  %v924_v52 = vadd.f32 %v923_v50, %v2350_v32  ;;  %v1175_v53 = vadd.f32 %v1174_v51, %v2352_v33  ;;  %v1452_v48 = vld [vmem:[%s2356_s27 + $0xf0] sm:$0xff] (%p2110_p6)  ;;  %v1454_v49 = vld [vmem:[%s2356_s27 + $0xf8] sm:$0xff] (%p2110_p6) }
 0x1af   : > { %v927_v54 = vpop.f32.mrf.mxu0  ;;  %v1178_v55 = vpop.f32.mrf.mxu1  ;;  %1429 = vst [vmem:[%s2709_s29 + $0x190] sm:$0xff] (%p2110_p6), %v1428_v36  ;;  %1431 = vst [vmem:[%s2709_s29 + $0x198] sm:$0xff] (%p2110_p6), %v1430_v37  ;;  %v1456_v50 = vld [vmem:[%s2356_s27 + $0x100] sm:$0xff] (%p2110_p6)  ;;  %v1458_v51 = vld [vmem:[%s2356_s27 + $0x108] sm:$0xff] (%p2110_p6) }
 0x1b0   : > { %1352 = vst [vmem:[%s2356_s27 + $0x4e8] sm:$0xff] %v924_v52  ;;  %1354 = vst [vmem:[%s2356_s27 + $0x4f8] sm:$0xff] %v1175_v53  ;;  %v928_v56 = vadd.f32 %v927_v54, %v2346_v30  ;;  %v1179_v57 = vadd.f32 %v1178_v55, %v2348_v31  ;;  %v1460_v52 = vld [vmem:[%s2356_s27 + $0x110] sm:$0xff] (%p2110_p6)  ;;  %v1462_v53 = vld [vmem:[%s2356_s27 + $0x118] sm:$0xff] (%p2110_p6) }
 0x1b1   : > { %v929_v58 = vpop.f32.mrf.mxu0  ;;  %v1180_v59 = vpop.f32.mrf.mxu1  ;;  %1433 = vst [vmem:[%s2709_s29 + $0x1e0] sm:$0xff] (%p2110_p6), %v1432_v38  ;;  %1435 = vst [vmem:[%s2709_s29 + $0x1e8] sm:$0xff] (%p2110_p6), %v1434_v39  ;;  %v1464_v54 = vld [vmem:[%s2356_s27 + $0x120] sm:$0xff] (%p2110_p6)  ;;  %v1466_v55 = vld [vmem:[%s2356_s27 + $0x128] sm:$0xff] (%p2110_p6) }
 0x1b2   : > { %1355 = vst [vmem:[%s2356_s27 + $0x500] sm:$0xff] %v928_v56  ;;  %1357 = vst [vmem:[%s2356_s27 + $0x510] sm:$0xff] %v1179_v57  ;;  %v930_v60 = vadd.f32 %v929_v58, %v2350_v32  ;;  %v1181_v61 = vadd.f32 %v1180_v59, %v2352_v33  ;;  %v1468_v56 = vld [vmem:[%s2356_s27 + $0x130] sm:$0xff] (%p2110_p6)  ;;  %v1470_v57 = vld [vmem:[%s2356_s27 + $0x138] sm:$0xff] (%p2110_p6) }
 0x1b3   : > { %v931_v62 = vpop.f32.mrf.mxu0  ;;  %v1182_v63 = vpop.f32.mrf.mxu1  ;;  %1437 = vst [vmem:[%s2709_s29 + $0x1f0] sm:$0xff] (%p2110_p6), %v1436_v40  ;;  %1439 = vst [vmem:[%s2709_s29 + $0x1f8] sm:$0xff] (%p2110_p6), %v1438_v41  ;;  %v1472_v58 = vld [vmem:[%s2356_s27 + $0x140] sm:$0xff] (%p2110_p6)  ;;  %v1474_v59 = vld [vmem:[%s2356_s27 + $0x148] sm:$0xff] (%p2110_p6) }
 0x1b4   : > { %1356 = vst [vmem:[%s2356_s27 + $0x508] sm:$0xff] %v930_v60  ;;  %1358 = vst [vmem:[%s2356_s27 + $0x518] sm:$0xff] %v1181_v61  ;;  %v932_v0 = vadd.f32 %v931_v62, %v2346_v30  ;;  %v1183_v1 = vadd.f32 %v1182_v63, %v2348_v31  ;;  %v1476_v60 = vld [vmem:[%s2356_s27 + $0x150] sm:$0xff] (%p2110_p6)  ;;  %v1478_v61 = vld [vmem:[%s2356_s27 + $0x158] sm:$0xff] (%p2110_p6) }
 0x1b5   : > { %v933_v2 = vpop.f32.mrf.mxu0  ;;  %v1184_v3 = vpop.f32.mrf.mxu1  ;;  %1441 = vst [vmem:[%s2709_s29 + $0x240] sm:$0xff] (%p2110_p6), %v1440_v42  ;;  %1443 = vst [vmem:[%s2709_s29 + $0x248] sm:$0xff] (%p2110_p6), %v1442_v43  ;;  %v1480_v62 = vld [vmem:[%s2356_s27 + $0x160] sm:$0xff] (%p2110_p6)  ;;  %v1482_v63 = vld [vmem:[%s2356_s27 + $0x168] sm:$0xff] (%p2110_p6) }
 0x1b6   : > { %1359 = vst [vmem:[%s2356_s27 + $0x520] sm:$0xff] %v932_v0  ;;  %1361 = vst [vmem:[%s2356_s27 + $0x530] sm:$0xff] %v1183_v1  ;;  %v934_v4 = vadd.f32 %v933_v2, %v2350_v32  ;;  %v1185_v5 = vadd.f32 %v1184_v3, %v2352_v33  ;;  %v1484_v0 = vld [vmem:[%s2356_s27 + $0x170] sm:$0xff] (%p2110_p6)  ;;  %v1486_v1 = vld [vmem:[%s2356_s27 + $0x178] sm:$0xff] (%p2110_p6) }
 0x1b7   : > { %v937_v6 = vpop.f32.mrf.mxu0  ;;  %v1188_v7 = vpop.f32.mrf.mxu1  ;;  %1445 = vst [vmem:[%s2709_s29 + $0x250] sm:$0xff] (%p2110_p6), %v1444_v44  ;;  %1447 = vst [vmem:[%s2709_s29 + $0x258] sm:$0xff] (%p2110_p6), %v1446_v45  ;;  %v1488_v2 = vld [vmem:[%s2356_s27 + $0x180] sm:$0xff] (%p2110_p6)  ;;  %v1490_v3 = vld [vmem:[%s2356_s27 + $0x188] sm:$0xff] (%p2110_p6) }
 0x1b8   : > { %1360 = vst [vmem:[%s2356_s27 + $0x528] sm:$0xff] %v934_v4  ;;  %1362 = vst [vmem:[%s2356_s27 + $0x538] sm:$0xff] %v1185_v5  ;;  %v938_v8 = vadd.f32 %v937_v6, %v2346_v30  ;;  %v1189_v9 = vadd.f32 %v1188_v7, %v2348_v31  ;;  %v1392_v30 = vld [vmem:[%s2356_s27] sm:$0xff] (%p2110_p6)  ;;  %v1394_v31 = vld [vmem:[%s2356_s27 + $0x8] sm:$0xff] (%p2110_p6) }
 0x1b9   : > { %v939_v10 = vpop.f32.mrf.mxu0  ;;  %v1190_v11 = vpop.f32.mrf.mxu1  ;;  %1373 = sbr.rel (!%p2110_p6) target bundleno = 517 (0x205), region = 59  ;;  %1393 = vst [vmem:[%s2709_s29] sm:$0xff] (%p2110_p6), %v1392_v30  ;;  %1395 = vst [vmem:[%s2709_s29 + $0x8] sm:$0xff] (%p2110_p6), %v1394_v31  ;;  %v1492_v4 = vld [vmem:[%s2356_s27 + $0x190] sm:$0xff] (%p2110_p6)  ;;  %v1494_v5 = vld [vmem:[%s2356_s27 + $0x198] sm:$0xff] (%p2110_p6) }
 0x1ba   : > { %1363 = vst [vmem:[%s2356_s27 + $0x540] sm:$0xff] %v938_v8  ;;  %1365 = vst [vmem:[%s2356_s27 + $0x550] sm:$0xff] %v1189_v9  ;;  %v940_v12 = vadd.f32 %v939_v10, %v2350_v32  ;;  %v1191_v13 = vadd.f32 %v1190_v11, %v2352_v33  ;;  %v1396_v32 = vld [vmem:[%s2356_s27 + $0x10] sm:$0xff] (%p2110_p6)  ;;  %v1398_v33 = vld [vmem:[%s2356_s27 + $0x18] sm:$0xff] (%p2110_p6) }
 0x1bb   : > { %v941_v14 = vpop.f32.mrf.mxu0  ;;  %v1192_v15 = vpop.f32.mrf.mxu1  ;;  %1397 = vst [vmem:[%s2709_s29 + $0x10] sm:$0xff] (%p2110_p6), %v1396_v32  ;;  %1399 = vst [vmem:[%s2709_s29 + $0x18] sm:$0xff] (%p2110_p6), %v1398_v33  ;;  %v1496_v6 = vld [vmem:[%s2356_s27 + $0x1a0] sm:$0xff] (%p2110_p6)  ;;  %v1498_v7 = vld [vmem:[%s2356_s27 + $0x1a8] sm:$0xff] (%p2110_p6) }
 0x1bc   : > { %1364 = vst [vmem:[%s2356_s27 + $0x548] sm:$0xff] %v940_v12  ;;  %1366 = vst [vmem:[%s2356_s27 + $0x558] sm:$0xff] %v1191_v13  ;;  %v1500_v8 = vld [vmem:[%s2356_s27 + $0x1b0] sm:$0xff] (%p2110_p6)  ;;  %v1502_v9 = vld [vmem:[%s2356_s27 + $0x1b8] sm:$0xff] (%p2110_p6) }
 0x1bd   : > { %v942_v16 = vpop.f32.mrf.mxu0  ;;  %v1193_v17 = vpop.f32.mrf.mxu1  ;;  %1449 = vst [vmem:[%s2709_s29 + $0x2a0] sm:$0xff] (%p2110_p6), %v1448_v46  ;;  %1451 = vst [vmem:[%s2709_s29 + $0x2a8] sm:$0xff] (%p2110_p6), %v1450_v47  ;;  %v1504_v10 = vld [vmem:[%s2356_s27 + $0x1c0] sm:$0xff] (%p2110_p6)  ;;  %v1506_v11 = vld [vmem:[%s2356_s27 + $0x1c8] sm:$0xff] (%p2110_p6) }
 0x1be   : > { %1453 = vst [vmem:[%s2709_s29 + $0x2b0] sm:$0xff] %v1452_v48  ;;  %1455 = vst [vmem:[%s2709_s29 + $0x2b8] sm:$0xff] %v1454_v49  ;;  %v1508_v12 = vld [vmem:[%s2356_s27 + $0x1d0] sm:$0xff]  ;;  %v1510_v13 = vld [vmem:[%s2356_s27 + $0x1d8] sm:$0xff] }
 0x1bf   : > { %1457 = vst [vmem:[%s2709_s29 + $0x300] sm:$0xff] %v1456_v50  ;;  %1459 = vst [vmem:[%s2709_s29 + $0x308] sm:$0xff] %v1458_v51  ;;  %v1512_v14 = vld [vmem:[%s2356_s27 + $0x1e0] sm:$0xff]  ;;  %v1514_v15 = vld [vmem:[%s2356_s27 + $0x1e8] sm:$0xff] }
 0x1c0   : > { %1461 = vst [vmem:[%s2709_s29 + $0x310] sm:$0xff] %v1460_v52  ;;  %1463 = vst [vmem:[%s2709_s29 + $0x318] sm:$0xff] %v1462_v53  ;;  %v1516_v16 = vld [vmem:[%s2356_s27 + $0x1f0] sm:$0xff]  ;;  %v1518_v17 = vld [vmem:[%s2356_s27 + $0x1f8] sm:$0xff] }
 0x1c1   : > { %1465 = vst [vmem:[%s2709_s29 + $0x360] sm:$0xff] %v1464_v54  ;;  %1467 = vst [vmem:[%s2709_s29 + $0x368] sm:$0xff] %v1466_v55  ;;  %v1520_v30 = vld [vmem:[%s2356_s27 + $0x200] sm:$0xff]  ;;  %v1522_v31 = vld [vmem:[%s2356_s27 + $0x208] sm:$0xff] }
 0x1c2   : > { %1469 = vst [vmem:[%s2709_s29 + $0x370] sm:$0xff] %v1468_v56  ;;  %1471 = vst [vmem:[%s2709_s29 + $0x378] sm:$0xff] %v1470_v57  ;;  %v1524_v32 = vld [vmem:[%s2356_s27 + $0x210] sm:$0xff]  ;;  %v1526_v33 = vld [vmem:[%s2356_s27 + $0x218] sm:$0xff] }
 0x1c3   : > { %1473 = vst [vmem:[%s2709_s29 + $0x3c0] sm:$0xff] %v1472_v58  ;;  %1475 = vst [vmem:[%s2709_s29 + $0x3c8] sm:$0xff] %v1474_v59  ;;  %v1532_v20 = vld [vmem:[%s2356_s27 + $0x230] sm:$0xff]  ;;  %v1534_v21 = vld [vmem:[%s2356_s27 + $0x238] sm:$0xff] }
 0x1c4   : > { %1477 = vst [vmem:[%s2709_s29 + $0x3d0] sm:$0xff] %v1476_v60  ;;  %1479 = vst [vmem:[%s2709_s29 + $0x3d8] sm:$0xff] %v1478_v61  ;;  %v1536_v22 = vld [vmem:[%s2356_s27 + $0x240] sm:$0xff]  ;;  %v1538_v23 = vld [vmem:[%s2356_s27 + $0x248] sm:$0xff] }
 0x1c5   : > { %1481 = vst [vmem:[%s2709_s29 + $0x420] sm:$0xff] %v1480_v62  ;;  %1483 = vst [vmem:[%s2709_s29 + $0x428] sm:$0xff] %v1482_v63  ;;  %v1540_v24 = vld [vmem:[%s2356_s27 + $0x250] sm:$0xff]  ;;  %v1542_v25 = vld [vmem:[%s2356_s27 + $0x258] sm:$0xff] }
 0x1c6   : > { %1485 = vst [vmem:[%s2709_s29 + $0x430] sm:$0xff] %v1484_v0  ;;  %1487 = vst [vmem:[%s2709_s29 + $0x438] sm:$0xff] %v1486_v1  ;;  %v1544_v26 = vld [vmem:[%s2356_s27 + $0x260] sm:$0xff]  ;;  %v1546_v27 = vld [vmem:[%s2356_s27 + $0x268] sm:$0xff] }
 0x1c7   : > { %1489 = vst [vmem:[%s2709_s29 + $0x480] sm:$0xff] %v1488_v2  ;;  %1491 = vst [vmem:[%s2709_s29 + $0x488] sm:$0xff] %v1490_v3  ;;  %v1548_v28 = vld [vmem:[%s2356_s27 + $0x270] sm:$0xff]  ;;  %v1550_v29 = vld [vmem:[%s2356_s27 + $0x278] sm:$0xff] }
 0x1c8   : > { %1493 = vst [vmem:[%s2709_s29 + $0x490] sm:$0xff] %v1492_v4  ;;  %1495 = vst [vmem:[%s2709_s29 + $0x498] sm:$0xff] %v1494_v5  ;;  %v1552_v34 = vld [vmem:[%s2356_s27 + $0x280] sm:$0xff]  ;;  %v1554_v35 = vld [vmem:[%s2356_s27 + $0x288] sm:$0xff] }
 0x1c9   : > { %1497 = vst [vmem:[%s2709_s29 + $0x4e0] sm:$0xff] %v1496_v6  ;;  %1499 = vst [vmem:[%s2709_s29 + $0x4e8] sm:$0xff] %v1498_v7  ;;  %v1556_v36 = vld [vmem:[%s2356_s27 + $0x290] sm:$0xff]  ;;  %v1558_v37 = vld [vmem:[%s2356_s27 + $0x298] sm:$0xff] }
 0x1ca   : > { %1501 = vst [vmem:[%s2709_s29 + $0x4f0] sm:$0xff] %v1500_v8  ;;  %1503 = vst [vmem:[%s2709_s29 + $0x4f8] sm:$0xff] %v1502_v9  ;;  %v1560_v38 = vld [vmem:[%s2356_s27 + $0x2a0] sm:$0xff]  ;;  %v1562_v39 = vld [vmem:[%s2356_s27 + $0x2a8] sm:$0xff] }
 0x1cb   : > { %1505 = vst [vmem:[%s2709_s29 + $0x540] sm:$0xff] %v1504_v10  ;;  %1507 = vst [vmem:[%s2709_s29 + $0x548] sm:$0xff] %v1506_v11  ;;  %v1564_v40 = vld [vmem:[%s2356_s27 + $0x2b0] sm:$0xff]  ;;  %v1566_v41 = vld [vmem:[%s2356_s27 + $0x2b8] sm:$0xff] }
 0x1cc   : > { %1509 = vst [vmem:[%s2709_s29 + $0x550] sm:$0xff] %v1508_v12  ;;  %1511 = vst [vmem:[%s2709_s29 + $0x558] sm:$0xff] %v1510_v13  ;;  %v1568_v42 = vld [vmem:[%s2356_s27 + $0x2c0] sm:$0xff]  ;;  %v1570_v43 = vld [vmem:[%s2356_s27 + $0x2c8] sm:$0xff] }
 0x1cd   : > { %1513 = vst [vmem:[%s2709_s29 + $0x5a0] sm:$0xff] %v1512_v14  ;;  %1515 = vst [vmem:[%s2709_s29 + $0x5a8] sm:$0xff] %v1514_v15  ;;  %v1572_v44 = vld [vmem:[%s2356_s27 + $0x2d0] sm:$0xff]  ;;  %v1574_v45 = vld [vmem:[%s2356_s27 + $0x2d8] sm:$0xff] }
 0x1ce   : > { %1517 = vst [vmem:[%s2709_s29 + $0x5b0] sm:$0xff] %v1516_v16  ;;  %1519 = vst [vmem:[%s2709_s29 + $0x5b8] sm:$0xff] %v1518_v17  ;;  %v1576_v46 = vld [vmem:[%s2356_s27 + $0x2e0] sm:$0xff]  ;;  %v1578_v47 = vld [vmem:[%s2356_s27 + $0x2e8] sm:$0xff] }
 0x1cf   : > { %1521 = vst [vmem:[%s2709_s29 + $0x600] sm:$0xff] %v1520_v30  ;;  %1523 = vst [vmem:[%s2709_s29 + $0x608] sm:$0xff] %v1522_v31  ;;  %v1580_v48 = vld [vmem:[%s2356_s27 + $0x2f0] sm:$0xff]  ;;  %v1582_v49 = vld [vmem:[%s2356_s27 + $0x2f8] sm:$0xff] }
 0x1d0   : > { %1525 = vst [vmem:[%s2709_s29 + $0x610] sm:$0xff] %v1524_v32  ;;  %1527 = vst [vmem:[%s2709_s29 + $0x618] sm:$0xff] %v1526_v33  ;;  %v1584_v50 = vld [vmem:[%s2356_s27 + $0x300] sm:$0xff]  ;;  %v1586_v51 = vld [vmem:[%s2356_s27 + $0x308] sm:$0xff] }
 0x1d1   : > { %1529 = vst [vmem:[%s2709_s29 + $0x660] sm:$0xff] %v1528_v18  ;;  %1531 = vst [vmem:[%s2709_s29 + $0x668] sm:$0xff] %v1530_v19  ;;  %v1588_v52 = vld [vmem:[%s2356_s27 + $0x310] sm:$0xff]  ;;  %v1590_v53 = vld [vmem:[%s2356_s27 + $0x318] sm:$0xff] }
 0x1d2   : > { %1533 = vst [vmem:[%s2709_s29 + $0x670] sm:$0xff] %v1532_v20  ;;  %1535 = vst [vmem:[%s2709_s29 + $0x678] sm:$0xff] %v1534_v21  ;;  %v1592_v54 = vld [vmem:[%s2356_s27 + $0x320] sm:$0xff]  ;;  %v1594_v55 = vld [vmem:[%s2356_s27 + $0x328] sm:$0xff] }
 0x1d3   : > { %1537 = vst [vmem:[%s2709_s29 + $0x6c0] sm:$0xff] %v1536_v22  ;;  %1539 = vst [vmem:[%s2709_s29 + $0x6c8] sm:$0xff] %v1538_v23  ;;  %v1596_v56 = vld [vmem:[%s2356_s27 + $0x330] sm:$0xff]  ;;  %v1598_v57 = vld [vmem:[%s2356_s27 + $0x338] sm:$0xff] }
 0x1d4   : > { %1541 = vst [vmem:[%s2709_s29 + $0x6d0] sm:$0xff] %v1540_v24  ;;  %1543 = vst [vmem:[%s2709_s29 + $0x6d8] sm:$0xff] %v1542_v25  ;;  %v1600_v58 = vld [vmem:[%s2356_s27 + $0x340] sm:$0xff]  ;;  %v1602_v59 = vld [vmem:[%s2356_s27 + $0x348] sm:$0xff] }
 0x1d5   : > { %1545 = vst [vmem:[%s2709_s29 + $0x720] sm:$0xff] %v1544_v26  ;;  %1547 = vst [vmem:[%s2709_s29 + $0x728] sm:$0xff] %v1546_v27  ;;  %v1604_v60 = vld [vmem:[%s2356_s27 + $0x350] sm:$0xff]  ;;  %v1606_v61 = vld [vmem:[%s2356_s27 + $0x358] sm:$0xff] }
 0x1d6   : > { %1549 = vst [vmem:[%s2709_s29 + $0x730] sm:$0xff] %v1548_v28  ;;  %1551 = vst [vmem:[%s2709_s29 + $0x738] sm:$0xff] %v1550_v29  ;;  %v1608_v62 = vld [vmem:[%s2356_s27 + $0x360] sm:$0xff]  ;;  %v1610_v63 = vld [vmem:[%s2356_s27 + $0x368] sm:$0xff] }
 0x1d7   : > { %1553 = vst [vmem:[%s2709_s29 + $0x780] sm:$0xff] %v1552_v34  ;;  %1555 = vst [vmem:[%s2709_s29 + $0x788] sm:$0xff] %v1554_v35  ;;  %v1612_v0 = vld [vmem:[%s2356_s27 + $0x370] sm:$0xff]  ;;  %v1614_v1 = vld [vmem:[%s2356_s27 + $0x378] sm:$0xff] }
 0x1d8   : > { %1557 = vst [vmem:[%s2709_s29 + $0x790] sm:$0xff] %v1556_v36  ;;  %1559 = vst [vmem:[%s2709_s29 + $0x798] sm:$0xff] %v1558_v37  ;;  %v1616_v2 = vld [vmem:[%s2356_s27 + $0x380] sm:$0xff]  ;;  %v1618_v3 = vld [vmem:[%s2356_s27 + $0x388] sm:$0xff] }
 0x1d9   : > { %1561 = vst [vmem:[%s2709_s29 + $0x7e0] sm:$0xff] %v1560_v38  ;;  %1563 = vst [vmem:[%s2709_s29 + $0x7e8] sm:$0xff] %v1562_v39  ;;  %v1620_v4 = vld [vmem:[%s2356_s27 + $0x390] sm:$0xff]  ;;  %v1622_v5 = vld [vmem:[%s2356_s27 + $0x398] sm:$0xff] }
 0x1da   : > { %1565 = vst [vmem:[%s2709_s29 + $0x7f0] sm:$0xff] %v1564_v40  ;;  %1567 = vst [vmem:[%s2709_s29 + $0x7f8] sm:$0xff] %v1566_v41  ;;  %v1624_v6 = vld [vmem:[%s2356_s27 + $0x3a0] sm:$0xff]  ;;  %v1626_v7 = vld [vmem:[%s2356_s27 + $0x3a8] sm:$0xff] }
 0x1db   : > { %1569 = vst [vmem:[%s2709_s29 + $0x840] sm:$0xff] %v1568_v42  ;;  %1571 = vst [vmem:[%s2709_s29 + $0x848] sm:$0xff] %v1570_v43  ;;  %v1628_v8 = vld [vmem:[%s2356_s27 + $0x3b0] sm:$0xff]  ;;  %v1630_v9 = vld [vmem:[%s2356_s27 + $0x3b8] sm:$0xff] }
 0x1dc   : > { %1573 = vst [vmem:[%s2709_s29 + $0x850] sm:$0xff] %v1572_v44  ;;  %1575 = vst [vmem:[%s2709_s29 + $0x858] sm:$0xff] %v1574_v45  ;;  %v1632_v10 = vld [vmem:[%s2356_s27 + $0x3c0] sm:$0xff]  ;;  %v1634_v11 = vld [vmem:[%s2356_s27 + $0x3c8] sm:$0xff] }
 0x1dd   : > { %1577 = vst [vmem:[%s2709_s29 + $0x8a0] sm:$0xff] %v1576_v46  ;;  %1579 = vst [vmem:[%s2709_s29 + $0x8a8] sm:$0xff] %v1578_v47  ;;  %v1636_v12 = vld [vmem:[%s2356_s27 + $0x3d0] sm:$0xff]  ;;  %v1638_v13 = vld [vmem:[%s2356_s27 + $0x3d8] sm:$0xff] }
 0x1de   : > { %1581 = vst [vmem:[%s2709_s29 + $0x8b0] sm:$0xff] %v1580_v48  ;;  %1583 = vst [vmem:[%s2709_s29 + $0x8b8] sm:$0xff] %v1582_v49  ;;  %v1640_v14 = vld [vmem:[%s2356_s27 + $0x3e0] sm:$0xff]  ;;  %v1642_v15 = vld [vmem:[%s2356_s27 + $0x3e8] sm:$0xff] }
 0x1df   : > { %1585 = vst [vmem:[%s2709_s29 + $0x900] sm:$0xff] %v1584_v50  ;;  %1587 = vst [vmem:[%s2709_s29 + $0x908] sm:$0xff] %v1586_v51  ;;  %v1644_v16 = vld [vmem:[%s2356_s27 + $0x3f0] sm:$0xff]  ;;  %v1646_v17 = vld [vmem:[%s2356_s27 + $0x3f8] sm:$0xff] }
 0x1e0   : > { %1589 = vst [vmem:[%s2709_s29 + $0x910] sm:$0xff] %v1588_v52  ;;  %1591 = vst [vmem:[%s2709_s29 + $0x918] sm:$0xff] %v1590_v53  ;;  %v1648_v30 = vld [vmem:[%s2356_s27 + $0x400] sm:$0xff]  ;;  %v1650_v31 = vld [vmem:[%s2356_s27 + $0x408] sm:$0xff] }
 0x1e1   : > { %1593 = vst [vmem:[%s2709_s29 + $0x960] sm:$0xff] %v1592_v54  ;;  %1595 = vst [vmem:[%s2709_s29 + $0x968] sm:$0xff] %v1594_v55  ;;  %v1652_v32 = vld [vmem:[%s2356_s27 + $0x410] sm:$0xff]  ;;  %v1654_v33 = vld [vmem:[%s2356_s27 + $0x418] sm:$0xff] }
 0x1e2   : > { %1597 = vst [vmem:[%s2709_s29 + $0x970] sm:$0xff] %v1596_v56  ;;  %1599 = vst [vmem:[%s2709_s29 + $0x978] sm:$0xff] %v1598_v57  ;;  %v1656_v18 = vld [vmem:[%s2356_s27 + $0x420] sm:$0xff]  ;;  %v1658_v19 = vld [vmem:[%s2356_s27 + $0x428] sm:$0xff] }
 0x1e3   : > { %1601 = vst [vmem:[%s2709_s29 + $0x9c0] sm:$0xff] %v1600_v58  ;;  %1603 = vst [vmem:[%s2709_s29 + $0x9c8] sm:$0xff] %v1602_v59  ;;  %v1660_v20 = vld [vmem:[%s2356_s27 + $0x430] sm:$0xff]  ;;  %v1662_v21 = vld [vmem:[%s2356_s27 + $0x438] sm:$0xff] }
 0x1e4   : > { %1605 = vst [vmem:[%s2709_s29 + $0x9d0] sm:$0xff] %v1604_v60  ;;  %1607 = vst [vmem:[%s2709_s29 + $0x9d8] sm:$0xff] %v1606_v61  ;;  %v1664_v22 = vld [vmem:[%s2356_s27 + $0x440] sm:$0xff]  ;;  %v1666_v23 = vld [vmem:[%s2356_s27 + $0x448] sm:$0xff] }
 0x1e5   : > { %1609 = vst [vmem:[%s2709_s29 + $0xa20] sm:$0xff] %v1608_v62  ;;  %1611 = vst [vmem:[%s2709_s29 + $0xa28] sm:$0xff] %v1610_v63  ;;  %v1668_v24 = vld [vmem:[%s2356_s27 + $0x450] sm:$0xff]  ;;  %v1670_v25 = vld [vmem:[%s2356_s27 + $0x458] sm:$0xff] }
 0x1e6   : > { %1613 = vst [vmem:[%s2709_s29 + $0xa30] sm:$0xff] %v1612_v0  ;;  %1615 = vst [vmem:[%s2709_s29 + $0xa38] sm:$0xff] %v1614_v1  ;;  %v1672_v26 = vld [vmem:[%s2356_s27 + $0x460] sm:$0xff]  ;;  %v1674_v27 = vld [vmem:[%s2356_s27 + $0x468] sm:$0xff] }
 0x1e7   : > { %1617 = vst [vmem:[%s2709_s29 + $0xa80] sm:$0xff] %v1616_v2  ;;  %1619 = vst [vmem:[%s2709_s29 + $0xa88] sm:$0xff] %v1618_v3  ;;  %v1676_v28 = vld [vmem:[%s2356_s27 + $0x470] sm:$0xff]  ;;  %v1678_v29 = vld [vmem:[%s2356_s27 + $0x478] sm:$0xff] }
 0x1e8   : > { %1621 = vst [vmem:[%s2709_s29 + $0xa90] sm:$0xff] %v1620_v4  ;;  %1623 = vst [vmem:[%s2709_s29 + $0xa98] sm:$0xff] %v1622_v5  ;;  %v1680_v34 = vld [vmem:[%s2356_s27 + $0x480] sm:$0xff]  ;;  %v1682_v35 = vld [vmem:[%s2356_s27 + $0x488] sm:$0xff] }
 0x1e9   : > { %1625 = vst [vmem:[%s2709_s29 + $0xae0] sm:$0xff] %v1624_v6  ;;  %1627 = vst [vmem:[%s2709_s29 + $0xae8] sm:$0xff] %v1626_v7  ;;  %v1684_v36 = vld [vmem:[%s2356_s27 + $0x490] sm:$0xff]  ;;  %v1686_v37 = vld [vmem:[%s2356_s27 + $0x498] sm:$0xff] }
 0x1ea   : > { %1629 = vst [vmem:[%s2709_s29 + $0xaf0] sm:$0xff] %v1628_v8  ;;  %1631 = vst [vmem:[%s2709_s29 + $0xaf8] sm:$0xff] %v1630_v9  ;;  %v1688_v38 = vld [vmem:[%s2356_s27 + $0x4a0] sm:$0xff]  ;;  %v1690_v39 = vld [vmem:[%s2356_s27 + $0x4a8] sm:$0xff] }
 0x1eb   : > { %1633 = vst [vmem:[%s2709_s29 + $0xb40] sm:$0xff] %v1632_v10  ;;  %1635 = vst [vmem:[%s2709_s29 + $0xb48] sm:$0xff] %v1634_v11  ;;  %v1692_v40 = vld [vmem:[%s2356_s27 + $0x4b0] sm:$0xff]  ;;  %v1694_v41 = vld [vmem:[%s2356_s27 + $0x4b8] sm:$0xff] }
 0x1ec   : > { %1637 = vst [vmem:[%s2709_s29 + $0xb50] sm:$0xff] %v1636_v12  ;;  %1639 = vst [vmem:[%s2709_s29 + $0xb58] sm:$0xff] %v1638_v13  ;;  %v1696_v42 = vld [vmem:[%s2356_s27 + $0x4c0] sm:$0xff]  ;;  %v1698_v43 = vld [vmem:[%s2356_s27 + $0x4c8] sm:$0xff] }
 0x1ed   : > { %1641 = vst [vmem:[%s2709_s29 + $0xba0] sm:$0xff] %v1640_v14  ;;  %1643 = vst [vmem:[%s2709_s29 + $0xba8] sm:$0xff] %v1642_v15  ;;  %v1700_v44 = vld [vmem:[%s2356_s27 + $0x4d0] sm:$0xff]  ;;  %v1702_v45 = vld [vmem:[%s2356_s27 + $0x4d8] sm:$0xff] }
 0x1ee   : > { %1645 = vst [vmem:[%s2709_s29 + $0xbb0] sm:$0xff] %v1644_v16  ;;  %1647 = vst [vmem:[%s2709_s29 + $0xbb8] sm:$0xff] %v1646_v17  ;;  %v1704_v46 = vld [vmem:[%s2356_s27 + $0x4e0] sm:$0xff]  ;;  %v1706_v47 = vld [vmem:[%s2356_s27 + $0x4e8] sm:$0xff] }
 0x1ef   : > { %1649 = vst [vmem:[%s2709_s29 + $0xc00] sm:$0xff] %v1648_v30  ;;  %1651 = vst [vmem:[%s2709_s29 + $0xc08] sm:$0xff] %v1650_v31  ;;  %v1708_v48 = vld [vmem:[%s2356_s27 + $0x4f0] sm:$0xff]  ;;  %v1710_v49 = vld [vmem:[%s2356_s27 + $0x4f8] sm:$0xff] }
 0x1f0   : > { %1653 = vst [vmem:[%s2709_s29 + $0xc10] sm:$0xff] %v1652_v32  ;;  %1655 = vst [vmem:[%s2709_s29 + $0xc18] sm:$0xff] %v1654_v33  ;;  %v1712_v50 = vld [vmem:[%s2356_s27 + $0x500] sm:$0xff]  ;;  %v1714_v51 = vld [vmem:[%s2356_s27 + $0x508] sm:$0xff] }
 0x1f1   : > { %1657 = vst [vmem:[%s2709_s29 + $0xc60] sm:$0xff] %v1656_v18  ;;  %1659 = vst [vmem:[%s2709_s29 + $0xc68] sm:$0xff] %v1658_v19  ;;  %v1716_v52 = vld [vmem:[%s2356_s27 + $0x510] sm:$0xff]  ;;  %v1718_v53 = vld [vmem:[%s2356_s27 + $0x518] sm:$0xff] }
 0x1f2   : > { %1661 = vst [vmem:[%s2709_s29 + $0xc70] sm:$0xff] %v1660_v20  ;;  %1663 = vst [vmem:[%s2709_s29 + $0xc78] sm:$0xff] %v1662_v21  ;;  %v1720_v54 = vld [vmem:[%s2356_s27 + $0x520] sm:$0xff]  ;;  %v1722_v55 = vld [vmem:[%s2356_s27 + $0x528] sm:$0xff] }
 0x1f3   : > { %1665 = vst [vmem:[%s2709_s29 + $0xcc0] sm:$0xff] %v1664_v22  ;;  %1667 = vst [vmem:[%s2709_s29 + $0xcc8] sm:$0xff] %v1666_v23  ;;  %v1724_v56 = vld [vmem:[%s2356_s27 + $0x530] sm:$0xff]  ;;  %v1726_v57 = vld [vmem:[%s2356_s27 + $0x538] sm:$0xff] }
 0x1f4   : > { %1669 = vst [vmem:[%s2709_s29 + $0xcd0] sm:$0xff] %v1668_v24  ;;  %1671 = vst [vmem:[%s2709_s29 + $0xcd8] sm:$0xff] %v1670_v25  ;;  %v1728_v58 = vld [vmem:[%s2356_s27 + $0x540] sm:$0xff]  ;;  %v1730_v59 = vld [vmem:[%s2356_s27 + $0x548] sm:$0xff] }
 0x1f5   : > { %1673 = vst [vmem:[%s2709_s29 + $0xd20] sm:$0xff] %v1672_v26  ;;  %1675 = vst [vmem:[%s2709_s29 + $0xd28] sm:$0xff] %v1674_v27  ;;  %v1732_v60 = vld [vmem:[%s2356_s27 + $0x550] sm:$0xff]  ;;  %v1734_v61 = vld [vmem:[%s2356_s27 + $0x558] sm:$0xff] }
 0x1f6   : > { %1677 = vst [vmem:[%s2709_s29 + $0xd30] sm:$0xff] %v1676_v28  ;;  %1679 = vst [vmem:[%s2709_s29 + $0xd38] sm:$0xff] %v1678_v29 }
 0x1f7   : > { %1681 = vst [vmem:[%s2709_s29 + $0xd80] sm:$0xff] %v1680_v34  ;;  %1683 = vst [vmem:[%s2709_s29 + $0xd88] sm:$0xff] %v1682_v35 }
 0x1f8   : > { %1685 = vst [vmem:[%s2709_s29 + $0xd90] sm:$0xff] %v1684_v36  ;;  %1687 = vst [vmem:[%s2709_s29 + $0xd98] sm:$0xff] %v1686_v37 }
 0x1f9   : > { %1689 = vst [vmem:[%s2709_s29 + $0xde0] sm:$0xff] %v1688_v38  ;;  %1691 = vst [vmem:[%s2709_s29 + $0xde8] sm:$0xff] %v1690_v39 }
 0x1fa   : > { %1693 = vst [vmem:[%s2709_s29 + $0xdf0] sm:$0xff] %v1692_v40  ;;  %1695 = vst [vmem:[%s2709_s29 + $0xdf8] sm:$0xff] %v1694_v41 }
 0x1fb   : > { %1697 = vst [vmem:[%s2709_s29 + $0xe40] sm:$0xff] %v1696_v42  ;;  %1699 = vst [vmem:[%s2709_s29 + $0xe48] sm:$0xff] %v1698_v43 }
 0x1fc   : > { %1701 = vst [vmem:[%s2709_s29 + $0xe50] sm:$0xff] %v1700_v44  ;;  %1703 = vst [vmem:[%s2709_s29 + $0xe58] sm:$0xff] %v1702_v45 }
 0x1fd   : > { %1705 = vst [vmem:[%s2709_s29 + $0xea0] sm:$0xff] %v1704_v46  ;;  %1707 = vst [vmem:[%s2709_s29 + $0xea8] sm:$0xff] %v1706_v47 }
 0x1fe   : > { %1709 = vst [vmem:[%s2709_s29 + $0xeb0] sm:$0xff] %v1708_v48  ;;  %1711 = vst [vmem:[%s2709_s29 + $0xeb8] sm:$0xff] %v1710_v49 }
 0x1ff   : > { %1713 = vst [vmem:[%s2709_s29 + $0xf00] sm:$0xff] %v1712_v50  ;;  %1715 = vst [vmem:[%s2709_s29 + $0xf08] sm:$0xff] %v1714_v51 }
 0x200   : > { %1717 = vst [vmem:[%s2709_s29 + $0xf10] sm:$0xff] %v1716_v52  ;;  %1719 = vst [vmem:[%s2709_s29 + $0xf18] sm:$0xff] %v1718_v53 }
 0x201   : > { %1721 = vst [vmem:[%s2709_s29 + $0xf60] sm:$0xff] %v1720_v54  ;;  %1723 = vst [vmem:[%s2709_s29 + $0xf68] sm:$0xff] %v1722_v55 }
 0x202   : > { %1725 = vst [vmem:[%s2709_s29 + $0xf70] sm:$0xff] %v1724_v56  ;;  %1727 = vst [vmem:[%s2709_s29 + $0xf78] sm:$0xff] %v1726_v57 }
 0x203   : > { %1729 = vst [vmem:[%s2709_s29 + $0xfc0] sm:$0xff] %v1728_v58  ;;  %1731 = vst [vmem:[%s2709_s29 + $0xfc8] sm:$0xff] %v1730_v59 }
 0x204   : > { %1733 = vst [vmem:[%s2709_s29 + $0xfd0] sm:$0xff] %v1732_v60  ;;  %1735 = vst [vmem:[%s2709_s29 + $0xfd8] sm:$0xff] %v1734_v61 }
 0x205 PF: > { %s13_s16 = sadd.s32 1, %s2052_s16   ;;  %s3072_s12 = smov %s2040_s13 }
 0x206   : > { %p10_p12 = scmp.ge.s32.totalorder %s13_s16, 5   ;;  %s3073_s13 = smov %s2115_s22 }
 0x207   : > { %s3074_s14 = smov %s2048_s15  ;;  %s3075_s15 = smov %s3077_s17 }
 0x208   :  { %12 = sbr.rel (!%p10_p12) target bundleno = 3 (0x3), region = 119 }

// kernel: _lambda_.19
= control target key start
LH: loop header
LB: loop body
LE: loop exit
PB: predicated region body
PF: predicated region fallthrough
CT: control target
= control target key end

     0   :  { %s1306_s12 = smov 0   ;;  %s1308_s13 = smov 0   ;;  %s1536_s0 = inlined_call_operand.vmem [shape: bf16[2048,128], index: 0, kind: input, shape index: {}]   ;;  %s1537_s1 = inlined_call_operand.vmem [shape: bf16[128,128], index: 1, kind: input, shape index: {}]   ;;  %s1538_s2 = inlined_call_operand.vmem [shape: f32[1,128], index: 2, kind: input, shape index: {}]   ;;  %s1539_s3 = inlined_call_operand.vmem [shape: f32[2048,128], index: 3, kind: output, shape index: {}]  }
   0x1   :  { %s1310_s14 = smov 0  }
   0x2 LB: > { %s25_s15 = sadd.s32 1, %s1280_s13  ;;  %p1014_p0 = scmp.ge.s32.totalorder %s1284_s14, 1  ;;  %s1284_s14 = sphi %s1310_s14, %s13_s14   ;;  %s1280_s13 = sphi %s1308_s13, %s1541_s13   ;;  %s1276_s12 = sphi %s1306_s12, %s1540_s12  }
   0x3   : > { %p27_p1 = scmp.ge.s32.totalorder %s25_s15, 4  ;;  %p169_p2 = scmp.lt.s32.totalorder %s1284_s14, 5 }
   0x5   : > { %s1543_s15 = smov (%p27_p1, %s25_s15), 0  ;;  %p170_p3 = pnand %p1014_p0, %p169_p2 }
   0x6   : > { %s1015_s18 = sshll.u32 (!%p170_p3), %s1276_s12, 6 }
   0x7   : > { %173 = sbr.rel (%p170_p3) target bundleno = 303 (0x12f), region = 32  ;;  %p204_p4 = scmp.lt.s32.totalorder (!%p170_p3), %s1015_s18, 255 }
   0xc   : > { %v1222_v0 = vld [vmem:[%s1537_s1 + $0x38] sm:$0xff]   ;;  %v1223_v1 = vld [vmem:[%s1537_s1 + $0x30] sm:$0xff]   ;;  %s1545_s18 = smov (!%p204_p4, %s1015_s18), 255  ;;  %v1224_v2 = vld [vmem:[%s1537_s1 + $0x28] sm:$0xff]  }
   0xd   : > { %1102 = vmatprep.subr.bf16.mxu0 %v1222_v0  ;;  %1182 = vmatprep.subr.bf16.mxu1 %v1222_v0  ;;  %s1016_s23 = sshll.u32 %s1545_s18, 2  ;;  %v1225_v3 = vld [vmem:[%s1537_s1 + $0x20] sm:$0xff]   ;;  %v1226_v6 = vld [vmem:[%s1537_s1 + $0x18] sm:$0xff]   ;;  %v1227_v7 = vld [vmem:[%s1537_s1 + $0x10] sm:$0xff]   ;;  %s1018_s10 = sshll.u32 %s1545_s18, 3 }
   0xe   : > { %1103 = vmatpush3.bf16.msra.mxu0 %v1222_v0  ;;  %1190 = vmatpush3.bf16.msra.mxu1 %v1222_v0  ;;  %s1339_s26 = scalar_lea.vmem %s1536_s0, %s1016_s23  ;;  %v1228_v8 = vld [vmem:[%s1537_s1 + $0x8] sm:$0xff]   ;;  %v1229_v9 = vld [vmem:[%s1537_s1] sm:$0xff]   ;;  %s1397_s19 = scalar_lea.vmem %s1539_s3, %s1018_s10 }
   0xf   : > { %1104 = vmatprep.subr.bf16.mxu0 %v1223_v1  ;;  %1183 = vmatprep.subr.bf16.mxu1 %v1223_v1  ;;  %v1230_v4 = vld [vmem:[%s1339_s26] sm:$0xff]   ;;  %v1232_v10 = vld [vmem:[%s1339_s26 + $0x8] sm:$0xff]   ;;  %v1234_v12 = vld [vmem:[%s1339_s26 + $0x10] sm:$0xff]  }
  0x10   : > { %v1231_v5 = vld [vmem:[%s1339_s26 + $0x80] sm:$0xff]   ;;  %1118 = vmatprep.mubr.bf16.mxu0 %v1230_v4  ;;  %v1233_v11 = vld [vmem:[%s1339_s26 + $0x88] sm:$0xff]   ;;  %v1235_v13 = vld [vmem:[%s1339_s26 + $0x90] sm:$0xff]  }
  0x11   : > { %1150 = vmatprep.mubr.bf16.mxu1 %v1231_v5  ;;  %v1236_v14 = vld [vmem:[%s1339_s26 + $0x18] sm:$0xff]   ;;  %v1238_v16 = vld [vmem:[%s1339_s26 + $0x20] sm:$0xff]   ;;  %v1240_v18 = vld [vmem:[%s1339_s26 + $0x28] sm:$0xff]  }
  0x12   : > { %1105 = vmatpush3.bf16.msra.mxu0 %v1223_v1  ;;  %1191 = vmatpush3.bf16.msra.mxu1 %v1223_v1  ;;  %v1237_v15 = vld [vmem:[%s1339_s26 + $0x98] sm:$0xff]   ;;  %v1239_v17 = vld [vmem:[%s1339_s26 + $0xa0] sm:$0xff]   ;;  %v1241_v19 = vld [vmem:[%s1339_s26 + $0xa8] sm:$0xff]  }
  0x13   : > { %1106 = vmatprep.subr.bf16.mxu0 %v1224_v2  ;;  %1184 = vmatprep.subr.bf16.mxu1 %v1224_v2  ;;  %v1242_v20 = vld [vmem:[%s1339_s26 + $0x30] sm:$0xff]   ;;  %v1244_v22 = vld [vmem:[%s1339_s26 + $0x38] sm:$0xff]   ;;  %v1246_v24 = vld [vmem:[%s1339_s26 + $0x40] sm:$0xff]  }
  0x14   : > { %v1243_v21 = vld [vmem:[%s1339_s26 + $0xb0] sm:$0xff]   ;;  %v1245_v23 = vld [vmem:[%s1339_s26 + $0xb8] sm:$0xff]   ;;  %v1247_v25 = vld [vmem:[%s1339_s26 + $0xc0] sm:$0xff]  }
  0x15   : > { %v1248_v26 = vld [vmem:[%s1339_s26 + $0x48] sm:$0xff]   ;;  %v1250_v28 = vld [vmem:[%s1339_s26 + $0x50] sm:$0xff]   ;;  %v1252_v30 = vld [vmem:[%s1339_s26 + $0x58] sm:$0xff]  }
  0x16   : > { %1107 = vmatpush3.bf16.msra.mxu0 %v1224_v2  ;;  %1192 = vmatpush3.bf16.msra.mxu1 %v1224_v2  ;;  %v1249_v27 = vld [vmem:[%s1339_s26 + $0xc8] sm:$0xff]   ;;  %v1251_v29 = vld [vmem:[%s1339_s26 + $0xd0] sm:$0xff]   ;;  %v1253_v31 = vld [vmem:[%s1339_s26 + $0xd8] sm:$0xff]  }
  0x17   : > { %1108 = vmatprep.subr.bf16.mxu0 %v1225_v3  ;;  %1185 = vmatprep.subr.bf16.mxu1 %v1225_v3  ;;  %v1254_v32 = vld [vmem:[%s1339_s26 + $0x60] sm:$0xff]   ;;  %v1256_v34 = vld [vmem:[%s1339_s26 + $0x68] sm:$0xff]   ;;  %v1258_v36 = vld [vmem:[%s1339_s26 + $0x70] sm:$0xff]  }
  0x18   : > { %v1255_v33 = vld [vmem:[%s1339_s26 + $0xe0] sm:$0xff]   ;;  %v1257_v35 = vld [vmem:[%s1339_s26 + $0xe8] sm:$0xff]   ;;  %v1259_v37 = vld [vmem:[%s1339_s26 + $0xf0] sm:$0xff]  }
  0x19   : > { %v1260_v38 = vld [vmem:[%s1339_s26 + $0x78] sm:$0xff]   ;;  %v1392_v40 = vld [vmem:[%s1538_s2] ss:$0 sm:$0xff] }
  0x1a   : > { %1109 = vmatpush3.bf16.msra.mxu0 %v1225_v3  ;;  %1193 = vmatpush3.bf16.msra.mxu1 %v1225_v3  ;;  %v1261_v39 = vld [vmem:[%s1339_s26 + $0xf8] sm:$0xff]  }
  0x1b   : > { %1110 = vmatprep.subr.bf16.mxu0 %v1226_v6  ;;  %1186 = vmatprep.subr.bf16.mxu1 %v1226_v6 }
  0x1e   : > { %1111 = vmatpush3.bf16.msra.mxu0 %v1226_v6  ;;  %1194 = vmatpush3.bf16.msra.mxu1 %v1226_v6 }
  0x1f   : > { %1112 = vmatprep.subr.bf16.mxu0 %v1227_v7  ;;  %1187 = vmatprep.subr.bf16.mxu1 %v1227_v7 }
  0x22   : > { %1113 = vmatpush3.bf16.msra.mxu0 %v1227_v7  ;;  %1195 = vmatpush3.bf16.msra.mxu1 %v1227_v7 }
  0x23   : > { %1114 = vmatprep.subr.bf16.mxu0 %v1228_v8  ;;  %1188 = vmatprep.subr.bf16.mxu1 %v1228_v8 }
  0x26   : > { %1115 = vmatpush3.bf16.msra.mxu0 %v1228_v8  ;;  %1196 = vmatpush3.bf16.msra.mxu1 %v1228_v8 }
  0x27   : > { %1116 = vmatprep.subr.bf16.mxu0 %v1229_v9  ;;  %1189 = vmatprep.subr.bf16.mxu1 %v1229_v9 }
  0x2a   : > { %1117 = vmatpush3.bf16.msra.mxu0 %v1229_v9  ;;  %1197 = vmatpush3.bf16.msra.mxu1 %v1229_v9 }
  0x2d   : > { %1119 = vmatmul.mubr.bf16.vlgmr.msra.gmra.mxu0 %v1232_v10  ;;  %1151 = vmatmul.mubr.bf16.vlgmr.msra.gmra.mxu1 %v1233_v11 }
  0x2e   : > { %1122 = vmatprep.mubr.bf16.mxu0 %v1234_v12  ;;  %1154 = vmatprep.mubr.bf16.mxu1 %v1235_v13 }
  0x35   : > { %1123 = vmatmul.mubr.bf16.gmra.mxu0 %v1236_v14  ;;  %1155 = vmatmul.mubr.bf16.gmra.mxu1 %v1237_v15 }
  0x36   : > { %1126 = vmatprep.mubr.bf16.mxu0 %v1238_v16  ;;  %1158 = vmatprep.mubr.bf16.mxu1 %v1239_v17 }
  0x3d   : > { %1127 = vmatmul.mubr.bf16.gmra.mxu0 %v1240_v18  ;;  %1159 = vmatmul.mubr.bf16.gmra.mxu1 %v1241_v19 }
  0x3e   : > { %1130 = vmatprep.mubr.bf16.mxu0 %v1242_v20  ;;  %1162 = vmatprep.mubr.bf16.mxu1 %v1243_v21 }
  0x45   : > { %1131 = vmatmul.mubr.bf16.gmra.mxu0 %v1244_v22  ;;  %1163 = vmatmul.mubr.bf16.gmra.mxu1 %v1245_v23 }
  0x46   : > { %1134 = vmatprep.mubr.bf16.mxu0 %v1246_v24  ;;  %1166 = vmatprep.mubr.bf16.mxu1 %v1247_v25 }
  0x4d   : > { %1135 = vmatmul.mubr.bf16.gmra.mxu0 %v1248_v26  ;;  %1167 = vmatmul.mubr.bf16.gmra.mxu1 %v1249_v27 }
  0x4e   : > { %1138 = vmatprep.mubr.bf16.mxu0 %v1250_v28  ;;  %1170 = vmatprep.mubr.bf16.mxu1 %v1251_v29 }
  0x55   : > { %1139 = vmatmul.mubr.bf16.gmra.mxu0 %v1252_v30  ;;  %1171 = vmatmul.mubr.bf16.gmra.mxu1 %v1253_v31 }
  0x56   : > { %1142 = vmatprep.mubr.bf16.mxu0 %v1254_v32  ;;  %1174 = vmatprep.mubr.bf16.mxu1 %v1255_v33 }
  0x5d   : > { %1143 = vmatmul.mubr.bf16.gmra.mxu0 %v1256_v34  ;;  %1175 = vmatmul.mubr.bf16.gmra.mxu1 %v1257_v35 }
  0x5e   : > { %1146 = vmatprep.mubr.bf16.mxu0 %v1258_v36  ;;  %1178 = vmatprep.mubr.bf16.mxu1 %v1259_v37 }
  0x65   : > { %1147 = vmatmul.mubr.bf16.gmra.mxu0 %v1260_v38  ;;  %1179 = vmatmul.mubr.bf16.gmra.mxu1 %v1261_v39 }
  0xed   : > { %v1120_v41 = vpop.f32.mrf.mxu0  ;;  %v1152_v42 = vpop.f32.mrf.mxu1 }
  0xee   : > { %v596_v43 = vadd.f32 %v1120_v41, %v1392_v40  ;;  %v724_v44 = vadd.f32 %v1152_v42, %v1392_v40 }
  0xef   : > { %v587_v45 = vpop.f32.mrf.mxu0  ;;  %v715_v46 = vpop.f32.mrf.mxu1 }
  0xf0   : > { %844 = vst [vmem:[%s1397_s19 + $0x10] sm:$0xff] %v596_v43  ;;  %876 = vst [vmem:[%s1397_s19 + $0x110] sm:$0xff] %v724_v44  ;;  %v588_v47 = vadd.f32 %v1392_v40, %v587_v45  ;;  %v716_v48 = vadd.f32 %v1392_v40, %v715_v46 }
  0xf1   : > { %v1121_v49 = vpop.f32.mrf.mxu0  ;;  %v1153_v50 = vpop.f32.mrf.mxu1 }
  0xf2   : > { %842 = vst [vmem:[%s1397_s19] sm:$0xff] %v588_v47  ;;  %874 = vst [vmem:[%s1397_s19 + $0x100] sm:$0xff] %v716_v48  ;;  %v599_v51 = vadd.f32 %v1121_v49, %v1392_v40  ;;  %v727_v52 = vadd.f32 %v1153_v50, %v1392_v40 }
  0xf3   : > { %v590_v53 = vpop.f32.mrf.mxu0  ;;  %v718_v54 = vpop.f32.mrf.mxu1 }
  0xf4   : > { %845 = vst [vmem:[%s1397_s19 + $0x18] sm:$0xff] %v599_v51  ;;  %877 = vst [vmem:[%s1397_s19 + $0x118] sm:$0xff] %v727_v52  ;;  %v591_v55 = vadd.f32 %v1392_v40, %v590_v53  ;;  %v719_v56 = vadd.f32 %v1392_v40, %v718_v54 }
  0xf5   : > { %v1124_v57 = vpop.f32.mrf.mxu0  ;;  %v1156_v58 = vpop.f32.mrf.mxu1 }
  0xf6   : > { %843 = vst [vmem:[%s1397_s19 + $0x8] sm:$0xff] %v591_v55  ;;  %875 = vst [vmem:[%s1397_s19 + $0x108] sm:$0xff] %v719_v56  ;;  %v612_v59 = vadd.f32 %v1124_v57, %v1392_v40  ;;  %v740_v60 = vadd.f32 %v1156_v58, %v1392_v40 }
  0xf7   : > { %v603_v61 = vpop.f32.mrf.mxu0  ;;  %v731_v62 = vpop.f32.mrf.mxu1 }
  0xf8   : > { %848 = vst [vmem:[%s1397_s19 + $0x30] sm:$0xff] %v612_v59  ;;  %880 = vst [vmem:[%s1397_s19 + $0x130] sm:$0xff] %v740_v60  ;;  %v604_v63 = vadd.f32 %v1392_v40, %v603_v61  ;;  %v732_v0 = vadd.f32 %v1392_v40, %v731_v62 }
  0xf9   : > { %v1125_v1 = vpop.f32.mrf.mxu0  ;;  %v1157_v2 = vpop.f32.mrf.mxu1 }
  0xfa   : > { %846 = vst [vmem:[%s1397_s19 + $0x20] sm:$0xff] %v604_v63  ;;  %878 = vst [vmem:[%s1397_s19 + $0x120] sm:$0xff] %v732_v0  ;;  %v615_v3 = vadd.f32 %v1125_v1, %v1392_v40  ;;  %v743_v4 = vadd.f32 %v1157_v2, %v1392_v40 }
  0xfb   : > { %v606_v5 = vpop.f32.mrf.mxu0  ;;  %v734_v6 = vpop.f32.mrf.mxu1 }
  0xfc   : > { %849 = vst [vmem:[%s1397_s19 + $0x38] sm:$0xff] %v615_v3  ;;  %881 = vst [vmem:[%s1397_s19 + $0x138] sm:$0xff] %v743_v4  ;;  %v607_v7 = vadd.f32 %v1392_v40, %v606_v5  ;;  %v735_v8 = vadd.f32 %v1392_v40, %v734_v6 }
  0xfd   : > { %v1128_v9 = vpop.f32.mrf.mxu0  ;;  %v1160_v10 = vpop.f32.mrf.mxu1 }
  0xfe   : > { %847 = vst [vmem:[%s1397_s19 + $0x28] sm:$0xff] %v607_v7  ;;  %879 = vst [vmem:[%s1397_s19 + $0x128] sm:$0xff] %v735_v8  ;;  %v628_v11 = vadd.f32 %v1128_v9, %v1392_v40  ;;  %v756_v12 = vadd.f32 %v1160_v10, %v1392_v40 }
  0xff   : > { %v619_v13 = vpop.f32.mrf.mxu0  ;;  %v747_v14 = vpop.f32.mrf.mxu1 }
 0x100   : > { %852 = vst [vmem:[%s1397_s19 + $0x50] sm:$0xff] %v628_v11  ;;  %884 = vst [vmem:[%s1397_s19 + $0x150] sm:$0xff] %v756_v12  ;;  %v620_v15 = vadd.f32 %v1392_v40, %v619_v13  ;;  %v748_v16 = vadd.f32 %v1392_v40, %v747_v14 }
 0x101   : > { %v1129_v17 = vpop.f32.mrf.mxu0  ;;  %v1161_v18 = vpop.f32.mrf.mxu1 }
 0x102   : > { %850 = vst [vmem:[%s1397_s19 + $0x40] sm:$0xff] %v620_v15  ;;  %882 = vst [vmem:[%s1397_s19 + $0x140] sm:$0xff] %v748_v16  ;;  %v631_v19 = vadd.f32 %v1129_v17, %v1392_v40  ;;  %v759_v20 = vadd.f32 %v1161_v18, %v1392_v40 }
 0x103   : > { %v622_v21 = vpop.f32.mrf.mxu0  ;;  %v750_v22 = vpop.f32.mrf.mxu1 }
 0x104   : > { %853 = vst [vmem:[%s1397_s19 + $0x58] sm:$0xff] %v631_v19  ;;  %885 = vst [vmem:[%s1397_s19 + $0x158] sm:$0xff] %v759_v20  ;;  %v623_v23 = vadd.f32 %v1392_v40, %v622_v21  ;;  %v751_v24 = vadd.f32 %v1392_v40, %v750_v22 }
 0x105   : > { %v1132_v25 = vpop.f32.mrf.mxu0  ;;  %v1164_v26 = vpop.f32.mrf.mxu1 }
 0x106   : > { %851 = vst [vmem:[%s1397_s19 + $0x48] sm:$0xff] %v623_v23  ;;  %883 = vst [vmem:[%s1397_s19 + $0x148] sm:$0xff] %v751_v24  ;;  %v644_v27 = vadd.f32 %v1132_v25, %v1392_v40  ;;  %v772_v28 = vadd.f32 %v1164_v26, %v1392_v40 }
 0x107   : > { %v635_v29 = vpop.f32.mrf.mxu0  ;;  %v763_v30 = vpop.f32.mrf.mxu1 }
 0x108   : > { %856 = vst [vmem:[%s1397_s19 + $0x70] sm:$0xff] %v644_v27  ;;  %888 = vst [vmem:[%s1397_s19 + $0x170] sm:$0xff] %v772_v28  ;;  %v636_v31 = vadd.f32 %v1392_v40, %v635_v29  ;;  %v764_v32 = vadd.f32 %v1392_v40, %v763_v30 }
 0x109   : > { %v1133_v33 = vpop.f32.mrf.mxu0  ;;  %v1165_v34 = vpop.f32.mrf.mxu1 }
 0x10a   : > { %854 = vst [vmem:[%s1397_s19 + $0x60] sm:$0xff] %v636_v31  ;;  %886 = vst [vmem:[%s1397_s19 + $0x160] sm:$0xff] %v764_v32  ;;  %v647_v35 = vadd.f32 %v1133_v33, %v1392_v40  ;;  %v775_v36 = vadd.f32 %v1165_v34, %v1392_v40 }
 0x10b   : > { %v638_v37 = vpop.f32.mrf.mxu0  ;;  %v766_v38 = vpop.f32.mrf.mxu1 }
 0x10c   : > { %857 = vst [vmem:[%s1397_s19 + $0x78] sm:$0xff] %v647_v35  ;;  %889 = vst [vmem:[%s1397_s19 + $0x178] sm:$0xff] %v775_v36  ;;  %v639_v39 = vadd.f32 %v1392_v40, %v638_v37  ;;  %v767_v41 = vadd.f32 %v1392_v40, %v766_v38 }
 0x10d   : > { %v1136_v42 = vpop.f32.mrf.mxu0  ;;  %v1168_v43 = vpop.f32.mrf.mxu1 }
 0x10e   : > { %855 = vst [vmem:[%s1397_s19 + $0x68] sm:$0xff] %v639_v39  ;;  %887 = vst [vmem:[%s1397_s19 + $0x168] sm:$0xff] %v767_v41  ;;  %v660_v44 = vadd.f32 %v1136_v42, %v1392_v40  ;;  %v788_v45 = vadd.f32 %v1168_v43, %v1392_v40 }
 0x10f   : > { %v651_v46 = vpop.f32.mrf.mxu0  ;;  %v779_v47 = vpop.f32.mrf.mxu1 }
 0x110   : > { %860 = vst [vmem:[%s1397_s19 + $0x90] sm:$0xff] %v660_v44  ;;  %892 = vst [vmem:[%s1397_s19 + $0x190] sm:$0xff] %v788_v45  ;;  %v652_v48 = vadd.f32 %v1392_v40, %v651_v46  ;;  %v780_v49 = vadd.f32 %v1392_v40, %v779_v47 }
 0x111   : > { %v1137_v50 = vpop.f32.mrf.mxu0  ;;  %v1169_v51 = vpop.f32.mrf.mxu1 }
 0x112   : > { %858 = vst [vmem:[%s1397_s19 + $0x80] sm:$0xff] %v652_v48  ;;  %890 = vst [vmem:[%s1397_s19 + $0x180] sm:$0xff] %v780_v49  ;;  %v663_v52 = vadd.f32 %v1137_v50, %v1392_v40  ;;  %v791_v53 = vadd.f32 %v1169_v51, %v1392_v40 }
 0x113   : > { %v654_v54 = vpop.f32.mrf.mxu0  ;;  %v782_v55 = vpop.f32.mrf.mxu1 }
 0x114   : > { %861 = vst [vmem:[%s1397_s19 + $0x98] sm:$0xff] %v663_v52  ;;  %893 = vst [vmem:[%s1397_s19 + $0x198] sm:$0xff] %v791_v53  ;;  %v655_v56 = vadd.f32 %v1392_v40, %v654_v54  ;;  %v783_v57 = vadd.f32 %v1392_v40, %v782_v55 }
 0x115   : > { %v1140_v58 = vpop.f32.mrf.mxu0  ;;  %v1172_v59 = vpop.f32.mrf.mxu1 }
 0x116   : > { %859 = vst [vmem:[%s1397_s19 + $0x88] sm:$0xff] %v655_v56  ;;  %891 = vst [vmem:[%s1397_s19 + $0x188] sm:$0xff] %v783_v57  ;;  %v676_v60 = vadd.f32 %v1140_v58, %v1392_v40  ;;  %v804_v61 = vadd.f32 %v1172_v59, %v1392_v40 }
 0x117   : > { %v667_v62 = vpop.f32.mrf.mxu0  ;;  %v795_v63 = vpop.f32.mrf.mxu1 }
 0x118   : > { %864 = vst [vmem:[%s1397_s19 + $0xb0] sm:$0xff] %v676_v60  ;;  %896 = vst [vmem:[%s1397_s19 + $0x1b0] sm:$0xff] %v804_v61  ;;  %v668_v0 = vadd.f32 %v1392_v40, %v667_v62  ;;  %v796_v1 = vadd.f32 %v1392_v40, %v795_v63 }
 0x119   : > { %v1141_v2 = vpop.f32.mrf.mxu0  ;;  %v1173_v3 = vpop.f32.mrf.mxu1 }
 0x11a   : > { %862 = vst [vmem:[%s1397_s19 + $0xa0] sm:$0xff] %v668_v0  ;;  %894 = vst [vmem:[%s1397_s19 + $0x1a0] sm:$0xff] %v796_v1  ;;  %v679_v4 = vadd.f32 %v1141_v2, %v1392_v40  ;;  %v807_v5 = vadd.f32 %v1173_v3, %v1392_v40 }
 0x11b   : > { %v670_v6 = vpop.f32.mrf.mxu0  ;;  %v798_v7 = vpop.f32.mrf.mxu1 }
 0x11c   : > { %865 = vst [vmem:[%s1397_s19 + $0xb8] sm:$0xff] %v679_v4  ;;  %897 = vst [vmem:[%s1397_s19 + $0x1b8] sm:$0xff] %v807_v5  ;;  %v671_v8 = vadd.f32 %v1392_v40, %v670_v6  ;;  %v799_v9 = vadd.f32 %v1392_v40, %v798_v7 }
 0x11d   : > { %v1144_v10 = vpop.f32.mrf.mxu0  ;;  %v1176_v11 = vpop.f32.mrf.mxu1 }
 0x11e   : > { %863 = vst [vmem:[%s1397_s19 + $0xa8] sm:$0xff] %v671_v8  ;;  %895 = vst [vmem:[%s1397_s19 + $0x1a8] sm:$0xff] %v799_v9  ;;  %v692_v12 = vadd.f32 %v1144_v10, %v1392_v40  ;;  %v820_v13 = vadd.f32 %v1176_v11, %v1392_v40 }
 0x11f   : > { %v683_v14 = vpop.f32.mrf.mxu0  ;;  %v811_v15 = vpop.f32.mrf.mxu1 }
 0x120   : > { %868 = vst [vmem:[%s1397_s19 + $0xd0] sm:$0xff] %v692_v12  ;;  %900 = vst [vmem:[%s1397_s19 + $0x1d0] sm:$0xff] %v820_v13  ;;  %v684_v16 = vadd.f32 %v1392_v40, %v683_v14  ;;  %v812_v17 = vadd.f32 %v1392_v40, %v811_v15 }
 0x121   : > { %v1145_v18 = vpop.f32.mrf.mxu0  ;;  %v1177_v19 = vpop.f32.mrf.mxu1 }
 0x122   : > { %866 = vst [vmem:[%s1397_s19 + $0xc0] sm:$0xff] %v684_v16  ;;  %898 = vst [vmem:[%s1397_s19 + $0x1c0] sm:$0xff] %v812_v17  ;;  %v695_v20 = vadd.f32 %v1145_v18, %v1392_v40  ;;  %v823_v21 = vadd.f32 %v1177_v19, %v1392_v40 }
 0x123   : > { %v686_v22 = vpop.f32.mrf.mxu0  ;;  %v814_v23 = vpop.f32.mrf.mxu1 }
 0x124   : > { %869 = vst [vmem:[%s1397_s19 + $0xd8] sm:$0xff] %v695_v20  ;;  %901 = vst [vmem:[%s1397_s19 + $0x1d8] sm:$0xff] %v823_v21  ;;  %v687_v24 = vadd.f32 %v1392_v40, %v686_v22  ;;  %v815_v25 = vadd.f32 %v1392_v40, %v814_v23 }
 0x125   : > { %v1148_v26 = vpop.f32.mrf.mxu0  ;;  %v1180_v27 = vpop.f32.mrf.mxu1 }
 0x126   : > { %867 = vst [vmem:[%s1397_s19 + $0xc8] sm:$0xff] %v687_v24  ;;  %899 = vst [vmem:[%s1397_s19 + $0x1c8] sm:$0xff] %v815_v25  ;;  %v708_v28 = vadd.f32 %v1148_v26, %v1392_v40  ;;  %v836_v29 = vadd.f32 %v1180_v27, %v1392_v40 }
 0x127   : > { %v699_v30 = vpop.f32.mrf.mxu0  ;;  %v827_v31 = vpop.f32.mrf.mxu1 }
 0x128   : > { %872 = vst [vmem:[%s1397_s19 + $0xf0] sm:$0xff] %v708_v28  ;;  %904 = vst [vmem:[%s1397_s19 + $0x1f0] sm:$0xff] %v836_v29  ;;  %v700_v32 = vadd.f32 %v1392_v40, %v699_v30  ;;  %v828_v33 = vadd.f32 %v1392_v40, %v827_v31 }
 0x129   : > { %v1149_v34 = vpop.f32.mrf.mxu0  ;;  %v1181_v35 = vpop.f32.mrf.mxu1 }
 0x12a   : > { %870 = vst [vmem:[%s1397_s19 + $0xe0] sm:$0xff] %v700_v32  ;;  %902 = vst [vmem:[%s1397_s19 + $0x1e0] sm:$0xff] %v828_v33  ;;  %v711_v36 = vadd.f32 %v1149_v34, %v1392_v40  ;;  %v839_v37 = vadd.f32 %v1181_v35, %v1392_v40 }
 0x12b   : > { %v702_v38 = vpop.f32.mrf.mxu0  ;;  %v830_v39 = vpop.f32.mrf.mxu1 }
 0x12c   : > { %873 = vst [vmem:[%s1397_s19 + $0xf8] sm:$0xff] %v711_v36  ;;  %905 = vst [vmem:[%s1397_s19 + $0x1f8] sm:$0xff] %v839_v37  ;;  %v703_v41 = vadd.f32 %v1392_v40, %v702_v38  ;;  %v831_v42 = vadd.f32 %v1392_v40, %v830_v39 }
 0x12e   : > { %871 = vst [vmem:[%s1397_s19 + $0xe8] sm:$0xff] %v703_v41  ;;  %903 = vst [vmem:[%s1397_s19 + $0x1e8] sm:$0xff] %v831_v42 }
 0x12f PF: > { %s13_s14 = sadd.s32 1, %s1284_s14   ;;  %s1540_s12 = smov %s1280_s13 }
 0x130   : > { %p10_p5 = scmp.ge.s32.totalorder %s13_s14, 6   ;;  %s1541_s13 = smov %s1543_s15 }
 0x132   :  { %12 = sbr.rel (!%p10_p5) target bundleno = 2 (0x2), region = 68 }

</bundles_post_ra>
